<compile_context>
chip_gen: v6e
topology: v6e:2x2x1
jax: 0.10.0
libtpu: 0.0.40
codegen_flags: <defaults>
</compile_context>

<pallas_src>
import functools

import jax
import jax.numpy as jnp
from jax.experimental import pallas as pl
from jax.experimental.pallas import tpu as pltpu


# ----------------------------------------------------------------------------
# In-kernel helpers
# ----------------------------------------------------------------------------
def _conv3x3(xp, w_ref, b_ref, H, W, relu=True):
    """3x3 'same' convolution on a zero-padded NHWC value.

    xp:    (1, H+2, W+2, Cin) value (f32)
    w_ref: (3, 3, Cin, Cout)  bf16 ref
    b_ref: (1, Cout)          f32 ref
    returns (H*W, Cout) f32
    """
    Cin = xp.shape[-1]
    Cout = w_ref.shape[-1]
    acc = jnp.zeros((H * W, Cout), jnp.float32)
    # Conv as a sum of 9 shifted matmuls: bf16 MXU inputs, f32 accumulation.
    for dy in range(3):
        for dx in range(3):
            patch = xp[:, dy:dy + H, dx:dx + W, :].reshape(H * W, Cin)
            acc = acc + jnp.dot(patch.astype(jnp.bfloat16), w_ref[dy, dx],
                                preferred_element_type=jnp.float32)
    acc = acc + b_ref[...]
    if relu:
        acc = jnp.maximum(acc, 0.0)
    return acc


# ----------------------------------------------------------------------------
# Fully fused FR-UNet-style sub-model kernel (one grid step = one batch item)
# ----------------------------------------------------------------------------
def _fr_unet_kernel(xp_ref, w1_ref, b1_ref, w2_ref, b2_ref, wo_ref, bo_ref,
                    y_ref, desc_ref, *rest, H, W, emit_gate):
    """conv3x3+ReLU -> conv3x3+ReLU -> 1x1 head + GAP (+ optional fused gate).

    xp_ref:   (1, H+2, W+2, Cin) zero-padded input block
    y_ref:    (1, H, W, Cout)    logits
    desc_ref: (1, 1, F1)         GAP descriptor
    xg_ref:   (1, H+2, W+2, Cin) gated, zero-padded input for the next stage
    f1p_ref:  (1, H+2, W+2, F1)  VMEM scratch holding padded f1 (never HBM)
    """
    if emit_gate:
        xg_ref, f1p_ref = rest
    else:
        (f1p_ref,) = rest

    Cin = xp_ref.shape[-1]
    F1 = w1_ref.shape[-1]
    Cout = wo_ref.shape[-1]

    xp = xp_ref[...]                                     # (1, H+2, W+2, Cin)

    # ---- conv1: 3x3 + ReLU
    f1 = _conv3x3(xp, w1_ref, b1_ref, H, W)              # (H*W, F1) f32

    # ---- stage zero-padded f1 in VMEM scratch so conv2's halo never hits HBM
    f1p_ref[...] = jnp.zeros_like(f1p_ref)
    f1p_ref[:, pl.ds(1, H), pl.ds(1, W), :] = (
        f1.reshape(1, H, W, F1).astype(f1p_ref.dtype))

    # ---- conv2: 3x3 + ReLU
    f2 = _conv3x3(f1p_ref[...], w2_ref, b2_ref, H, W)    # (H*W, F1) f32

    # ---- 1x1 head (fused epilogue, f32)
    y = (jnp.dot(f2, wo_ref[...], preferred_element_type=jnp.float32)
         + bo_ref[...])                                  # (H*W, Cout)
    y_ref[...] = y.reshape(1, H, W, Cout)

    # ---- global-average-pool descriptor (fused epilogue, f32)
    desc_ref[...] = (jnp.sum(f2, axis=0, keepdims=True)
                     * (1.0 / (H * W))).reshape(1, 1, F1)

    # ---- training-time gate, emitted already zero-padded for the next stage
    if emit_gate:
        gate = 1.0 + jax.nn.sigmoid(y)                   # (H*W, 1)
        x_int = xp[:, 1:H + 1, 1:W + 1, :].reshape(H * W, Cin)
        xg_ref[...] = jnp.zeros_like(xg_ref)
        xg_ref[:, pl.ds(1, H), pl.ds(1, W), :] = (
            (gate * x_int).reshape(1, H, W, Cin))


def _fr_unet_block(x_pad, p, *, emit_gate):
    """One fused pallas_call for a whole sub-model (grid over batch)."""
    N, Hp, Wp, Cin = x_pad.shape
    H, W = Hp - 2, Wp - 2
    F1 = p["w1"].shape[-1]
    Cout = p["wo"].shape[-1]

    kernel = functools.partial(_fr_unet_kernel, H=H, W=W, emit_gate=emit_gate)

    def full_spec(shape):
        return pl.BlockSpec(tuple(shape), lambda n, s=shape: (0,) * len(s))

    in_specs = [
        pl.BlockSpec((1, Hp, Wp, Cin), lambda n: (n, 0, 0, 0)),
        full_spec(p["w1"].shape), full_spec(p["b1"].shape),
        full_spec(p["w2"].shape), full_spec(p["b2"].shape),
        full_spec(p["wo"].shape), full_spec(p["bo"].shape),
    ]

    out_shapes = [
        jax.ShapeDtypeStruct((N, H, W, Cout), jnp.float32),   # logits
        jax.ShapeDtypeStruct((N, 1, F1), jnp.float32),        # GAP descriptor
    ]
    out_specs = [
        pl.BlockSpec((1, H, W, Cout), lambda n: (n, 0, 0, 0)),
        pl.BlockSpec((1, 1, F1), lambda n: (n, 0, 0)),
    ]
    if emit_gate:
        out_shapes.append(jax.ShapeDtypeStruct((N, Hp, Wp, Cin), jnp.float32))
        out_specs.append(pl.BlockSpec((1, Hp, Wp, Cin), lambda n: (n, 0, 0, 0)))

    return pl.pallas_call(
        kernel,
        grid=(N,),
        out_shape=tuple(out_shapes),
        in_specs=in_specs,
        out_specs=tuple(out_specs),
        scratch_shapes=[pltpu.VMEM((1, Hp, Wp, F1), jnp.float32)],
        compiler_params=pltpu.CompilerParams(
            dimension_semantics=("parallel",)),   # both TCs on v7x
    )(x_pad, p["w1"], p["b1"], p["w2"], p["b2"], p["wo"], p["bo"])


# ----------------------------------------------------------------------------
# Parameters (synthetic, deterministic) + branch merging
# ----------------------------------------------------------------------------
def init_fr_unet_params(key, in_ch, feat):
    k1, k2, k3 = jax.random.split(key, 3)
    s = 0.05
    return {
        # conv weights stored bf16 (MXU inputs); biases / head kept f32.
        "w1": (s * jax.random.normal(k1, (3, 3, in_ch, feat))).astype(jnp.bfloat16),
        "b1": jnp.zeros((1, feat), jnp.float32),
        "w2": (s * jax.random.normal(k2, (3, 3, feat, feat))).astype(jnp.bfloat16),
        "b2": jnp.zeros((1, feat), jnp.float32),
        "wo": (s * jax.random.normal(k3, (feat, 1))).astype(jnp.float32),
        "bo": jnp.zeros((1, 1), jnp.float32),
    }


def _merge_branch_params(pa, pb):
    """Merge two independent branches into one kernel's weights.

    conv1 concatenates along Cout; conv2 and the 1x1 head become block
    diagonal so neither branch sees the other's features (identical math).
    """
    feat = pa["w1"].shape[-1]
    w1 = jnp.concatenate([pa["w1"], pb["w1"]], axis=-1)           # (3,3,Cin,2F)
    b1 = jnp.concatenate([pa["b1"], pb["b1"]], axis=-1)           # (1,2F)
    z2 = jnp.zeros((3, 3, feat, feat), pa["w2"].dtype)
    w2 = jnp.concatenate(
        [jnp.concatenate([pa["w2"], z2], axis=-1),
         jnp.concatenate([z2, pb["w2"]], axis=-1)], axis=2)       # (3,3,2F,2F)
    b2 = jnp.concatenate([pa["b2"], pb["b2"]], axis=-1)           # (1,2F)
    zo = jnp.zeros((feat, 1), pa["wo"].dtype)
    wo = jnp.concatenate(
        [jnp.concatenate([pa["wo"], zo], axis=-1),
         jnp.concatenate([zo, pb["wo"]], axis=-1)], axis=0)       # (2F,2)
    bo = jnp.concatenate([pa["bo"], pb["bo"]], axis=-1)           # (1,2)
    return {"w1": w1, "b1": b1, "w2": w2, "b2": b2, "wo": wo, "bo": bo}


# ----------------------------------------------------------------------------
# TRIPLE_FR_UNet forward
# ----------------------------------------------------------------------------
def triple_fr_unet_forward(params, x_nchw, training=True):
    """Forward pass matching TRIPLE_FR_UNet.forward (NCHW in / NCHW out)."""
    x = jnp.transpose(x_nchw, (0, 2, 3, 1))                # NCHW -> NHWC
    x_pad = jnp.pad(x, ((0, 0), (1, 1), (1, 1), (0, 0)))   # pad once, up front

    # --- vessel branch (gate fused into the kernel's epilogue) ---
    y_vessel, vessel_desc, xg_pad = _fr_unet_block(
        x_pad, params["vessel"], emit_gate=True)

    # x = (1 + sigmoid(y_vessel)) * x   only applied in training mode
    x2_pad = xg_pad if training else x_pad

    # --- bifurcation + cross branches fused into one kernel ---
    merged = _merge_branch_params(params["bifurcation"], params["cross"])
    y_bc, desc_bc = _fr_unet_block(x2_pad, merged, emit_gate=False)

    feat = params["bifurcation"]["w1"].shape[-1]
    to_nchw = lambda t: jnp.transpose(t, (0, 3, 1, 2))
    y_bif = to_nchw(y_bc[..., 0:1])
    y_cross = to_nchw(y_bc[..., 1:2])
    vessel_desc = vessel_desc[:, 0, :]
    bif_desc = desc_bc[:, 0, :feat]
    cross_desc = desc_bc[:, 0, feat:]
    return (to_nchw(y_vessel), y_bif, y_cross,
            vessel_desc, bif_desc, cross_desc)


# ----------------------------------------------------------------------------
# Main
# ----------------------------------------------------------------------------
if __name__ == "__main__":
    key = jax.random.PRNGKey(0)
    kx, kv, kb, kc = jax.random.split(key, 4)

    N, C, H, W = 2, 3, 16, 16
    FEAT = 16

    x = jax.random.normal(kx, (N, C, H, W), dtype=jnp.float32)

    params = {
        "vessel": init_fr_unet_params(kv, C, FEAT),
        "bifurcation": init_fr_unet_params(kb, C, FEAT),
        "cross": init_fr_unet_params(kc, C, FEAT),
    }

    fwd = jax.jit(triple_fr_unet_forward, static_argnames=("training",))
    outs = fwd(params, x, training=True)
    outs = jax.block_until_ready(outs)

    y_vessel, y_bif, y_cross, vdesc, bdesc, cdesc = outs
    assert y_vessel.shape == (N, 1, H, W)
    assert y_bif.shape == (N, 1, H, W)
    assert y_cross.shape == (N, 1, H, W)
    assert vdesc.shape == (N, FEAT)
    assert bdesc.shape == (N, FEAT)
    assert cdesc.shape == (N, FEAT)
    assert all(bool(jnp.all(jnp.isfinite(o))) for o in outs)

    print("KERNEL_OK")
</pallas_src>

<mosaic_0001>
module attributes {stable_mosaic.version = 11 : i64} {
  func.func @_fr_unet_kernel(%arg0: i32, %arg1: memref<1x18x18x3xf32, #tpu.memory_space<vmem>>, %arg2: memref<3x3x3x16xbf16, #tpu.memory_space<vmem>>, %arg3: memref<1x16xf32, #tpu.memory_space<vmem>>, %arg4: memref<3x3x16x16xbf16, #tpu.memory_space<vmem>>, %arg5: memref<1x16xf32, #tpu.memory_space<vmem>>, %arg6: memref<16x1xf32, #tpu.memory_space<vmem>>, %arg7: memref<1x1xf32, #tpu.memory_space<vmem>>, %arg8: memref<1x16x16x1xf32, #tpu.memory_space<vmem>>, %arg9: memref<1x1x16xf32, #tpu.memory_space<vmem>>, %arg10: memref<1x18x18x3xf32, #tpu.memory_space<vmem>>, %arg11: memref<1x18x18x16xf32, #tpu.memory_space<vmem>>) attributes {dimension_semantics = [#tpu.dimension_semantics<parallel>], iteration_bounds = array<i64: 2>, scalar_prefetch = 0 : i64, scratch_operands = 1 : i64, tpu.core_type = #tpu.core_type<tc>, window_params = [{transform_indices = @transform_0, window_bounds = array<i64: 1, 18, 18, 3>}, {pipeline_mode = #tpu.pipeline_mode<synchronous>, transform_indices = @transform_1, window_bounds = array<i64: 3, 3, 3, 16>}, {pipeline_mode = #tpu.pipeline_mode<synchronous>, transform_indices = @transform_2, window_bounds = array<i64: 1, 16>}, {pipeline_mode = #tpu.pipeline_mode<synchronous>, transform_indices = @transform_3, window_bounds = array<i64: 3, 3, 16, 16>}, {pipeline_mode = #tpu.pipeline_mode<synchronous>, transform_indices = @transform_4, window_bounds = array<i64: 1, 16>}, {pipeline_mode = #tpu.pipeline_mode<synchronous>, transform_indices = @transform_5, window_bounds = array<i64: 16, 1>}, {pipeline_mode = #tpu.pipeline_mode<synchronous>, transform_indices = @transform_6, window_bounds = array<i64: 1, 1>}, {transform_indices = @transform_7, window_bounds = array<i64: 1, 16, 16, 1>}, {transform_indices = @transform_8, window_bounds = array<i64: 1, 1, 16>}, {transform_indices = @transform_9, window_bounds = array<i64: 1, 18, 18, 3>}]} {
    %c0 = arith.constant 0 : index
    %c0_0 = arith.constant 0 : index
    %c0_1 = arith.constant 0 : index
    %c0_2 = arith.constant 0 : index
    %0 = vector.load %arg1[%c0, %c0_0, %c0_1, %c0_2] : memref<1x18x18x3xf32, #tpu.memory_space<vmem>>, vector<1x18x18x3xf32>
    %cst = arith.constant 0.000000e+00 : f32
    %1 = vector.broadcast %cst : f32 to vector<256x16xf32>
    %2 = vector.extract_strided_slice %0 {offsets = [0, 0, 0, 0], sizes = [1, 16, 16, 3], strides = [1, 1, 1, 1]} : vector<1x18x18x3xf32> to vector<1x16x16x3xf32>
    %3 = vector.shape_cast %2 : vector<1x16x16x3xf32> to vector<256x3xf32>
    %4 = arith.truncf %3 : vector<256x3xf32> to vector<256x3xbf16>
    %c0_3 = arith.constant 0 : index
    %c0_4 = arith.constant 0 : index
    %c0_5 = arith.constant 0 : index
    %c0_6 = arith.constant 0 : index
    %5 = vector.load %arg2[%c0_3, %c0_4, %c0_5, %c0_6] : memref<3x3x3x16xbf16, #tpu.memory_space<vmem>>, vector<1x1x3x16xbf16>
    %6 = vector.shape_cast %5 : vector<1x1x3x16xbf16> to vector<3x16xbf16>
    %cst_7 = arith.constant dense<0.000000e+00> : vector<256x16xf32>
    %7 = tpu.matmul %4, %6, %cst_7 {dimension_numbers = #tpu.dot_dimension_numbers<[1], [0], [0], [1], [0, 0, 1, 1], [], []>} : vector<256x3xbf16>, vector<3x16xbf16>, vector<256x16xf32> -> vector<256x16xf32>
    %8 = arith.addf %1, %7 : vector<256x16xf32>
    %9 = vector.extract_strided_slice %0 {offsets = [0, 0, 1, 0], sizes = [1, 16, 16, 3], strides = [1, 1, 1, 1]} : vector<1x18x18x3xf32> to vector<1x16x16x3xf32>
    %10 = vector.shape_cast %9 : vector<1x16x16x3xf32> to vector<256x3xf32>
    %11 = arith.truncf %10 : vector<256x3xf32> to vector<256x3xbf16>
    %c0_8 = arith.constant 0 : index
    %c1 = arith.constant 1 : index
    %c0_9 = arith.constant 0 : index
    %c0_10 = arith.constant 0 : index
    %12 = vector.load %arg2[%c0_8, %c1, %c0_9, %c0_10] : memref<3x3x3x16xbf16, #tpu.memory_space<vmem>>, vector<1x1x3x16xbf16>
    %13 = vector.shape_cast %12 : vector<1x1x3x16xbf16> to vector<3x16xbf16>
    %cst_11 = arith.constant dense<0.000000e+00> : vector<256x16xf32>
    %14 = tpu.matmul %11, %13, %cst_11 {dimension_numbers = #tpu.dot_dimension_numbers<[1], [0], [0], [1], [0, 0, 1, 1], [], []>} : vector<256x3xbf16>, vector<3x16xbf16>, vector<256x16xf32> -> vector<256x16xf32>
    %15 = arith.addf %8, %14 : vector<256x16xf32>
    %16 = vector.extract_strided_slice %0 {offsets = [0, 0, 2, 0], sizes = [1, 16, 16, 3], strides = [1, 1, 1, 1]} : vector<1x18x18x3xf32> to vector<1x16x16x3xf32>
    %17 = vector.shape_cast %16 : vector<1x16x16x3xf32> to vector<256x3xf32>
    %18 = arith.truncf %17 : vector<256x3xf32> to vector<256x3xbf16>
    %c0_12 = arith.constant 0 : index
    %c2 = arith.constant 2 : index
    %c0_13 = arith.constant 0 : index
    %c0_14 = arith.constant 0 : index
    %19 = vector.load %arg2[%c0_12, %c2, %c0_13, %c0_14] : memref<3x3x3x16xbf16, #tpu.memory_space<vmem>>, vector<1x1x3x16xbf16>
    %20 = vector.shape_cast %19 : vector<1x1x3x16xbf16> to vector<3x16xbf16>
    %cst_15 = arith.constant dense<0.000000e+00> : vector<256x16xf32>
    %21 = tpu.matmul %18, %20, %cst_15 {dimension_numbers = #tpu.dot_dimension_numbers<[1], [0], [0], [1], [0, 0, 1, 1], [], []>} : vector<256x3xbf16>, vector<3x16xbf16>, vector<256x16xf32> -> vector<256x16xf32>
    %22 = arith.addf %15, %21 : vector<256x16xf32>
    %23 = vector.extract_strided_slice %0 {offsets = [0, 1, 0, 0], sizes = [1, 16, 16, 3], strides = [1, 1, 1, 1]} : vector<1x18x18x3xf32> to vector<1x16x16x3xf32>
    %24 = vector.shape_cast %23 : vector<1x16x16x3xf32> to vector<256x3xf32>
    %25 = arith.truncf %24 : vector<256x3xf32> to vector<256x3xbf16>
    %c1_16 = arith.constant 1 : index
    %c0_17 = arith.constant 0 : index
    %c0_18 = arith.constant 0 : index
    %c0_19 = arith.constant 0 : index
    %26 = vector.load %arg2[%c1_16, %c0_17, %c0_18, %c0_19] : memref<3x3x3x16xbf16, #tpu.memory_space<vmem>>, vector<1x1x3x16xbf16>
    %27 = vector.shape_cast %26 : vector<1x1x3x16xbf16> to vector<3x16xbf16>
    %cst_20 = arith.constant dense<0.000000e+00> : vector<256x16xf32>
    %28 = tpu.matmul %25, %27, %cst_20 {dimension_numbers = #tpu.dot_dimension_numbers<[1], [0], [0], [1], [0, 0, 1, 1], [], []>} : vector<256x3xbf16>, vector<3x16xbf16>, vector<256x16xf32> -> vector<256x16xf32>
    %29 = arith.addf %22, %28 : vector<256x16xf32>
    %30 = vector.extract_strided_slice %0 {offsets = [0, 1, 1, 0], sizes = [1, 16, 16, 3], strides = [1, 1, 1, 1]} : vector<1x18x18x3xf32> to vector<1x16x16x3xf32>
    %31 = vector.shape_cast %30 : vector<1x16x16x3xf32> to vector<256x3xf32>
    %32 = arith.truncf %31 : vector<256x3xf32> to vector<256x3xbf16>
    %c1_21 = arith.constant 1 : index
    %c1_22 = arith.constant 1 : index
    %c0_23 = arith.constant 0 : index
    %c0_24 = arith.constant 0 : index
    %33 = vector.load %arg2[%c1_21, %c1_22, %c0_23, %c0_24] : memref<3x3x3x16xbf16, #tpu.memory_space<vmem>>, vector<1x1x3x16xbf16>
    %34 = vector.shape_cast %33 : vector<1x1x3x16xbf16> to vector<3x16xbf16>
    %cst_25 = arith.constant dense<0.000000e+00> : vector<256x16xf32>
    %35 = tpu.matmul %32, %34, %cst_25 {dimension_numbers = #tpu.dot_dimension_numbers<[1], [0], [0], [1], [0, 0, 1, 1], [], []>} : vector<256x3xbf16>, vector<3x16xbf16>, vector<256x16xf32> -> vector<256x16xf32>
    %36 = arith.addf %29, %35 : vector<256x16xf32>
    %37 = vector.extract_strided_slice %0 {offsets = [0, 1, 2, 0], sizes = [1, 16, 16, 3], strides = [1, 1, 1, 1]} : vector<1x18x18x3xf32> to vector<1x16x16x3xf32>
    %38 = vector.shape_cast %37 : vector<1x16x16x3xf32> to vector<256x3xf32>
    %39 = arith.truncf %38 : vector<256x3xf32> to vector<256x3xbf16>
    %c1_26 = arith.constant 1 : index
    %c2_27 = arith.constant 2 : index
    %c0_28 = arith.constant 0 : index
    %c0_29 = arith.constant 0 : index
    %40 = vector.load %arg2[%c1_26, %c2_27, %c0_28, %c0_29] : memref<3x3x3x16xbf16, #tpu.memory_space<vmem>>, vector<1x1x3x16xbf16>
    %41 = vector.shape_cast %40 : vector<1x1x3x16xbf16> to vector<3x16xbf16>
    %cst_30 = arith.constant dense<0.000000e+00> : vector<256x16xf32>
    %42 = tpu.matmul %39, %41, %cst_30 {dimension_numbers = #tpu.dot_dimension_numbers<[1], [0], [0], [1], [0, 0, 1, 1], [], []>} : vector<256x3xbf16>, vector<3x16xbf16>, vector<256x16xf32> -> vector<256x16xf32>
    %43 = arith.addf %36, %42 : vector<256x16xf32>
    %44 = vector.extract_strided_slice %0 {offsets = [0, 2, 0, 0], sizes = [1, 16, 16, 3], strides = [1, 1, 1, 1]} : vector<1x18x18x3xf32> to vector<1x16x16x3xf32>
    %45 = vector.shape_cast %44 : vector<1x16x16x3xf32> to vector<256x3xf32>
    %46 = arith.truncf %45 : vector<256x3xf32> to vector<256x3xbf16>
    %c2_31 = arith.constant 2 : index
    %c0_32 = arith.constant 0 : index
    %c0_33 = arith.constant 0 : index
    %c0_34 = arith.constant 0 : index
    %47 = vector.load %arg2[%c2_31, %c0_32, %c0_33, %c0_34] : memref<3x3x3x16xbf16, #tpu.memory_space<vmem>>, vector<1x1x3x16xbf16>
    %48 = vector.shape_cast %47 : vector<1x1x3x16xbf16> to vector<3x16xbf16>
    %cst_35 = arith.constant dense<0.000000e+00> : vector<256x16xf32>
    %49 = tpu.matmul %46, %48, %cst_35 {dimension_numbers = #tpu.dot_dimension_numbers<[1], [0], [0], [1], [0, 0, 1, 1], [], []>} : vector<256x3xbf16>, vector<3x16xbf16>, vector<256x16xf32> -> vector<256x16xf32>
    %50 = arith.addf %43, %49 : vector<256x16xf32>
    %51 = vector.extract_strided_slice %0 {offsets = [0, 2, 1, 0], sizes = [1, 16, 16, 3], strides = [1, 1, 1, 1]} : vector<1x18x18x3xf32> to vector<1x16x16x3xf32>
    %52 = vector.shape_cast %51 : vector<1x16x16x3xf32> to vector<256x3xf32>
    %53 = arith.truncf %52 : vector<256x3xf32> to vector<256x3xbf16>
    %c2_36 = arith.constant 2 : index
    %c1_37 = arith.constant 1 : index
    %c0_38 = arith.constant 0 : index
    %c0_39 = arith.constant 0 : index
    %54 = vector.load %arg2[%c2_36, %c1_37, %c0_38, %c0_39] : memref<3x3x3x16xbf16, #tpu.memory_space<vmem>>, vector<1x1x3x16xbf16>
    %55 = vector.shape_cast %54 : vector<1x1x3x16xbf16> to vector<3x16xbf16>
    %cst_40 = arith.constant dense<0.000000e+00> : vector<256x16xf32>
    %56 = tpu.matmul %53, %55, %cst_40 {dimension_numbers = #tpu.dot_dimension_numbers<[1], [0], [0], [1], [0, 0, 1, 1], [], []>} : vector<256x3xbf16>, vector<3x16xbf16>, vector<256x16xf32> -> vector<256x16xf32>
    %57 = arith.addf %50, %56 : vector<256x16xf32>
    %58 = vector.extract_strided_slice %0 {offsets = [0, 2, 2, 0], sizes = [1, 16, 16, 3], strides = [1, 1, 1, 1]} : vector<1x18x18x3xf32> to vector<1x16x16x3xf32>
    %59 = vector.shape_cast %58 : vector<1x16x16x3xf32> to vector<256x3xf32>
    %60 = arith.truncf %59 : vector<256x3xf32> to vector<256x3xbf16>
    %c2_41 = arith.constant 2 : index
    %c2_42 = arith.constant 2 : index
    %c0_43 = arith.constant 0 : index
    %c0_44 = arith.constant 0 : index
    %61 = vector.load %arg2[%c2_41, %c2_42, %c0_43, %c0_44] : memref<3x3x3x16xbf16, #tpu.memory_space<vmem>>, vector<1x1x3x16xbf16>
    %62 = vector.shape_cast %61 : vector<1x1x3x16xbf16> to vector<3x16xbf16>
    %cst_45 = arith.constant dense<0.000000e+00> : vector<256x16xf32>
    %63 = tpu.matmul %60, %62, %cst_45 {dimension_numbers = #tpu.dot_dimension_numbers<[1], [0], [0], [1], [0, 0, 1, 1], [], []>} : vector<256x3xbf16>, vector<3x16xbf16>, vector<256x16xf32> -> vector<256x16xf32>
    %64 = arith.addf %57, %63 : vector<256x16xf32>
    %c0_46 = arith.constant 0 : index
    %c0_47 = arith.constant 0 : index
    %65 = vector.load %arg3[%c0_46, %c0_47] : memref<1x16xf32, #tpu.memory_space<vmem>>, vector<1x16xf32>
    %66 = vector.broadcast %65 : vector<1x16xf32> to vector<256x16xf32>
    %67 = arith.addf %64, %66 : vector<256x16xf32>
    %cst_48 = arith.constant 0.000000e+00 : f32
    %68 = vector.broadcast %cst_48 : f32 to vector<256x16xf32>
    %69 = arith.maximumf %67, %68 : vector<256x16xf32>
    %cst_49 = arith.constant 0.000000e+00 : f32
    %70 = vector.broadcast %cst_49 : f32 to vector<1x18x18x16xf32>
    %c0_50 = arith.constant 0 : index
    %c0_51 = arith.constant 0 : index
    %c0_52 = arith.constant 0 : index
    %c0_53 = arith.constant 0 : index
    %71 = vector.load %arg11[%c0_50, %c0_51, %c0_52, %c0_53] : memref<1x18x18x16xf32, #tpu.memory_space<vmem>>, vector<1x18x18x16xf32>
    tpu.vector_store %arg11[%c0_50, %c0_51, %c0_52, %c0_53], %70 {strides = array<i32>} : memref<1x18x18x16xf32, #tpu.memory_space<vmem>>, vector<1x18x18x16xf32>,
    %72 = vector.shape_cast %69 : vector<256x16xf32> to vector<1x16x16x16xf32>
    %c0_54 = arith.constant 0 : index
    %c1_55 = arith.constant 1 : index
    %c1_56 = arith.constant 1 : index
    %c0_57 = arith.constant 0 : index
    %73 = vector.load %arg11[%c0_54, %c1_55, %c1_56, %c0_57] : memref<1x18x18x16xf32, #tpu.memory_space<vmem>>, vector<1x16x16x16xf32>
    tpu.vector_store %arg11[%c0_54, %c1_55, %c1_56, %c0_57], %72 {strides = array<i32>} : memref<1x18x18x16xf32, #tpu.memory_space<vmem>>, vector<1x16x16x16xf32>,
    %c0_58 = arith.constant 0 : index
    %c0_59 = arith.constant 0 : index
    %c0_60 = arith.constant 0 : index
    %c0_61 = arith.constant 0 : index
    %74 = vector.load %arg11[%c0_58, %c0_59, %c0_60, %c0_61] : memref<1x18x18x16xf32, #tpu.memory_space<vmem>>, vector<1x18x18x16xf32>
    %cst_62 = arith.constant 0.000000e+00 : f32
    %75 = vector.broadcast %cst_62 : f32 to vector<256x16xf32>
    %76 = vector.extract_strided_slice %74 {offsets = [0, 0, 0, 0], sizes = [1, 16, 16, 16], strides = [1, 1, 1, 1]} : vector<1x18x18x16xf32> to vector<1x16x16x16xf32>
    %77 = vector.shape_cast %76 : vector<1x16x16x16xf32> to vector<256x16xf32>
    %78 = arith.truncf %77 : vector<256x16xf32> to vector<256x16xbf16>
    %c0_63 = arith.constant 0 : index
    %c0_64 = arith.constant 0 : index
    %c0_65 = arith.constant 0 : index
    %c0_66 = arith.constant 0 : index
    %79 = vector.load %arg4[%c0_63, %c0_64, %c0_65, %c0_66] : memref<3x3x16x16xbf16, #tpu.memory_space<vmem>>, vector<1x1x16x16xbf16>
    %80 = vector.shape_cast %79 : vector<1x1x16x16xbf16> to vector<16x16xbf16>
    %cst_67 = arith.constant dense<0.000000e+00> : vector<256x16xf32>
    %81 = tpu.matmul %78, %80, %cst_67 {dimension_numbers = #tpu.dot_dimension_numbers<[1], [0], [0], [1], [0, 0, 1, 1], [], []>} : vector<256x16xbf16>, vector<16x16xbf16>, vector<256x16xf32> -> vector<256x16xf32>
    %82 = arith.addf %75, %81 : vector<256x16xf32>
    %83 = vector.extract_strided_slice %74 {offsets = [0, 0, 1, 0], sizes = [1, 16, 16, 16], strides = [1, 1, 1, 1]} : vector<1x18x18x16xf32> to vector<1x16x16x16xf32>
    %84 = vector.shape_cast %83 : vector<1x16x16x16xf32> to vector<256x16xf32>
    %85 = arith.truncf %84 : vector<256x16xf32> to vector<256x16xbf16>
    %c0_68 = arith.constant 0 : index
    %c1_69 = arith.constant 1 : index
    %c0_70 = arith.constant 0 : index
    %c0_71 = arith.constant 0 : index
    %86 = vector.load %arg4[%c0_68, %c1_69, %c0_70, %c0_71] : memref<3x3x16x16xbf16, #tpu.memory_space<vmem>>, vector<1x1x16x16xbf16>
    %87 = vector.shape_cast %86 : vector<1x1x16x16xbf16> to vector<16x16xbf16>
    %cst_72 = arith.constant dense<0.000000e+00> : vector<256x16xf32>
    %88 = tpu.matmul %85, %87, %cst_72 {dimension_numbers = #tpu.dot_dimension_numbers<[1], [0], [0], [1], [0, 0, 1, 1], [], []>} : vector<256x16xbf16>, vector<16x16xbf16>, vector<256x16xf32> -> vector<256x16xf32>
    %89 = arith.addf %82, %88 : vector<256x16xf32>
    %90 = vector.extract_strided_slice %74 {offsets = [0, 0, 2, 0], sizes = [1, 16, 16, 16], strides = [1, 1, 1, 1]} : vector<1x18x18x16xf32> to vector<1x16x16x16xf32>
    %91 = vector.shape_cast %90 : vector<1x16x16x16xf32> to vector<256x16xf32>
    %92 = arith.truncf %91 : vector<256x16xf32> to vector<256x16xbf16>
    %c0_73 = arith.constant 0 : index
    %c2_74 = arith.constant 2 : index
    %c0_75 = arith.constant 0 : index
    %c0_76 = arith.constant 0 : index
    %93 = vector.load %arg4[%c0_73, %c2_74, %c0_75, %c0_76] : memref<3x3x16x16xbf16, #tpu.memory_space<vmem>>, vector<1x1x16x16xbf16>
    %94 = vector.shape_cast %93 : vector<1x1x16x16xbf16> to vector<16x16xbf16>
    %cst_77 = arith.constant dense<0.000000e+00> : vector<256x16xf32>
    %95 = tpu.matmul %92, %94, %cst_77 {dimension_numbers = #tpu.dot_dimension_numbers<[1], [0], [0], [1], [0, 0, 1, 1], [], []>} : vector<256x16xbf16>, vector<16x16xbf16>, vector<256x16xf32> -> vector<256x16xf32>
    %96 = arith.addf %89, %95 : vector<256x16xf32>
    %97 = vector.extract_strided_slice %74 {offsets = [0, 1, 0, 0], sizes = [1, 16, 16, 16], strides = [1, 1, 1, 1]} : vector<1x18x18x16xf32> to vector<1x16x16x16xf32>
    %98 = vector.shape_cast %97 : vector<1x16x16x16xf32> to vector<256x16xf32>
    %99 = arith.truncf %98 : vector<256x16xf32> to vector<256x16xbf16>
    %c1_78 = arith.constant 1 : index
    %c0_79 = arith.constant 0 : index
    %c0_80 = arith.constant 0 : index
    %c0_81 = arith.constant 0 : index
    %100 = vector.load %arg4[%c1_78, %c0_79, %c0_80, %c0_81] : memref<3x3x16x16xbf16, #tpu.memory_space<vmem>>, vector<1x1x16x16xbf16>
    %101 = vector.shape_cast %100 : vector<1x1x16x16xbf16> to vector<16x16xbf16>
    %cst_82 = arith.constant dense<0.000000e+00> : vector<256x16xf32>
    %102 = tpu.matmul %99, %101, %cst_82 {dimension_numbers = #tpu.dot_dimension_numbers<[1], [0], [0], [1], [0, 0, 1, 1], [], []>} : vector<256x16xbf16>, vector<16x16xbf16>, vector<256x16xf32> -> vector<256x16xf32>
    %103 = arith.addf %96, %102 : vector<256x16xf32>
    %104 = vector.extract_strided_slice %74 {offsets = [0, 1, 1, 0], sizes = [1, 16, 16, 16], strides = [1, 1, 1, 1]} : vector<1x18x18x16xf32> to vector<1x16x16x16xf32>
    %105 = vector.shape_cast %104 : vector<1x16x16x16xf32> to vector<256x16xf32>
    %106 = arith.truncf %105 : vector<256x16xf32> to vector<256x16xbf16>
    %c1_83 = arith.constant 1 : index
    %c1_84 = arith.constant 1 : index
    %c0_85 = arith.constant 0 : index
    %c0_86 = arith.constant 0 : index
    %107 = vector.load %arg4[%c1_83, %c1_84, %c0_85, %c0_86] : memref<3x3x16x16xbf16, #tpu.memory_space<vmem>>, vector<1x1x16x16xbf16>
    %108 = vector.shape_cast %107 : vector<1x1x16x16xbf16> to vector<16x16xbf16>
    %cst_87 = arith.constant dense<0.000000e+00> : vector<256x16xf32>
    %109 = tpu.matmul %106, %108, %cst_87 {dimension_numbers = #tpu.dot_dimension_numbers<[1], [0], [0], [1], [0, 0, 1, 1], [], []>} : vector<256x16xbf16>, vector<16x16xbf16>, vector<256x16xf32> -> vector<256x16xf32>
    %110 = arith.addf %103, %109 : vector<256x16xf32>
    %111 = vector.extract_strided_slice %74 {offsets = [0, 1, 2, 0], sizes = [1, 16, 16, 16], strides = [1, 1, 1, 1]} : vector<1x18x18x16xf32> to vector<1x16x16x16xf32>
    %112 = vector.shape_cast %111 : vector<1x16x16x16xf32> to vector<256x16xf32>
    %113 = arith.truncf %112 : vector<256x16xf32> to vector<256x16xbf16>
    %c1_88 = arith.constant 1 : index
    %c2_89 = arith.constant 2 : index
    %c0_90 = arith.constant 0 : index
    %c0_91 = arith.constant 0 : index
    %114 = vector.load %arg4[%c1_88, %c2_89, %c0_90, %c0_91] : memref<3x3x16x16xbf16, #tpu.memory_space<vmem>>, vector<1x1x16x16xbf16>
    %115 = vector.shape_cast %114 : vector<1x1x16x16xbf16> to vector<16x16xbf16>
    %cst_92 = arith.constant dense<0.000000e+00> : vector<256x16xf32>
    %116 = tpu.matmul %113, %115, %cst_92 {dimension_numbers = #tpu.dot_dimension_numbers<[1], [0], [0], [1], [0, 0, 1, 1], [], []>} : vector<256x16xbf16>, vector<16x16xbf16>, vector<256x16xf32> -> vector<256x16xf32>
    %117 = arith.addf %110, %116 : vector<256x16xf32>
    %118 = vector.extract_strided_slice %74 {offsets = [0, 2, 0, 0], sizes = [1, 16, 16, 16], strides = [1, 1, 1, 1]} : vector<1x18x18x16xf32> to vector<1x16x16x16xf32>
    %119 = vector.shape_cast %118 : vector<1x16x16x16xf32> to vector<256x16xf32>
    %120 = arith.truncf %119 : vector<256x16xf32> to vector<256x16xbf16>
    %c2_93 = arith.constant 2 : index
    %c0_94 = arith.constant 0 : index
    %c0_95 = arith.constant 0 : index
    %c0_96 = arith.constant 0 : index
    %121 = vector.load %arg4[%c2_93, %c0_94, %c0_95, %c0_96] : memref<3x3x16x16xbf16, #tpu.memory_space<vmem>>, vector<1x1x16x16xbf16>
    %122 = vector.shape_cast %121 : vector<1x1x16x16xbf16> to vector<16x16xbf16>
    %cst_97 = arith.constant dense<0.000000e+00> : vector<256x16xf32>
    %123 = tpu.matmul %120, %122, %cst_97 {dimension_numbers = #tpu.dot_dimension_numbers<[1], [0], [0], [1], [0, 0, 1, 1], [], []>} : vector<256x16xbf16>, vector<16x16xbf16>, vector<256x16xf32> -> vector<256x16xf32>
    %124 = arith.addf %117, %123 : vector<256x16xf32>
    %125 = vector.extract_strided_slice %74 {offsets = [0, 2, 1, 0], sizes = [1, 16, 16, 16], strides = [1, 1, 1, 1]} : vector<1x18x18x16xf32> to vector<1x16x16x16xf32>
    %126 = vector.shape_cast %125 : vector<1x16x16x16xf32> to vector<256x16xf32>
    %127 = arith.truncf %126 : vector<256x16xf32> to vector<256x16xbf16>
    %c2_98 = arith.constant 2 : index
    %c1_99 = arith.constant 1 : index
    %c0_100 = arith.constant 0 : index
    %c0_101 = arith.constant 0 : index
    %128 = vector.load %arg4[%c2_98, %c1_99, %c0_100, %c0_101] : memref<3x3x16x16xbf16, #tpu.memory_space<vmem>>, vector<1x1x16x16xbf16>
    %129 = vector.shape_cast %128 : vector<1x1x16x16xbf16> to vector<16x16xbf16>
    %cst_102 = arith.constant dense<0.000000e+00> : vector<256x16xf32>
    %130 = tpu.matmul %127, %129, %cst_102 {dimension_numbers = #tpu.dot_dimension_numbers<[1], [0], [0], [1], [0, 0, 1, 1], [], []>} : vector<256x16xbf16>, vector<16x16xbf16>, vector<256x16xf32> -> vector<256x16xf32>
    %131 = arith.addf %124, %130 : vector<256x16xf32>
    %132 = vector.extract_strided_slice %74 {offsets = [0, 2, 2, 0], sizes = [1, 16, 16, 16], strides = [1, 1, 1, 1]} : vector<1x18x18x16xf32> to vector<1x16x16x16xf32>
    %133 = vector.shape_cast %132 : vector<1x16x16x16xf32> to vector<256x16xf32>
    %134 = arith.truncf %133 : vector<256x16xf32> to vector<256x16xbf16>
    %c2_103 = arith.constant 2 : index
    %c2_104 = arith.constant 2 : index
    %c0_105 = arith.constant 0 : index
    %c0_106 = arith.constant 0 : index
    %135 = vector.load %arg4[%c2_103, %c2_104, %c0_105, %c0_106] : memref<3x3x16x16xbf16, #tpu.memory_space<vmem>>, vector<1x1x16x16xbf16>
    %136 = vector.shape_cast %135 : vector<1x1x16x16xbf16> to vector<16x16xbf16>
    %cst_107 = arith.constant dense<0.000000e+00> : vector<256x16xf32>
    %137 = tpu.matmul %134, %136, %cst_107 {dimension_numbers = #tpu.dot_dimension_numbers<[1], [0], [0], [1], [0, 0, 1, 1], [], []>} : vector<256x16xbf16>, vector<16x16xbf16>, vector<256x16xf32> -> vector<256x16xf32>
    %138 = arith.addf %131, %137 : vector<256x16xf32>
    %c0_108 = arith.constant 0 : index
    %c0_109 = arith.constant 0 : index
    %139 = vector.load %arg5[%c0_108, %c0_109] : memref<1x16xf32, #tpu.memory_space<vmem>>, vector<1x16xf32>
    %140 = vector.broadcast %139 : vector<1x16xf32> to vector<256x16xf32>
    %141 = arith.addf %138, %140 : vector<256x16xf32>
    %cst_110 = arith.constant 0.000000e+00 : f32
    %142 = vector.broadcast %cst_110 : f32 to vector<256x16xf32>
    %143 = arith.maximumf %141, %142 : vector<256x16xf32>
    %c0_111 = arith.constant 0 : index
    %c0_112 = arith.constant 0 : index
    %144 = vector.load %arg6[%c0_111, %c0_112] : memref<16x1xf32, #tpu.memory_space<vmem>>, vector<16x1xf32>
    %cst_113 = arith.constant dense<0.000000e+00> : vector<256x1xf32>
    %145 = tpu.matmul %143, %144, %cst_113 {dimension_numbers = #tpu.dot_dimension_numbers<[1], [0], [0], [1], [0, 0, 1, 1], [], []>} : vector<256x16xf32>, vector<16x1xf32>, vector<256x1xf32> -> vector<256x1xf32>
    %c0_114 = arith.constant 0 : index
    %c0_115 = arith.constant 0 : index
    %146 = vector.load %arg7[%c0_114, %c0_115] : memref<1x1xf32, #tpu.memory_space<vmem>>, vector<1x1xf32>
    %147 = vector.broadcast %146 : vector<1x1xf32> to vector<256x1xf32>
    %148 = arith.addf %145, %147 : vector<256x1xf32>
    %149 = vector.shape_cast %148 : vector<256x1xf32> to vector<1x16x16x1xf32>
    %c0_116 = arith.constant 0 : index
    %c0_117 = arith.constant 0 : index
    %c0_118 = arith.constant 0 : index
    %c0_119 = arith.constant 0 : index
    %150 = vector.load %arg8[%c0_116, %c0_117, %c0_118, %c0_119] : memref<1x16x16x1xf32, #tpu.memory_space<vmem>>, vector<1x16x16x1xf32>
    tpu.vector_store %arg8[%c0_116, %c0_117, %c0_118, %c0_119], %149 {strides = array<i32>} : memref<1x16x16x1xf32, #tpu.memory_space<vmem>>, vector<1x16x16x1xf32>,
    %cst_120 = arith.constant dense<0.000000e+00> : vector<16xf32>
    %151 = vector.multi_reduction <add>, %143, %cst_120 [0] : vector<256x16xf32> to vector<16xf32>
    %152 = vector.shape_cast %151 : vector<16xf32> to vector<1x16xf32>
    %cst_121 = arith.constant 3.906250e-03 : f32
    %153 = vector.broadcast %cst_121 : f32 to vector<1x16xf32>
    %154 = arith.mulf %152, %153 : vector<1x16xf32>
    %155 = vector.shape_cast %154 : vector<1x16xf32> to vector<1x1x16xf32>
    %c0_122 = arith.constant 0 : index
    %c0_123 = arith.constant 0 : index
    %c0_124 = arith.constant 0 : index
    %156 = vector.load %arg9[%c0_122, %c0_123, %c0_124] : memref<1x1x16xf32, #tpu.memory_space<vmem>>, vector<1x1x16xf32>
    tpu.vector_store %arg9[%c0_122, %c0_123, %c0_124], %155 {strides = array<i32>} : memref<1x1x16xf32, #tpu.memory_space<vmem>>, vector<1x1x16xf32>,
    %157 = arith.negf %148 : vector<256x1xf32>
    %158 = math.exp %157 : vector<256x1xf32>
    %cst_125 = arith.constant 1.000000e+00 : f32
    %159 = vector.broadcast %cst_125 : f32 to vector<256x1xf32>
    %160 = arith.addf %159, %158 : vector<256x1xf32>
    %161 = arith.divf %159, %160 : vector<256x1xf32>
    %cst_126 = arith.constant 1.000000e+00 : f32
    %162 = vector.broadcast %cst_126 : f32 to vector<256x1xf32>
    %163 = arith.addf %162, %161 : vector<256x1xf32>
    %164 = vector.extract_strided_slice %0 {offsets = [0, 1, 1, 0], sizes = [1, 16, 16, 3], strides = [1, 1, 1, 1]} : vector<1x18x18x3xf32> to vector<1x16x16x3xf32>
    %165 = vector.shape_cast %164 : vector<1x16x16x3xf32> to vector<256x3xf32>
    %cst_127 = arith.constant 0.000000e+00 : f32
    %166 = vector.broadcast %cst_127 : f32 to vector<1x18x18x3xf32>
    %c0_128 = arith.constant 0 : index
    %c0_129 = arith.constant 0 : index
    %c0_130 = arith.constant 0 : index
    %c0_131 = arith.constant 0 : index
    %167 = vector.load %arg10[%c0_128, %c0_129, %c0_130, %c0_131] : memref<1x18x18x3xf32, #tpu.memory_space<vmem>>, vector<1x18x18x3xf32>
    tpu.vector_store %arg10[%c0_128, %c0_129, %c0_130, %c0_131], %166 {strides = array<i32>} : memref<1x18x18x3xf32, #tpu.memory_space<vmem>>, vector<1x18x18x3xf32>,
    %168 = vector.broadcast %163 : vector<256x1xf32> to vector<256x3xf32>
    %169 = arith.mulf %168, %165 : vector<256x3xf32>
    %170 = vector.shape_cast %169 : vector<256x3xf32> to vector<1x16x16x3xf32>
    %c0_132 = arith.constant 0 : index
    %c1_133 = arith.constant 1 : index
    %c1_134 = arith.constant 1 : index
    %c0_135 = arith.constant 0 : index
    %171 = vector.load %arg10[%c0_132, %c1_133, %c1_134, %c0_135] : memref<1x18x18x3xf32, #tpu.memory_space<vmem>>, vector<1x16x16x3xf32>
    tpu.vector_store %arg10[%c0_132, %c1_133, %c1_134, %c0_135], %170 {strides = array<i32>} : memref<1x18x18x3xf32, #tpu.memory_space<vmem>>, vector<1x16x16x3xf32>,
    return
  }
  func.func @transform_0(%arg0: i32) -> (i32, i32, i32, i32) {
    %c0_i32 = arith.constant 0 : i32
    %c0_i32_0 = arith.constant 0 : i32
    %c0_i32_1 = arith.constant 0 : i32
    %c0_i32_2 = arith.constant 0 : i32
    return %arg0, %c0_i32, %c0_i32_0, %c0_i32_1 : i32, i32, i32, i32
  }
  func.func @transform_1(%arg0: i32) -> (i32, i32, i32, i32) {
    %c0_i32 = arith.constant 0 : i32
    %c0_i32_0 = arith.constant 0 : i32
    %c0_i32_1 = arith.constant 0 : i32
    %c0_i32_2 = arith.constant 0 : i32
    %c0_i32_3 = arith.constant 0 : i32
    return %c0_i32, %c0_i32_0, %c0_i32_1, %c0_i32_2 : i32, i32, i32, i32
  }
  func.func @transform_2(%arg0: i32) -> (i32, i32) {
    %c0_i32 = arith.constant 0 : i32
    %c0_i32_0 = arith.constant 0 : i32
    %c0_i32_1 = arith.constant 0 : i32
    return %c0_i32, %c0_i32_0 : i32, i32
  }
  func.func @transform_3(%arg0: i32) -> (i32, i32, i32, i32) {
    %c0_i32 = arith.constant 0 : i32
    %c0_i32_0 = arith.constant 0 : i32
    %c0_i32_1 = arith.constant 0 : i32
    %c0_i32_2 = arith.constant 0 : i32
    %c0_i32_3 = arith.constant 0 : i32
    return %c0_i32, %c0_i32_0, %c0_i32_1, %c0_i32_2 : i32, i32, i32, i32
  }
  func.func @transform_4(%arg0: i32) -> (i32, i32) {
    %c0_i32 = arith.constant 0 : i32
    %c0_i32_0 = arith.constant 0 : i32
    %c0_i32_1 = arith.constant 0 : i32
    return %c0_i32, %c0_i32_0 : i32, i32
  }
  func.func @transform_5(%arg0: i32) -> (i32, i32) {
    %c0_i32 = arith.constant 0 : i32
    %c0_i32_0 = arith.constant 0 : i32
    %c0_i32_1 = arith.constant 0 : i32
    return %c0_i32, %c0_i32_0 : i32, i32
  }
  func.func @transform_6(%arg0: i32) -> (i32, i32) {
    %c0_i32 = arith.constant 0 : i32
    %c0_i32_0 = arith.constant 0 : i32
    %c0_i32_1 = arith.constant 0 : i32
    return %c0_i32, %c0_i32_0 : i32, i32
  }
  func.func @transform_7(%arg0: i32) -> (i32, i32, i32, i32) {
    %c0_i32 = arith.constant 0 : i32
    %c0_i32_0 = arith.constant 0 : i32
    %c0_i32_1 = arith.constant 0 : i32
    %c0_i32_2 = arith.constant 0 : i32
    return %arg0, %c0_i32, %c0_i32_0, %c0_i32_1 : i32, i32, i32, i32
  }
  func.func @transform_8(%arg0: i32) -> (i32, i32, i32) {
    %c0_i32 = arith.constant 0 : i32
    %c0_i32_0 = arith.constant 0 : i32
    %c0_i32_1 = arith.constant 0 : i32
    return %arg0, %c0_i32, %c0_i32_0 : i32, i32, i32
  }
  func.func @transform_9(%arg0: i32) -> (i32, i32, i32, i32) {
    %c0_i32 = arith.constant 0 : i32
    %c0_i32_0 = arith.constant 0 : i32
    %c0_i32_1 = arith.constant 0 : i32
    %c0_i32_2 = arith.constant 0 : i32
    return %arg0, %c0_i32, %c0_i32_0, %c0_i32_1 : i32, i32, i32, i32
  }
}

module attributes {stable_mosaic.version = 11 : i64} {
  func.func @_fr_unet_kernel(%arg0: i32, %arg1: memref<1x18x18x3xf32, #tpu.memory_space<vmem>>, %arg2: memref<3x3x3x32xbf16, #tpu.memory_space<vmem>>, %arg3: memref<1x32xf32, #tpu.memory_space<vmem>>, %arg4: memref<3x3x32x32xbf16, #tpu.memory_space<vmem>>, %arg5: memref<1x32xf32, #tpu.memory_space<vmem>>, %arg6: memref<32x2xf32, #tpu.memory_space<vmem>>, %arg7: memref<1x2xf32, #tpu.memory_space<vmem>>, %arg8: memref<1x16x16x2xf32, #tpu.memory_space<vmem>>, %arg9: memref<1x1x32xf32, #tpu.memory_space<vmem>>, %arg10: memref<1x18x18x32xf32, #tpu.memory_space<vmem>>) attributes {dimension_semantics = [#tpu.dimension_semantics<parallel>], iteration_bounds = array<i64: 2>, scalar_prefetch = 0 : i64, scratch_operands = 1 : i64, tpu.core_type = #tpu.core_type<tc>, window_params = [{transform_indices = @transform_0, window_bounds = array<i64: 1, 18, 18, 3>}, {pipeline_mode = #tpu.pipeline_mode<synchronous>, transform_indices = @transform_1, window_bounds = array<i64: 3, 3, 3, 32>}, {pipeline_mode = #tpu.pipeline_mode<synchronous>, transform_indices = @transform_2, window_bounds = array<i64: 1, 32>}, {pipeline_mode = #tpu.pipeline_mode<synchronous>, transform_indices = @transform_3, window_bounds = array<i64: 3, 3, 32, 32>}, {pipeline_mode = #tpu.pipeline_mode<synchronous>, transform_indices = @transform_4, window_bounds = array<i64: 1, 32>}, {pipeline_mode = #tpu.pipeline_mode<synchronous>, transform_indices = @transform_5, window_bounds = array<i64: 32, 2>}, {pipeline_mode = #tpu.pipeline_mode<synchronous>, transform_indices = @transform_6, window_bounds = array<i64: 1, 2>}, {transform_indices = @transform_7, window_bounds = array<i64: 1, 16, 16, 2>}, {transform_indices = @transform_8, window_bounds = array<i64: 1, 1, 32>}]} {
    %c0 = arith.constant 0 : index
    %c0_0 = arith.constant 0 : index
    %c0_1 = arith.constant 0 : index
    %c0_2 = arith.constant 0 : index
    %0 = vector.load %arg1[%c0, %c0_0, %c0_1, %c0_2] : memref<1x18x18x3xf32, #tpu.memory_space<vmem>>, vector<1x18x18x3xf32>
    %cst = arith.constant 0.000000e+00 : f32
    %1 = vector.broadcast %cst : f32 to vector<256x32xf32>
    %2 = vector.extract_strided_slice %0 {offsets = [0, 0, 0, 0], sizes = [1, 16, 16, 3], strides = [1, 1, 1, 1]} : vector<1x18x18x3xf32> to vector<1x16x16x3xf32>
    %3 = vector.shape_cast %2 : vector<1x16x16x3xf32> to vector<256x3xf32>
    %4 = arith.truncf %3 : vector<256x3xf32> to vector<256x3xbf16>
    %c0_3 = arith.constant 0 : index
    %c0_4 = arith.constant 0 : index
    %c0_5 = arith.constant 0 : index
    %c0_6 = arith.constant 0 : index
    %5 = vector.load %arg2[%c0_3, %c0_4, %c0_5, %c0_6] : memref<3x3x3x32xbf16, #tpu.memory_space<vmem>>, vector<1x1x3x32xbf16>
    %6 = vector.shape_cast %5 : vector<1x1x3x32xbf16> to vector<3x32xbf16>
    %cst_7 = arith.constant dense<0.000000e+00> : vector<256x32xf32>
    %7 = tpu.matmul %4, %6, %cst_7 {dimension_numbers = #tpu.dot_dimension_numbers<[1], [0], [0], [1], [0, 0, 1, 1], [], []>} : vector<256x3xbf16>, vector<3x32xbf16>, vector<256x32xf32> -> vector<256x32xf32>
    %8 = arith.addf %1, %7 : vector<256x32xf32>
    %9 = vector.extract_strided_slice %0 {offsets = [0, 0, 1, 0], sizes = [1, 16, 16, 3], strides = [1, 1, 1, 1]} : vector<1x18x18x3xf32> to vector<1x16x16x3xf32>
    %10 = vector.shape_cast %9 : vector<1x16x16x3xf32> to vector<256x3xf32>
    %11 = arith.truncf %10 : vector<256x3xf32> to vector<256x3xbf16>
    %c0_8 = arith.constant 0 : index
    %c1 = arith.constant 1 : index
    %c0_9 = arith.constant 0 : index
    %c0_10 = arith.constant 0 : index
    %12 = vector.load %arg2[%c0_8, %c1, %c0_9, %c0_10] : memref<3x3x3x32xbf16, #tpu.memory_space<vmem>>, vector<1x1x3x32xbf16>
    %13 = vector.shape_cast %12 : vector<1x1x3x32xbf16> to vector<3x32xbf16>
    %cst_11 = arith.constant dense<0.000000e+00> : vector<256x32xf32>
    %14 = tpu.matmul %11, %13, %cst_11 {dimension_numbers = #tpu.dot_dimension_numbers<[1], [0], [0], [1], [0, 0, 1, 1], [], []>} : vector<256x3xbf16>, vector<3x32xbf16>, vector<256x32xf32> -> vector<256x32xf32>
    %15 = arith.addf %8, %14 : vector<256x32xf32>
    %16 = vector.extract_strided_slice %0 {offsets = [0, 0, 2, 0], sizes = [1, 16, 16, 3], strides = [1, 1, 1, 1]} : vector<1x18x18x3xf32> to vector<1x16x16x3xf32>
    %17 = vector.shape_cast %16 : vector<1x16x16x3xf32> to vector<256x3xf32>
    %18 = arith.truncf %17 : vector<256x3xf32> to vector<256x3xbf16>
    %c0_12 = arith.constant 0 : index
    %c2 = arith.constant 2 : index
    %c0_13 = arith.constant 0 : index
    %c0_14 = arith.constant 0 : index
    %19 = vector.load %arg2[%c0_12, %c2, %c0_13, %c0_14] : memref<3x3x3x32xbf16, #tpu.memory_space<vmem>>, vector<1x1x3x32xbf16>
    %20 = vector.shape_cast %19 : vector<1x1x3x32xbf16> to vector<3x32xbf16>
    %cst_15 = arith.constant dense<0.000000e+00> : vector<256x32xf32>
    %21 = tpu.matmul %18, %20, %cst_15 {dimension_numbers = #tpu.dot_dimension_numbers<[1], [0], [0], [1], [0, 0, 1, 1], [], []>} : vector<256x3xbf16>, vector<3x32xbf16>, vector<256x32xf32> -> vector<256x32xf32>
    %22 = arith.addf %15, %21 : vector<256x32xf32>
    %23 = vector.extract_strided_slice %0 {offsets = [0, 1, 0, 0], sizes = [1, 16, 16, 3], strides = [1, 1, 1, 1]} : vector<1x18x18x3xf32> to vector<1x16x16x3xf32>
    %24 = vector.shape_cast %23 : vector<1x16x16x3xf32> to vector<256x3xf32>
    %25 = arith.truncf %24 : vector<256x3xf32> to vector<256x3xbf16>
    %c1_16 = arith.constant 1 : index
    %c0_17 = arith.constant 0 : index
    %c0_18 = arith.constant 0 : index
    %c0_19 = arith.constant 0 : index
    %26 = vector.load %arg2[%c1_16, %c0_17, %c0_18, %c0_19] : memref<3x3x3x32xbf16, #tpu.memory_space<vmem>>, vector<1x1x3x32xbf16>
    %27 = vector.shape_cast %26 : vector<1x1x3x32xbf16> to vector<3x32xbf16>
    %cst_20 = arith.constant dense<0.000000e+00> : vector<256x32xf32>
    %28 = tpu.matmul %25, %27, %cst_20 {dimension_numbers = #tpu.dot_dimension_numbers<[1], [0], [0], [1], [0, 0, 1, 1], [], []>} : vector<256x3xbf16>, vector<3x32xbf16>, vector<256x32xf32> -> vector<256x32xf32>
    %29 = arith.addf %22, %28 : vector<256x32xf32>
    %30 = vector.extract_strided_slice %0 {offsets = [0, 1, 1, 0], sizes = [1, 16, 16, 3], strides = [1, 1, 1, 1]} : vector<1x18x18x3xf32> to vector<1x16x16x3xf32>
    %31 = vector.shape_cast %30 : vector<1x16x16x3xf32> to vector<256x3xf32>
    %32 = arith.truncf %31 : vector<256x3xf32> to vector<256x3xbf16>
    %c1_21 = arith.constant 1 : index
    %c1_22 = arith.constant 1 : index
    %c0_23 = arith.constant 0 : index
    %c0_24 = arith.constant 0 : index
    %33 = vector.load %arg2[%c1_21, %c1_22, %c0_23, %c0_24] : memref<3x3x3x32xbf16, #tpu.memory_space<vmem>>, vector<1x1x3x32xbf16>
    %34 = vector.shape_cast %33 : vector<1x1x3x32xbf16> to vector<3x32xbf16>
    %cst_25 = arith.constant dense<0.000000e+00> : vector<256x32xf32>
    %35 = tpu.matmul %32, %34, %cst_25 {dimension_numbers = #tpu.dot_dimension_numbers<[1], [0], [0], [1], [0, 0, 1, 1], [], []>} : vector<256x3xbf16>, vector<3x32xbf16>, vector<256x32xf32> -> vector<256x32xf32>
    %36 = arith.addf %29, %35 : vector<256x32xf32>
    %37 = vector.extract_strided_slice %0 {offsets = [0, 1, 2, 0], sizes = [1, 16, 16, 3], strides = [1, 1, 1, 1]} : vector<1x18x18x3xf32> to vector<1x16x16x3xf32>
    %38 = vector.shape_cast %37 : vector<1x16x16x3xf32> to vector<256x3xf32>
    %39 = arith.truncf %38 : vector<256x3xf32> to vector<256x3xbf16>
    %c1_26 = arith.constant 1 : index
    %c2_27 = arith.constant 2 : index
    %c0_28 = arith.constant 0 : index
    %c0_29 = arith.constant 0 : index
    %40 = vector.load %arg2[%c1_26, %c2_27, %c0_28, %c0_29] : memref<3x3x3x32xbf16, #tpu.memory_space<vmem>>, vector<1x1x3x32xbf16>
    %41 = vector.shape_cast %40 : vector<1x1x3x32xbf16> to vector<3x32xbf16>
    %cst_30 = arith.constant dense<0.000000e+00> : vector<256x32xf32>
    %42 = tpu.matmul %39, %41, %cst_30 {dimension_numbers = #tpu.dot_dimension_numbers<[1], [0], [0], [1], [0, 0, 1, 1], [], []>} : vector<256x3xbf16>, vector<3x32xbf16>, vector<256x32xf32> -> vector<256x32xf32>
    %43 = arith.addf %36, %42 : vector<256x32xf32>
    %44 = vector.extract_strided_slice %0 {offsets = [0, 2, 0, 0], sizes = [1, 16, 16, 3], strides = [1, 1, 1, 1]} : vector<1x18x18x3xf32> to vector<1x16x16x3xf32>
    %45 = vector.shape_cast %44 : vector<1x16x16x3xf32> to vector<256x3xf32>
    %46 = arith.truncf %45 : vector<256x3xf32> to vector<256x3xbf16>
    %c2_31 = arith.constant 2 : index
    %c0_32 = arith.constant 0 : index
    %c0_33 = arith.constant 0 : index
    %c0_34 = arith.constant 0 : index
    %47 = vector.load %arg2[%c2_31, %c0_32, %c0_33, %c0_34] : memref<3x3x3x32xbf16, #tpu.memory_space<vmem>>, vector<1x1x3x32xbf16>
    %48 = vector.shape_cast %47 : vector<1x1x3x32xbf16> to vector<3x32xbf16>
    %cst_35 = arith.constant dense<0.000000e+00> : vector<256x32xf32>
    %49 = tpu.matmul %46, %48, %cst_35 {dimension_numbers = #tpu.dot_dimension_numbers<[1], [0], [0], [1], [0, 0, 1, 1], [], []>} : vector<256x3xbf16>, vector<3x32xbf16>, vector<256x32xf32> -> vector<256x32xf32>
    %50 = arith.addf %43, %49 : vector<256x32xf32>
    %51 = vector.extract_strided_slice %0 {offsets = [0, 2, 1, 0], sizes = [1, 16, 16, 3], strides = [1, 1, 1, 1]} : vector<1x18x18x3xf32> to vector<1x16x16x3xf32>
    %52 = vector.shape_cast %51 : vector<1x16x16x3xf32> to vector<256x3xf32>
    %53 = arith.truncf %52 : vector<256x3xf32> to vector<256x3xbf16>
    %c2_36 = arith.constant 2 : index
    %c1_37 = arith.constant 1 : index
    %c0_38 = arith.constant 0 : index
    %c0_39 = arith.constant 0 : index
    %54 = vector.load %arg2[%c2_36, %c1_37, %c0_38, %c0_39] : memref<3x3x3x32xbf16, #tpu.memory_space<vmem>>, vector<1x1x3x32xbf16>
    %55 = vector.shape_cast %54 : vector<1x1x3x32xbf16> to vector<3x32xbf16>
    %cst_40 = arith.constant dense<0.000000e+00> : vector<256x32xf32>
    %56 = tpu.matmul %53, %55, %cst_40 {dimension_numbers = #tpu.dot_dimension_numbers<[1], [0], [0], [1], [0, 0, 1, 1], [], []>} : vector<256x3xbf16>, vector<3x32xbf16>, vector<256x32xf32> -> vector<256x32xf32>
    %57 = arith.addf %50, %56 : vector<256x32xf32>
    %58 = vector.extract_strided_slice %0 {offsets = [0, 2, 2, 0], sizes = [1, 16, 16, 3], strides = [1, 1, 1, 1]} : vector<1x18x18x3xf32> to vector<1x16x16x3xf32>
    %59 = vector.shape_cast %58 : vector<1x16x16x3xf32> to vector<256x3xf32>
    %60 = arith.truncf %59 : vector<256x3xf32> to vector<256x3xbf16>
    %c2_41 = arith.constant 2 : index
    %c2_42 = arith.constant 2 : index
    %c0_43 = arith.constant 0 : index
    %c0_44 = arith.constant 0 : index
    %61 = vector.load %arg2[%c2_41, %c2_42, %c0_43, %c0_44] : memref<3x3x3x32xbf16, #tpu.memory_space<vmem>>, vector<1x1x3x32xbf16>
    %62 = vector.shape_cast %61 : vector<1x1x3x32xbf16> to vector<3x32xbf16>
    %cst_45 = arith.constant dense<0.000000e+00> : vector<256x32xf32>
    %63 = tpu.matmul %60, %62, %cst_45 {dimension_numbers = #tpu.dot_dimension_numbers<[1], [0], [0], [1], [0, 0, 1, 1], [], []>} : vector<256x3xbf16>, vector<3x32xbf16>, vector<256x32xf32> -> vector<256x32xf32>
    %64 = arith.addf %57, %63 : vector<256x32xf32>
    %c0_46 = arith.constant 0 : index
    %c0_47 = arith.constant 0 : index
    %65 = vector.load %arg3[%c0_46, %c0_47] : memref<1x32xf32, #tpu.memory_space<vmem>>, vector<1x32xf32>
    %66 = vector.broadcast %65 : vector<1x32xf32> to vector<256x32xf32>
    %67 = arith.addf %64, %66 : vector<256x32xf32>
    %cst_48 = arith.constant 0.000000e+00 : f32
    %68 = vector.broadcast %cst_48 : f32 to vector<256x32xf32>
    %69 = arith.maximumf %67, %68 : vector<256x32xf32>
    %cst_49 = arith.constant 0.000000e+00 : f32
    %70 = vector.broadcast %cst_49 : f32 to vector<1x18x18x32xf32>
    %c0_50 = arith.constant 0 : index
    %c0_51 = arith.constant 0 : index
    %c0_52 = arith.constant 0 : index
    %c0_53 = arith.constant 0 : index
    %71 = vector.load %arg10[%c0_50, %c0_51, %c0_52, %c0_53] : memref<1x18x18x32xf32, #tpu.memory_space<vmem>>, vector<1x18x18x32xf32>
    tpu.vector_store %arg10[%c0_50, %c0_51, %c0_52, %c0_53], %70 {strides = array<i32>} : memref<1x18x18x32xf32, #tpu.memory_space<vmem>>, vector<1x18x18x32xf32>,
    %72 = vector.shape_cast %69 : vector<256x32xf32> to vector<1x16x16x32xf32>
    %c0_54 = arith.constant 0 : index
    %c1_55 = arith.constant 1 : index
    %c1_56 = arith.constant 1 : index
    %c0_57 = arith.constant 0 : index
    %73 = vector.load %arg10[%c0_54, %c1_55, %c1_56, %c0_57] : memref<1x18x18x32xf32, #tpu.memory_space<vmem>>, vector<1x16x16x32xf32>
    tpu.vector_store %arg10[%c0_54, %c1_55, %c1_56, %c0_57], %72 {strides = array<i32>} : memref<1x18x18x32xf32, #tpu.memory_space<vmem>>, vector<1x16x16x32xf32>,
    %c0_58 = arith.constant 0 : index
    %c0_59 = arith.constant 0 : index
    %c0_60 = arith.constant 0 : index
    %c0_61 = arith.constant 0 : index
    %74 = vector.load %arg10[%c0_58, %c0_59, %c0_60, %c0_61] : memref<1x18x18x32xf32, #tpu.memory_space<vmem>>, vector<1x18x18x32xf32>
    %cst_62 = arith.constant 0.000000e+00 : f32
    %75 = vector.broadcast %cst_62 : f32 to vector<256x32xf32>
    %76 = vector.extract_strided_slice %74 {offsets = [0, 0, 0, 0], sizes = [1, 16, 16, 32], strides = [1, 1, 1, 1]} : vector<1x18x18x32xf32> to vector<1x16x16x32xf32>
    %77 = vector.shape_cast %76 : vector<1x16x16x32xf32> to vector<256x32xf32>
    %78 = arith.truncf %77 : vector<256x32xf32> to vector<256x32xbf16>
    %c0_63 = arith.constant 0 : index
    %c0_64 = arith.constant 0 : index
    %c0_65 = arith.constant 0 : index
    %c0_66 = arith.constant 0 : index
    %79 = vector.load %arg4[%c0_63, %c0_64, %c0_65, %c0_66] : memref<3x3x32x32xbf16, #tpu.memory_space<vmem>>, vector<1x1x32x32xbf16>
    %80 = vector.shape_cast %79 : vector<1x1x32x32xbf16> to vector<32x32xbf16>
    %cst_67 = arith.constant dense<0.000000e+00> : vector<256x32xf32>
    %81 = tpu.matmul %78, %80, %cst_67 {dimension_numbers = #tpu.dot_dimension_numbers<[1], [0], [0], [1], [0, 0, 1, 1], [], []>} : vector<256x32xbf16>, vector<32x32xbf16>, vector<256x32xf32> -> vector<256x32xf32>
    %82 = arith.addf %75, %81 : vector<256x32xf32>
    %83 = vector.extract_strided_slice %74 {offsets = [0, 0, 1, 0], sizes = [1, 16, 16, 32], strides = [1, 1, 1, 1]} : vector<1x18x18x32xf32> to vector<1x16x16x32xf32>
    %84 = vector.shape_cast %83 : vector<1x16x16x32xf32> to vector<256x32xf32>
    %85 = arith.truncf %84 : vector<256x32xf32> to vector<256x32xbf16>
    %c0_68 = arith.constant 0 : index
    %c1_69 = arith.constant 1 : index
    %c0_70 = arith.constant 0 : index
    %c0_71 = arith.constant 0 : index
    %86 = vector.load %arg4[%c0_68, %c1_69, %c0_70, %c0_71] : memref<3x3x32x32xbf16, #tpu.memory_space<vmem>>, vector<1x1x32x32xbf16>
    %87 = vector.shape_cast %86 : vector<1x1x32x32xbf16> to vector<32x32xbf16>
    %cst_72 = arith.constant dense<0.000000e+00> : vector<256x32xf32>
    %88 = tpu.matmul %85, %87, %cst_72 {dimension_numbers = #tpu.dot_dimension_numbers<[1], [0], [0], [1], [0, 0, 1, 1], [], []>} : vector<256x32xbf16>, vector<32x32xbf16>, vector<256x32xf32> -> vector<256x32xf32>
    %89 = arith.addf %82, %88 : vector<256x32xf32>
    %90 = vector.extract_strided_slice %74 {offsets = [0, 0, 2, 0], sizes = [1, 16, 16, 32], strides = [1, 1, 1, 1]} : vector<1x18x18x32xf32> to vector<1x16x16x32xf32>
    %91 = vector.shape_cast %90 : vector<1x16x16x32xf32> to vector<256x32xf32>
    %92 = arith.truncf %91 : vector<256x32xf32> to vector<256x32xbf16>
    %c0_73 = arith.constant 0 : index
    %c2_74 = arith.constant 2 : index
    %c0_75 = arith.constant 0 : index
    %c0_76 = arith.constant 0 : index
    %93 = vector.load %arg4[%c0_73, %c2_74, %c0_75, %c0_76] : memref<3x3x32x32xbf16, #tpu.memory_space<vmem>>, vector<1x1x32x32xbf16>
    %94 = vector.shape_cast %93 : vector<1x1x32x32xbf16> to vector<32x32xbf16>
    %cst_77 = arith.constant dense<0.000000e+00> : vector<256x32xf32>
    %95 = tpu.matmul %92, %94, %cst_77 {dimension_numbers = #tpu.dot_dimension_numbers<[1], [0], [0], [1], [0, 0, 1, 1], [], []>} : vector<256x32xbf16>, vector<32x32xbf16>, vector<256x32xf32> -> vector<256x32xf32>
    %96 = arith.addf %89, %95 : vector<256x32xf32>
    %97 = vector.extract_strided_slice %74 {offsets = [0, 1, 0, 0], sizes = [1, 16, 16, 32], strides = [1, 1, 1, 1]} : vector<1x18x18x32xf32> to vector<1x16x16x32xf32>
    %98 = vector.shape_cast %97 : vector<1x16x16x32xf32> to vector<256x32xf32>
    %99 = arith.truncf %98 : vector<256x32xf32> to vector<256x32xbf16>
    %c1_78 = arith.constant 1 : index
    %c0_79 = arith.constant 0 : index
    %c0_80 = arith.constant 0 : index
    %c0_81 = arith.constant 0 : index
    %100 = vector.load %arg4[%c1_78, %c0_79, %c0_80, %c0_81] : memref<3x3x32x32xbf16, #tpu.memory_space<vmem>>, vector<1x1x32x32xbf16>
    %101 = vector.shape_cast %100 : vector<1x1x32x32xbf16> to vector<32x32xbf16>
    %cst_82 = arith.constant dense<0.000000e+00> : vector<256x32xf32>
    %102 = tpu.matmul %99, %101, %cst_82 {dimension_numbers = #tpu.dot_dimension_numbers<[1], [0], [0], [1], [0, 0, 1, 1], [], []>} : vector<256x32xbf16>, vector<32x32xbf16>, vector<256x32xf32> -> vector<256x32xf32>
    %103 = arith.addf %96, %102 : vector<256x32xf32>
    %104 = vector.extract_strided_slice %74 {offsets = [0, 1, 1, 0], sizes = [1, 16, 16, 32], strides = [1, 1, 1, 1]} : vector<1x18x18x32xf32> to vector<1x16x16x32xf32>
    %105 = vector.shape_cast %104 : vector<1x16x16x32xf32> to vector<256x32xf32>
    %106 = arith.truncf %105 : vector<256x32xf32> to vector<256x32xbf16>
    %c1_83 = arith.constant 1 : index
    %c1_84 = arith.constant 1 : index
    %c0_85 = arith.constant 0 : index
    %c0_86 = arith.constant 0 : index
    %107 = vector.load %arg4[%c1_83, %c1_84, %c0_85, %c0_86] : memref<3x3x32x32xbf16, #tpu.memory_space<vmem>>, vector<1x1x32x32xbf16>
    %108 = vector.shape_cast %107 : vector<1x1x32x32xbf16> to vector<32x32xbf16>
    %cst_87 = arith.constant dense<0.000000e+00> : vector<256x32xf32>
    %109 = tpu.matmul %106, %108, %cst_87 {dimension_numbers = #tpu.dot_dimension_numbers<[1], [0], [0], [1], [0, 0, 1, 1], [], []>} : vector<256x32xbf16>, vector<32x32xbf16>, vector<256x32xf32> -> vector<256x32xf32>
    %110 = arith.addf %103, %109 : vector<256x32xf32>
    %111 = vector.extract_strided_slice %74 {offsets = [0, 1, 2, 0], sizes = [1, 16, 16, 32], strides = [1, 1, 1, 1]} : vector<1x18x18x32xf32> to vector<1x16x16x32xf32>
    %112 = vector.shape_cast %111 : vector<1x16x16x32xf32> to vector<256x32xf32>
    %113 = arith.truncf %112 : vector<256x32xf32> to vector<256x32xbf16>
    %c1_88 = arith.constant 1 : index
    %c2_89 = arith.constant 2 : index
    %c0_90 = arith.constant 0 : index
    %c0_91 = arith.constant 0 : index
    %114 = vector.load %arg4[%c1_88, %c2_89, %c0_90, %c0_91] : memref<3x3x32x32xbf16, #tpu.memory_space<vmem>>, vector<1x1x32x32xbf16>
    %115 = vector.shape_cast %114 : vector<1x1x32x32xbf16> to vector<32x32xbf16>
    %cst_92 = arith.constant dense<0.000000e+00> : vector<256x32xf32>
    %116 = tpu.matmul %113, %115, %cst_92 {dimension_numbers = #tpu.dot_dimension_numbers<[1], [0], [0], [1], [0, 0, 1, 1], [], []>} : vector<256x32xbf16>, vector<32x32xbf16>, vector<256x32xf32> -> vector<256x32xf32>
    %117 = arith.addf %110, %116 : vector<256x32xf32>
    %118 = vector.extract_strided_slice %74 {offsets = [0, 2, 0, 0], sizes = [1, 16, 16, 32], strides = [1, 1, 1, 1]} : vector<1x18x18x32xf32> to vector<1x16x16x32xf32>
    %119 = vector.shape_cast %118 : vector<1x16x16x32xf32> to vector<256x32xf32>
    %120 = arith.truncf %119 : vector<256x32xf32> to vector<256x32xbf16>
    %c2_93 = arith.constant 2 : index
    %c0_94 = arith.constant 0 : index
    %c0_95 = arith.constant 0 : index
    %c0_96 = arith.constant 0 : index
    %121 = vector.load %arg4[%c2_93, %c0_94, %c0_95, %c0_96] : memref<3x3x32x32xbf16, #tpu.memory_space<vmem>>, vector<1x1x32x32xbf16>
    %122 = vector.shape_cast %121 : vector<1x1x32x32xbf16> to vector<32x32xbf16>
    %cst_97 = arith.constant dense<0.000000e+00> : vector<256x32xf32>
    %123 = tpu.matmul %120, %122, %cst_97 {dimension_numbers = #tpu.dot_dimension_numbers<[1], [0], [0], [1], [0, 0, 1, 1], [], []>} : vector<256x32xbf16>, vector<32x32xbf16>, vector<256x32xf32> -> vector<256x32xf32>
    %124 = arith.addf %117, %123 : vector<256x32xf32>
    %125 = vector.extract_strided_slice %74 {offsets = [0, 2, 1, 0], sizes = [1, 16, 16, 32], strides = [1, 1, 1, 1]} : vector<1x18x18x32xf32> to vector<1x16x16x32xf32>
    %126 = vector.shape_cast %125 : vector<1x16x16x32xf32> to vector<256x32xf32>
    %127 = arith.truncf %126 : vector<256x32xf32> to vector<256x32xbf16>
    %c2_98 = arith.constant 2 : index
    %c1_99 = arith.constant 1 : index
    %c0_100 = arith.constant 0 : index
    %c0_101 = arith.constant 0 : index
    %128 = vector.load %arg4[%c2_98, %c1_99, %c0_100, %c0_101] : memref<3x3x32x32xbf16, #tpu.memory_space<vmem>>, vector<1x1x32x32xbf16>
    %129 = vector.shape_cast %128 : vector<1x1x32x32xbf16> to vector<32x32xbf16>
    %cst_102 = arith.constant dense<0.000000e+00> : vector<256x32xf32>
    %130 = tpu.matmul %127, %129, %cst_102 {dimension_numbers = #tpu.dot_dimension_numbers<[1], [0], [0], [1], [0, 0, 1, 1], [], []>} : vector<256x32xbf16>, vector<32x32xbf16>, vector<256x32xf32> -> vector<256x32xf32>
    %131 = arith.addf %124, %130 : vector<256x32xf32>
    %132 = vector.extract_strided_slice %74 {offsets = [0, 2, 2, 0], sizes = [1, 16, 16, 32], strides = [1, 1, 1, 1]} : vector<1x18x18x32xf32> to vector<1x16x16x32xf32>
    %133 = vector.shape_cast %132 : vector<1x16x16x32xf32> to vector<256x32xf32>
    %134 = arith.truncf %133 : vector<256x32xf32> to vector<256x32xbf16>
    %c2_103 = arith.constant 2 : index
    %c2_104 = arith.constant 2 : index
    %c0_105 = arith.constant 0 : index
    %c0_106 = arith.constant 0 : index
    %135 = vector.load %arg4[%c2_103, %c2_104, %c0_105, %c0_106] : memref<3x3x32x32xbf16, #tpu.memory_space<vmem>>, vector<1x1x32x32xbf16>
    %136 = vector.shape_cast %135 : vector<1x1x32x32xbf16> to vector<32x32xbf16>
    %cst_107 = arith.constant dense<0.000000e+00> : vector<256x32xf32>
    %137 = tpu.matmul %134, %136, %cst_107 {dimension_numbers = #tpu.dot_dimension_numbers<[1], [0], [0], [1], [0, 0, 1, 1], [], []>} : vector<256x32xbf16>, vector<32x32xbf16>, vector<256x32xf32> -> vector<256x32xf32>
    %138 = arith.addf %131, %137 : vector<256x32xf32>
    %c0_108 = arith.constant 0 : index
    %c0_109 = arith.constant 0 : index
    %139 = vector.load %arg5[%c0_108, %c0_109] : memref<1x32xf32, #tpu.memory_space<vmem>>, vector<1x32xf32>
    %140 = vector.broadcast %139 : vector<1x32xf32> to vector<256x32xf32>
    %141 = arith.addf %138, %140 : vector<256x32xf32>
    %cst_110 = arith.constant 0.000000e+00 : f32
    %142 = vector.broadcast %cst_110 : f32 to vector<256x32xf32>
    %143 = arith.maximumf %141, %142 : vector<256x32xf32>
    %c0_111 = arith.constant 0 : index
    %c0_112 = arith.constant 0 : index
    %144 = vector.load %arg6[%c0_111, %c0_112] : memref<32x2xf32, #tpu.memory_space<vmem>>, vector<32x2xf32>
    %cst_113 = arith.constant dense<0.000000e+00> : vector<256x2xf32>
    %145 = tpu.matmul %143, %144, %cst_113 {dimension_numbers = #tpu.dot_dimension_numbers<[1], [0], [0], [1], [0, 0, 1, 1], [], []>} : vector<256x32xf32>, vector<32x2xf32>, vector<256x2xf32> -> vector<256x2xf32>
    %c0_114 = arith.constant 0 : index
    %c0_115 = arith.constant 0 : index
    %146 = vector.load %arg7[%c0_114, %c0_115] : memref<1x2xf32, #tpu.memory_space<vmem>>, vector<1x2xf32>
    %147 = vector.broadcast %146 : vector<1x2xf32> to vector<256x2xf32>
    %148 = arith.addf %145, %147 : vector<256x2xf32>
    %149 = vector.shape_cast %148 : vector<256x2xf32> to vector<1x16x16x2xf32>
    %c0_116 = arith.constant 0 : index
    %c0_117 = arith.constant 0 : index
    %c0_118 = arith.constant 0 : index
    %c0_119 = arith.constant 0 : index
    %150 = vector.load %arg8[%c0_116, %c0_117, %c0_118, %c0_119] : memref<1x16x16x2xf32, #tpu.memory_space<vmem>>, vector<1x16x16x2xf32>
    tpu.vector_store %arg8[%c0_116, %c0_117, %c0_118, %c0_119], %149 {strides = array<i32>} : memref<1x16x16x2xf32, #tpu.memory_space<vmem>>, vector<1x16x16x2xf32>,
    %cst_120 = arith.constant dense<0.000000e+00> : vector<32xf32>
    %151 = vector.multi_reduction <add>, %143, %cst_120 [0] : vector<256x32xf32> to vector<32xf32>
    %152 = vector.shape_cast %151 : vector<32xf32> to vector<1x32xf32>
    %cst_121 = arith.constant 3.906250e-03 : f32
    %153 = vector.broadcast %cst_121 : f32 to vector<1x32xf32>
    %154 = arith.mulf %152, %153 : vector<1x32xf32>
    %155 = vector.shape_cast %154 : vector<1x32xf32> to vector<1x1x32xf32>
    %c0_122 = arith.constant 0 : index
    %c0_123 = arith.constant 0 : index
    %c0_124 = arith.constant 0 : index
    %156 = vector.load %arg9[%c0_122, %c0_123, %c0_124] : memref<1x1x32xf32, #tpu.memory_space<vmem>>, vector<1x1x32xf32>
    tpu.vector_store %arg9[%c0_122, %c0_123, %c0_124], %155 {strides = array<i32>} : memref<1x1x32xf32, #tpu.memory_space<vmem>>, vector<1x1x32xf32>,
    return
  }
  func.func @transform_0(%arg0: i32) -> (i32, i32, i32, i32) {
    %c0_i32 = arith.constant 0 : i32
    %c0_i32_0 = arith.constant 0 : i32
    %c0_i32_1 = arith.constant 0 : i32
    %c0_i32_2 = arith.constant 0 : i32
    return %arg0, %c0_i32, %c0_i32_0, %c0_i32_1 : i32, i32, i32, i32
  }
  func.func @transform_1(%arg0: i32) -> (i32, i32, i32, i32) {
    %c0_i32 = arith.constant 0 : i32
    %c0_i32_0 = arith.constant 0 : i32
    %c0_i32_1 = arith.constant 0 : i32
    %c0_i32_2 = arith.constant 0 : i32
    %c0_i32_3 = arith.constant 0 : i32
    return %c0_i32, %c0_i32_0, %c0_i32_1, %c0_i32_2 : i32, i32, i32, i32
  }
  func.func @transform_2(%arg0: i32) -> (i32, i32) {
    %c0_i32 = arith.constant 0 : i32
    %c0_i32_0 = arith.constant 0 : i32
    %c0_i32_1 = arith.constant 0 : i32
    return %c0_i32, %c0_i32_0 : i32, i32
  }
  func.func @transform_3(%arg0: i32) -> (i32, i32, i32, i32) {
    %c0_i32 = arith.constant 0 : i32
    %c0_i32_0 = arith.constant 0 : i32
    %c0_i32_1 = arith.constant 0 : i32
    %c0_i32_2 = arith.constant 0 : i32
    %c0_i32_3 = arith.constant 0 : i32
    return %c0_i32, %c0_i32_0, %c0_i32_1, %c0_i32_2 : i32, i32, i32, i32
  }
  func.func @transform_4(%arg0: i32) -> (i32, i32) {
    %c0_i32 = arith.constant 0 : i32
    %c0_i32_0 = arith.constant 0 : i32
    %c0_i32_1 = arith.constant 0 : i32
    return %c0_i32, %c0_i32_0 : i32, i32
  }
  func.func @transform_5(%arg0: i32) -> (i32, i32) {
    %c0_i32 = arith.constant 0 : i32
    %c0_i32_0 = arith.constant 0 : i32
    %c0_i32_1 = arith.constant 0 : i32
    return %c0_i32, %c0_i32_0 : i32, i32
  }
  func.func @transform_6(%arg0: i32) -> (i32, i32) {
    %c0_i32 = arith.constant 0 : i32
    %c0_i32_0 = arith.constant 0 : i32
    %c0_i32_1 = arith.constant 0 : i32
    return %c0_i32, %c0_i32_0 : i32, i32
  }
  func.func @transform_7(%arg0: i32) -> (i32, i32, i32, i32) {
    %c0_i32 = arith.constant 0 : i32
    %c0_i32_0 = arith.constant 0 : i32
    %c0_i32_1 = arith.constant 0 : i32
    %c0_i32_2 = arith.constant 0 : i32
    return %arg0, %c0_i32, %c0_i32_0, %c0_i32_1 : i32, i32, i32, i32
  }
  func.func @transform_8(%arg0: i32) -> (i32, i32, i32) {
    %c0_i32 = arith.constant 0 : i32
    %c0_i32_0 = arith.constant 0 : i32
    %c0_i32_1 = arith.constant 0 : i32
    return %arg0, %c0_i32, %c0_i32_0 : i32, i32, i32
  }
}

</mosaic_0001>

<bundles_post_ra>
// kernel: triple_fr_unet_forward.2
= control target key start
LH: loop header
LB: loop body
LE: loop exit
PB: predicated region body
PF: predicated region fallthrough
CT: control target
= control target key end

     0   :  { %s11692_s0 = inlined_call_operand.vmem [shape: f32[2,18,18,3], index: 0, kind: input, shape index: {}]   ;;  %s11693_s1 = inlined_call_operand.vmem [shape: bf16[3,3,3,16], index: 1, kind: input, shape index: {}]   ;;  %s11694_s2 = inlined_call_operand.vmem [shape: f32[1,16], index: 2, kind: input, shape index: {}]   ;;  %s11695_s3 = inlined_call_operand.vmem [shape: bf16[3,3,16,16], index: 3, kind: input, shape index: {}]   ;;  %s11696_s4 = inlined_call_operand.vmem [shape: f32[1,16], index: 4, kind: input, shape index: {}]   ;;  %s11697_s5 = inlined_call_operand.vmem [shape: f32[16,1], index: 5, kind: input, shape index: {}]   ;;  %s11698_s6 = inlined_call_operand.<no memory space> [shape: f32[1,1], index: 6, kind: input, shape index: {}]   ;;  %s11699_s7 = inlined_call_operand.vmem [shape: f32[2,16,16,1], index: 7, kind: output, shape index: {0}]   ;;  %s11700_s8 = inlined_call_operand.hbm [shape: f32[2,1,16], index: 8, kind: output, shape index: {1}]   ;;  %s11701_s9 = inlined_call_operand.vmem [shape: f32[2,18,18,3], index: 9, kind: output, shape index: {2}]  }
   0x1   :  { %v15_v0 = vstv %s11698_s6 }
   0x2   :  { %16 = vst [vmem:[#allocation3] sm:$0x1] %v15_v0 }
   0x3   :  { %17 = vsyncpa [#allocation5], 0 }
   0x4   :  { %19 = vsyncpa [#allocation5 + $0x1], 0  ;;  %s8030_s11 = smov 0   ;;  %s8032_s12 = smov 0  }
   0x5   :  { %s8034_s13 = smov 0   ;;  %s8036_s14 = smov 0  }
   0x6 LB: > { %s8051_s6 = sadd.s32 4294967295, %s7971_s14   ;;  %s6291_s15 = sadd.s32 4294967294, %s7971_s14   ;;  %s7971_s14 = sphi %s8036_s14, %s12199_s14   ;;  %s7967_s13 = sphi %s8034_s13, %s12198_s13   ;;  %s7963_s12 = sphi %s8032_s12, %s12197_s12   ;;  %s7959_s11 = sphi %s8030_s11, %s12196_s11  }
   0x7   : > { %s8055_s16 = sadd.s32 1, %s7971_s14   ;;  %s210_s17 = sadd.s32 1, %s7967_s13 }
   0x8   : > { %s207_s18 = ssub.s32 %s7971_s14, %s8055_s16  ;;  %p220_p0 = scmp.ne.s32.totalorder %s7967_s13, %s7963_s12 }
   0x9   : > { %p208_p1 = scmp.eq.s32.totalorder %s207_s18, 0  ;;  %p221_p2 = scmp.eq.s32.totalorder %s8051_s6, 1 }
   0xa   : > { %p226_p3 = scmp.ne.s32.totalorder %s7963_s12, %s7959_s11  ;;  %p227_p4 = scmp.eq.s32.totalorder %s6291_s15, 1 }
   0xb   : > { %s8066_s19 = scalar_select %p208_p1, %s7967_s13, %s210_s17  }
   0xc   : > { %p8068_p5 = por %p221_p2, %p220_p0  ;;  %p8072_p6 = por %p227_p4, %p226_p3 }
   0xd   : > { %p6294_p7 = scmp.ge.s32.totalorder %s7971_s14, 1  ;;  %p297_p8 = scmp.lt.s32.totalorder %s7971_s14, 3 }
   0xf   : > { %p298_p9 = pnand %p6294_p7, %p297_p8 }
  0x11   : > { %301 = sbr.rel (%p298_p9) target bundleno = 1381 (0x565), region = 48 }
  0x16   : > { %v6299_v1 = vld [vmem:[%s11693_s1 + $0x2] sm:$0x3]  ;;  %vm657_vm0 = vcmask 1040384   ;;  %vm658_vm1 = vcmask 1041408   ;;  %p342_p10 = scmp.lt.s32.totalorder %s8051_s6, 1  ;;  %v7973_v2 = vmov 65535  }
  0x17   : > { %v659_v3 = vsel %vm657_vm0, 4294967295, %v7973_v2  ;;  %v428_v4 = vld [vmem:[%s11693_s1] sm:$0x3]  ;;  %v6332_v6 = vld [vmem:[%s11693_s1 + $0x4] sm:$0x3]  ;;  %vm477_vm2 = vcmask 1046528  }
  0x18   : > { %v8085_v5 = vsel %vm658_vm1, %v659_v3, 0  ;;  %s8088_s26 = scalar_select %p342_p10, %s8051_s6, 1  ;;  %v6349_v10 = vld [vmem:[%s11693_s1 + $0x6] sm:$0x3]  ;;  %vm608_vm3 = vcmask 23552   ;;  %vm1037_vm4 = vcmask 1045504  }
  0x19   : > { %v662_v7 = vand.u32 %v6299_v1, %v8085_v5  ;;  %v8095_v8 = vand.u32 %v8085_v5, %v428_v4  ;;  %v8098_v9 = vand.u32 %v6332_v6, %v8085_v5  ;;  %v6366_v22 = vld [vmem:[%s11693_s1 + $0x8] sm:$0x3]  ;;  %v8152_v29 = vand.u32 %v6349_v10, %v8085_v5  ;;  %s333_s28 = sand.u32 1, %s7963_s12   ;;  %s7976_s15 = smov [#allocation4]  }
  0x1a   : > { %s7729_s29 = smul.u32 432, %s8088_s26  ;;  %v8183_v43 = vand.u32 %v6366_v22, %v8085_v5  ;;  %vm2729_vm5 = vcmask 130048   ;;  %vm2732_vm6 = vcmask 123904   ;;  %vm5651_vm7 = vcmask 122880   ;;  %s11393_s30 = scalar_lea.vmem [#allocation4], %s333_s28 }
  0x1b   : > { %7727 = vmatprep.subr.bf16.mxu1 %v662_v7  ;;  %7063 = vmatprep.subr.bf16.mxu0 %v662_v7  ;;  %vm5879_vm8 = vcmask 17408   ;;  %s6722_s10 = sshll.u32 %s8088_s26, 8  ;;  %vm5548_vm9 = vcmask 7168   ;;  %s6719_s26 = sshll.u32 %s8051_s6, 4 }
  0x1c   : > { %7728 = vmatpush3.bf16.msra.mxu1 %v662_v7  ;;  %7064 = vmatpush3.bf16.msra.mxu0 %v662_v7  ;;  %s8109_s18 = scalar_lea.vmem %s11692_s0, %s7729_s29  ;;  %s9154_s25 = scalar_lea.vmem %s11701_s9, %s7729_s29 }
  0x1d   : > { %v8112_v11 = vld [vmem:[%s8109_s18] sm:$0xff]  ;;  %v8115_v12 = vld [vmem:[%s8109_s18 + $0x8] sm:$0xff]  ;;  %v8118_v13 = vld [vmem:[%s8109_s18 + $0x10] sm:$0x3]  ;;  %7097 = vmatprep.subr.bf16.mxu1 %v8095_v8  ;;  %7131 = vmatprep.subr.bf16.mxu0 %v8098_v9  ;;  %s11456_s22 = scalar_lea.vmem %s11699_s7, %s6722_s10  ;;  %s11558_s24 = scalar_lea.hbm %s11700_s8, %s6719_s26 }
  0x1e   : > { %v478_v14 = vrot.slane %v8112_v11, 1  ;;  %v479_v15 = vrot.slane %v8115_v12, 1  ;;  %v481_v16 = vrot.slane %v8118_v13, 1  ;;  %v8126_v17 = vld [vmem:[%s8109_s18 + $0xc0] sm:$0xff]  ;;  %v8129_v18 = vld [vmem:[%s8109_s18 + $0xc8] sm:$0xff]  ;;  %v8143_v26 = vld [vmem:[%s8109_s18 + $0x18] sm:$0xff] }
  0x1f   : > { %v8132_v19 = vld [vmem:[%s8109_s18 + $0xd0] sm:$0x3]  ;;  %v518_v20 = vrot.slane %v8126_v17, 1  ;;  %v519_v21 = vrot.slane %v8129_v18, 1  ;;  %v8146_v27 = vld [vmem:[%s8109_s18 + $0x20] sm:$0xff]  ;;  %v483_v32 = vrot.slane %v8143_v26, 1 }
  0x20   : > { %v480_v23 = vsel %vm477_vm2, %v478_v14, %v479_v15  ;;  %v482_v24 = vsel %vm477_vm2, %v479_v15, %v481_v16  ;;  %v521_v25 = vrot.slane %v8132_v19, 1  ;;  %v8149_v28 = vld [vmem:[%s8109_s18 + $0x28] sm:$0x3]  ;;  %v484_v33 = vrot.slane %v8146_v27, 1  ;;  %v8160_v34 = vld [vmem:[%s8109_s18 + $0xd8] sm:$0xff]  ;;  %v8163_v35 = vld [vmem:[%s8109_s18 + $0xe0] sm:$0xff] }
  0x21   : > { %v590_v30 = vpack.c.bf16 %v482_v24, %v480_v23  ;;  %v8155_v31 = vsel %vm477_vm2, %v518_v20, %v519_v21  ;;  %v8166_v36 = vld [vmem:[%s8109_s18 + $0xe8] sm:$0x3]  ;;  %v486_v39 = vrot.slane %v8149_v28, 1  ;;  %v8174_v40 = vld [vmem:[%s8109_s18 + $0x30] sm:$0xff]  ;;  %v8177_v41 = vld [vmem:[%s8109_s18 + $0x38] sm:$0xff]  ;;  %v523_v47 = vrot.slane %v8160_v34, 1 }
  0x22   : > { %11812 = vst [vmem:[#allocation7_spill] sm:$0xff] %v8155_v31  ;;  %v8170_v38 = vsel %vm477_vm2, %v519_v21, %v521_v25  ;;  %v8180_v42 = vld [vmem:[%s8109_s18 + $0xf0] sm:$0xff]  ;;  %v8192_v46 = vsel %vm477_vm2, %v483_v32, %v484_v33  ;;  %v8196_v48 = vld [vmem:[%s8109_s18 + $0x40] sm:$0x3]  ;;  %v8199_v49 = vld [vmem:[%s8109_s18 + $0xf8] sm:$0xff]  ;;  %v524_v51 = vrot.slane %v8163_v35, 1 }
  0x23   : > { %11813 = vst [vmem:[#allocation8_spill] sm:$0xff] %v8170_v38  ;;  %7065 = vmatprep.mubr.msk.bf16.mxu0 %vm608_vm3, %v590_v30  ;;  %v8189_v45 = vpack.c.bf16 %v8170_v38, %v8155_v31  ;;  %11815 = vst [vmem:[#allocation10_spill] sm:$0xff] %v8192_v46  ;;  %v8202_v50 = vsel %vm477_vm2, %v484_v33, %v486_v39  ;;  %v526_v52 = vrot.slane %v8166_v36, 1  ;;  %v488_v53 = vrot.slane %v8174_v40, 1  ;;  %v8208_v54 = vld [vmem:[%s8109_s18 + $0x100] sm:$0x3] }
  0x24   : > { %11816 = vst [vmem:[#allocation11_spill] sm:$0xff] %v8202_v50  ;;  %11817 = vst [vmem:[#allocation12_spill] sm:$0xff] %v8208_v54  ;;  %v8211_v55 = vld [vmem:[%s8109_s18 + $0x48] sm:$0xff]  ;;  %v8217_v56 = vpack.c.bf16 %v8202_v50, %v8192_v46  ;;  %v489_v57 = vrot.slane %v8177_v41, 1  ;;  %v491_v58 = vrot.slane %v8196_v48, 1  ;;  %v528_v59 = vrot.slane %v8180_v42, 1 }
  0x25   : > { %11814 = vst [vmem:[#allocation9_spill] sm:$0xff] %v8189_v45  ;;  %7081 = vmatprep.mubr.msk.bf16.mxu1 %vm608_vm3, %v8189_v45  ;;  %v8223_v60 = vld [vmem:[%s8109_s18 + $0x50] sm:$0xff]  ;;  %v8226_v61 = vsel %vm477_vm2, %v523_v47, %v524_v51  ;;  %v8229_v62 = vsel %vm477_vm2, %v524_v51, %v526_v52  ;;  %v529_v63 = vrot.slane %v8199_v49, 1  ;;  %v531_v0 = vrot.slane %v8208_v54, 1  ;;  %v8234_v1 = vld [vmem:[%s8109_s18 + $0x58] sm:$0x3] }
  0x26   : > { %11818 = vst [vmem:[#allocation13_spill] sm:$0xff] %v8217_v56  ;;  %11819 = vst [vmem:[#allocation14_spill] sm:$0xff] %v8226_v61  ;;  %v8237_v2 = vld [vmem:[%s8109_s18 + $0x108] sm:$0xff]  ;;  %v8240_v3 = vld [vmem:[%s8109_s18 + $0x110] sm:$0xff]  ;;  %7066 = vmatmul.mubr.msk.bf16.vlgmr.msra.gmra.mxu0 %vm608_vm3, %v8217_v56  ;;  %v8246_v4 = vpack.c.bf16 %v8229_v62, %v8226_v61  ;;  %v8249_v6 = vsel %vm477_vm2, %v488_v53, %v489_v57  ;;  %v8252_v7 = vsel %vm477_vm2, %v489_v57, %v491_v58  ;;  %s6183_s29 = sshll.u32 %s11393_s30, 4  ;;  %s6163_s27 = scalar_lea.sflag [#allocation5], %s333_s28  ;;  %s6184_s29 = int_to_ptr.vmem [resolvable:$true] %s6183_s29 }
  0x27   : > { %11820 = vst [vmem:[#allocation15_spill] sm:$0xff] %v8229_v62  ;;  %11822 = vst [vmem:[#allocation17_spill] sm:$0xff] %v8249_v6  ;;  %v493_v10 = vrot.slane %v8211_v55, 1  ;;  %v8256_v14 = vld [vmem:[%s8109_s18 + $0x118] sm:$0x3]  ;;  %v8259_v15 = vld [vmem:[%s8109_s18 + $0x60] sm:$0xff]  ;;  %7132 = vmatpush3.bf16.msra.mxu0 %v8098_v9  ;;  %v8267_v20 = vpack.c.bf16 %v8252_v7, %v8249_v6  ;;  %v8270_v21 = vsel %vm477_vm2, %v528_v59, %v529_v63 }
  0x28   : > { %11821 = vst [vmem:[#allocation16_spill] sm:$0xff] %v8246_v4  ;;  %11823 = vst [vmem:[#allocation18_spill] sm:$0xff] %v8252_v7  ;;  %v8262_v16 = vld [vmem:[%s8109_s18 + $0x68] sm:$0xff]  ;;  %v8273_v22 = vsel %vm477_vm2, %v529_v63, %v531_v0  ;;  %v494_v23 = vrot.slane %v8223_v60, 1  ;;  %v8277_v24 = vld [vmem:[%s8109_s18 + $0x70] sm:$0x3]  ;;  %7082 = vmatmul.mubr.msk.bf16.vlgmr.msra.gmra.mxu1 %vm608_vm3, %v8246_v4  ;;  %7199 = vmatprep.subr.bf16.mxu0 %v8183_v43 }
  0x29   : > { %11824 = vst [vmem:[#allocation19_spill] sm:$0xff] %v8256_v14  ;;  %11825 = vst [vmem:[#allocation20_spill] sm:$0xff] %v8267_v20  ;;  %v8280_v25 = vld [vmem:[%s8109_s18 + $0x120] sm:$0xff]  ;;  %v8286_v9 = vpack.c.bf16 %v8273_v22, %v8270_v21  ;;  %v496_v30 = vrot.slane %v8234_v1, 1  ;;  %v533_v32 = vrot.slane %v8237_v2, 1  ;;  %v534_v33 = vrot.slane %v8240_v3, 1  ;;  %7098 = vmatpush3.bf16.msra.mxu1 %v8095_v8  ;;  %7069 = vmatprep.mubr.msk.bf16.mxu0 %vm608_vm3, %v8267_v20 }
  0x2a   : > { %11826 = vst [vmem:[#allocation21_spill] sm:$0xff] %v8270_v21  ;;  %11827 = vst [vmem:[#allocation22_spill] sm:$0xff] %v8273_v22  ;;  %v8292_v39 = vld [vmem:[%s8109_s18 + $0x128] sm:$0xff]  ;;  %v8299_v47 = vsel %vm477_vm2, %v493_v10, %v494_v23  ;;  %v536_v51 = vrot.slane %v8256_v14, 1  ;;  %v498_v52 = vrot.slane %v8259_v15, 1  ;;  %v499_v53 = vrot.slane %v8262_v16, 1  ;;  %7165 = vmatprep.subr.bf16.mxu1 %v8152_v29 }
  0x2b   : > { %11828 = vst [vmem:[#allocation23_spill] sm:$0xff] %v8286_v9  ;;  %11829 = vst [vmem:[#allocation24_spill] sm:$0xff] %v8299_v47  ;;  %v8305_v57 = vld [vmem:[%s8109_s18 + $0x130] sm:$0x3]  ;;  %v8308_v58 = vld [vmem:[%s8109_s18 + $0x78] sm:$0xff]  ;;  %7085 = vmatprep.mubr.msk.bf16.mxu1 %vm608_vm3, %v8286_v9  ;;  %v8313_v8 = vsel %vm477_vm2, %v494_v23, %v496_v30  ;;  %v8316_v59 = vsel %vm477_vm2, %v533_v32, %v534_v33  ;;  %v501_v63 = vrot.slane %v8277_v24, 1 }
  0x2c   : > { %11830 = vst [vmem:[#allocation25_spill] sm:$0xff] %v8305_v57  ;;  %11831 = vst [vmem:[#allocation26_spill] sm:$0xff] %v8313_v8  ;;  %v538_v0 = vrot.slane %v8280_v25, 1  ;;  %v8321_v10 = vld [vmem:[%s8109_s18 + $0x80] sm:$0xff]  ;;  %v8324_v37 = vld [vmem:[%s8109_s18 + $0x88] sm:$0x3]  ;;  %v8329_v23 = vpack.c.bf16 %v8313_v8, %v8299_v47  ;;  %v8332_v30 = vsel %vm477_vm2, %v534_v33, %v536_v51  ;;  %v8335_v32 = vsel %vm477_vm2, %v498_v52, %v499_v53 }
  0x2d   : > { %11832 = vst [vmem:[#allocation27_spill] sm:$0xff] %v8316_v59  ;;  %11834 = vst [vmem:[#allocation29_spill] sm:$0xff] %v8332_v30  ;;  %v539_v44 = vrot.slane %v8292_v39, 1  ;;  %v8339_v22 = vld [vmem:[%s8109_s18 + $0x138] sm:$0xff]  ;;  %v8342_v21 = vld [vmem:[%s8109_s18 + $0x140] sm:$0xff]  ;;  %v8349_v61 = vpack.c.bf16 %v8332_v30, %v8316_v59  ;;  %v8352_v33 = vsel %vm477_vm2, %v499_v53, %v501_v63  ;;  %v541_v51 = vrot.slane %v8305_v57, 1 }
  0x2e   : > { %11833 = vst [vmem:[#allocation28_spill] sm:$0xff] %v8329_v23  ;;  %11835 = vst [vmem:[#allocation30_spill] sm:$0xff] %v8335_v32  ;;  %v8345_v62 = vld [vmem:[%s8109_s18 + $0x148] sm:$0x3]  ;;  %v503_v52 = vrot.slane %v8308_v58, 1  ;;  %v8357_v38 = vld [vmem:[%s8109_s18 + $0x90] sm:$0xff]  ;;  %v8367_v47 = vpack.c.bf16 %v8352_v33, %v8335_v32  ;;  %7070 = vmatmul.mubr.msk.bf16.gmra.mxu0 %vm608_vm3, %v8329_v23 }
  0x2f   : > { %11836 = vst [vmem:[#allocation31_spill] sm:$0xff] %v8345_v62  ;;  %11837 = vst [vmem:[#allocation32_spill] sm:$0xff] %v8349_v61  ;;  %v8360_v31 = vld [vmem:[%s8109_s18 + $0x98] sm:$0xff]  ;;  %v8363_v8 = vld [vmem:[%s8109_s18 + $0xa0] sm:$0x3]  ;;  %v8370_v30 = vsel %vm477_vm2, %v538_v0, %v539_v44  ;;  %v504_v53 = vrot.slane %v8321_v10, 1 }
  0x30   : > { %11838 = vst [vmem:[#allocation33_spill] sm:$0xff] %v8352_v33  ;;  %11839 = vst [vmem:[#allocation34_spill] sm:$0xff] %v8367_v47  ;;  %v506_v63 = vrot.slane %v8324_v37, 1  ;;  %v8375_v59 = vld [vmem:[%s8109_s18 + $0x150] sm:$0xff]  ;;  %v8378_v6 = vld [vmem:[%s8109_s18 + $0x158] sm:$0xff]  ;;  %v8386_v33 = vsel %vm477_vm2, %v539_v44, %v541_v51  ;;  %v543_v0 = vrot.slane %v8339_v22, 1  ;;  %7073 = vmatprep.mubr.msk.bf16.mxu0 %vm608_vm3, %v8367_v47  ;;  %7086 = vmatmul.mubr.msk.bf16.gmra.mxu1 %vm608_vm3, %v8349_v61 }
  0x31   : > { %11840 = vst [vmem:[#allocation35_spill] sm:$0xff] %v8370_v30  ;;  %v8381_v46 = vld [vmem:[%s8109_s18 + $0x160] sm:$0x3]  ;;  %11842 = vst [vmem:[#allocation37_spill] sm:$0xff] %v8386_v33  ;;  %v544_v32 = vrot.slane %v8342_v21, 1  ;;  %v546_v7 = vrot.slane %v8345_v62, 1  ;;  %v8401_v4 = vpack.c.bf16 %v8386_v33, %v8370_v30  ;;  %v8404_v44 = vsel %vm477_vm2, %v503_v52, %v504_v53 }
  0x32   : > { %11841 = vst [vmem:[#allocation36_spill] sm:$0xff] %v8381_v46  ;;  %v8392_v50 = vld [vmem:[%s8109_s18 + $0xa8] sm:$0xff]  ;;  %v8395_v9 = vld [vmem:[%s8109_s18 + $0xb8] sm:$0x3]  ;;  %11844 = vst [vmem:[#allocation39_spill] sm:$0xff] %v8404_v44  ;;  %v8407_v51 = vsel %vm477_vm2, %v504_v53, %v506_v63  ;;  %v508_v45 = vrot.slane %v8357_v38, 1 }
  0x33   : > { %11843 = vst [vmem:[#allocation38_spill] sm:$0xff] %v8401_v4  ;;  %11845 = vst [vmem:[#allocation40_spill] sm:$0xff] %v8407_v51  ;;  %v8411_v23 = vld [vmem:[%s8109_s18 + $0xb0] sm:$0xff]  ;;  %v8416_v47 = vsel %vm477_vm2, %v543_v0, %v544_v32  ;;  %v509_v33 = vrot.slane %v8360_v31, 1  ;;  %v8420_v30 = vld [vmem:[%s8109_s18 + $0x168] sm:$0xff]  ;;  %7089 = vmatprep.mubr.msk.bf16.mxu1 %vm608_vm3, %v8401_v4  ;;  %v8425_v52 = vsel %vm477_vm2, %v544_v32, %v546_v7  ;;  %v511_v53 = vrot.slane %v8363_v8, 1 }
  0x34   : > { %11846 = vst [vmem:[#allocation41_spill] sm:$0xff] %v8416_v47  ;;  %11847 = vst [vmem:[#allocation42_spill] sm:$0xff] %v8425_v52  ;;  %v548_v63 = vrot.slane %v8375_v59, 1  ;;  %v549_v20 = vrot.slane %v8378_v6, 1  ;;  %v8431_v61 = vld [vmem:[%s8109_s18 + $0x170] sm:$0xff]  ;;  %v8435_v0 = vpack.c.bf16 %v8407_v51, %v8404_v44  ;;  %v551_v4 = vrot.slane %v8381_v46, 1 }
  0x35   : > { %v8438_v56 = vsel %vm477_vm2, %v508_v45, %v509_v33  ;;  %v513_v7 = vrot.slane %v8392_v50, 1  ;;  %v8443_v32 = vld [vmem:[%s8109_s18 + $0x178] sm:$0x3]  ;;  %v8446_v62 = vsel %vm477_vm2, %v509_v33, %v511_v53  ;;  %v514_v14 = vrot.slane %v8411_v23, 1  ;;  %s7911_s10 = scalar_lea.vmem %s6184_s29, 16  ;;  %s7915_s17 = sshll.u32 %s7976_s15, 4  ;;  %s7916_s17 = int_to_ptr.vmem [resolvable:$false] %s7915_s17 }
  0x36   : > { %11848 = vst [vmem:[#allocation43_spill] sm:$0xff] %v8438_v56  ;;  %11849 = vst [vmem:[#allocation44_spill] sm:$0xff] %v8446_v62  ;;  %v8449_v57 = vsel %vm477_vm2, %v548_v63, %v549_v20  ;;  %v516_v51 = vrot.slane %v8395_v9, 1  ;;  %v1041_v44 = vrot.slane %v8118_v13, 2  ;;  %v8456_v45 = vpack.c.bf16 %v8425_v52, %v8416_v47  ;;  %7074 = vmatmul.mubr.msk.bf16.gmra.mxu0 %vm608_vm3, %v8435_v0  ;;  %p7912_p11 = scmp.ne.s32.totalorder %s6184_s29, %s7911_s10  ;;  %p7918_p0 = scmp.lt.s32.totalorder %s6184_s29, %s7916_s17 }
  0x37   : > { %11850 = vst [vmem:[#allocation45_spill] sm:$0xff] %v8449_v57  ;;  %v8460_v46 = vpack.c.bf16 %v8446_v62, %v8438_v56  ;;  %v8463_v33 = vsel %vm477_vm2, %v549_v20, %v551_v4  ;;  %v553_v63 = vrot.slane %v8420_v30, 1  ;;  %v554_v54 = vrot.slane %v8431_v61, 1 }
  0x38   : > { %11851 = vst [vmem:[#allocation46_spill] sm:$0xff] %v8463_v33  ;;  %v8467_v53 = vpack.c.bf16 %v8463_v33, %v8449_v57  ;;  %v556_v13 = vrot.slane %v8443_v32, 1  ;;  %v8477_v52 = vsel %vm477_vm2, %v513_v7, %v514_v14  ;;  %v8480_v4 = vsel %vm477_vm2, %v514_v14, %v516_v51  ;;  %7090 = vmatmul.mubr.msk.bf16.gmra.mxu1 %vm608_vm3, %v8456_v45  ;;  %p7913_p12 = pnand %p7912_p11, %p8068_p5 }
  0x39   : > { %7077 = vmatprep.mubr.msk.bf16.mxu0 %vm608_vm3, %v8460_v46  ;;  %11852 = vst [vmem:[#allocation47_spill] sm:$0xff] %v8477_v52  ;;  %11853 = vst [vmem:[#allocation48_spill] sm:$0xff] %v8480_v4  ;;  %v11854_v20 = vrot.slane %v8115_v12, 2  ;;  %v11855_v33 = vrot.slane %v8112_v11, 2  ;;  %v8495_v7 = vsel %vm477_vm2, %v553_v63, %v554_v54  ;;  %v8502_v51 = vpack.c.bf16 %v8480_v4, %v8477_v52 }
  0x3a   : > { %7093 = vmatprep.mubr.msk.bf16.mxu1 %vm608_vm3, %v8467_v53  ;;  %11857 = vst [vmem:[#allocation49_spill] sm:$0xff] %v8495_v7  ;;  %v8498_v14 = vsel %vm477_vm2, %v554_v54, %v556_v13  ;;  %v1043_v56 = vrot.slane %v8143_v26, 2  ;;  %v1048_v63 = vrot.slane %v8174_v40, 2  ;;  %v1049_v54 = vrot.slane %v8177_v41, 2  ;;  %p7914_p13 = pneg %p7913_p12 }
  0x3b   : > { %v1040_v57 = vsel %vm1037_vm4, %v11855_v33, %v11854_v20  ;;  %v11856_v47 = vmov %v11854_v20  ;;  %11858 = vst [vmem:[#allocation50_spill] sm:$0xff] %v8498_v14  ;;  %v1044_v33 = vrot.slane %v8146_v27, 2  ;;  %v1046_v20 = vrot.slane %v8149_v28, 2  ;;  %v6400_v28 = vld [vmem:[%s11693_s1 + $0xc] sm:$0x3] }
  0x3c   : > { %v1042_v62 = vsel %vm1037_vm4, %v11856_v47, %v1041_v44  ;;  %v8509_v44 = vpack.c.bf16 %v8498_v14, %v8495_v7  ;;  %v1051_v13 = vrot.slane %v8196_v48, 2  ;;  %v412_v4 = vpack.c.bf16 %v8115_v12, %v8112_v11 }
  0x3d   : > { %v1150_v47 = vpack.c.bf16 %v1042_v62, %v1040_v57  ;;  %v1045_v62 = vsel %vm1037_vm4, %v1043_v56, %v1044_v33  ;;  %v1047_v57 = vsel %vm1037_vm4, %v1044_v33, %v1046_v20  ;;  %v1050_v48 = vsel %vm1037_vm4, %v1048_v63, %v1049_v54 }
  0x3e   : > { %7078 = vmatmul.mubr.msk.bf16.gmra.mxu0 %vm608_vm3, %v8502_v51  ;;  %v1052_v11 = vsel %vm1037_vm4, %v1049_v54, %v1051_v13  ;;  %v8530_v12 = vand.u32 %v6400_v28, %v8085_v5  ;;  %v8534_v14 = vpack.c.bf16 %v8146_v27, %v8143_v26  ;;  %v1053_v56 = vrot.slane %v8211_v55, 2  ;;  %v6383_v26 = vld [vmem:[%s11693_s1 + $0xa] sm:$0x3] }
  0x3f   : > { %7133 = vmatprep.mubr.msk.bf16.mxu0 %vm608_vm3, %v1150_v47  ;;  %v8536_v47 = vpack.c.bf16 %v1047_v57, %v1045_v62  ;;  %v8541_v33 = vpack.c.bf16 %v8129_v18, %v8126_v17  ;;  %v8543_v20 = vpack.c.bf16 %v1052_v11, %v1050_v48  ;;  %v1054_v63 = vrot.slane %v8223_v60, 2 }
  0x40   : > { %7094 = vmatmul.mubr.msk.bf16.gmra.mxu1 %vm608_vm3, %v8509_v44  ;;  %v8549_v54 = vpack.c.bf16 %v8163_v35, %v8160_v34  ;;  %v1058_v27 = vrot.slane %v8259_v15, 2  ;;  %v1059_v13 = vrot.slane %v8262_v16, 2  ;;  %v1061_v28 = vrot.slane %v8277_v24, 2 }
  0x41   : > { %7099 = vmatprep.mubr.msk.bf16.mxu1 %vm608_vm3, %v412_v4  ;;  %v1056_v4 = vrot.slane %v8234_v1, 2  ;;  %v8559_v62 = vpack.c.bf16 %v8199_v49, %v8180_v42  ;;  %v8563_v1 = vpack.c.bf16 %v8177_v41, %v8174_v40  ;;  %v8568_v57 = vand.u32 %v6383_v26, %v8085_v5 }
  0x42   : > { %v1055_v24 = vsel %vm1037_vm4, %v1053_v56, %v1054_v63  ;;  %v8577_v11 = vpack.c.bf16 %v8240_v3, %v8237_v2  ;;  %v1060_v40 = vsel %vm1037_vm4, %v1058_v27, %v1059_v13  ;;  %v1062_v41 = vsel %vm1037_vm4, %v1059_v13, %v1061_v28 }
  0x43   : > { %v1057_v48 = vsel %vm1037_vm4, %v1054_v63, %v1056_v4  ;;  %v8593_v56 = vpack.c.bf16 %v8223_v60, %v8211_v55  ;;  %v8599_v4 = vpack.c.bf16 %v8342_v21, %v8339_v22  ;;  %v8602_v26 = vpack.c.bf16 %v1062_v41, %v1060_v40 }
  0x44   : > { %v8595_v63 = vpack.c.bf16 %v1057_v48, %v1055_v24  ;;  %v1063_v27 = vrot.slane %v8308_v58, 2  ;;  %v1066_v13 = vrot.slane %v8324_v37, 2  ;;  %v1068_v28 = vrot.slane %v8357_v38, 2 }
  0x45   : > { %v1069_v55 = vrot.slane %v8360_v31, 2  ;;  %v1071_v60 = vrot.slane %v8363_v8, 2  ;;  %v8612_v24 = vpack.c.bf16 %v8378_v6, %v8375_v59  ;;  %v8616_v48 = vpack.c.bf16 %v8262_v16, %v8259_v15 }
  0x46   : > { %7134 = vmatmul.mubr.msk.bf16.vlgmr.msra.gmra.mxu0 %vm608_vm3, %v8536_v47  ;;  %v8620_v40 = vpack.c.bf16 %v8431_v61, %v8420_v30  ;;  %v1073_v52 = vrot.slane %v8392_v50, 2 }
  0x47   : > { %7200 = vmatpush3.bf16.msra.mxu0 %v8183_v43  ;;  %7137 = vmatprep.mubr.msk.bf16.mxu0 %vm608_vm3, %v8543_v20  ;;  %v8585_v43 = vpack.c.bf16 %v8292_v39, %v8280_v25  ;;  %v1070_v15 = vsel %vm1037_vm4, %v1068_v28, %v1069_v55  ;;  %v1072_v16 = vsel %vm1037_vm4, %v1069_v55, %v1071_v60  ;;  %v1078_v55 = vrot.slane %v8126_v17, 2 }
  0x48   : > { %7100 = vmatmul.mubr.msk.bf16.vlgmr.msra.gmra.mxu1 %vm608_vm3, %v8534_v14  ;;  %7267 = vmatprep.subr.bf16.mxu0 %v8530_v12  ;;  %v8636_v7 = vpack.c.bf16 %v1072_v16, %v1070_v15  ;;  %v8644_v28 = vpack.c.bf16 %v8321_v10, %v8308_v58  ;;  %v1079_v60 = vrot.slane %v8129_v18, 2  ;;  %v1083_v58 = vrot.slane %v8160_v34, 2 }
  0x49   : > { %7166 = vmatpush3.bf16.msra.mxu1 %v8152_v29  ;;  %7103 = vmatprep.mubr.msk.bf16.mxu1 %vm608_vm3, %v8563_v1  ;;  %v1064_v29 = vrot.slane %v8321_v10, 2  ;;  %v1084_v10 = vrot.slane %v8163_v35, 2  ;;  %v1088_v15 = vrot.slane %v8180_v42, 2  ;;  %v1089_v16 = vrot.slane %v8199_v49, 2 }
  0x4a   : > { %7233 = vmatprep.subr.bf16.mxu1 %v8568_v57  ;;  %v1080_v17 = vsel %vm1037_vm4, %v1078_v55, %v1079_v60  ;;  %v11860_v55 = vld [vmem:[#allocation19_spill] sm:$0xff] }
  0x4b   : > { %v1065_v37 = vsel %vm1037_vm4, %v1063_v27, %v1064_v29  ;;  %v1067_v8 = vsel %vm1037_vm4, %v1064_v29, %v1066_v13  ;;  %v1074_v27 = vrot.slane %v8411_v23, 2  ;;  %v1076_v29 = vrot.slane %v8395_v9, 2 }
  0x4c   : > { %v8634_v41 = vpack.c.bf16 %v1067_v8, %v1065_v37  ;;  %v1081_v13 = vrot.slane %v8132_v19, 2  ;;  %v8650_v37 = vpack.c.bf16 %v8360_v31, %v8357_v38  ;;  %v8673_v8 = vpack.c.bf16 %v8411_v23, %v8392_v50 }
  0x4d   : > { %v1075_v19 = vsel %vm1037_vm4, %v1073_v52, %v1074_v27  ;;  %v1077_v9 = vsel %vm1037_vm4, %v1074_v27, %v1076_v29  ;;  %v1086_v52 = vrot.slane %v8166_v36, 2  ;;  %v11859_v27 = vld [vmem:[#allocation12_spill] sm:$0xff]  ;;  %v1085_v34 = vsel %vm1037_vm4, %v1083_v58, %v1084_v10 }
  0x4e   : > { %7138 = vmatmul.mubr.msk.bf16.gmra.mxu0 %vm608_vm3, %v8595_v63  ;;  %v1082_v18 = vsel %vm1037_vm4, %v1079_v60, %v1081_v13  ;;  %v8664_v31 = vpack.c.bf16 %v1077_v9, %v1075_v19  ;;  %v1091_v29 = vrot.slane %v11859_v27, 2  ;;  %v1090_v36 = vsel %vm1037_vm4, %v1088_v15, %v1089_v16 }
  0x4f   : > { %7141 = vmatprep.mubr.msk.bf16.mxu0 %vm608_vm3, %v8602_v26  ;;  %v8666_v38 = vpack.c.bf16 %v1082_v18, %v1080_v17  ;;  %v1087_v35 = vsel %vm1037_vm4, %v1084_v10, %v1086_v52  ;;  %v1093_v23 = vrot.slane %v8237_v2, 2  ;;  %v1094_v13 = vrot.slane %v8240_v3, 2  ;;  %v11861_v17 = vld [vmem:[#allocation25_spill] sm:$0xff] }
  0x50   : > { %7104 = vmatmul.mubr.msk.bf16.gmra.mxu1 %vm608_vm3, %v8593_v56  ;;  %v1092_v42 = vsel %vm1037_vm4, %v1089_v16, %v1091_v29  ;;  %v8690_v49 = vpack.c.bf16 %v1087_v35, %v1085_v34  ;;  %v1096_v60 = vrot.slane %v11860_v55, 2  ;;  %v1098_v19 = vrot.slane %v8280_v25, 2  ;;  %v11862_v16 = vld [vmem:[#allocation31_spill] sm:$0xff]  ;;  %v11863_v35 = vld [vmem:[#allocation36_spill] sm:$0xff] }
  0x51   : > { %7107 = vmatprep.mubr.msk.bf16.mxu1 %vm608_vm3, %v8616_v48  ;;  %v8692_v50 = vpack.c.bf16 %v1092_v42, %v1090_v36  ;;  %v1099_v9 = vrot.slane %v8292_v39, 2  ;;  %v1101_v18 = vrot.slane %v11861_v17, 2  ;;  %v1095_v58 = vsel %vm1037_vm4, %v1093_v23, %v1094_v13  ;;  %v406_v17 = vld [vmem:[%s8109_s18 + $0x180] sm:$0xff] }
  0x52   : > { %v1097_v2 = vsel %vm1037_vm4, %v1094_v13, %v1096_v60  ;;  %v1103_v52 = vrot.slane %v8339_v22, 2  ;;  %v1104_v15 = vrot.slane %v8342_v21, 2  ;;  %v1106_v27 = vrot.slane %v11862_v16, 2  ;;  %v6434_v16 = vld [vmem:[%s11693_s1 + $0x10] sm:$0x3] }
  0x53   : > { %v1100_v3 = vsel %vm1037_vm4, %v1098_v19, %v1099_v9  ;;  %v1102_v25 = vsel %vm1037_vm4, %v1099_v9, %v1101_v18  ;;  %v8712_v39 = vpack.c.bf16 %v1097_v2, %v1095_v58  ;;  %v1108_v29 = vrot.slane %v8375_v59, 2  ;;  %v407_v18 = vld [vmem:[%s8109_s18 + $0x188] sm:$0xff]  ;;  %v408_v58 = vld [vmem:[%s8109_s18 + $0x190] sm:$0x3] }
  0x54   : > { %v8714_v10 = vpack.c.bf16 %v1102_v25, %v1100_v3  ;;  %v1109_v34 = vrot.slane %v8378_v6, 2  ;;  %v1111_v36 = vrot.slane %v11863_v35, 2  ;;  %v1105_v42 = vsel %vm1037_vm4, %v1103_v52, %v1104_v15 }
  0x55   : > { %v1107_v22 = vsel %vm1037_vm4, %v1104_v15, %v1106_v27  ;;  %v1113_v13 = vrot.slane %v8420_v30, 2  ;;  %v1114_v55 = vrot.slane %v8431_v61, 2  ;;  %v1116_v60 = vrot.slane %v8443_v32, 2  ;;  %v11864_v15 = vld [vmem:[#allocation13_spill] sm:$0xff]  ;;  %v6417_v27 = vld [vmem:[%s11693_s1 + $0xe] sm:$0x3] }
  0x56   : > { %7142 = vmatmul.mubr.msk.bf16.gmra.mxu0 %vm608_vm3, %v8634_v41  ;;  %v1110_v21 = vsel %vm1037_vm4, %v1108_v29, %v1109_v34  ;;  %v1112_v6 = vsel %vm1037_vm4, %v1109_v34, %v1111_v36  ;;  %v8734_v59 = vpack.c.bf16 %v1107_v22, %v1105_v42  ;;  %v1826_v61 = vrot.slane %v406_v17, 2  ;;  %v11865_v34 = vld [vmem:[#allocation20_spill] sm:$0xff]  ;;  %v11872_v22 = vld [vmem:[#allocation38_spill] sm:$0xff] }
  0x57   : > { %7145 = vmatprep.mubr.msk.bf16.mxu0 %vm608_vm3, %v8636_v7  ;;  %v8736_v23 = vpack.c.bf16 %v1112_v6, %v1110_v21  ;;  %v1115_v19 = vsel %vm1037_vm4, %v1113_v13, %v1114_v55  ;;  %v1117_v9 = vsel %vm1037_vm4, %v1114_v55, %v1116_v60  ;;  %v1827_v30 = vrot.slane %v407_v18, 2  ;;  %v11866_v36 = vld [vmem:[#allocation28_spill] sm:$0xff] }
  0x58   : > { %7108 = vmatmul.mubr.msk.bf16.gmra.mxu1 %vm608_vm3, %v8644_v28  ;;  %v8753_v32 = vpack.c.bf16 %v1117_v9, %v1115_v19  ;;  %v1829_v2 = vrot.slane %v408_v58, 2  ;;  %v2463_v29 = vand.u32 %v6434_v16, %v8085_v5  ;;  %v2254_v35 = vand.u32 %v6417_v27, %v8085_v5  ;;  %v11868_v5 = vld [vmem:[#allocation9_spill] sm:$0xff]  ;;  %v11871_v42 = vld [vmem:[#allocation32_spill] sm:$0xff] }
  0x59   : > { %7111 = vmatprep.mubr.msk.bf16.mxu1 %vm608_vm3, %v8650_v37  ;;  %v1828_v3 = vsel %vm1037_vm4, %v1826_v61, %v1827_v30  ;;  %v1617_v21 = vrot.slane %v406_v17, 1  ;;  %v1618_v6 = vrot.slane %v407_v18, 1  ;;  %v1620_v13 = vrot.slane %v408_v58, 1  ;;  %v8932_v58 = vld [vmem:[%s8109_s18 + $0x1a0] sm:$0xff] }
  0x5a   : > { %v1830_v25 = vsel %vm1037_vm4, %v1827_v30, %v1829_v2  ;;  %v1412_v9 = vpack.c.bf16 %v407_v18, %v406_v17  ;;  %v8929_v30 = vld [vmem:[%s8109_s18 + $0x198] sm:$0xff] }
  0x5b   : > { %v8760_v52 = vpack.c.bf16 %v1830_v25, %v1828_v3  ;;  %v8831_v55 = vsel %vm477_vm2, %v1617_v21, %v1618_v6  ;;  %v8834_v60 = vsel %vm477_vm2, %v1618_v6, %v1620_v13 }
  0x5c   : > { %11873 = vst [vmem:[#allocation12_spill] sm:$0xff] %v8831_v55  ;;  %11874 = vst [vmem:[#allocation19_spill] sm:$0xff] %v8834_v60  ;;  %v8842_v19 = vpack.c.bf16 %v8834_v60, %v8831_v55 }
  0x5e   : > { %7146 = vmatmul.mubr.msk.bf16.gmra.mxu0 %vm608_vm3, %v8664_v31  ;;  %11875 = vst [vmem:[#allocation25_spill] sm:$0xff] %v8842_v19 }
  0x5f   : > { %7149 = vmatprep.mubr.msk.bf16.mxu0 %vm608_vm3, %v8666_v38 }
  0x60   : > { %7112 = vmatmul.mubr.msk.bf16.gmra.mxu1 %vm608_vm3, %v8673_v8 }
  0x61   : > { %7115 = vmatprep.mubr.msk.bf16.mxu1 %vm608_vm3, %v8541_v33 }
  0x66   : > { %7150 = vmatmul.mubr.msk.bf16.gmra.mxu0 %vm608_vm3, %v8690_v49 }
  0x67   : > { %7153 = vmatprep.mubr.msk.bf16.mxu0 %vm608_vm3, %v8692_v50 }
  0x68   : > { %7116 = vmatmul.mubr.msk.bf16.gmra.mxu1 %vm608_vm3, %v8549_v54 }
  0x69   : > { %7119 = vmatprep.mubr.msk.bf16.mxu1 %vm608_vm3, %v8559_v62 }
  0x6e   : > { %7154 = vmatmul.mubr.msk.bf16.gmra.mxu0 %vm608_vm3, %v8712_v39 }
  0x6f   : > { %7157 = vmatprep.mubr.msk.bf16.mxu0 %vm608_vm3, %v8714_v10 }
  0x70   : > { %7120 = vmatmul.mubr.msk.bf16.gmra.mxu1 %vm608_vm3, %v8577_v11 }
  0x71   : > { %7123 = vmatprep.mubr.msk.bf16.mxu1 %vm608_vm3, %v8585_v43 }
  0x76   : > { %7158 = vmatmul.mubr.msk.bf16.gmra.mxu0 %vm608_vm3, %v8734_v59 }
  0x77   : > { %7161 = vmatprep.mubr.msk.bf16.mxu0 %vm608_vm3, %v8736_v23 }
  0x78   : > { %7124 = vmatmul.mubr.msk.bf16.gmra.mxu1 %vm608_vm3, %v8599_v4 }
  0x79   : > { %7127 = vmatprep.mubr.msk.bf16.mxu1 %vm608_vm3, %v8612_v24 }
  0x7e   : > { %7162 = vmatmul.mubr.msk.bf16.gmra.mxu0 %vm608_vm3, %v8753_v32 }
  0x7f   : > { %7201 = vmatprep.mubr.msk.bf16.mxu0 %vm608_vm3, %v11864_v15 }
  0x80   : > { %7128 = vmatmul.mubr.msk.bf16.gmra.mxu1 %vm608_vm3, %v8620_v40 }
  0x81   : > { %7167 = vmatprep.mubr.msk.bf16.mxu1 %vm608_vm3, %v8534_v14  ;;  %v11867_v14 = vld [vmem:[#allocation34_spill] sm:$0xff] }
  0x86   : > { %7202 = vmatmul.mubr.msk.bf16.vlgmr.msra.gmra.mxu0 %vm608_vm3, %v11865_v34 }
  0x87   : > { %7268 = vmatpush3.bf16.msra.mxu0 %v8530_v12  ;;  %7205 = vmatprep.mubr.msk.bf16.mxu0 %vm608_vm3, %v11866_v36  ;;  %v11869_v12 = vld [vmem:[#allocation16_spill] sm:$0xff] }
  0x88   : > { %7168 = vmatmul.mubr.msk.bf16.vlgmr.msra.gmra.mxu1 %vm608_vm3, %v8563_v1  ;;  %7335 = vmatprep.subr.bf16.mxu0 %v2463_v29 }
  0x89   : > { %7234 = vmatpush3.bf16.msra.mxu1 %v8568_v57  ;;  %7171 = vmatprep.mubr.msk.bf16.mxu1 %vm608_vm3, %v8593_v56  ;;  %v11870_v57 = vld [vmem:[#allocation23_spill] sm:$0xff] }
  0x8a   : > { %7301 = vmatprep.subr.bf16.mxu1 %v2254_v35 }
  0x8e   : > { %7206 = vmatmul.mubr.msk.bf16.gmra.mxu0 %vm608_vm3, %v11867_v14 }
  0x8f   : > { %7209 = vmatprep.mubr.msk.bf16.mxu0 %vm608_vm3, %v8435_v0 }
  0x90   : > { %7172 = vmatmul.mubr.msk.bf16.gmra.mxu1 %vm608_vm3, %v8616_v48 }
  0x91   : > { %7175 = vmatprep.mubr.msk.bf16.mxu1 %vm608_vm3, %v8644_v28 }
  0x96   : > { %7210 = vmatmul.mubr.msk.bf16.gmra.mxu0 %vm608_vm3, %v8460_v46 }
  0x97   : > { %7213 = vmatprep.mubr.msk.bf16.mxu0 %vm608_vm3, %v8502_v51 }
  0x98   : > { %7176 = vmatmul.mubr.msk.bf16.gmra.mxu1 %vm608_vm3, %v8650_v37 }
  0x99   : > { %7179 = vmatprep.mubr.msk.bf16.mxu1 %vm608_vm3, %v8673_v8 }
  0x9e   : > { %7214 = vmatmul.mubr.msk.bf16.gmra.mxu0 %vm608_vm3, %v11868_v5 }
  0x9f   : > { %7217 = vmatprep.mubr.msk.bf16.mxu0 %vm608_vm3, %v11869_v12 }
  0xa0   : > { %7180 = vmatmul.mubr.msk.bf16.gmra.mxu1 %vm608_vm3, %v8541_v33 }
  0xa1   : > { %7183 = vmatprep.mubr.msk.bf16.mxu1 %vm608_vm3, %v8549_v54 }
  0xa6   : > { %7218 = vmatmul.mubr.msk.bf16.gmra.mxu0 %vm608_vm3, %v11870_v57 }
  0xa7   : > { %7221 = vmatprep.mubr.msk.bf16.mxu0 %vm608_vm3, %v11871_v42 }
  0xa8   : > { %7184 = vmatmul.mubr.msk.bf16.gmra.mxu1 %vm608_vm3, %v8559_v62 }
  0xa9   : > { %7187 = vmatprep.mubr.msk.bf16.mxu1 %vm608_vm3, %v8577_v11 }
  0xae   : > { %7222 = vmatmul.mubr.msk.bf16.gmra.mxu0 %vm608_vm3, %v11872_v22 }
  0xaf   : > { %7225 = vmatprep.mubr.msk.bf16.mxu0 %vm608_vm3, %v8456_v45 }
  0xb0   : > { %7188 = vmatmul.mubr.msk.bf16.gmra.mxu1 %vm608_vm3, %v8585_v43 }
  0xb1   : > { %7191 = vmatprep.mubr.msk.bf16.mxu1 %vm608_vm3, %v8599_v4 }
  0xb6   : > { %7226 = vmatmul.mubr.msk.bf16.gmra.mxu0 %vm608_vm3, %v8467_v53 }
  0xb7   : > { %7229 = vmatprep.mubr.msk.bf16.mxu0 %vm608_vm3, %v8509_v44 }
  0xb8   : > { %7192 = vmatmul.mubr.msk.bf16.gmra.mxu1 %vm608_vm3, %v8612_v24 }
  0xb9   : > { %7195 = vmatprep.mubr.msk.bf16.mxu1 %vm608_vm3, %v8620_v40 }
  0xbe   : > { %7230 = vmatmul.mubr.msk.bf16.gmra.mxu0 %vm608_vm3, %v8842_v19 }
  0xbf   : > { %7269 = vmatprep.mubr.msk.bf16.mxu0 %vm608_vm3, %v8563_v1 }
  0xc0   : > { %7196 = vmatmul.mubr.msk.bf16.gmra.mxu1 %vm608_vm3, %v1412_v9 }
  0xc1   : > { %7235 = vmatprep.mubr.msk.bf16.mxu1 %vm608_vm3, %v8536_v47 }
  0xc6   : > { %7270 = vmatmul.mubr.msk.bf16.vlgmr.msra.gmra.mxu0 %vm608_vm3, %v8593_v56 }
  0xc7   : > { %7336 = vmatpush3.bf16.msra.mxu0 %v2463_v29  ;;  %7273 = vmatprep.mubr.msk.bf16.mxu0 %vm608_vm3, %v8616_v48 }
  0xc8   : > { %7236 = vmatmul.mubr.msk.bf16.vlgmr.msra.gmra.mxu1 %vm608_vm3, %v8543_v20 }
  0xc9   : > { %7302 = vmatpush3.bf16.msra.mxu1 %v2254_v35  ;;  %7239 = vmatprep.mubr.msk.bf16.mxu1 %vm608_vm3, %v8595_v63 }
  0xce   : > { %7274 = vmatmul.mubr.msk.bf16.gmra.mxu0 %vm608_vm3, %v8644_v28 }
  0xcf   : > { %7277 = vmatprep.mubr.msk.bf16.mxu0 %vm608_vm3, %v8650_v37 }
  0xd0   : > { %7240 = vmatmul.mubr.msk.bf16.gmra.mxu1 %vm608_vm3, %v8602_v26 }
  0xd1   : > { %7243 = vmatprep.mubr.msk.bf16.mxu1 %vm608_vm3, %v8634_v41 }
  0xd6   : > { %7278 = vmatmul.mubr.msk.bf16.gmra.mxu0 %vm608_vm3, %v8673_v8 }
  0xd7   : > { %7281 = vmatprep.mubr.msk.bf16.mxu0 %vm608_vm3, %v8541_v33 }
  0xd8   : > { %7244 = vmatmul.mubr.msk.bf16.gmra.mxu1 %vm608_vm3, %v8636_v7 }
  0xd9   : > { %7247 = vmatprep.mubr.msk.bf16.mxu1 %vm608_vm3, %v8664_v31 }
  0xde   : > { %7282 = vmatmul.mubr.msk.bf16.gmra.mxu0 %vm608_vm3, %v8549_v54 }
  0xdf   : > { %7285 = vmatprep.mubr.msk.bf16.mxu0 %vm608_vm3, %v8559_v62 }
  0xe0   : > { %7248 = vmatmul.mubr.msk.bf16.gmra.mxu1 %vm608_vm3, %v8666_v38 }
  0xe1   : > { %7251 = vmatprep.mubr.msk.bf16.mxu1 %vm608_vm3, %v8690_v49 }
  0xe6   : > { %v7067_v47 = vpop.f32.mrf.mxu0  ;;  %7286 = vmatmul.mubr.msk.bf16.gmra.mxu0 %vm608_vm3, %v8577_v11 }
  0xe7   : > { %7289 = vmatprep.mubr.msk.bf16.mxu0 %vm608_vm3, %v8585_v43 }
  0xe8   : > { %v8887_v33 = vpop.f32.mrf.mxu1  ;;  %7252 = vmatmul.mubr.msk.bf16.gmra.mxu1 %vm608_vm3, %v8692_v50  ;;  %v698_v54 = vpop.f32.mrf.mxu0 }
  0xe9   : > { %7255 = vmatprep.mubr.msk.bf16.mxu1 %vm608_vm3, %v8712_v39 }
  0xea   : > { %v8893_v62 = vpop.f32.mrf.mxu1  ;;  %v7068_v1 = vpop.f32.mrf.mxu0 }
  0xec   : > { %v8895_v56 = vpop.f32.mrf.mxu1  ;;  %v701_v48 = vpop.f32.mrf.mxu0 }
  0xee   : > { %v8897_v28 = vpop.f32.mrf.mxu1  ;;  %v8899_v11 = vpop.f32.mrf.mxu0  ;;  %7290 = vmatmul.mubr.msk.bf16.gmra.mxu0 %vm608_vm3, %v8599_v4 }
  0xef   : > { %11876 = vst [vmem:[#allocation31_spill] sm:$0xff] %v8897_v28  ;;  %7293 = vmatprep.mubr.msk.bf16.mxu0 %vm608_vm3, %v8612_v24 }
  0xf0   : > { %v8905_v43 = vpop.f32.mrf.mxu1  ;;  %7256 = vmatmul.mubr.msk.bf16.gmra.mxu1 %vm608_vm3, %v8714_v10  ;;  %v8909_v37 = vpop.f32.mrf.mxu0 }
  0xf1   : > { %7259 = vmatprep.mubr.msk.bf16.mxu1 %vm608_vm3, %v8734_v59 }
  0xf2   : > { %v8913_v8 = vpop.f32.mrf.mxu1  ;;  %v8915_v17 = vpop.f32.mrf.mxu0 }
  0xf4   : > { %v8917_v18 = vpop.f32.mrf.mxu1  ;;  %v8919_v4 = vpop.f32.mrf.mxu0 }
  0xf6   : > { %v8921_v61 = vpop.f32.mrf.mxu1  ;;  %v8923_v24 = vpop.f32.mrf.mxu0  ;;  %7294 = vmatmul.mubr.msk.bf16.gmra.mxu0 %vm608_vm3, %v8620_v40  ;;  %v2035_v40 = vpack.c.bf16 %v8932_v58, %v8929_v30 }
  0xf7   : > { %11877 = vst [vmem:[#allocation36_spill] sm:$0xff] %v8921_v61  ;;  %7297 = vmatprep.mubr.msk.bf16.mxu0 %vm608_vm3, %v1412_v9 }
  0xf8   : > { %v8934_v2 = vpop.f32.mrf.mxu1  ;;  %7260 = vmatmul.mubr.msk.bf16.gmra.mxu1 %vm608_vm3, %v8736_v23  ;;  %v8938_v3 = vpop.f32.mrf.mxu0 }
  0xf9   : > { %7263 = vmatprep.mubr.msk.bf16.mxu1 %vm608_vm3, %v8753_v32 }
  0xfa   : > { %v8942_v25 = vpop.f32.mrf.mxu1  ;;  %v8944_v15 = vpop.f32.mrf.mxu0 }
  0xfb   : > { %11878 = vst [vmem:[#allocation13_spill] sm:$0xff] %v8942_v25 }
  0xfc   : > { %v8948_v16 = vpop.f32.mrf.mxu1  ;;  %v8950_v27 = vpop.f32.mrf.mxu0 }
  0xfd   : > { %11879 = vst [vmem:[#allocation20_spill] sm:$0xff] %v8948_v16 }
  0xfe   : > { %v8952_v29 = vpop.f32.mrf.mxu1  ;;  %v8954_v35 = vpop.f32.mrf.mxu0  ;;  %7298 = vmatmul.mubr.msk.bf16.gmra.mxu0 %vm608_vm3, %v2035_v40 }
  0xff   : > { %11880 = vst [vmem:[#allocation28_spill] sm:$0xff] %v8952_v29  ;;  %7337 = vmatprep.mubr.msk.bf16.mxu0 %vm608_vm3, %v8543_v20 }
 0x100   : > { %v8959_v21 = vpop.f32.mrf.mxu1  ;;  %7264 = vmatmul.mubr.msk.bf16.gmra.mxu1 %vm608_vm3, %v8760_v52  ;;  %v8963_v6 = vpop.f32.mrf.mxu0 }
 0x101   : > { %11881 = vst [vmem:[#allocation34_spill] sm:$0xff] %v8959_v21  ;;  %7303 = vmatprep.mubr.msk.bf16.mxu1 %vm608_vm3, %v11865_v34 }
 0x102   : > { %v8967_v13 = vpop.f32.mrf.mxu1  ;;  %v8969_v9 = vpop.f32.mrf.mxu0 }
 0x103   : > { %11882 = vst [vmem:[#allocation9_spill] sm:$0xff] %v8967_v13 }
 0x104   : > { %v8971_v60 = vpop.f32.mrf.mxu1  ;;  %v8973_v40 = vpop.f32.mrf.mxu0 }
 0x105   : > { %11883 = vst [vmem:[#allocation16_spill] sm:$0xff] %v8971_v60 }
 0x106   : > { %v8975_v55 = vpop.f32.mrf.mxu1  ;;  %v7135_v20 = vpop.f32.mrf.mxu0  ;;  %7338 = vmatmul.mubr.msk.bf16.vlgmr.msra.gmra.mxu0 %vm608_vm3, %v8595_v63 }
 0x107   : > { %11884 = vst [vmem:[#allocation23_spill] sm:$0xff] %v8975_v55  ;;  %7341 = vmatprep.mubr.msk.bf16.mxu0 %vm608_vm3, %v8602_v26 }
 0x108   : > { %v7101_v29 = vpop.f32.mrf.mxu1  ;;  %7304 = vmatmul.mubr.msk.bf16.vlgmr.msra.gmra.mxu1 %vm608_vm3, %v11866_v36  ;;  %v1253_v34 = vpop.f32.mrf.mxu0 }
 0x109   : > { %v919_v61 = vadd.f32 %v7101_v29, %v7067_v47  ;;  %7307 = vmatprep.mubr.msk.bf16.mxu1 %vm608_vm3, %v11867_v14 }
 0x10a   : > { %v910_v28 = vpop.f32.mrf.mxu1  ;;  %v7136_v60 = vpop.f32.mrf.mxu0 }
 0x10b   : > { %v8985_v13 = vadd.f32 %v7135_v20, %v919_v61  ;;  %v911_v55 = vadd.f32 %v910_v28, %v698_v54 }
 0x10c   : > { %v7102_v21 = vpop.f32.mrf.mxu1  ;;  %v1256_v16 = vpop.f32.mrf.mxu0 }
 0x10d   : > { %v8987_v63 = vadd.f32 %v1253_v34, %v911_v55  ;;  %v922_v25 = vadd.f32 %v7102_v21, %v7068_v1 }
 0x10e   : > { %v913_v26 = vpop.f32.mrf.mxu1  ;;  %v7139_v19 = vpop.f32.mrf.mxu0  ;;  %7342 = vmatmul.mubr.msk.bf16.gmra.mxu0 %vm608_vm3, %v8634_v41 }
 0x10f   : > { %v8991_v36 = vadd.f32 %v7136_v60, %v922_v25  ;;  %v914_v47 = vadd.f32 %v913_v26, %v701_v48  ;;  %7345 = vmatprep.mubr.msk.bf16.mxu0 %vm608_vm3, %v8636_v7 }
 0x110   : > { %v7105_v14 = vpop.f32.mrf.mxu1  ;;  %7308 = vmatmul.mubr.msk.bf16.gmra.mxu1 %vm608_vm3, %v8435_v0  ;;  %v1269_v54 = vpop.f32.mrf.mxu0 }
 0x111   : > { %v8997_v28 = vadd.f32 %v1256_v16, %v914_v47  ;;  %v935_v55 = vadd.f32 %v7105_v14, %v8899_v11  ;;  %7311 = vmatprep.mubr.msk.bf16.mxu1 %vm608_vm3, %v8460_v46 }
 0x112   : > { %v926_v1 = vpop.f32.mrf.mxu1  ;;  %v7140_v41 = vpop.f32.mrf.mxu0 }
 0x113   : > { %v9002_v60 = vadd.f32 %v7139_v19, %v935_v55  ;;  %v927_v48 = vadd.f32 %v926_v1, %v8909_v37 }
 0x114   : > { %v7106_v61 = vpop.f32.mrf.mxu1  ;;  %v1272_v7 = vpop.f32.mrf.mxu0 }
 0x115   : > { %v9005_v25 = vadd.f32 %v1269_v54, %v927_v48  ;;  %v938_v0 = vadd.f32 %v7106_v61, %v8915_v17 }
 0x116   : > { %v929_v29 = vpop.f32.mrf.mxu1  ;;  %v7143_v16 = vpop.f32.mrf.mxu0  ;;  %7346 = vmatmul.mubr.msk.bf16.gmra.mxu0 %vm608_vm3, %v8664_v31 }
 0x117   : > { %v9010_v11 = vadd.f32 %v7140_v41, %v938_v0  ;;  %v930_v46 = vadd.f32 %v929_v29, %v8919_v4  ;;  %7349 = vmatprep.mubr.msk.bf16.mxu0 %vm608_vm3, %v8666_v38  ;;  %v7774_v0 = vld [vmem:[%s11695_s3 + $0x8] sm:$0xff]  }
 0x118   : > { %v7109_v19 = vpop.f32.mrf.mxu1  ;;  %7312 = vmatmul.mubr.msk.bf16.gmra.mxu1 %vm608_vm3, %v8502_v51  ;;  %v1285_v37 = vpop.f32.mrf.mxu0  ;;  %7369 = vmatprep.subr.bf16.mxu1 %v7774_v0 }
 0x119   : > { %v9017_v21 = vadd.f32 %v1272_v7, %v930_v46  ;;  %v951_v17 = vadd.f32 %v7109_v19, %v8923_v24  ;;  %7315 = vmatprep.mubr.msk.bf16.mxu1 %vm608_vm3, %v11868_v5  ;;  %7370 = vmatpush3.bf16.msra.mxu1 %v7774_v0  ;;  %v11885_v0 = vld [vmem:[#allocation25_spill] sm:$0xff] }
 0x11a   : > { %v942_v31 = vpop.f32.mrf.mxu1  ;;  %v7144_v20 = vpop.f32.mrf.mxu0 }
 0x11b   : > { %v9022_v34 = vadd.f32 %v7143_v16, %v951_v17  ;;  %v943_v4 = vadd.f32 %v942_v31, %v8938_v3 }
 0x11c   : > { %v7110_v26 = vpop.f32.mrf.mxu1  ;;  %v1288_v38 = vpop.f32.mrf.mxu0 }
 0x11d   : > { %v9025_v47 = vadd.f32 %v1285_v37, %v943_v4  ;;  %v954_v51 = vadd.f32 %v7110_v26, %v8944_v15 }
 0x11e   : > { %v945_v14 = vpop.f32.mrf.mxu1  ;;  %v7147_v54 = vpop.f32.mrf.mxu0  ;;  %7350 = vmatmul.mubr.msk.bf16.gmra.mxu0 %vm608_vm3, %v8690_v49 }
 0x11f   : > { %v9030_v24 = vadd.f32 %v7144_v20, %v954_v51  ;;  %v946_v5 = vadd.f32 %v945_v14, %v8950_v27  ;;  %7353 = vmatprep.mubr.msk.bf16.mxu0 %vm608_vm3, %v8692_v50 }
 0x120   : > { %v7113_v55 = vpop.f32.mrf.mxu1  ;;  %7316 = vmatmul.mubr.msk.bf16.gmra.mxu1 %vm608_vm3, %v11869_v12  ;;  %v1301_v3 = vpop.f32.mrf.mxu0 }
 0x121   : > { %v9037_v1 = vadd.f32 %v1288_v38, %v946_v5  ;;  %v967_v15 = vadd.f32 %v7113_v55, %v8954_v35  ;;  %7319 = vmatprep.mubr.msk.bf16.mxu1 %vm608_vm3, %v11870_v57  ;;  %v411_v38 = vld [vmem:[%s8109_s18 + $0x1a8] sm:$0x3] }
 0x122   : > { %v958_v49 = vpop.f32.mrf.mxu1  ;;  %v7148_v41 = vpop.f32.mrf.mxu0  ;;  %v2452_v55 = vrot.slane %v411_v38, 2 }
 0x123   : > { %v9042_v48 = vadd.f32 %v7147_v54, %v967_v15  ;;  %v959_v27 = vadd.f32 %v958_v49, %v8963_v6  ;;  %v2450_v54 = vrot.slane %v8932_v58, 2 }
 0x124   : > { %v7114_v61 = vpop.f32.mrf.mxu1  ;;  %v1304_v50 = vpop.f32.mrf.mxu0 }
 0x125   : > { %v9045_v7 = vadd.f32 %v1301_v3, %v959_v27  ;;  %v970_v12 = vadd.f32 %v7114_v61, %v8969_v9 }
 0x126   : > { %v961_v35 = vpop.f32.mrf.mxu1  ;;  %v7151_v29 = vpop.f32.mrf.mxu0  ;;  %7354 = vmatmul.mubr.msk.bf16.gmra.mxu0 %vm608_vm3, %v8712_v39 }
 0x127   : > { %v9053_v57 = vadd.f32 %v7148_v41, %v970_v12  ;;  %v962_v16 = vadd.f32 %v961_v35, %v8973_v40  ;;  %7357 = vmatprep.mubr.msk.bf16.mxu0 %vm608_vm3, %v8714_v10  ;;  %v2243_v41 = vrot.slane %v411_v38, 1 }
 0x128   : > { %v7117_v6 = vpop.f32.mrf.mxu1  ;;  %7320 = vmatmul.mubr.msk.bf16.gmra.mxu1 %vm608_vm3, %v11871_v42  ;;  %v1317_v9 = vpop.f32.mrf.mxu0 }
 0x129   : > { %v9060_v46 = vadd.f32 %v1304_v50, %v962_v16  ;;  %v983_v19 = vadd.f32 %v7117_v6, %v8887_v33  ;;  %7323 = vmatprep.mubr.msk.bf16.mxu1 %vm608_vm3, %v11872_v22 }
 0x12a   : > { %v974_v39 = vpop.f32.mrf.mxu1  ;;  %v7152_v40 = vpop.f32.mrf.mxu0 }
 0x12b   : > { %v9065_v37 = vadd.f32 %v7151_v29, %v983_v19  ;;  %v975_v10 = vadd.f32 %v974_v39, %v8893_v62 }
 0x12c   : > { %v7118_v17 = vpop.f32.mrf.mxu1  ;;  %v9068_v31 = vpop.f32.mrf.mxu0 }
 0x12d   : > { %v9070_v42 = vadd.f32 %v1317_v9, %v975_v10  ;;  %v986_v20 = vadd.f32 %v7118_v17, %v8895_v56  ;;  %v2449_v56 = vrot.slane %v8929_v30, 2  ;;  %v11886_v9 = vld [vmem:[#allocation13_spill] sm:$0xff] }
 0x12e   : > { %v9073_v4 = vpop.f32.mrf.mxu1  ;;  %v7155_v33 = vpop.f32.mrf.mxu0  ;;  %7358 = vmatmul.mubr.msk.bf16.gmra.mxu0 %vm608_vm3, %v8734_v59 }
 0x12f   : > { %v9077_v22 = vadd.f32 %v7152_v40, %v986_v20  ;;  %7361 = vmatprep.mubr.msk.bf16.mxu0 %vm608_vm3, %v8736_v23 }
 0x130   : > { %v7121_v26 = vpop.f32.mrf.mxu1  ;;  %7324 = vmatmul.mubr.msk.bf16.gmra.mxu1 %vm608_vm3, %v8456_v45  ;;  %v1333_v62 = vpop.f32.mrf.mxu0  ;;  %v2240_v45 = vrot.slane %v8929_v30, 1  ;;  %v2451_v30 = vsel %vm1037_vm4, %v2449_v56, %v2450_v54 }
 0x131   : > { %v999_v51 = vadd.f32 %v7121_v26, %v8905_v43  ;;  %7327 = vmatprep.mubr.msk.bf16.mxu1 %vm608_vm3, %v8467_v53  ;;  %v2241_v43 = vrot.slane %v8932_v58, 1  ;;  %v2453_v58 = vsel %vm1037_vm4, %v2450_v54, %v2452_v55 }
 0x132   : > { %v990_v14 = vpop.f32.mrf.mxu1  ;;  %v7156_v59 = vpop.f32.mrf.mxu0  ;;  %v2456_v16 = vpack.c.bf16 %v2453_v58, %v2451_v30 }
 0x133   : > { %v9089_v5 = vadd.f32 %v7155_v33, %v999_v51  ;;  %v991_v23 = vadd.f32 %v990_v14, %v8913_v8  ;;  %v2244_v35 = vsel %vm477_vm2, %v2241_v43, %v2243_v41  ;;  %v11888_v51 = vld [vmem:[#allocation34_spill] sm:$0xff] }
 0x134   : > { %v7122_v3 = vpop.f32.mrf.mxu1  ;;  %v9093_v15 = vpop.f32.mrf.mxu0 }
 0x135   : > { %v9096_v49 = vadd.f32 %v1333_v62, %v991_v23  ;;  %v1002_v53 = vadd.f32 %v7122_v3, %v8917_v18  ;;  %v11889_v23 = vld [vmem:[#allocation9_spill] sm:$0xff] }
 0x136   : > { %v9099_v27 = vpop.f32.mrf.mxu1  ;;  %v7159_v61 = vpop.f32.mrf.mxu0  ;;  %7362 = vmatmul.mubr.msk.bf16.gmra.mxu0 %vm608_vm3, %v8753_v32  ;;  %v2242_v32 = vsel %vm477_vm2, %v2240_v45, %v2241_v43 }
 0x137   : > { %v9103_v8 = vadd.f32 %v7156_v59, %v1002_v53  ;;  %7365 = vmatprep.mubr.msk.bf16.mxu0 %vm608_vm3, %v8760_v52  ;;  %v11890_v53 = vld [vmem:[#allocation16_spill] sm:$0xff] }
 0x138   : > { %v7125_v50 = vpop.f32.mrf.mxu1  ;;  %7328 = vmatmul.mubr.msk.bf16.gmra.mxu1 %vm608_vm3, %v8509_v44  ;;  %v1349_v18 = vpop.f32.mrf.mxu0  ;;  %v2247_v44 = vpack.c.bf16 %v2244_v35, %v2242_v32 }
 0x139   : > { %v1015_v12 = vadd.f32 %v7125_v50, %v8934_v2  ;;  %7331 = vmatprep.mubr.msk.bf16.mxu1 %vm608_vm3, %v11885_v0  ;;  %v11887_v2 = vld [vmem:[#allocation20_spill] sm:$0xff] }
 0x13a   : > { %v1006_v29 = vpop.f32.mrf.mxu1  ;;  %v7160_v52 = vpop.f32.mrf.mxu0 }
 0x13b   : > { %v9116_v6 = vadd.f32 %v7159_v61, %v1015_v12  ;;  %v1007_v19 = vadd.f32 %v1006_v29, %v11886_v9 }
 0x13c   : > { %v7126_v39 = vpop.f32.mrf.mxu1  ;;  %v9119_v40 = vpop.f32.mrf.mxu0 }
 0x13d   : > { %v9121_v10 = vadd.f32 %v1349_v18, %v1007_v19  ;;  %v1018_v17 = vadd.f32 %v7126_v39, %v11887_v2 }
 0x13e   : > { %v9124_v20 = vpop.f32.mrf.mxu1  ;;  %v7163_v33 = vpop.f32.mrf.mxu0  ;;  %7366 = vmatmul.mubr.msk.bf16.gmra.mxu0 %vm608_vm3, %v2456_v16 }
 0x13f   : > { %v9127_v26 = vadd.f32 %v7160_v52, %v1018_v17  ;;  %v11757_v17 = vmov 0.0  }
 0x140   : > { %v7129_v62 = vpop.f32.mrf.mxu1  ;;  %7332 = vmatmul.mubr.msk.bf16.gmra.mxu1 %vm608_vm3, %v2247_v44  ;;  %v1365_v38 = vpop.f32.mrf.mxu0  ;;  %2737 = vst.msk [vmem:[#allocation2 + $0x30] sm:$0xff] %vm2729_vm5, %v11757_v17  ;;  %2738 = vst.msk [vmem:[#allocation2 + $0x38] sm:$0xff] %vm2729_vm5, %v11757_v17 }
 0x141   : > { %v1031_v56 = vadd.f32 %v7129_v62, %v11888_v51  ;;  %2730 = vst.msk [vmem:[#allocation2] sm:$0xff] %vm2729_vm5, %v11757_v17  ;;  %2731 = vst.msk [vmem:[#allocation2 + $0x8] sm:$0xff] %vm2729_vm5, %v11757_v17 }
 0x142   : > { %v1022_v14 = vpop.f32.mrf.mxu1  ;;  %v7164_v59 = vpop.f32.mrf.mxu0  ;;  %2734 = vst.msk [vmem:[#allocation2 + $0x18] sm:$0xff] %vm2729_vm5, %v11757_v17  ;;  %2735 = vst.msk [vmem:[#allocation2 + $0x20] sm:$0xff] %vm2729_vm5, %v11757_v17 }
 0x143   : > { %v9131_v54 = vadd.f32 %v7163_v33, %v1031_v56  ;;  %v1023_v55 = vadd.f32 %v1022_v14, %v11889_v23  ;;  %2740 = vst.msk [vmem:[#allocation2 + $0x48] sm:$0xff] %vm2729_vm5, %v11757_v17  ;;  %2741 = vst.msk [vmem:[#allocation2 + $0x50] sm:$0xff] %vm2729_vm5, %v11757_v17 }
 0x144   : > { %v7130_v45 = vpop.f32.mrf.mxu1  ;;  %v9134_v3 = vpop.f32.mrf.mxu0  ;;  %2743 = vst.msk [vmem:[#allocation2 + $0x60] sm:$0xff] %vm2729_vm5, %v11757_v17  ;;  %2744 = vst.msk [vmem:[#allocation2 + $0x68] sm:$0xff] %vm2729_vm5, %v11757_v17 }
 0x145   : > { %v9136_v43 = vadd.f32 %v1365_v38, %v1023_v55  ;;  %v1034_v41 = vadd.f32 %v7130_v45, %v11890_v53  ;;  %2746 = vst.msk [vmem:[#allocation2 + $0x78] sm:$0xff] %vm2729_vm5, %v11757_v17  ;;  %2747 = vst.msk [vmem:[#allocation2 + $0x80] sm:$0xff] %vm2729_vm5, %v11757_v17 }
 0x146   : > { %v9139_v61 = vpop.f32.mrf.mxu1  ;;  %v7203_v30 = vpop.f32.mrf.mxu0  ;;  %2749 = vst.msk [vmem:[#allocation2 + $0x90] sm:$0xff] %vm2729_vm5, %v11757_v17  ;;  %2750 = vst.msk [vmem:[#allocation2 + $0x98] sm:$0xff] %vm2729_vm5, %v11757_v17 }
 0x147   : > { %v9141_v58 = vadd.f32 %v7164_v59, %v1034_v41  ;;  %2752 = vst.msk [vmem:[#allocation2 + $0xa8] sm:$0xff] %vm2729_vm5, %v11757_v17  ;;  %2753 = vst.msk [vmem:[#allocation2 + $0xb0] sm:$0xff] %vm2729_vm5, %v11757_v17 }
 0x148   : > { %v7169_v50 = vpop.f32.mrf.mxu1  ;;  %v1667_v18 = vpop.f32.mrf.mxu0  ;;  %2755 = vst.msk [vmem:[#allocation2 + $0xc0] sm:$0xff] %vm2729_vm5, %v11757_v17  ;;  %2756 = vst.msk [vmem:[#allocation2 + $0xc8] sm:$0xff] %vm2729_vm5, %v11757_v17 }
 0x149   : > { %v1584_v12 = vadd.f32 %v7169_v50, %v8985_v13  ;;  %2758 = vst.msk [vmem:[#allocation2 + $0xd8] sm:$0xff] %vm2729_vm5, %v11757_v17  ;;  %2759 = vst.msk [vmem:[#allocation2 + $0xe0] sm:$0xff] %vm2729_vm5, %v11757_v17 }
 0x14a   : > { %v1455_v0 = vpop.f32.mrf.mxu1  ;;  %v7204_v32 = vpop.f32.mrf.mxu0  ;;  %2761 = vst.msk [vmem:[#allocation2 + $0xf0] sm:$0xff] %vm2729_vm5, %v11757_v17  ;;  %2762 = vst.msk [vmem:[#allocation2 + $0xf8] sm:$0xff] %vm2729_vm5, %v11757_v17 }
 0x14b   : > { %v9144_v35 = vadd.f32 %v7203_v30, %v1584_v12  ;;  %v1582_v29 = vadd.f32 %v1455_v0, %v8987_v63  ;;  %2764 = vst.msk [vmem:[#allocation2 + $0x108] sm:$0xff] %vm2729_vm5, %v11757_v17  ;;  %2765 = vst.msk [vmem:[#allocation2 + $0x110] sm:$0xff] %vm2729_vm5, %v11757_v17  ;;  %v7775_v0 = vld [vmem:[%s11695_s3] sm:$0xff]  }
 0x14c   : > { %v7170_v52 = vpop.f32.mrf.mxu1  ;;  %v9147_v16 = vpop.f32.mrf.mxu0  ;;  %2767 = vst.msk [vmem:[#allocation2 + $0x120] sm:$0xff] %vm2729_vm5, %v11757_v17  ;;  %2768 = vst.msk [vmem:[#allocation2 + $0x128] sm:$0xff] %vm2729_vm5, %v11757_v17  ;;  %7403 = vmatprep.subr.bf16.mxu0 %v7775_v0 }
 0x14d   : > { %v9156_v9 = vadd.f32 %v1667_v18, %v1582_v29  ;;  %v1585_v19 = vadd.f32 %v7170_v52, %v8991_v36  ;;  %2770 = vst.msk [vmem:[#allocation2 + $0x138] sm:$0xff] %vm2729_vm5, %v11757_v17  ;;  %2771 = vst.msk [vmem:[#allocation2 + $0x140] sm:$0xff] %vm2729_vm5, %v11757_v17  ;;  %7404 = vmatpush3.bf16.msra.mxu0 %v7775_v0 }
 0x14e   : > { %v9159_v13 = vpop.f32.mrf.mxu1  ;;  %v9161_v39 = vpop.f32.mrf.mxu0  ;;  %2773 = vst.msk [vmem:[#allocation2 + $0x150] sm:$0xff] %vm2729_vm5, %v11757_v17  ;;  %2774 = vst.msk [vmem:[#allocation2 + $0x158] sm:$0xff] %vm2729_vm5, %v11757_v17 }
 0x14f   : > { %v9163_v44 = vadd.f32 %v7204_v32, %v1585_v19  ;;  %2776 = vst.msk [vmem:[#allocation2 + $0x168] sm:$0xff] %vm2729_vm5, %v11757_v17  ;;  %2777 = vst.msk [vmem:[#allocation2 + $0x170] sm:$0xff] %vm2729_vm5, %v11757_v17  ;;  %v9413_v19 = vld [vmem:[#allocation2] sm:$0xff] }
 0x150   : > { %v9165_v63 = vpop.f32.mrf.mxu1  ;;  %v9167_v2 = vpop.f32.mrf.mxu0  ;;  %2779 = vst.msk [vmem:[#allocation2 + $0x180] sm:$0xff] %vm2729_vm5, %v11757_v17  ;;  %2780 = vst.msk [vmem:[#allocation2 + $0x188] sm:$0xff] %vm2729_vm5, %v11757_v17 }
 0x151   : > { %2782 = vst.msk [vmem:[#allocation2 + $0x198] sm:$0xff] %vm2729_vm5, %v11757_v17  ;;  %2783 = vst.msk [vmem:[#allocation2 + $0x1a0] sm:$0xff] %vm2729_vm5, %v11757_v17  ;;  %v1588_v36 = vadd.f32 %v9165_v63, %v9002_v60 }
 0x152   : > { %5877 = vst.msk [vmem:[%s9154_s25] sm:$0xff] %vm608_vm3, %v11757_v17  ;;  %5878 = vst.msk [vmem:[%s9154_s25 + $0x8] sm:$0xff] %vm608_vm3, %v11757_v17  ;;  %v1471_v33 = vpop.f32.mrf.mxu1  ;;  %v7208_v62 = vpop.f32.mrf.mxu0 }
 0x153   : > { %5881 = vst.msk [vmem:[%s9154_s25 + $0x18] sm:$0xff] %vm608_vm3, %v11757_v17  ;;  %5882 = vst.msk [vmem:[%s9154_s25 + $0x20] sm:$0xff] %vm608_vm3, %v11757_v17  ;;  %v9352_v38 = vadd.f32 %v9161_v39, %v1588_v36  ;;  %v1586_v51 = vadd.f32 %v1471_v33, %v9005_v25 }
 0x154   : > { %5884 = vst.msk [vmem:[%s9154_s25 + $0x30] sm:$0xff] %vm608_vm3, %v11757_v17  ;;  %5885 = vst.msk [vmem:[%s9154_s25 + $0x38] sm:$0xff] %vm608_vm3, %v11757_v17  ;;  %v7174_v56 = vpop.f32.mrf.mxu1  ;;  %v9355_v14 = vpop.f32.mrf.mxu0 }
 0x155   : > { %5887 = vst.msk [vmem:[%s9154_s25 + $0x48] sm:$0xff] %vm608_vm3, %v11757_v17  ;;  %5888 = vst.msk [vmem:[%s9154_s25 + $0x50] sm:$0xff] %vm608_vm3, %v11757_v17  ;;  %v9394_v60 = vadd.f32 %v9167_v2, %v1586_v51  ;;  %v1589_v25 = vadd.f32 %v7174_v56, %v9010_v11  ;;  %v2938_v2 = vrot.slane %v9413_v19, 1 }
 0x156   : > { %5890 = vst.msk [vmem:[%s9154_s25 + $0x60] sm:$0xff] %vm608_vm3, %v11757_v17  ;;  %5891 = vst.msk [vmem:[%s9154_s25 + $0x68] sm:$0xff] %vm608_vm3, %v11757_v17  ;;  %v9397_v59 = vpop.f32.mrf.mxu1  ;;  %v7211_v23 = vpop.f32.mrf.mxu0 }
 0x157   : > { %5893 = vst.msk [vmem:[%s9154_s25 + $0x78] sm:$0xff] %vm608_vm3, %v11757_v17  ;;  %5894 = vst.msk [vmem:[%s9154_s25 + $0x80] sm:$0xff] %vm608_vm3, %v11757_v17  ;;  %v9399_v55 = vadd.f32 %v7208_v62, %v1589_v25 }
 0x158   : > { %5896 = vst.msk [vmem:[%s9154_s25 + $0x90] sm:$0xff] %vm608_vm3, %v11757_v17  ;;  %5897 = vst.msk [vmem:[%s9154_s25 + $0x98] sm:$0xff] %vm608_vm3, %v11757_v17  ;;  %v7177_v45 = vpop.f32.mrf.mxu1  ;;  %v1699_v53 = vpop.f32.mrf.mxu0 }
 0x159   : > { %5899 = vst.msk [vmem:[%s9154_s25 + $0xa8] sm:$0xff] %vm608_vm3, %v11757_v17  ;;  %5900 = vst.msk [vmem:[%s9154_s25 + $0xb0] sm:$0xff] %vm608_vm3, %v11757_v17  ;;  %v1592_v41 = vadd.f32 %v7177_v45, %v9022_v34  ;;  %v9415_v34 = vld [vmem:[#allocation2 + $0x8] sm:$0xff] }
 0x15a   : > { %5902 = vst.msk [vmem:[%s9154_s25 + $0xc0] sm:$0xff] %vm608_vm3, %v11757_v17  ;;  %5903 = vst.msk [vmem:[%s9154_s25 + $0xc8] sm:$0xff] %vm608_vm3, %v11757_v17  ;;  %v1487_v30 = vpop.f32.mrf.mxu1  ;;  %v7212_v50 = vpop.f32.mrf.mxu0  ;;  %v2939_v36 = vrot.slane %v9415_v34, 1 }
 0x15b   : > { %5905 = vst.msk [vmem:[%s9154_s25 + $0xd8] sm:$0xff] %vm608_vm3, %v11757_v17  ;;  %5906 = vst.msk [vmem:[%s9154_s25 + $0xe0] sm:$0xff] %vm608_vm3, %v11757_v17  ;;  %v9402_v18 = vadd.f32 %v7211_v23, %v1592_v41  ;;  %v1590_v12 = vadd.f32 %v1487_v30, %v9025_v47  ;;  %v2872_v47 = vpack.c.bf16 %v9415_v34, %v9413_v19 }
 0x15c   : > { %5908 = vst.msk [vmem:[%s9154_s25 + $0xf0] sm:$0xff] %vm608_vm3, %v11757_v17  ;;  %5909 = vst.msk [vmem:[%s9154_s25 + $0xf8] sm:$0xff] %vm608_vm3, %v11757_v17  ;;  %v7178_v11 = vpop.f32.mrf.mxu1  ;;  %v9408_v32 = vpop.f32.mrf.mxu0  ;;  %v2940_v23 = vsel %vm477_vm2, %v2938_v2, %v2939_v36 }
 0x15d   : > { %5911 = vst.msk [vmem:[%s9154_s25 + $0x108] sm:$0xff] %vm608_vm3, %v11757_v17  ;;  %5912 = vst.msk [vmem:[%s9154_s25 + $0x110] sm:$0xff] %vm608_vm3, %v11757_v17  ;;  %v9410_v29 = vadd.f32 %v1699_v53, %v1590_v12  ;;  %v1593_v52 = vadd.f32 %v7178_v11, %v9030_v24  ;;  %7405 = vmatprep.mubr.msk.bf16.mxu0 %vm2729_vm5, %v2872_v47 }
 0x15e   : > { %5914 = vst.msk [vmem:[%s9154_s25 + $0x120] sm:$0xff] %vm608_vm3, %v11757_v17  ;;  %5915 = vst.msk [vmem:[%s9154_s25 + $0x128] sm:$0xff] %vm608_vm3, %v11757_v17  ;;  %v9417_v39 = vpop.f32.mrf.mxu1  ;;  %v7215_v63 = vpop.f32.mrf.mxu0 }
 0x15f   : > { %5917 = vst.msk [vmem:[%s9154_s25 + $0x138] sm:$0xff] %vm608_vm3, %v11757_v17  ;;  %5918 = vst.msk [vmem:[%s9154_s25 + $0x140] sm:$0xff] %vm608_vm3, %v11757_v17  ;;  %v9425_v62 = vadd.f32 %v7212_v50, %v1593_v52 }
 0x160   : > { %5920 = vst.msk [vmem:[%s9154_s25 + $0x150] sm:$0xff] %vm608_vm3, %v11757_v17  ;;  %5921 = vst.msk [vmem:[%s9154_s25 + $0x158] sm:$0xff] %vm608_vm3, %v11757_v17  ;;  %v7181_v51 = vpop.f32.mrf.mxu1  ;;  %v1715_v56 = vpop.f32.mrf.mxu0 }
 0x161   : > { %5923 = vst.msk [vmem:[%s9154_s25 + $0x168] sm:$0xff] %vm608_vm3, %v11757_v17  ;;  %5924 = vst.msk [vmem:[%s9154_s25 + $0x170] sm:$0xff] %vm608_vm3, %v11757_v17  ;;  %v1596_v25 = vadd.f32 %v7181_v51, %v9042_v48 }
 0x162   : > { %5926 = vst.msk [vmem:[%s9154_s25 + $0x180] sm:$0xff] %vm608_vm3, %v11757_v17  ;;  %5927 = vst.msk [vmem:[%s9154_s25 + $0x188] sm:$0xff] %vm608_vm3, %v11757_v17  ;;  %v1503_v53 = vpop.f32.mrf.mxu1  ;;  %v7216_v41 = vpop.f32.mrf.mxu0 }
 0x163   : > { %5929 = vst.msk [vmem:[%s9154_s25 + $0x198] sm:$0xff] %vm608_vm3, %v11757_v17  ;;  %5930 = vst.msk [vmem:[%s9154_s25 + $0x1a0] sm:$0xff] %vm608_vm3, %v11757_v17  ;;  %v9432_v12 = vadd.f32 %v7215_v63, %v1596_v25  ;;  %v1594_v50 = vadd.f32 %v1503_v53, %v9045_v7 }
 0x164   : > { %2739 = vst.msk [vmem:[#allocation2 + $0x40] sm:$0x3] %vm2732_vm6, %v11757_v17  ;;  %2733 = vst.msk [vmem:[#allocation2 + $0x10] sm:$0x3] %vm2732_vm6, %v11757_v17  ;;  %v7182_v0 = vpop.f32.mrf.mxu1  ;;  %v9435_v11 = vpop.f32.mrf.mxu0 }
 0x165   : > { %2736 = vst.msk [vmem:[#allocation2 + $0x28] sm:$0x3] %vm2732_vm6, %v11757_v17  ;;  %2742 = vst.msk [vmem:[#allocation2 + $0x58] sm:$0x3] %vm2732_vm6, %v11757_v17  ;;  %v9438_v52 = vadd.f32 %v1715_v56, %v1594_v50  ;;  %v1597_v48 = vadd.f32 %v7182_v0, %v9053_v57  ;;  %v9452_v56 = vld [vmem:[%s11695_s3 + $0x10] sm:$0xff]  }
 0x166   : > { %2745 = vst.msk [vmem:[#allocation2 + $0x70] sm:$0x3] %vm2732_vm6, %v11757_v17  ;;  %2748 = vst.msk [vmem:[#allocation2 + $0x88] sm:$0x3] %vm2732_vm6, %v11757_v17  ;;  %v9441_v47 = vpop.f32.mrf.mxu1  ;;  %v7219_v2 = vpop.f32.mrf.mxu0  ;;  %7437 = vmatprep.subr.bf16.mxu1 %v9452_v56 }
 0x167   : > { %2751 = vst.msk [vmem:[#allocation2 + $0xa0] sm:$0x3] %vm2732_vm6, %v11757_v17  ;;  %2754 = vst.msk [vmem:[#allocation2 + $0xb8] sm:$0x3] %vm2732_vm6, %v11757_v17 }
 0x168   : > { %2757 = vst.msk [vmem:[#allocation2 + $0xd0] sm:$0x3] %vm2732_vm6, %v11757_v17  ;;  %2760 = vst.msk [vmem:[#allocation2 + $0xe8] sm:$0x3] %vm2732_vm6, %v11757_v17  ;;  %v1731_v51 = vpop.f32.mrf.mxu0 }
 0x169   : > { %2763 = vst.msk [vmem:[#allocation2 + $0x100] sm:$0x3] %vm2732_vm6, %v11757_v17  ;;  %2766 = vst.msk [vmem:[#allocation2 + $0x118] sm:$0x3] %vm2732_vm6, %v11757_v17 }
 0x16a   : > { %2769 = vst.msk [vmem:[#allocation2 + $0x130] sm:$0x3] %vm2732_vm6, %v11757_v17  ;;  %2772 = vst.msk [vmem:[#allocation2 + $0x148] sm:$0x3] %vm2732_vm6, %v11757_v17  ;;  %v7220_v7 = vpop.f32.mrf.mxu0 }
 0x16b   : > { %2775 = vst.msk [vmem:[#allocation2 + $0x160] sm:$0x3] %vm2732_vm6, %v11757_v17  ;;  %2778 = vst.msk [vmem:[#allocation2 + $0x178] sm:$0x3] %vm2732_vm6, %v11757_v17  ;;  %v9423_v33 = vld [vmem:[#allocation2 + $0x10] sm:$0x3] }
 0x16c   : > { %2781 = vst.msk [vmem:[#allocation2 + $0x190] sm:$0x3] %vm2732_vm6, %v11757_v17  ;;  %2784 = vst.msk [vmem:[#allocation2 + $0x1a8] sm:$0x3] %vm2732_vm6, %v11757_v17  ;;  %v2941_v24 = vrot.slane %v9423_v33, 1  ;;  %v9454_v53 = vpop.f32.mrf.mxu0 }
 0x16d   : > { %11891 = vst [vmem:[#allocation32_spill] sm:$0xff] %v9432_v12  ;;  %11892 = vst [vmem:[#allocation38_spill] sm:$0xff] %v9438_v52 }
 0x16e   : > { %v2942_v45 = vsel %vm477_vm2, %v2939_v36, %v2941_v24  ;;  %v9443_v36 = vadd.f32 %v7216_v41, %v1597_v48  ;;  %v7185_v24 = vpop.f32.mrf.mxu1  ;;  %11895 = vst [vmem:[#allocation20_spill] sm:$0xff] %v9452_v56  ;;  %v7223_v50 = vpop.f32.mrf.mxu0 }
 0x16f   : > { %v3050_v30 = vpack.c.bf16 %v2942_v45, %v2940_v23  ;;  %v1600_v63 = vadd.f32 %v7185_v24, %v9065_v37 }
 0x170   : > { %11893 = vst [vmem:[#allocation25_spill] sm:$0xff] %v9443_v36  ;;  %v1519_v25 = vpop.f32.mrf.mxu1  ;;  %v1747_v48 = vpop.f32.mrf.mxu0 }
 0x171   : > { %7371 = vmatprep.mubr.msk.bf16.mxu1 %vm2729_vm5, %v3050_v30  ;;  %v9446_v23 = vadd.f32 %v7219_v2, %v1600_v63  ;;  %v1598_v45 = vadd.f32 %v1519_v25, %v9070_v42 }
 0x172   : > { %v7186_v57 = vpop.f32.mrf.mxu1  ;;  %v7224_v63 = vpop.f32.mrf.mxu0 }
 0x173   : > { %11894 = vst [vmem:[#allocation13_spill] sm:$0xff] %v9446_v23  ;;  %v9456_v41 = vadd.f32 %v1731_v51, %v1598_v45  ;;  %v1601_v30 = vadd.f32 %v7186_v57, %v9077_v22 }
 0x174   : > { %v9460_v37 = vpop.f32.mrf.mxu1  ;;  %v9468_v17 = vpop.f32.mrf.mxu0 }
 0x175   : > { %11896 = vst [vmem:[#allocation34_spill] sm:$0xff] %v9456_v41  ;;  %v9462_v0 = vadd.f32 %v7220_v7, %v1601_v30 }
 0x176   : > { %v7189_v42 = vpop.f32.mrf.mxu1  ;;  %v7227_v7 = vpop.f32.mrf.mxu0 }
 0x177   : > { %11897 = vst [vmem:[#allocation9_spill] sm:$0xff] %v9462_v0  ;;  %v1604_v2 = vadd.f32 %v7189_v42, %v9089_v5 }
 0x178   : > { %v1535_v24 = vpop.f32.mrf.mxu1  ;;  %v1763_v5 = vpop.f32.mrf.mxu0 }
 0x179   : > { %v9465_v25 = vadd.f32 %v7223_v50, %v1604_v2  ;;  %v1602_v51 = vadd.f32 %v1535_v24, %v9096_v49 }
 0x17a   : > { %v7190_v45 = vpop.f32.mrf.mxu1  ;;  %v7228_v2 = vpop.f32.mrf.mxu0 }
 0x17b   : > { %11898 = vst [vmem:[#allocation16_spill] sm:$0xff] %v9465_v25  ;;  %v9470_v22 = vadd.f32 %v1747_v48, %v1602_v51  ;;  %v1605_v57 = vadd.f32 %v7190_v45, %v9103_v8 }
 0x17c   : > { %v9473_v56 = vpop.f32.mrf.mxu1  ;;  %v9481_v48 = vpop.f32.mrf.mxu0 }
 0x17d   : > { %11899 = vst [vmem:[#allocation51_spill] sm:$0xff] %v9470_v22  ;;  %v9475_v30 = vadd.f32 %v7224_v63, %v1605_v57 }
 0x17e   : > { %v7193_v0 = vpop.f32.mrf.mxu1  ;;  %v7231_v63 = vpop.f32.mrf.mxu0 }
 0x17f   : > { %11900 = vst [vmem:[#allocation52_spill] sm:$0xff] %v9475_v30  ;;  %v1608_v42 = vadd.f32 %v7193_v0, %v9116_v6 }
 0x180   : > { %v1551_v50 = vpop.f32.mrf.mxu1  ;;  %v1779_v6 = vpop.f32.mrf.mxu0 }
 0x181   : > { %v9478_v25 = vadd.f32 %v7227_v7, %v1608_v42  ;;  %v1606_v49 = vadd.f32 %v1551_v50, %v9121_v10 }
 0x182   : > { %v7194_v24 = vpop.f32.mrf.mxu1  ;;  %v7232_v42 = vpop.f32.mrf.mxu0 }
 0x183   : > { %11901 = vst [vmem:[#allocation53_spill] sm:$0xff] %v9478_v25  ;;  %v9483_v51 = vadd.f32 %v1763_v5, %v1606_v49  ;;  %v1609_v8 = vadd.f32 %v7194_v24, %v9127_v26 }
 0x184   : > { %v9486_v45 = vpop.f32.mrf.mxu1  ;;  %v9494_v5 = vpop.f32.mrf.mxu0 }
 0x185   : > { %11902 = vst [vmem:[#allocation54_spill] sm:$0xff] %v9483_v51  ;;  %v9488_v57 = vadd.f32 %v7228_v2, %v1609_v8 }
 0x186   : > { %v7197_v30 = vpop.f32.mrf.mxu1  ;;  %v9501_v2 = vpop.f32.mrf.mxu0 }
 0x187   : > { %11903 = vst [vmem:[#allocation55_spill] sm:$0xff] %v9488_v57  ;;  %v1612_v0 = vadd.f32 %v7197_v30, %v9131_v54 }
 0x188   : > { %v1567_v7 = vpop.f32.mrf.mxu1  ;;  %v9507_v30 = vpop.f32.mrf.mxu0 }
 0x189   : > { %v9491_v25 = vadd.f32 %v7231_v63, %v1612_v0  ;;  %v1610_v10 = vadd.f32 %v1567_v7, %v9136_v43 }
 0x18a   : > { %v7198_v50 = vpop.f32.mrf.mxu1  ;;  %v9511_v43 = vpop.f32.mrf.mxu0 }
 0x18b   : > { %11904 = vst [vmem:[#allocation56_spill] sm:$0xff] %v9491_v25  ;;  %v9496_v49 = vadd.f32 %v1779_v6, %v1610_v10  ;;  %v1613_v26 = vadd.f32 %v7198_v50, %v9141_v58  ;;  %11907 = vst [vmem:[#allocation59_spill] sm:$0xff] %v9511_v43 }
 0x18c   : > { %v9499_v24 = vpop.f32.mrf.mxu1  ;;  %v9515_v6 = vpop.f32.mrf.mxu0 }
 0x18d   : > { %11905 = vst [vmem:[#allocation57_spill] sm:$0xff] %v9496_v49  ;;  %v9503_v8 = vadd.f32 %v7232_v42, %v1613_v26  ;;  %11908 = vst [vmem:[#allocation60_spill] sm:$0xff] %v9515_v6 }
 0x18e   : > { %v9505_v54 = vpop.f32.mrf.mxu1  ;;  %v9519_v58 = vpop.f32.mrf.mxu0 }
 0x18f   : > { %11906 = vst [vmem:[#allocation58_spill] sm:$0xff] %v9503_v8  ;;  %11909 = vst [vmem:[#allocation61_spill] sm:$0xff] %v9519_v58 }
 0x190   : > { %v9509_v63 = vpop.f32.mrf.mxu1  ;;  %v9523_v42 = vpop.f32.mrf.mxu0 }
 0x191   : > { %11910 = vst [vmem:[#allocation62_spill] sm:$0xff] %v9523_v42 }
 0x192   : > { %v9513_v0 = vpop.f32.mrf.mxu1  ;;  %v9527_v26 = vpop.f32.mrf.mxu0 }
 0x193   : > { %11911 = vst [vmem:[#allocation63_spill] sm:$0xff] %v9527_v26 }
 0x194   : > { %v9517_v7 = vpop.f32.mrf.mxu1  ;;  %v9531_v49 = vpop.f32.mrf.mxu0 }
 0x195   : > { %11912 = vst [vmem:[#allocation64_spill] sm:$0xff] %v9531_v49  ;;  %v3499_v49 = vrot.slane %v9413_v19, 2  ;;  %v3502_v19 = vrot.slane %v9423_v33, 2 }
 0x196   : > { %v9521_v10 = vpop.f32.mrf.mxu1  ;;  %v9535_v57 = vpop.f32.mrf.mxu0 }
 0x197   : > { %11913 = vst [vmem:[#allocation65_spill] sm:$0xff] %v9535_v57  ;;  %v3500_v57 = vrot.slane %v9415_v34, 2 }
 0x198   : > { %v9525_v50 = vpop.f32.mrf.mxu1  ;;  %v9539_v22 = vpop.f32.mrf.mxu0 }
 0x199   : > { %11914 = vst [vmem:[#allocation66_spill] sm:$0xff] %v9539_v22 }
 0x19a   : > { %v9529_v8 = vpop.f32.mrf.mxu1  ;;  %v9543_v23 = vpop.f32.mrf.mxu0 }
 0x19b   : > { %11915 = vst [vmem:[#allocation67_spill] sm:$0xff] %v9543_v23  ;;  %v9562_v23 = vld [vmem:[%s11695_s3 + $0x18] sm:$0xff]  }
 0x19c   : > { %v9533_v25 = vpop.f32.mrf.mxu1  ;;  %v9547_v42 = vpop.f32.mrf.mxu0  ;;  %11920 = vst [vmem:[#allocation72_spill] sm:$0xff] %v9562_v23  ;;  %7471 = vmatprep.subr.bf16.mxu0 %v9562_v23 }
 0x19d   : > { %11916 = vst [vmem:[#allocation68_spill] sm:$0xff] %v9547_v42 }
 0x19e   : > { %v9537_v51 = vpop.f32.mrf.mxu1  ;;  %v9551_v58 = vpop.f32.mrf.mxu0 }
 0x19f   : > { %11917 = vst [vmem:[#allocation69_spill] sm:$0xff] %v9551_v58  ;;  %v9570_v58 = vsel %vm1037_vm4, %v3499_v49, %v3500_v57 }
 0x1a0   : > { %v9541_v41 = vpop.f32.mrf.mxu1  ;;  %v9557_v52 = vpop.f32.mrf.mxu0  ;;  %11923 = vst [vmem:[#allocation75_spill] sm:$0xff] %v9570_v58 }
 0x1a1   : > { %11919 = vst [vmem:[#allocation71_spill] sm:$0xff] %v9557_v52  ;;  %v9578_v52 = vsel %vm1037_vm4, %v3500_v57, %v3502_v19 }
 0x1a2   : > { %v9545_v36 = vpop.f32.mrf.mxu1  ;;  %v9566_v42 = vpop.f32.mrf.mxu0  ;;  %11926 = vst [vmem:[#allocation78_spill] sm:$0xff] %v9578_v52 }
 0x1a3   : > { %11922 = vst [vmem:[#allocation74_spill] sm:$0xff] %v9566_v42 }
 0x1a4   : > { %v9549_v26 = vpop.f32.mrf.mxu1 }
 0x1a6   : > { %v9555_v6 = vpop.f32.mrf.mxu1 }
 0x1a7   : > { %11918 = vst [vmem:[#allocation70_spill] sm:$0xff] %v9555_v6  ;;  %v9575_v6 = vpop.f32.mrf.mxu0 }
 0x1a8   : > { %v9564_v22 = vpop.f32.mrf.mxu1  ;;  %11925 = vst [vmem:[#allocation77_spill] sm:$0xff] %v9575_v6 }
 0x1a9   : > { %11921 = vst [vmem:[#allocation73_spill] sm:$0xff] %v9564_v22  ;;  %v9582_v43 = vpop.f32.mrf.mxu0 }
 0x1aa   : > { %v9573_v34 = vpop.f32.mrf.mxu1  ;;  %11928 = vst [vmem:[#allocation80_spill] sm:$0xff] %v9582_v43 }
 0x1ab   : > { %11924 = vst [vmem:[#allocation76_spill] sm:$0xff] %v9573_v34  ;;  %v9588_v49 = vpop.f32.mrf.mxu0 }
 0x1ac   : > { %v9580_v12 = vpop.f32.mrf.mxu1  ;;  %11930 = vst [vmem:[#allocation82_spill] sm:$0xff] %v9588_v49 }
 0x1ad   : > { %11927 = vst [vmem:[#allocation79_spill] sm:$0xff] %v9580_v12  ;;  %v9592_v33 = vpop.f32.mrf.mxu0 }
 0x1ae   : > { %v9586_v23 = vpop.f32.mrf.mxu1  ;;  %11932 = vst [vmem:[#allocation84_spill] sm:$0xff] %v9592_v33 }
 0x1af   : > { %11929 = vst [vmem:[#allocation81_spill] sm:$0xff] %v9586_v23  ;;  %v9596_v6 = vpop.f32.mrf.mxu0 }
 0x1b0   : > { %v9590_v22 = vpop.f32.mrf.mxu1  ;;  %11934 = vst [vmem:[#allocation86_spill] sm:$0xff] %v9596_v6 }
 0x1b1   : > { %11931 = vst [vmem:[#allocation83_spill] sm:$0xff] %v9590_v22  ;;  %v9600_v19 = vpop.f32.mrf.mxu0  ;;  %v11949_v22 = vld [vmem:[#allocation28_spill] sm:$0xff] }
 0x1b2   : > { %v9594_v34 = vpop.f32.mrf.mxu1  ;;  %11936 = vst [vmem:[#allocation88_spill] sm:$0xff] %v9600_v19  ;;  %v11947_v19 = vld [vmem:[#allocation31_spill] sm:$0xff] }
 0x1b3   : > { %11933 = vst [vmem:[#allocation85_spill] sm:$0xff] %v9594_v34  ;;  %v9604_v12 = vpop.f32.mrf.mxu0 }
 0x1b4   : > { %v9598_v57 = vpop.f32.mrf.mxu1  ;;  %11938 = vst [vmem:[#allocation90_spill] sm:$0xff] %v9604_v12  ;;  %v11948_v12 = vld [vmem:[#allocation36_spill] sm:$0xff] }
 0x1b5   : > { %11935 = vst [vmem:[#allocation87_spill] sm:$0xff] %v9598_v57  ;;  %v9608_v58 = vpop.f32.mrf.mxu0 }
 0x1b6   : > { %v9602_v43 = vpop.f32.mrf.mxu1  ;;  %11940 = vst [vmem:[#allocation92_spill] sm:$0xff] %v9608_v58  ;;  %v1010_v58 = vadd.f32 %v9124_v20, %v11949_v22  ;;  %v1583_v20 = vadd.f32 %v9159_v13, %v8997_v28  ;;  %v1591_v22 = vadd.f32 %v9417_v39, %v9037_v1 }
 0x1b7   : > { %11937 = vst [vmem:[#allocation89_spill] sm:$0xff] %v9602_v43  ;;  %v9612_v49 = vpop.f32.mrf.mxu0  ;;  %v978_v43 = vadd.f32 %v9073_v4, %v11947_v19 }
 0x1b8   : > { %v9606_v42 = vpop.f32.mrf.mxu1  ;;  %11942 = vst [vmem:[#allocation94_spill] sm:$0xff] %v9612_v49 }
 0x1b9   : > { %11939 = vst [vmem:[#allocation91_spill] sm:$0xff] %v9606_v42  ;;  %v9616_v34 = vpop.f32.mrf.mxu0  ;;  %v994_v42 = vadd.f32 %v9099_v27, %v11948_v12  ;;  %v1405_v27 = vadd.f32 %v9119_v40, %v1010_v58  ;;  %v1587_v12 = vadd.f32 %v9397_v59, %v9017_v21  ;;  %v1795_v59 = vadd.f32 %v9147_v16, %v1583_v20  ;;  %v11951_v58 = vld [vmem:[#allocation59_spill] sm:$0xff] }
 0x1ba   : > { %v9610_v52 = vpop.f32.mrf.mxu1  ;;  %11944 = vst [vmem:[#allocation96_spill] sm:$0xff] %v9616_v34  ;;  %v2006_v16 = vadd.f32 %v9513_v0, %v9163_v44 }
 0x1bb   : > { %11941 = vst [vmem:[#allocation93_spill] sm:$0xff] %v9610_v52  ;;  %v9620_v57 = vpop.f32.mrf.mxu0  ;;  %v1401_v4 = vadd.f32 %v9093_v15, %v994_v42  ;;  %v1607_v28 = vadd.f32 %v9486_v45, %v1405_v27  ;;  %v1799_v39 = vadd.f32 %v9355_v14, %v1587_v12  ;;  %v11954_v42 = vld [vmem:[#allocation38_spill] sm:$0xff] }
 0x1bc   : > { %v9614_v33 = vpop.f32.mrf.mxu1  ;;  %11946 = vst [vmem:[#allocation98_spill] sm:$0xff] %v9620_v57  ;;  %v1397_v57 = vadd.f32 %v9068_v31, %v978_v43 }
 0x1bd   : > { %11943 = vst [vmem:[#allocation95_spill] sm:$0xff] %v9614_v33  ;;  %v9630_v49 = vpop.f32.mrf.mxu0  ;;  %v11950_v33 = vld [vmem:[#allocation23_spill] sm:$0xff]  ;;  %v1603_v40 = vadd.f32 %v9473_v56, %v1401_v4  ;;  %v9681_v14 = vadd.f32 %v9481_v48, %v1607_v28  ;;  %v2010_v48 = vadd.f32 %v9529_v8, %v9399_v55  ;;  %v2208_v55 = vadd.f32 %v11951_v58, %v2006_v16  ;;  %v11952_v8 = vld [vmem:[#allocation32_spill] sm:$0xff]  ;;  %v11964_v28 = vld [vmem:[#allocation65_spill] sm:$0xff] }
 0x1be   : > { %v9618_v6 = vpop.f32.mrf.mxu1  ;;  %v1026_v34 = vadd.f32 %v9139_v61, %v11950_v33  ;;  %v1595_v61 = vadd.f32 %v9441_v47, %v9060_v46  ;;  %v1599_v15 = vadd.f32 %v9460_v37, %v1397_v57  ;;  %v2005_v46 = vadd.f32 %v9505_v54, %v9144_v35  ;;  %v11960_v57 = vld [vmem:[#allocation76_spill] sm:$0xff] }
 0x1bf   : > { %11945 = vst [vmem:[#allocation97_spill] sm:$0xff] %v9618_v6  ;;  %v9636_v6 = vpop.f32.mrf.mxu0  ;;  %v9674_v43 = vadd.f32 %v9468_v17, %v1603_v40  ;;  %v2003_v35 = vadd.f32 %v9509_v63, %v9156_v9  ;;  %v2008_v54 = vadd.f32 %v9533_v25, %v1799_v39  ;;  %v2014_v63 = vadd.f32 %v9545_v36, %v9425_v62  ;;  %v11953_v25 = vld [vmem:[#allocation70_spill] sm:$0xff]  ;;  %v11966_v39 = vld [vmem:[#allocation67_spill] sm:$0xff] }
 0x1c0   : > { %v9628_v52 = vpop.f32.mrf.mxu1  ;;  %v1409_v31 = vadd.f32 %v9134_v3, %v1026_v34  ;;  %v1803_v3 = vadd.f32 %v9408_v32, %v1591_v22  ;;  %v1807_v47 = vadd.f32 %v9435_v11, %v1595_v61  ;;  %v1811_v45 = vadd.f32 %v9454_v53, %v1599_v15  ;;  %v11958_v62 = vld [vmem:[#allocation62_spill] sm:$0xff]  ;;  %v11962_v22 = vld [vmem:[#allocation64_spill] sm:$0xff] }
 0x1c1   : > { %v9651_v19 = vpop.f32.mrf.mxu0  ;;  %v2004_v32 = vadd.f32 %v9517_v7, %v1795_v59  ;;  %v2009_v11 = vadd.f32 %v9521_v10, %v9352_v38  ;;  %v2007_v53 = vadd.f32 %v9525_v50, %v9394_v60  ;;  %v2207_v44 = vadd.f32 %v9501_v2, %v2005_v46  ;;  %v11956_v50 = vld [vmem:[#allocation60_spill] sm:$0xff]  ;;  %v11965_v46 = vld [vmem:[#allocation66_spill] sm:$0xff] }
 0x1c2   : > { %v9634_v23 = vpop.f32.mrf.mxu1  ;;  %v1611_v1 = vadd.f32 %v9499_v24, %v1409_v31  ;;  %v2013_v38 = vadd.f32 %v9537_v51, %v9402_v18  ;;  %v2011_v60 = vadd.f32 %v9541_v41, %v9410_v29  ;;  %v2012_v0 = vadd.f32 %v9549_v26, %v1803_v3  ;;  %v11955_v18 = vld [vmem:[#allocation73_spill] sm:$0xff]  ;;  %v11963_v31 = vld [vmem:[#allocation79_spill] sm:$0xff] }
 0x1c3   : > { %v9659_v21 = vpop.f32.mrf.mxu0  ;;  %v2205_v2 = vadd.f32 %v9507_v30, %v2003_v35  ;;  %v2017_v10 = vadd.f32 %v11953_v25, %v11952_v8  ;;  %v2015_v51 = vadd.f32 %v11955_v18, %v11954_v42  ;;  %v2206_v29 = vadd.f32 %v11956_v50, %v2004_v32  ;;  %v11957_v41 = vld [vmem:[#allocation61_spill] sm:$0xff]  ;;  %v11961_v30 = vld [vmem:[#allocation63_spill] sm:$0xff]  ;;  %v11967_v35 = vld [vmem:[#allocation68_spill] sm:$0xff] }
 0x1c4   : > { %v9649_v33 = vpop.f32.mrf.mxu1  ;;  %v9693_v9 = vadd.f32 %v9494_v5, %v1611_v1  ;;  %v2211_v34 = vadd.f32 %v11957_v41, %v2009_v11  ;;  %v2209_v36 = vadd.f32 %v11958_v62, %v2007_v53  ;;  %v11959_v26 = vld [vmem:[#allocation25_spill] sm:$0xff]  ;;  %v9720_v12 = vadd.f32 %v11961_v30, %v2010_v48  ;;  %v9741_v32 = vld [vmem:[%s11694_s2] ss:$0 sm:$0xff]  ;;  %v11969_v48 = vld [vmem:[#allocation71_spill] sm:$0xff] }
 0x1c5   : > { %v9670_v37 = vpop.f32.mrf.mxu0  ;;  %v2018_v4 = vadd.f32 %v11960_v57, %v11959_v26  ;;  %v9723_v61 = vadd.f32 %v11962_v22, %v2008_v54  ;;  %v2016_v15 = vadd.f32 %v11963_v31, %v1807_v47  ;;  %v9727_v1 = vadd.f32 %v11964_v28, %v2013_v38  ;;  %v11968_v53 = vld [vmem:[#allocation69_spill] sm:$0xff]  ;;  %v11973_v42 = vld [vmem:[#allocation34_spill] sm:$0xff]  ;;  %v11974_v18 = vld [vmem:[#allocation83_spill] sm:$0xff] }
 0x1c6   : > { %v9657_v13 = vpop.f32.mrf.mxu1  ;;  %v9730_v59 = vadd.f32 %v11965_v46, %v2011_v60  ;;  %v9733_v3 = vadd.f32 %v11966_v39, %v2014_v63  ;;  %v9736_v16 = vadd.f32 %v11967_v35, %v2012_v0  ;;  %v9747_v54 = vadd.f32 %v11969_v48, %v2015_v51  ;;  %v11970_v63 = vld [vmem:[#allocation74_spill] sm:$0xff]  ;;  %v11971_v0 = vld [vmem:[#allocation13_spill] sm:$0xff]  ;;  %v11979_v31 = vld [vmem:[#allocation16_spill] sm:$0xff] }
 0x1c7   : > { %v9690_v17 = vpop.f32.mrf.mxu0  ;;  %v9750_v58 = vadd.f32 %v11970_v63, %v2018_v4  ;;  %v11972_v8 = vld [vmem:[#allocation81_spill] sm:$0xff]  ;;  %v2019_v50 = vadd.f32 %v11974_v18, %v11973_v42  ;;  %v11978_v4 = vld [vmem:[#allocation87_spill] sm:$0xff]  ;;  %v11987_v18 = vld [vmem:[#allocation84_spill] sm:$0xff] }
 0x1c8   : > { %v9668_v56 = vpop.f32.mrf.mxu1  ;;  %v2021_v25 = vadd.f32 %v11972_v8, %v11971_v0  ;;  %v11975_v41 = vld [vmem:[#allocation9_spill] sm:$0xff]  ;;  %v2020_v22 = vadd.f32 %v11978_v4, %v1811_v45  ;;  %v11981_v46 = vld [vmem:[#allocation51_spill] sm:$0xff]  ;;  %v11986_v45 = vld [vmem:[#allocation82_spill] sm:$0xff] }
 0x1c9   : > { %v7339_v7 = vpop.f32.mrf.mxu0  ;;  %v11976_v62 = vld [vmem:[#allocation85_spill] sm:$0xff]  ;;  %v11982_v39 = vld [vmem:[#allocation91_spill] sm:$0xff] }
 0x1ca   : > { %v9688_v24 = vpop.f32.mrf.mxu1  ;;  %v2022_v26 = vadd.f32 %v11976_v62, %v11975_v41  ;;  %v2023_v35 = vadd.f32 %v11982_v39, %v11981_v46  ;;  %v11988_v62 = vld [vmem:[#allocation95_spill] sm:$0xff]  ;;  %v11992_v46 = vld [vmem:[#allocation92_spill] sm:$0xff] }
 0x1cb   : > { %v2499_v20 = vpop.f32.mrf.mxu0 }
 0x1cc   : > { %v9706_v5 = vpop.f32.mrf.mxu1  ;;  %v9777_v41 = vadd.f32 %v11987_v18, %v2022_v26  ;;  %v11991_v26 = vld [vmem:[#allocation90_spill] sm:$0xff] }
 0x1cd   : > { %v7340_v47 = vpop.f32.mrf.mxu0 }
 0x1ce   : > { %v7305_v27 = vpop.f32.mrf.mxu1 }
 0x1cf   : > { %v2419_v40 = vadd.f32 %v7305_v27, %v2207_v44  ;;  %v9744_v44 = vadd.f32 %v11968_v53, %v2017_v10  ;;  %v2502_v10 = vpop.f32.mrf.mxu0  ;;  %v11977_v27 = vld [vmem:[#allocation77_spill] sm:$0xff] }
 0x1d0   : > { %v2290_v11 = vpop.f32.mrf.mxu1  ;;  %v9759_v30 = vadd.f32 %v11977_v27, %v2016_v15  ;;  %v11984_v53 = vld [vmem:[#allocation93_spill] sm:$0xff] }
 0x1d1   : > { %v2628_v38 = vadd.f32 %v7339_v7, %v2419_v40  ;;  %v2417_v60 = vadd.f32 %v2290_v11, %v2205_v2  ;;  %v11980_v40 = vld [vmem:[#allocation89_spill] sm:$0xff]  ;;  %v11983_v11 = vld [vmem:[#allocation52_spill] sm:$0xff]  ;;  %v7343_v0 = vpop.f32.mrf.mxu0 }
 0x1d2   : > { %v7306_v57 = vpop.f32.mrf.mxu1  ;;  %v2025_v28 = vadd.f32 %v11980_v40, %v11979_v31  ;;  %v2026_v48 = vadd.f32 %v11984_v53, %v11983_v11  ;;  %v9790_v40 = vadd.f32 %v11991_v26, %v2023_v35  ;;  %v11996_v35 = vld [vmem:[#allocation54_spill] sm:$0xff] }
 0x1d3   : > { %v2667_v7 = vadd.f32 %v9741_v32, %v2628_v38  ;;  %v2626_v2 = vadd.f32 %v2499_v20, %v2417_v60  ;;  %v2420_v51 = vadd.f32 %v7306_v57, %v2208_v55  ;;  %v11985_v20 = vld [vmem:[#allocation80_spill] sm:$0xff]  ;;  %v9774_v60 = vadd.f32 %v11986_v45, %v2019_v50  ;;  %v2515_v4 = vpop.f32.mrf.mxu0 }
 0x1d4   : > { %v2293_v63 = vpop.f32.mrf.mxu1  ;;  %v9771_v55 = vadd.f32 %v11985_v20, %v2021_v25  ;;  %v2024_v57 = vadd.f32 %v11988_v62, %v9674_v43  ;;  %v11989_v25 = vld [vmem:[#allocation86_spill] sm:$0xff]  ;;  %v11990_v50 = vld [vmem:[#allocation88_spill] sm:$0xff]  ;;  %v9793_v43 = vadd.f32 %v11992_v46, %v2026_v48  ;;  %v11997_v48 = vld [vmem:[#allocation55_spill] sm:$0xff] }
 0x1d5   : > { %v2699_v8 = vmax.f32 %v2667_v7, 0.0  ;;  %v2665_v15 = vadd.f32 %v9741_v32, %v2626_v2  ;;  %v2629_v42 = vadd.f32 %v7340_v47, %v2420_v51  ;;  %v2418_v38 = vadd.f32 %v2293_v63, %v2206_v29  ;;  %v7344_v11 = vpop.f32.mrf.mxu0 }
 0x1d6   : > { %v7309_v27 = vpop.f32.mrf.mxu1  ;;  %v9784_v51 = vadd.f32 %v11989_v25, %v2020_v22  ;;  %v9787_v31 = vadd.f32 %v11990_v50, %v2025_v28  ;;  %v11993_v22 = vld [vmem:[#allocation94_spill] sm:$0xff]  ;;  %v11994_v28 = vld [vmem:[#allocation53_spill] sm:$0xff]  ;;  %v2030_v20 = vadd.f32 %v9634_v23, %v11997_v48 }
 0x1d7   : > { %2788 = vst.msk [vmem:[#allocation2 + $0x31] sm:$0xff] %vm2729_vm5, %v2699_v8  ;;  %v2697_v7 = vmax.f32 %v2665_v15, 0.0  ;;  %v2668_v47 = vadd.f32 %v9741_v32, %v2629_v42  ;;  %v2627_v29 = vadd.f32 %v2502_v10, %v2418_v38  ;;  %v2423_v2 = vadd.f32 %v7309_v27, %v2211_v34  ;;  %v11995_v15 = vld [vmem:[#allocation97_spill] sm:$0xff]  ;;  %v2518_v18 = vpop.f32.mrf.mxu0  ;;  %v12000_v23 = vld [vmem:[#allocation58_spill] sm:$0xff] }
 0x1d8   : > { %v2306_v39 = vpop.f32.mrf.mxu1  ;;  %v9798_v8 = vadd.f32 %v11993_v22, %v2024_v57  ;;  %v2029_v42 = vadd.f32 %v11995_v15, %v11994_v28  ;;  %v2027_v38 = vadd.f32 %v9628_v52, %v11996_v35  ;;  %v2028_v27 = vadd.f32 %v9649_v33, %v9681_v14  ;;  %v11999_v52 = vld [vmem:[#allocation57_spill] sm:$0xff]  ;;  %v12001_v33 = vld [vmem:[#allocation96_spill] sm:$0xff] }
 0x1d9   : > { %2786 = vst.msk [vmem:[#allocation2 + $0x19] sm:$0xff] %vm2729_vm5, %v2697_v7  ;;  %v2700_v53 = vmax.f32 %v2668_v47, 0.0  ;;  %v2666_v10 = vadd.f32 %v9741_v32, %v2627_v29  ;;  %v2632_v34 = vadd.f32 %v7343_v0, %v2423_v2  ;;  %v2421_v63 = vadd.f32 %v2306_v39, %v2209_v36  ;;  %v11998_v7 = vld [vmem:[#allocation56_spill] sm:$0xff]  ;;  %v7347_v50 = vpop.f32.mrf.mxu0 }
 0x1da   : > { %v7310_v45 = vpop.f32.mrf.mxu1  ;;  %v2033_v47 = vadd.f32 %v9657_v13, %v11998_v7  ;;  %v2031_v29 = vadd.f32 %v9668_v56, %v11999_v52  ;;  %v2034_v2 = vadd.f32 %v9688_v24, %v12000_v23  ;;  %v9821_v14 = vadd.f32 %v12001_v33, %v2029_v42  ;;  %v12002_v13 = vld [vmem:[#allocation98_spill] sm:$0xff] }
 0x1db   : > { %2789 = vst.msk [vmem:[#allocation2 + $0x39] sm:$0xff] %vm2729_vm5, %v2700_v53  ;;  %v2698_v62 = vmax.f32 %v2666_v10, 0.0  ;;  %v2671_v0 = vadd.f32 %v9741_v32, %v2632_v34  ;;  %v2630_v36 = vadd.f32 %v2515_v4, %v2421_v63  ;;  %v2424_v57 = vadd.f32 %v7310_v45, %v9720_v12  ;;  %v2531_v10 = vpop.f32.mrf.mxu0 }
 0x1dc   : > { %v2309_v25 = vpop.f32.mrf.mxu1  ;;  %v9824_v39 = vadd.f32 %v12002_v13, %v2027_v38  ;;  %v9827_v56 = vadd.f32 %v9630_v49, %v2030_v20  ;;  %v2032_v24 = vadd.f32 %v9706_v5, %v9693_v9  ;;  %v9837_v28 = vadd.f32 %v9636_v6, %v2028_v27 }
 0x1dd   : > { %2787 = vst.msk [vmem:[#allocation2 + $0x21] sm:$0xff] %vm2729_vm5, %v2698_v62  ;;  %v2703_v26 = vmax.f32 %v2671_v0, 0.0  ;;  %v2669_v4 = vadd.f32 %v9741_v32, %v2630_v36  ;;  %v2633_v12 = vadd.f32 %v7344_v11, %v2424_v57  ;;  %v2422_v46 = vadd.f32 %v2309_v25, %v9723_v61  ;;  %v7348_v42 = vpop.f32.mrf.mxu0 }
 0x1de   : > { %v7313_v53 = vpop.f32.mrf.mxu1  ;;  %v9834_v22 = vld [vmem:[#allocation2 + $0x30] sm:$0xff]  ;;  %v9840_v49 = vadd.f32 %v9651_v19, %v2033_v47  ;;  %v9843_v9 = vadd.f32 %v9659_v21, %v2031_v29  ;;  %v9846_v5 = vadd.f32 %v9670_v37, %v2034_v2  ;;  %v9854_v19 = vadd.f32 %v9690_v17, %v2032_v24 }
 0x1df   : > { %2792 = vst.msk [vmem:[#allocation2 + $0x61] sm:$0xff] %vm2729_vm5, %v2703_v26  ;;  %v2701_v34 = vmax.f32 %v2669_v4, 0.0  ;;  %v2672_v11 = vadd.f32 %v9741_v32, %v2633_v12  ;;  %v2631_v61 = vadd.f32 %v2518_v18, %v2422_v46  ;;  %v2427_v63 = vadd.f32 %v7313_v53, %v9727_v1  ;;  %v2534_v20 = vpop.f32.mrf.mxu0 }
 0x1e0   : > { %v2322_v15 = vpop.f32.mrf.mxu1  ;;  %v9848_v35 = vld [vmem:[#allocation2 + $0x18] sm:$0xff]  ;;  %v2948_v18 = vrot.slane %v9834_v22, 1 }
 0x1e1   : > { %2790 = vst.msk [vmem:[#allocation2 + $0x49] sm:$0xff] %vm2729_vm5, %v2701_v34  ;;  %v2704_v1 = vmax.f32 %v2672_v11, 0.0  ;;  %v2670_v38 = vadd.f32 %v9741_v32, %v2631_v61  ;;  %v2636_v6 = vadd.f32 %v7347_v50, %v2427_v63  ;;  %v2425_v48 = vadd.f32 %v2322_v15, %v9730_v59  ;;  %v7351_v7 = vpop.f32.mrf.mxu0 }
 0x1e2   : > { %v7314_v21 = vpop.f32.mrf.mxu1  ;;  %v2943_v37 = vrot.slane %v9848_v35, 1  ;;  %v9857_v45 = vld [vmem:[#allocation2 + $0x38] sm:$0xff]  ;;  %v9861_v0 = vld [vmem:[#allocation2 + $0x40] sm:$0x3] }
 0x1e3   : > { %2793 = vst.msk [vmem:[#allocation2 + $0x69] sm:$0xff] %vm2729_vm5, %v2704_v1  ;;  %v2702_v36 = vmax.f32 %v2670_v38, 0.0  ;;  %v2675_v59 = vadd.f32 %v9741_v32, %v2636_v6  ;;  %v2634_v57 = vadd.f32 %v2531_v10, %v2425_v48  ;;  %v2428_v17 = vadd.f32 %v7314_v21, %v9733_v3  ;;  %v2547_v13 = vpop.f32.mrf.mxu0  ;;  %v9901_v48 = vld [vmem:[%s11695_s3 + $0x28] sm:$0xff]  }
 0x1e4   : > { %v2325_v27 = vpop.f32.mrf.mxu1  ;;  %v9866_v47 = vld [vmem:[#allocation2 + $0x20] sm:$0xff]  ;;  %v9871_v29 = vpack.c.bf16 %v9857_v45, %v9834_v22  ;;  %v2949_v23 = vrot.slane %v9857_v45, 1  ;;  %v9874_v2 = vld [vmem:[#allocation2 + $0x28] sm:$0x3]  ;;  %v2951_v25 = vrot.slane %v9861_v0, 1 }
 0x1e5   : > { %2791 = vst.msk [vmem:[#allocation2 + $0x51] sm:$0xff] %vm2729_vm5, %v2702_v36  ;;  %v2707_v50 = vmax.f32 %v2675_v59, 0.0  ;;  %v2673_v3 = vadd.f32 %v9741_v32, %v2634_v57  ;;  %v2637_v26 = vadd.f32 %v7348_v42, %v2428_v17  ;;  %v2426_v4 = vadd.f32 %v2325_v27, %v9736_v16  ;;  %v7352_v63 = vpop.f32.mrf.mxu0  ;;  %v12003_v36 = vld [vmem:[#allocation72_spill] sm:$0xff] }
 0x1e6   : > { %v7317_v12 = vpop.f32.mrf.mxu1  ;;  %v9882_v46 = vpack.c.bf16 %v9866_v47, %v9848_v35  ;;  %v2944_v33 = vrot.slane %v9866_v47, 1  ;;  %v2946_v53 = vrot.slane %v9874_v2, 1  ;;  %v2950_v1 = vsel %vm477_vm2, %v2948_v18, %v2949_v23  ;;  %v9908_v18 = vld [vmem:[#allocation2 + $0x60] sm:$0xff] }
 0x1e7   : > { %2796 = vst.msk [vmem:[#allocation2 + $0x91] sm:$0xff] %vm2729_vm5, %v2707_v50  ;;  %v2705_v10 = vmax.f32 %v2673_v3, 0.0  ;;  %v2676_v34 = vadd.f32 %v9741_v32, %v2637_v26  ;;  %v2635_v11 = vadd.f32 %v2534_v20, %v2426_v4  ;;  %v2431_v16 = vadd.f32 %v7317_v12, %v9744_v44 }
 0x1e8   : > { %7406 = vmatmul.mubr.msk.bf16.vlgmr.msra.gmra.mxu0 %vm2729_vm5, %v9882_v46  ;;  %v2338_v61 = vpop.f32.mrf.mxu1  ;;  %v2945_v15 = vsel %vm477_vm2, %v2943_v37, %v2944_v33  ;;  %v2947_v42 = vsel %vm477_vm2, %v2944_v33, %v2946_v53  ;;  %v2952_v38 = vsel %vm477_vm2, %v2949_v23, %v2951_v25  ;;  %v9896_v6 = vld [vmem:[#allocation2 + $0x48] sm:$0xff]  ;;  %v2550_v23 = vpop.f32.mrf.mxu0 }
 0x1e9   : > { %2794 = vst.msk [vmem:[#allocation2 + $0x79] sm:$0xff] %vm2729_vm5, %v2705_v10  ;;  %v2708_v44 = vmax.f32 %v2676_v34, 0.0  ;;  %v2674_v21 = vadd.f32 %v9741_v32, %v2635_v11  ;;  %v2640_v20 = vadd.f32 %v7351_v7, %v2431_v16  ;;  %v2429_v37 = vadd.f32 %v2338_v61, %v9747_v54  ;;  %7409 = vmatprep.mubr.msk.bf16.mxu0 %vm2729_vm5, %v9871_v29  ;;  %v9922_v54 = vld [vmem:[%s11695_s3 + $0x20] sm:$0xff]  }
 0x1ea   : > { %7472 = vmatpush3.bf16.msra.mxu0 %v12003_v36  ;;  %v7318_v57 = vpop.f32.mrf.mxu1  ;;  %v9912_v17 = vpack.c.bf16 %v2947_v42, %v2945_v15  ;;  %v9914_v27 = vpack.c.bf16 %v2952_v38, %v2950_v1  ;;  %v2953_v25 = vrot.slane %v9896_v6, 1  ;;  %v9917_v7 = vld [vmem:[#allocation2 + $0x68] sm:$0xff]  ;;  %12006 = vst [vmem:[#allocation28_spill] sm:$0xff] %v9922_v54  ;;  %v7355_v33 = vpop.f32.mrf.mxu0  ;;  %v2958_v11 = vrot.slane %v9908_v18, 1  ;;  %v12008_v15 = vld [vmem:[#allocation20_spill] sm:$0xff] }
 0x1eb   : > { %7539 = vmatprep.subr.bf16.mxu0 %v9901_v48  ;;  %2797 = vst.msk [vmem:[#allocation2 + $0x99] sm:$0xff] %vm2729_vm5, %v2708_v44  ;;  %v2706_v50 = vmax.f32 %v2674_v21, 0.0  ;;  %v2679_v3 = vadd.f32 %v9741_v32, %v2640_v20  ;;  %v2638_v26 = vadd.f32 %v2547_v13, %v2429_v37  ;;  %v2432_v4 = vadd.f32 %v7318_v57, %v9750_v58  ;;  %v9947_v38 = vld [vmem:[#allocation2 + $0x70] sm:$0x3] }
 0x1ec   : > { %12004 = vst [vmem:[#allocation31_spill] sm:$0xff] %v9912_v17  ;;  %12005 = vst [vmem:[#allocation36_spill] sm:$0xff] %v9914_v27  ;;  %7372 = vmatmul.mubr.msk.bf16.vlgmr.msra.gmra.mxu1 %vm2729_vm5, %v9912_v17  ;;  %v2341_v12 = vpop.f32.mrf.mxu1  ;;  %v9930_v53 = vld [vmem:[#allocation2 + $0x50] sm:$0xff]  ;;  %v9935_v34 = vpack.c.bf16 %v9917_v7, %v9908_v18  ;;  %v2959_v16 = vrot.slane %v9917_v7, 1  ;;  %v9945_v1 = vld [vmem:[#allocation2 + $0x58] sm:$0x3]  ;;  %v2563_v37 = vpop.f32.mrf.mxu0 }
 0x1ed   : > { %2795 = vst.msk [vmem:[#allocation2 + $0x81] sm:$0xff] %vm2729_vm5, %v2706_v50  ;;  %v2711_v58 = vmax.f32 %v2679_v3, 0.0  ;;  %v2677_v13 = vadd.f32 %v9741_v32, %v2638_v26  ;;  %v2641_v61 = vadd.f32 %v7352_v63, %v2432_v4  ;;  %7438 = vmatpush3.bf16.msra.mxu1 %v12008_v15  ;;  %7375 = vmatprep.mubr.msk.bf16.mxu1 %vm2729_vm5, %v9914_v27  ;;  %v2954_v20 = vrot.slane %v9930_v53, 1 }
 0x1ee   : > { %12007 = vst [vmem:[#allocation23_spill] sm:$0xff] %v9935_v34  ;;  %v2430_v42 = vadd.f32 %v2341_v12, %v9759_v30  ;;  %v7321_v44 = vpop.f32.mrf.mxu1  ;;  %v9951_v21 = vpack.c.bf16 %v9930_v53, %v9896_v6  ;;  %7505 = vmatprep.subr.bf16.mxu1 %v9922_v54  ;;  %v7356_v4 = vpop.f32.mrf.mxu0  ;;  %v2956_v15 = vrot.slane %v9945_v1, 1  ;;  %v2960_v36 = vsel %vm477_vm2, %v2958_v11, %v2959_v16 }
 0x1ef   : > { %2800 = vst.msk [vmem:[#allocation2 + $0xc1] sm:$0xff] %vm2729_vm5, %v2711_v58  ;;  %v2709_v30 = vmax.f32 %v2677_v13, 0.0  ;;  %v2680_v57 = vadd.f32 %v9741_v32, %v2641_v61  ;;  %v2435_v3 = vadd.f32 %v7321_v44, %v9771_v55  ;;  %v2955_v12 = vsel %vm477_vm2, %v2953_v25, %v2954_v20 }
 0x1f0   : > { %v2639_v50 = vadd.f32 %v2550_v23, %v2430_v42  ;;  %7410 = vmatmul.mubr.msk.bf16.gmra.mxu0 %vm2729_vm5, %v9951_v21  ;;  %v2354_v26 = vpop.f32.mrf.mxu1  ;;  %v2961_v10 = vrot.slane %v9947_v38, 1  ;;  %v9966_v58 = vld [vmem:[#allocation2 + $0x78] sm:$0xff]  ;;  %v2957_v11 = vsel %vm477_vm2, %v2954_v20, %v2956_v15  ;;  %v2566_v63 = vpop.f32.mrf.mxu0 }
 0x1f1   : > { %2798 = vst.msk [vmem:[#allocation2 + $0xa9] sm:$0xff] %vm2729_vm5, %v2709_v30  ;;  %v2712_v23 = vmax.f32 %v2680_v57, 0.0  ;;  %v2644_v13 = vadd.f32 %v7355_v33, %v2435_v3  ;;  %v2433_v61 = vadd.f32 %v2354_v26, %v9774_v60  ;;  %7413 = vmatprep.mubr.msk.bf16.mxu0 %vm2729_vm5, %v9935_v34  ;;  %v2963_v62 = vrot.slane %v9966_v58, 1  ;;  %v9982_v3 = vld [vmem:[#allocation2 + $0x90] sm:$0xff] }
 0x1f2   : > { %v2678_v55 = vadd.f32 %v9741_v32, %v2639_v50  ;;  %v7322_v42 = vpop.f32.mrf.mxu1  ;;  %v2962_v44 = vsel %vm477_vm2, %v2959_v16, %v2961_v10  ;;  %v9977_v30 = vld [vmem:[#allocation2 + $0x98] sm:$0xff]  ;;  %v9984_v26 = vpack.c.bf16 %v2957_v11, %v2955_v12  ;;  %v7359_v16 = vpop.f32.mrf.mxu0  ;;  %v12032_v34 = vrot.slane %v9834_v22, 2 }
 0x1f3   : > { %2801 = vst.msk [vmem:[#allocation2 + $0xc9] sm:$0xff] %vm2729_vm5, %v2712_v23  ;;  %v2683_v60 = vadd.f32 %v9741_v32, %v2644_v13  ;;  %v2642_v57 = vadd.f32 %v2563_v37, %v2433_v61  ;;  %v2436_v50 = vadd.f32 %v7322_v42, %v9777_v41  ;;  %v9986_v20 = vpack.c.bf16 %v2962_v44, %v2960_v36 }
 0x1f4   : > { %v2710_v33 = vmax.f32 %v2678_v55, 0.0  ;;  %12009 = vst [vmem:[#allocation59_spill] sm:$0xff] %v9984_v26  ;;  %v2357_v10 = vpop.f32.mrf.mxu1  ;;  %v9988_v15 = vld [vmem:[#allocation2 + $0x80] sm:$0xff]  ;;  %v9993_v23 = vpack.c.bf16 %v9977_v30, %v9982_v3  ;;  %v9998_v36 = vld [vmem:[#allocation2 + $0x88] sm:$0x3]  ;;  %7376 = vmatmul.mubr.msk.bf16.gmra.mxu1 %vm2729_vm5, %v9984_v26  ;;  %v2579_v11 = vpop.f32.mrf.mxu0  ;;  %v2968_v44 = vrot.slane %v9982_v3, 1 }
 0x1f5   : > { %12010 = vst [vmem:[#allocation32_spill] sm:$0xff] %v9986_v20  ;;  %v2715_v37 = vmax.f32 %v2683_v60, 0.0  ;;  %v2681_v41 = vadd.f32 %v9741_v32, %v2642_v57  ;;  %v2645_v55 = vadd.f32 %v7356_v4, %v2436_v50  ;;  %v2434_v12 = vadd.f32 %v2357_v10, %v9784_v51  ;;  %7379 = vmatprep.mubr.msk.bf16.mxu1 %vm2729_vm5, %v9986_v20  ;;  %v10014_v50 = vld [vmem:[#allocation2 + $0xa0] sm:$0x3] }
 0x1f6   : > { %12011 = vst [vmem:[#allocation70_spill] sm:$0xff] %v9993_v23  ;;  %2799 = vst.msk [vmem:[#allocation2 + $0xb1] sm:$0xff] %vm2729_vm5, %v2710_v33  ;;  %v7325_v13 = vpop.f32.mrf.mxu1  ;;  %v10004_v61 = vpack.c.bf16 %v9988_v15, %v9966_v58  ;;  %v2964_v42 = vrot.slane %v9988_v15, 1  ;;  %v2969_v33 = vrot.slane %v9977_v30, 1  ;;  %v12033_v22 = vrot.slane %v9866_v47, 2 }
 0x1f7   : > { %2804 = vst.msk [vmem:[#allocation2 + $0xf1] sm:$0xff] %vm2729_vm5, %v2715_v37  ;;  %v2713_v51 = vmax.f32 %v2681_v41, 0.0  ;;  %v2684_v4 = vadd.f32 %v9741_v32, %v2645_v55  ;;  %v2643_v60 = vadd.f32 %v2566_v63, %v2434_v12  ;;  %v2439_v57 = vadd.f32 %v7325_v13, %v9787_v31  ;;  %v7360_v37 = vpop.f32.mrf.mxu0 }
 0x1f8   : > { %12012 = vst [vmem:[#allocation38_spill] sm:$0xff] %v10004_v61  ;;  %7414 = vmatmul.mubr.msk.bf16.gmra.mxu0 %vm2729_vm5, %v10004_v61  ;;  %v2370_v25 = vpop.f32.mrf.mxu1  ;;  %v2965_v41 = vsel %vm477_vm2, %v2963_v62, %v2964_v42  ;;  %v2966_v55 = vrot.slane %v9998_v36, 1  ;;  %v10027_v10 = vld [vmem:[#allocation2 + $0xa8] sm:$0xff]  ;;  %v2970_v59 = vsel %vm477_vm2, %v2968_v44, %v2969_v33 }
 0x1f9   : > { %2802 = vst.msk [vmem:[#allocation2 + $0xd9] sm:$0xff] %vm2729_vm5, %v2713_v51  ;;  %v2716_v63 = vmax.f32 %v2684_v4, 0.0  ;;  %v2682_v31 = vadd.f32 %v9741_v32, %v2643_v60  ;;  %v2648_v12 = vadd.f32 %v7359_v16, %v2439_v57  ;;  %v2437_v13 = vadd.f32 %v2370_v25, %v9790_v40  ;;  %7417 = vmatprep.mubr.msk.bf16.mxu0 %vm2729_vm5, %v9993_v23  ;;  %v2582_v4 = vpop.f32.mrf.mxu0 }
 0x1fa   : > { %v7326_v52 = vpop.f32.mrf.mxu1  ;;  %v2967_v62 = vsel %vm477_vm2, %v2964_v42, %v2966_v55  ;;  %v2971_v51 = vrot.slane %v10014_v50, 1  ;;  %v10036_v57 = vld [vmem:[#allocation2 + $0xc8] sm:$0xff]  ;;  %v2973_v26 = vrot.slane %v10027_v10, 1 }
 0x1fb   : > { %2805 = vst.msk [vmem:[#allocation2 + $0xf9] sm:$0xff] %vm2729_vm5, %v2716_v63  ;;  %v2714_v16 = vmax.f32 %v2682_v31, 0.0  ;;  %v2687_v40 = vadd.f32 %v9741_v32, %v2648_v12  ;;  %v2646_v25 = vadd.f32 %v2579_v11, %v2437_v13  ;;  %v2440_v60 = vadd.f32 %v7326_v52, %v9793_v43  ;;  %v7363_v55 = vpop.f32.mrf.mxu0 }
 0x1fc   : > { %v10038_v20 = vpack.c.bf16 %v2967_v62, %v2965_v41  ;;  %v2972_v24 = vsel %vm477_vm2, %v2969_v33, %v2971_v51  ;;  %v2373_v42 = vpop.f32.mrf.mxu1  ;;  %v10049_v41 = vld [vmem:[#allocation2 + $0xc0] sm:$0xff] }
 0x1fd   : > { %v10041_v44 = vld [vmem:[#allocation2 + $0xb0] sm:$0xff]  ;;  %2803 = vst.msk [vmem:[#allocation2 + $0xe1] sm:$0xff] %vm2729_vm5, %v2714_v16  ;;  %v2719_v31 = vmax.f32 %v2687_v40, 0.0  ;;  %v2685_v11 = vadd.f32 %v9741_v32, %v2646_v25  ;;  %v2649_v43 = vadd.f32 %v7360_v37, %v2440_v60  ;;  %v10047_v52 = vpack.c.bf16 %v2972_v24, %v2970_v59  ;;  %v2595_v51 = vpop.f32.mrf.mxu0  ;;  %v10069_v40 = vld [vmem:[#allocation2 + $0xb8] sm:$0x3] }
 0x1fe   : > { %12013 = vst [vmem:[#allocation73_spill] sm:$0xff] %v10038_v20  ;;  %7380 = vmatmul.mubr.msk.bf16.gmra.mxu1 %vm2729_vm5, %v10038_v20  ;;  %v2438_v33 = vadd.f32 %v2373_v42, %v9798_v8  ;;  %v7329_v12 = vpop.f32.mrf.mxu1  ;;  %v10056_v13 = vpack.c.bf16 %v10041_v44, %v10027_v10  ;;  %v2974_v62 = vrot.slane %v10041_v44, 1  ;;  %v10061_v37 = vpack.c.bf16 %v10036_v57, %v10049_v41  ;;  %v10071_v25 = vld [vmem:[#allocation2 + $0xd0] sm:$0x3] }
 0x1ff   : > { %12014 = vst [vmem:[#allocation60_spill] sm:$0xff] %v10047_v52  ;;  %2808 = vst.msk [vmem:[#allocation2 + $0x121] sm:$0xff] %vm2729_vm5, %v2719_v31  ;;  %v2717_v24 = vmax.f32 %v2685_v11, 0.0  ;;  %v2688_v59 = vadd.f32 %v9741_v32, %v2649_v43  ;;  %7383 = vmatprep.mubr.msk.bf16.mxu1 %vm2729_vm5, %v10047_v52  ;;  %v2443_v8 = vadd.f32 %v7329_v12, %v9821_v14  ;;  %v2978_v31 = vrot.slane %v10049_v41, 1  ;;  %v7364_v63 = vpop.f32.mrf.mxu0 }
 0x200   : > { %12015 = vst [vmem:[#allocation61_spill] sm:$0xff] %v10056_v13  ;;  %12016 = vst [vmem:[#allocation62_spill] sm:$0xff] %v10061_v37  ;;  %v2647_v60 = vadd.f32 %v2582_v4, %v2438_v33  ;;  %7418 = vmatmul.mubr.msk.bf16.gmra.mxu0 %vm2729_vm5, %v10056_v13  ;;  %v2386_v42 = vpop.f32.mrf.mxu1  ;;  %v2979_v11 = vrot.slane %v10036_v57, 1  ;;  %v10083_v33 = vld [vmem:[#allocation2 + $0xd8] sm:$0xff]  ;;  %v2975_v27 = vsel %vm477_vm2, %v2973_v26, %v2974_v62  ;;  %v2976_v43 = vrot.slane %v10069_v40, 1 }
 0x201   : > { %2806 = vst.msk [vmem:[#allocation2 + $0x109] sm:$0xff] %vm2729_vm5, %v2717_v24  ;;  %v2720_v14 = vmax.f32 %v2688_v59, 0.0  ;;  %v2652_v12 = vadd.f32 %v7363_v55, %v2443_v8  ;;  %v2441_v16 = vadd.f32 %v2386_v42, %v9824_v39  ;;  %7421 = vmatprep.mubr.msk.bf16.mxu0 %vm2729_vm5, %v10061_v37  ;;  %v2981_v24 = vrot.slane %v10071_v25, 1  ;;  %v2598_v59 = vpop.f32.mrf.mxu0 }
 0x202   : > { %v2686_v52 = vadd.f32 %v9741_v32, %v2647_v60  ;;  %v7330_v20 = vpop.f32.mrf.mxu1  ;;  %v2980_v42 = vsel %vm477_vm2, %v2978_v31, %v2979_v11  ;;  %v2977_v60 = vsel %vm477_vm2, %v2974_v62, %v2976_v43  ;;  %v2983_v23 = vrot.slane %v10083_v33, 1 }
 0x203   : > { %2809 = vst.msk [vmem:[#allocation2 + $0x129] sm:$0xff] %vm2729_vm5, %v2720_v14  ;;  %v2691_v39 = vadd.f32 %v9741_v32, %v2652_v12  ;;  %v2650_v55 = vadd.f32 %v2595_v51, %v2441_v16  ;;  %v2444_v8 = vadd.f32 %v7330_v20, %v9827_v56  ;;  %v2982_v17 = vsel %vm477_vm2, %v2979_v11, %v2981_v24  ;;  %v7367_v37 = vpop.f32.mrf.mxu0  ;;  %v10101_v56 = vld [vmem:[#allocation2 + $0xf8] sm:$0xff]  ;;  %v10112_v11 = vld [vmem:[#allocation2 + $0xf0] sm:$0xff] }
 0x204   : > { %v2718_v4 = vmax.f32 %v2686_v52, 0.0  ;;  %v2389_v26 = vpop.f32.mrf.mxu1  ;;  %v10095_v13 = vld [vmem:[#allocation2 + $0xe0] sm:$0xff]  ;;  %v10099_v51 = vpack.c.bf16 %v2977_v60, %v2975_v27  ;;  %v10104_v20 = vpack.c.bf16 %v2982_v17, %v2980_v42 }
 0x205   : > { %v2723_v61 = vmax.f32 %v2691_v39, 0.0  ;;  %v2689_v14 = vadd.f32 %v9741_v32, %v2650_v55  ;;  %v2653_v12 = vadd.f32 %v7364_v63, %v2444_v8  ;;  %v2442_v52 = vadd.f32 %v2389_v26, %v9837_v28  ;;  %v2611_v43 = vpop.f32.mrf.mxu0  ;;  %v10135_v26 = vld [vmem:[#allocation2 + $0x100] sm:$0x3] }
 0x206   : > { %12017 = vst [vmem:[#allocation25_spill] sm:$0xff] %v10099_v51  ;;  %2807 = vst.msk [vmem:[#allocation2 + $0x111] sm:$0xff] %vm2729_vm5, %v2718_v4  ;;  %v7333_v62 = vpop.f32.mrf.mxu1  ;;  %v10109_v16 = vpack.c.bf16 %v10095_v13, %v10083_v33  ;;  %v2984_v31 = vrot.slane %v10095_v13, 1  ;;  %7384 = vmatmul.mubr.msk.bf16.gmra.mxu1 %vm2729_vm5, %v10099_v51  ;;  %v10120_v4 = vld [vmem:[#allocation2 + $0xe8] sm:$0x3]  ;;  %v10129_v55 = vpack.c.bf16 %v10101_v56, %v10112_v11 }
 0x207   : > { %12018 = vst [vmem:[#allocation76_spill] sm:$0xff] %v10104_v20  ;;  %2812 = vst.msk [vmem:[#allocation2 + $0x151] sm:$0xff] %vm2729_vm5, %v2723_v61  ;;  %v2721_v27 = vmax.f32 %v2689_v14, 0.0  ;;  %v2692_v63 = vadd.f32 %v9741_v32, %v2653_v12  ;;  %v2447_v17 = vadd.f32 %v7333_v62, %v9840_v49  ;;  %7387 = vmatprep.mubr.msk.bf16.mxu1 %vm2729_vm5, %v10104_v20  ;;  %v2989_v49 = vrot.slane %v10101_v56, 1 }
 0x208   : > { %12019 = vst [vmem:[#allocation63_spill] sm:$0xff] %v10109_v16  ;;  %v2651_v24 = vadd.f32 %v2598_v59, %v2442_v52  ;;  %7422 = vmatmul.mubr.msk.bf16.gmra.mxu0 %vm2729_vm5, %v10109_v16  ;;  %v2402_v39 = vpop.f32.mrf.mxu1  ;;  %12020 = vst [vmem:[#allocation64_spill] sm:$0xff] %v10129_v55  ;;  %v2988_v59 = vrot.slane %v10112_v11, 1  ;;  %v2985_v62 = vsel %vm477_vm2, %v2983_v23, %v2984_v31  ;;  %v2991_v61 = vrot.slane %v10135_v26, 1  ;;  %v10150_v20 = vld [vmem:[#allocation2 + $0x108] sm:$0xff] }
 0x209   : > { %2810 = vst.msk [vmem:[#allocation2 + $0x139] sm:$0xff] %vm2729_vm5, %v2721_v27  ;;  %v2724_v8 = vmax.f32 %v2692_v63, 0.0  ;;  %v2656_v42 = vadd.f32 %v7367_v37, %v2447_v17  ;;  %v2445_v60 = vadd.f32 %v2402_v39, %v9843_v9  ;;  %7425 = vmatprep.mubr.msk.bf16.mxu0 %vm2729_vm5, %v10129_v55  ;;  %v2986_v27 = vrot.slane %v10120_v4, 1 }
 0x20a   : > { %v2690_v14 = vadd.f32 %v9741_v32, %v2651_v24  ;;  %v7334_v52 = vpop.f32.mrf.mxu1  ;;  %v7368_v24 = vpop.f32.mrf.mxu0  ;;  %v2990_v12 = vsel %vm477_vm2, %v2988_v59, %v2989_v49 }
 0x20b   : > { %2813 = vst.msk [vmem:[#allocation2 + $0x159] sm:$0xff] %vm2729_vm5, %v2724_v8  ;;  %v2695_v9 = vadd.f32 %v9741_v32, %v2656_v42  ;;  %v2654_v37 = vadd.f32 %v2611_v43, %v2445_v60  ;;  %v2448_v17 = vadd.f32 %v7334_v52, %v9846_v5  ;;  %v2987_v28 = vsel %vm477_vm2, %v2984_v31, %v2986_v27  ;;  %v10157_v5 = vld [vmem:[#allocation2 + $0x128] sm:$0xff]  ;;  %v10167_v27 = vld [vmem:[#allocation2 + $0x120] sm:$0xff] }
 0x20c   : > { %v2722_v39 = vmax.f32 %v2690_v14, 0.0  ;;  %v2405_v23 = vpop.f32.mrf.mxu1  ;;  %v10153_v43 = vpack.c.bf16 %v2987_v28, %v2985_v62  ;;  %v2992_v31 = vsel %vm477_vm2, %v2989_v49, %v2991_v61  ;;  %v2614_v61 = vpop.f32.mrf.mxu0 }
 0x20d   : > { %v2727_v51 = vmax.f32 %v2695_v9, 0.0  ;;  %v2693_v8 = vadd.f32 %v9741_v32, %v2654_v37  ;;  %v2657_v42 = vadd.f32 %v7368_v24, %v2448_v17  ;;  %v10155_v60 = vld [vmem:[#allocation2 + $0x110] sm:$0xff]  ;;  %v2446_v59 = vadd.f32 %v2405_v23, %v9854_v19  ;;  %v10176_v49 = vld [vmem:[#allocation2 + $0x118] sm:$0x3] }
 0x20e   : > { %12021 = vst [vmem:[#allocation79_spill] sm:$0xff] %v10153_v43  ;;  %2811 = vst.msk [vmem:[#allocation2 + $0x141] sm:$0xff] %vm2729_vm5, %v2722_v39  ;;  %v10164_v14 = vpack.c.bf16 %v10155_v60, %v10150_v20  ;;  %v2994_v52 = vrot.slane %v10155_v60, 1  ;;  %7388 = vmatmul.mubr.msk.bf16.gmra.mxu1 %vm2729_vm5, %v10153_v43  ;;  %v10173_v9 = vpack.c.bf16 %v2992_v31, %v2990_v12  ;;  %v2993_v19 = vrot.slane %v10150_v20, 1  ;;  %v10178_v37 = vld [vmem:[#allocation2 + $0x130] sm:$0x3] }
 0x20f   : > { %2816 = vst.msk [vmem:[#allocation2 + $0x181] sm:$0xff] %vm2729_vm5, %v2727_v51  ;;  %v2725_v28 = vmax.f32 %v2693_v8, 0.0  ;;  %v2696_v62 = vadd.f32 %v9741_v32, %v2657_v42  ;;  %v2655_v17 = vadd.f32 %v2614_v61, %v2446_v59  ;;  %v10186_v39 = vpack.c.bf16 %v10157_v5, %v10167_v27 }
 0x210   : > { %12022 = vst [vmem:[#allocation65_spill] sm:$0xff] %v10164_v14  ;;  %12023 = vst [vmem:[#allocation66_spill] sm:$0xff] %v10173_v9  ;;  %7426 = vmatmul.mubr.msk.bf16.gmra.mxu0 %vm2729_vm5, %v10164_v14  ;;  %v10188_v12 = vld [vmem:[#allocation2 + $0x138] sm:$0xff]  ;;  %7391 = vmatprep.mubr.msk.bf16.mxu1 %vm2729_vm5, %v10173_v9  ;;  %v2998_v8 = vrot.slane %v10167_v27, 1  ;;  %v2999_v42 = vrot.slane %v10157_v5, 1  ;;  %v2995_v61 = vsel %vm477_vm2, %v2993_v19, %v2994_v52  ;;  %v2996_v51 = vrot.slane %v10176_v49, 1 }
 0x211   : > { %12024 = vst [vmem:[#allocation67_spill] sm:$0xff] %v10186_v39  ;;  %2814 = vst.msk [vmem:[#allocation2 + $0x169] sm:$0xff] %vm2729_vm5, %v2725_v28  ;;  %v2728_v23 = vmax.f32 %v2696_v62, 0.0  ;;  %v2694_v59 = vadd.f32 %v9741_v32, %v2655_v17  ;;  %7429 = vmatprep.mubr.msk.bf16.mxu0 %vm2729_vm5, %v10186_v39  ;;  %v3001_v28 = vrot.slane %v10178_v37, 1  ;;  %v10202_v62 = vld [vmem:[#allocation2 + $0x150] sm:$0xff]  ;;  %v3003_v32 = vrot.slane %v10188_v12, 1 }
 0x212   : > { %v10204_v24 = vld [vmem:[#allocation2 + $0x158] sm:$0xff]  ;;  %v3000_v31 = vsel %vm477_vm2, %v2998_v8, %v2999_v42  ;;  %v2997_v19 = vsel %vm477_vm2, %v2994_v52, %v2996_v51  ;;  %v10217_v14 = vld [vmem:[#allocation2 + $0x160] sm:$0x3]  ;;  %v3008_v55 = vrot.slane %v10202_v62, 1 }
 0x213   : > { %2817 = vst.msk [vmem:[#allocation2 + $0x189] sm:$0xff] %vm2729_vm5, %v2728_v23  ;;  %v2726_v9 = vmax.f32 %v2694_v59, 0.0  ;;  %v3002_v43 = vsel %vm477_vm2, %v2999_v42, %v3001_v28  ;;  %v10215_v39 = vpack.c.bf16 %v10204_v24, %v10202_v62  ;;  %v10219_v23 = vpack.c.bf16 %v2997_v19, %v2995_v61 }
 0x214   : > { %v10221_v63 = vpack.c.bf16 %v3002_v43, %v3000_v31  ;;  %v3009_v59 = vrot.slane %v10204_v24, 1  ;;  %v3011_v28 = vrot.slane %v10217_v14, 1  ;;  %v12030_v19 = vrot.slane %v9848_v35, 2 }
 0x215   : > { %12025 = vst [vmem:[#allocation68_spill] sm:$0xff] %v10215_v39  ;;  %12026 = vst [vmem:[#allocation69_spill] sm:$0xff] %v10219_v23  ;;  %v10223_v8 = vld [vmem:[#allocation2 + $0x140] sm:$0xff]  ;;  %v10227_v17 = vld [vmem:[#allocation2 + $0x148] sm:$0x3] }
 0x216   : > { %12027 = vst [vmem:[#allocation71_spill] sm:$0xff] %v10221_v63  ;;  %2815 = vst.msk [vmem:[#allocation2 + $0x171] sm:$0xff] %vm2729_vm5, %v2726_v9  ;;  %v10232_v52 = vpack.c.bf16 %v10223_v8, %v10188_v12  ;;  %v3004_v51 = vrot.slane %v10223_v8, 1  ;;  %7392 = vmatmul.mubr.msk.bf16.gmra.mxu1 %vm2729_vm5, %v10219_v23  ;;  %v3006_v31 = vrot.slane %v10227_v17, 1  ;;  %v3010_v61 = vsel %vm477_vm2, %v3008_v55, %v3009_v59 }
 0x217   : > { %v12029_v9 = vrot.slane %v9866_v47, 2  ;;  %7395 = vmatprep.mubr.msk.bf16.mxu1 %vm2729_vm5, %v10221_v63  ;;  %v3507_v55 = vrot.slane %v9874_v2, 2  ;;  %v12031_v23 = vrot.slane %v9857_v45, 2  ;;  %v12037_v47 = vrot.slane %v9917_v7, 2 }
 0x218   : > { %12028 = vst [vmem:[#allocation74_spill] sm:$0xff] %v10232_v52  ;;  %7430 = vmatmul.mubr.msk.bf16.gmra.mxu0 %vm2729_vm5, %v10232_v52  ;;  %v3005_v43 = vsel %vm477_vm2, %v3003_v32, %v3004_v51  ;;  %v10252_v42 = vld [vmem:[#allocation2 + $0x168] sm:$0xff]  ;;  %v3007_v63 = vsel %vm477_vm2, %v3004_v51, %v3006_v31  ;;  %v3012_v32 = vsel %vm477_vm2, %v3009_v59, %v3011_v28  ;;  %v12035_v59 = vrot.slane %v9930_v53, 2 }
 0x219   : > { %v3506_v16 = vsel %vm1037_vm4, %v12030_v19, %v12029_v9  ;;  %v3511_v35 = vsel %vm1037_vm4, %v12032_v34, %v12031_v23  ;;  %v3512_v9 = vrot.slane %v9861_v0, 2  ;;  %7433 = vmatprep.mubr.msk.bf16.mxu0 %vm2729_vm5, %v10215_v39  ;;  %v3013_v52 = vrot.slane %v10252_v42, 1 }
 0x21a   : > { %v10267_v2 = vpack.c.bf16 %v3007_v63, %v3005_v43  ;;  %v10269_v54 = vpack.c.bf16 %v3012_v32, %v3010_v61  ;;  %v3508_v34 = vsel %vm1037_vm4, %v12033_v22, %v3507_v55  ;;  %v12034_v0 = vmov %v12031_v23 }
 0x21b   : > { %v3513_v23 = vsel %vm1037_vm4, %v12034_v0, %v3512_v9  ;;  %v10277_v39 = vpack.c.bf16 %v3508_v34, %v3506_v16  ;;  %v12036_v51 = vrot.slane %v9896_v6, 2  ;;  %v3517_v43 = vrot.slane %v9945_v1, 2 }
 0x21c   : > { %v10279_v19 = vpack.c.bf16 %v3513_v23, %v3511_v35  ;;  %v12038_v31 = vrot.slane %v9908_v18, 2  ;;  %v3522_v61 = vrot.slane %v9947_v38, 2  ;;  %v12039_v16 = vrot.slane %v9988_v15, 2 }
 0x21d   : > { %v3516_v63 = vsel %vm1037_vm4, %v12036_v51, %v12035_v59  ;;  %v12040_v28 = vrot.slane %v9966_v58, 2  ;;  %v3527_v6 = vrot.slane %v9998_v36, 2  ;;  %v10299_v35 = vld [vmem:[#allocation2 + $0x170] sm:$0xff]  ;;  %v10301_v9 = vld [vmem:[#allocation2 + $0x178] sm:$0x3]  ;;  %v12041_v1 = vmov %v12035_v59 }
 0x21e   : > { %v3521_v45 = vsel %vm1037_vm4, %v12038_v31, %v12037_v47  ;;  %v3518_v18 = vsel %vm1037_vm4, %v12041_v1, %v3517_v43  ;;  %v12042_v32 = vrot.slane %v9977_v30, 2  ;;  %v12043_v38 = vrot.slane %v9982_v3, 2  ;;  %7396 = vmatmul.mubr.msk.bf16.gmra.mxu1 %vm2729_vm5, %v10267_v2 }
 0x21f   : > { %v3526_v55 = vsel %vm1037_vm4, %v12040_v28, %v12039_v16  ;;  %v3532_v58 = vrot.slane %v10014_v50, 2  ;;  %v12044_v34 = vrot.slane %v10041_v44, 2  ;;  %v12045_v36 = vrot.slane %v10027_v10, 2  ;;  %7399 = vmatprep.mubr.msk.bf16.mxu1 %vm2729_vm5, %v10269_v54 }
 0x220   : > { %v3531_v22 = vsel %vm1037_vm4, %v12043_v38, %v12042_v32  ;;  %v10319_v23 = vpack.c.bf16 %v10299_v35, %v10252_v42  ;;  %v3014_v53 = vrot.slane %v10299_v35, 1  ;;  %v3575_v59 = vrot.slane %v10299_v35, 2  ;;  %v12075_v35 = vld [vmem:[#allocation23_spill] sm:$0xff] }
 0x221   : > { %v3536_v0 = vsel %vm1037_vm4, %v12045_v36, %v12044_v34  ;;  %v3016_v3 = vrot.slane %v10301_v9, 1  ;;  %v10326_v50 = vpack.c.bf16 %v3518_v18, %v3516_v63  ;;  %v12046_v51 = vmov %v12037_v47 }
 0x222   : > { %v3523_v10 = vsel %vm1037_vm4, %v12046_v51, %v3522_v61  ;;  %v12047_v43 = vmov %v12039_v16  ;;  %v12048_v31 = vmov %v12042_v32  ;;  %7434 = vmatmul.mubr.msk.bf16.gmra.mxu0 %vm2729_vm5, %v10319_v23  ;;  %v3015_v63 = vsel %vm477_vm2, %v3013_v52, %v3014_v53 }
 0x223   : > { %v3528_v47 = vsel %vm1037_vm4, %v12047_v43, %v3527_v6  ;;  %v3533_v16 = vsel %vm1037_vm4, %v12048_v31, %v3532_v58  ;;  %v3017_v7 = vsel %vm477_vm2, %v3014_v53, %v3016_v3  ;;  %v10343_v28 = vpack.c.bf16 %v3523_v10, %v3521_v45  ;;  %7473 = vmatprep.mubr.msk.bf16.mxu0 %vm2729_vm5, %v9882_v46 }
 0x224   : > { %v3537_v15 = vrot.slane %v10069_v40, 2  ;;  %v10348_v30 = vpack.c.bf16 %v3017_v7, %v3015_v63  ;;  %v10350_v61 = vpack.c.bf16 %v3528_v47, %v3526_v55  ;;  %v10352_v6 = vpack.c.bf16 %v3533_v16, %v3531_v22 }
 0x225   : > { %v12049_v1 = vrot.slane %v10036_v57, 2  ;;  %v12050_v18 = vrot.slane %v10049_v41, 2  ;;  %v12051_v45 = vmov %v12044_v34  ;;  %v3542_v40 = vrot.slane %v10071_v25, 2 }
 0x226   : > { %v3538_v32 = vsel %vm1037_vm4, %v12051_v45, %v3537_v15  ;;  %v12052_v46 = vrot.slane %v10095_v13, 2  ;;  %v12053_v38 = vrot.slane %v10083_v33, 2  ;;  %v3547_v22 = vrot.slane %v10120_v4, 2  ;;  %7400 = vmatmul.mubr.msk.bf16.gmra.mxu1 %vm2729_vm5, %v10348_v30 }
 0x227   : > { %v3541_v52 = vsel %vm1037_vm4, %v12050_v18, %v12049_v1  ;;  %v10369_v58 = vpack.c.bf16 %v3538_v32, %v3536_v0  ;;  %v12054_v41 = vrot.slane %v10101_v56, 2  ;;  %v12055_v34 = vrot.slane %v10112_v11, 2  ;;  %v10413_v18 = vld [vmem:[#allocation2 + $0x180] sm:$0xff]  ;;  %v10415_v56 = vld [vmem:[#allocation2 + $0x188] sm:$0xff] }
 0x228   : > { %v3546_v55 = vsel %vm1037_vm4, %v12053_v38, %v12052_v46  ;;  %v3552_v36 = vrot.slane %v10135_v26, 2  ;;  %v12056_v25 = vrot.slane %v10155_v60, 2  ;;  %v12057_v53 = vrot.slane %v10150_v20, 2  ;;  %v12070_v38 = vld [vmem:[#allocation75_spill] sm:$0xff] }
 0x229   : > { %v3551_v44 = vsel %vm1037_vm4, %v12055_v34, %v12054_v41  ;;  %v12058_v3 = vmov %v12049_v1  ;;  %v12059_v0 = vmov %v12052_v46  ;;  %v3557_v11 = vrot.slane %v10176_v49, 2  ;;  %v12069_v46 = vld [vmem:[#allocation78_spill] sm:$0xff] }
 0x22a   : > { %v3556_v33 = vsel %vm1037_vm4, %v12057_v53, %v12056_v25  ;;  %v3543_v4 = vsel %vm1037_vm4, %v12058_v3, %v3542_v40  ;;  %v3548_v51 = vsel %vm1037_vm4, %v12059_v0, %v3547_v22  ;;  %v12060_v10 = vrot.slane %v10157_v5, 2  ;;  %7474 = vmatmul.mubr.msk.bf16.vlgmr.msra.gmra.mxu0 %vm2729_vm5, %v9871_v29 }
 0x22b   : > { %v12061_v26 = vrot.slane %v10167_v27, 2  ;;  %v10394_v47 = vpack.c.bf16 %v3543_v4, %v3541_v52  ;;  %v10396_v20 = vpack.c.bf16 %v3548_v51, %v3546_v55  ;;  %v12062_v57 = vmov %v12054_v41  ;;  %v10442_v41 = vld [vmem:[#allocation2 + $0x190] sm:$0x3]  ;;  %7477 = vmatprep.mubr.msk.bf16.mxu0 %vm2729_vm5, %v9951_v21  ;;  %7540 = vmatpush3.bf16.msra.mxu0 %v9901_v48 }
 0x22c   : > { %v3553_v31 = vsel %vm1037_vm4, %v12062_v57, %v3552_v36  ;;  %v3562_v13 = vrot.slane %v10178_v37, 2  ;;  %v12063_v49 = vmov %v12056_v25  ;;  %v12064_v27 = vrot.slane %v10223_v8, 2  ;;  %v7780_v48 = vld [vmem:[%s11695_s3 + $0x30] sm:$0xff]  }
 0x22d   : > { %v3561_v43 = vsel %vm1037_vm4, %v12061_v26, %v12060_v10  ;;  %v10402_v16 = vpack.c.bf16 %v3553_v31, %v3551_v44  ;;  %v3558_v63 = vsel %vm1037_vm4, %v12063_v49, %v3557_v11  ;;  %v12065_v7 = vrot.slane %v10188_v12, 2  ;;  %v12078_v26 = vld [vmem:[#allocation61_spill] sm:$0xff]  ;;  %v12080_v57 = vld [vmem:[#allocation63_spill] sm:$0xff]  ;;  %v12081_v31 = vld [vmem:[#allocation64_spill] sm:$0xff] }
 0x22e   : > { %v3567_v1 = vrot.slane %v10227_v17, 2  ;;  %v10419_v37 = vpack.c.bf16 %v3558_v63, %v3556_v33  ;;  %v12066_v60 = vmov %v12060_v10  ;;  %v12067_v45 = vrot.slane %v10204_v24, 2  ;;  %v12077_v10 = vld [vmem:[#allocation70_spill] sm:$0xff]  ;;  %v12083_v49 = vld [vmem:[#allocation67_spill] sm:$0xff] }
 0x22f   : > { %v3566_v15 = vsel %vm1037_vm4, %v12065_v7, %v12064_v27  ;;  %v3563_v52 = vsel %vm1037_vm4, %v12066_v60, %v3562_v13  ;;  %v12068_v12 = vrot.slane %v10202_v62, 2  ;;  %v3572_v17 = vrot.slane %v10217_v14, 2  ;;  %v7781_v14 = vld [vmem:[%s11695_s3 + $0x38] sm:$0xff]   ;;  %v12082_v13 = vld [vmem:[#allocation65_spill] sm:$0xff]  ;;  %v12084_v63 = vld [vmem:[#allocation74_spill] sm:$0xff] }
 0x230   : > { %v3574_v40 = vrot.slane %v10252_v42, 2  ;;  %v12071_v55 = vpack.c.bf16 %v12069_v46, %v12070_v38  ;;  %v10437_v5 = vpack.c.bf16 %v3563_v52, %v3561_v43  ;;  %v12072_v22 = vmov %v12064_v27  ;;  %7607 = vmatprep.subr.bf16.mxu0 %v7781_v14  ;;  %v12079_v43 = vld [vmem:[#allocation62_spill] sm:$0xff]  ;;  %v12085_v27 = vld [vmem:[#allocation68_spill] sm:$0xff]  ;;  %v12096_v38 = vld [vmem:[#allocation69_spill] sm:$0xff] }
 0x231   : > { %v3571_v32 = vsel %vm1037_vm4, %v12068_v12, %v12067_v45  ;;  %v3568_v62 = vsel %vm1037_vm4, %v12072_v22, %v3567_v1  ;;  %v12073_v34 = vmov %v12067_v45  ;;  %v4086_v36 = vrot.slane %v10413_v18, 1  ;;  %v7782_v1 = vld [vmem:[%s11695_s3 + $0x40] sm:$0xff]   ;;  %v12095_v46 = vld [vmem:[#allocation66_spill] sm:$0xff] }
 0x232   : > { %7439 = vmatprep.mubr.msk.bf16.mxu1 %vm2729_vm5, %v12071_v55  ;;  %v10449_v42 = vpack.c.bf16 %v3568_v62, %v3566_v15  ;;  %v3573_v44 = vsel %vm1037_vm4, %v12073_v34, %v3572_v17  ;;  %v4087_v8 = vrot.slane %v10415_v56, 1  ;;  %v3576_v53 = vsel %vm1037_vm4, %v3574_v40, %v3575_v59  ;;  %7478 = vmatmul.mubr.msk.bf16.gmra.mxu0 %vm2729_vm5, %v12075_v35  ;;  %v12086_v15 = vld [vmem:[#allocation31_spill] sm:$0xff]  ;;  %v12087_v60 = vld [vmem:[#allocation36_spill] sm:$0xff]  ;;  %v12090_v45 = vld [vmem:[#allocation73_spill] sm:$0xff] }
 0x233   : > { %v10457_v25 = vpack.c.bf16 %v3573_v44, %v3571_v32  ;;  %v3577_v33 = vrot.slane %v10301_v9, 2  ;;  %v4089_v24 = vrot.slane %v10442_v41, 1  ;;  %7440 = vmatmul.mubr.msk.bf16.vlgmr.msra.gmra.mxu1 %vm2729_vm5, %v10277_v39  ;;  %v12074_v9 = vld [vmem:[#allocation28_spill] sm:$0xff]  ;;  %v10529_v7 = vpack.c.bf16 %v10415_v56, %v10413_v18  ;;  %v12092_v32 = vld [vmem:[#allocation25_spill] sm:$0xff]  ;;  %v12094_v40 = vld [vmem:[#allocation79_spill] sm:$0xff] }
 0x234   : > { %v4088_v3 = vsel %vm477_vm2, %v4086_v36, %v4087_v8  ;;  %7506 = vmatpush3.bf16.msra.mxu1 %v12074_v9  ;;  %7443 = vmatprep.mubr.msk.bf16.mxu1 %vm2729_vm5, %v10279_v19  ;;  %v12089_v52 = vld [vmem:[#allocation32_spill] sm:$0xff]  ;;  %v12097_v55 = vld [vmem:[#allocation71_spill] sm:$0xff]  ;;  %v4300_v22 = vrot.slane %v10415_v56, 2  ;;  %v4302_v62 = vrot.slane %v10442_v41, 2 }
 0x235   : > { %v3578_v4 = vsel %vm1037_vm4, %v3575_v59, %v3577_v33  ;;  %v4090_v51 = vsel %vm477_vm2, %v4087_v8, %v4089_v24  ;;  %7573 = vmatprep.subr.bf16.mxu1 %v7780_v48  ;;  %v12076_v59 = vld [vmem:[#allocation38_spill] sm:$0xff]  ;;  %v12091_v12 = vld [vmem:[#allocation60_spill] sm:$0xff] }
 0x236   : > { %v10468_v0 = vpack.c.bf16 %v3578_v4, %v3576_v53  ;;  %v10474_v11 = vpack.c.bf16 %v4090_v51, %v4088_v3  ;;  %7481 = vmatprep.mubr.msk.bf16.mxu0 %vm2729_vm5, %v12076_v59  ;;  %v12093_v17 = vld [vmem:[#allocation76_spill] sm:$0xff]  ;;  %v4303_v44 = vsel %vm1037_vm4, %v4300_v22, %v4302_v62  ;;  %v10619_v53 = vld [vmem:[#allocation2 + $0x1a8] sm:$0x3] }
 0x237   : > { %v10613_v41 = vld [vmem:[#allocation2 + $0x1a0] sm:$0xff]  ;;  %v4937_v24 = vrot.slane %v10619_v53, 2 }
 0x238   : > { %v4935_v8 = vrot.slane %v10613_v41, 2 }
 0x23a   : > { %7482 = vmatmul.mubr.msk.bf16.gmra.mxu0 %vm2729_vm5, %v12077_v10 }
 0x23b   : > { %7444 = vmatmul.mubr.msk.bf16.gmra.mxu1 %vm2729_vm5, %v10326_v50  ;;  %7485 = vmatprep.mubr.msk.bf16.mxu0 %vm2729_vm5, %v12078_v26 }
 0x23c   : > { %7447 = vmatprep.mubr.msk.bf16.mxu1 %vm2729_vm5, %v10343_v28 }
 0x242   : > { %7486 = vmatmul.mubr.msk.bf16.gmra.mxu0 %vm2729_vm5, %v12079_v43 }
 0x243   : > { %7448 = vmatmul.mubr.msk.bf16.gmra.mxu1 %vm2729_vm5, %v10350_v61  ;;  %7489 = vmatprep.mubr.msk.bf16.mxu0 %vm2729_vm5, %v12080_v57 }
 0x244   : > { %7451 = vmatprep.mubr.msk.bf16.mxu1 %vm2729_vm5, %v10352_v6 }
 0x24a   : > { %7490 = vmatmul.mubr.msk.bf16.gmra.mxu0 %vm2729_vm5, %v12081_v31 }
 0x24b   : > { %7452 = vmatmul.mubr.msk.bf16.gmra.mxu1 %vm2729_vm5, %v10369_v58  ;;  %7493 = vmatprep.mubr.msk.bf16.mxu0 %vm2729_vm5, %v12082_v13 }
 0x24c   : > { %7455 = vmatprep.mubr.msk.bf16.mxu1 %vm2729_vm5, %v10394_v47 }
 0x252   : > { %7494 = vmatmul.mubr.msk.bf16.gmra.mxu0 %vm2729_vm5, %v12083_v49 }
 0x253   : > { %7456 = vmatmul.mubr.msk.bf16.gmra.mxu1 %vm2729_vm5, %v10396_v20  ;;  %7497 = vmatprep.mubr.msk.bf16.mxu0 %vm2729_vm5, %v12084_v63 }
 0x254   : > { %7459 = vmatprep.mubr.msk.bf16.mxu1 %vm2729_vm5, %v10402_v16 }
 0x25a   : > { %7498 = vmatmul.mubr.msk.bf16.gmra.mxu0 %vm2729_vm5, %v12085_v27 }
 0x25b   : > { %7460 = vmatmul.mubr.msk.bf16.gmra.mxu1 %vm2729_vm5, %v10419_v37  ;;  %7501 = vmatprep.mubr.msk.bf16.mxu0 %vm2729_vm5, %v10319_v23 }
 0x25c   : > { %7463 = vmatprep.mubr.msk.bf16.mxu1 %vm2729_vm5, %v10437_v5 }
 0x262   : > { %7502 = vmatmul.mubr.msk.bf16.gmra.mxu0 %vm2729_vm5, %v10529_v7 }
 0x263   : > { %7464 = vmatmul.mubr.msk.bf16.gmra.mxu1 %vm2729_vm5, %v10449_v42  ;;  %7541 = vmatprep.mubr.msk.bf16.mxu0 %vm2729_vm5, %v10277_v39  ;;  %v12088_v39 = vld [vmem:[#allocation59_spill] sm:$0xff] }
 0x264   : > { %7467 = vmatprep.mubr.msk.bf16.mxu1 %vm2729_vm5, %v10457_v25 }
 0x26a   : > { %7542 = vmatmul.mubr.msk.bf16.vlgmr.msra.gmra.mxu0 %vm2729_vm5, %v10279_v19 }
 0x26b   : > { %7468 = vmatmul.mubr.msk.bf16.gmra.mxu1 %vm2729_vm5, %v10468_v0  ;;  %7545 = vmatprep.mubr.msk.bf16.mxu0 %vm2729_vm5, %v10326_v50 }
 0x26c   : > { %7507 = vmatprep.mubr.msk.bf16.mxu1 %vm2729_vm5, %v12086_v15  ;;  %7608 = vmatpush3.bf16.msra.mxu0 %v7781_v14  ;;  %v4299_v14 = vrot.slane %v10413_v18, 2  ;;  %v10611_v18 = vld [vmem:[#allocation2 + $0x198] sm:$0xff] }
 0x26d   : > { %v4934_v36 = vrot.slane %v10611_v18, 2 }
 0x26e   : > { %v4301_v34 = vsel %vm1037_vm4, %v4299_v14, %v4300_v22 }
 0x26f   : > { %v10603_v56 = vpack.c.bf16 %v4303_v44, %v4301_v34  ;;  %v10624_v3 = vsel %vm1037_vm4, %v4934_v36, %v4935_v8 }
 0x270   : > { %12098 = vst [vmem:[#allocation13_spill] sm:$0xff] %v10624_v3 }
 0x272   : > { %7546 = vmatmul.mubr.msk.bf16.gmra.mxu0 %vm2729_vm5, %v10343_v28 }
 0x273   : > { %7508 = vmatmul.mubr.msk.bf16.vlgmr.msra.gmra.mxu1 %vm2729_vm5, %v12087_v60  ;;  %7549 = vmatprep.mubr.msk.bf16.mxu0 %vm2729_vm5, %v10350_v61 }
 0x274   : > { %7574 = vmatpush3.bf16.msra.mxu1 %v7780_v48  ;;  %7511 = vmatprep.mubr.msk.bf16.mxu1 %vm2729_vm5, %v12088_v39  ;;  %v10632_v48 = vsel %vm1037_vm4, %v4935_v8, %v4937_v24 }
 0x275   : > { %7641 = vmatprep.subr.bf16.mxu1 %v7782_v1 }
 0x27a   : > { %7550 = vmatmul.mubr.msk.bf16.gmra.mxu0 %vm2729_vm5, %v10352_v6 }
 0x27b   : > { %7512 = vmatmul.mubr.msk.bf16.gmra.mxu1 %vm2729_vm5, %v12089_v52  ;;  %7553 = vmatprep.mubr.msk.bf16.mxu0 %vm2729_vm5, %v10369_v58 }
 0x27c   : > { %7515 = vmatprep.mubr.msk.bf16.mxu1 %vm2729_vm5, %v12090_v45 }
 0x282   : > { %7554 = vmatmul.mubr.msk.bf16.gmra.mxu0 %vm2729_vm5, %v10394_v47 }
 0x283   : > { %7516 = vmatmul.mubr.msk.bf16.gmra.mxu1 %vm2729_vm5, %v12091_v12  ;;  %7557 = vmatprep.mubr.msk.bf16.mxu0 %vm2729_vm5, %v10396_v20 }
 0x284   : > { %7519 = vmatprep.mubr.msk.bf16.mxu1 %vm2729_vm5, %v12092_v32 }
 0x28a   : > { %7558 = vmatmul.mubr.msk.bf16.gmra.mxu0 %vm2729_vm5, %v10402_v16 }
 0x28b   : > { %7520 = vmatmul.mubr.msk.bf16.gmra.mxu1 %vm2729_vm5, %v12093_v17  ;;  %7561 = vmatprep.mubr.msk.bf16.mxu0 %vm2729_vm5, %v10419_v37 }
 0x28c   : > { %7523 = vmatprep.mubr.msk.bf16.mxu1 %vm2729_vm5, %v12094_v40 }
 0x292   : > { %7562 = vmatmul.mubr.msk.bf16.gmra.mxu0 %vm2729_vm5, %v10437_v5 }
 0x293   : > { %7524 = vmatmul.mubr.msk.bf16.gmra.mxu1 %vm2729_vm5, %v12095_v46  ;;  %7565 = vmatprep.mubr.msk.bf16.mxu0 %vm2729_vm5, %v10449_v42 }
 0x294   : > { %7527 = vmatprep.mubr.msk.bf16.mxu1 %vm2729_vm5, %v12096_v38 }
 0x29a   : > { %7566 = vmatmul.mubr.msk.bf16.gmra.mxu0 %vm2729_vm5, %v10457_v25 }
 0x29b   : > { %7528 = vmatmul.mubr.msk.bf16.gmra.mxu1 %vm2729_vm5, %v12097_v55  ;;  %7569 = vmatprep.mubr.msk.bf16.mxu0 %vm2729_vm5, %v10468_v0 }
 0x29c   : > { %7531 = vmatprep.mubr.msk.bf16.mxu1 %vm2729_vm5, %v10267_v2 }
 0x2a2   : > { %7570 = vmatmul.mubr.msk.bf16.gmra.mxu0 %vm2729_vm5, %v10603_v56 }
 0x2a3   : > { %7532 = vmatmul.mubr.msk.bf16.gmra.mxu1 %vm2729_vm5, %v10269_v54  ;;  %7609 = vmatprep.mubr.msk.bf16.mxu0 %vm2729_vm5, %v12087_v60 }
 0x2a4   : > { %7535 = vmatprep.mubr.msk.bf16.mxu1 %vm2729_vm5, %v10348_v30 }
 0x2a8   : > { %v7407_v33 = vpop.f32.mrf.mxu0 }
 0x2aa   : > { %7610 = vmatmul.mubr.msk.bf16.vlgmr.msra.gmra.mxu0 %vm2729_vm5, %v12088_v39  ;;  %v3372_v4 = vpop.f32.mrf.mxu0 }
 0x2ab   : > { %7536 = vmatmul.mubr.msk.bf16.gmra.mxu1 %vm2729_vm5, %v10474_v11  ;;  %7613 = vmatprep.mubr.msk.bf16.mxu0 %vm2729_vm5, %v12089_v52 }
 0x2ac   : > { %7575 = vmatprep.mubr.msk.bf16.mxu1 %vm2729_vm5, %v9871_v29  ;;  %v7373_v29 = vpop.f32.mrf.mxu1  ;;  %v7408_v9 = vpop.f32.mrf.mxu0 }
 0x2ad   : > { %v10636_v15 = vadd.f32 %v7407_v33, %v7373_v29 }
 0x2ae   : > { %v3157_v60 = vpop.f32.mrf.mxu1  ;;  %v3375_v22 = vpop.f32.mrf.mxu0 }
 0x2af   : > { %v10640_v39 = vadd.f32 %v3372_v4, %v3157_v60 }
 0x2b0   : > { %v7374_v52 = vpop.f32.mrf.mxu1  ;;  %v7411_v62 = vpop.f32.mrf.mxu0 }
 0x2b1   : > { %v10644_v14 = vadd.f32 %v7408_v9, %v7374_v52 }
 0x2b2   : > { %7614 = vmatmul.mubr.msk.bf16.gmra.mxu0 %vm2729_vm5, %v12090_v45  ;;  %v3160_v34 = vpop.f32.mrf.mxu1  ;;  %v3388_v44 = vpop.f32.mrf.mxu0 }
 0x2b3   : > { %7576 = vmatmul.mubr.msk.bf16.vlgmr.msra.gmra.mxu1 %vm2729_vm5, %v9951_v21  ;;  %7617 = vmatprep.mubr.msk.bf16.mxu0 %vm2729_vm5, %v12091_v12  ;;  %v10650_v36 = vadd.f32 %v3375_v22, %v3160_v34 }
 0x2b4   : > { %7642 = vmatpush3.bf16.msra.mxu1 %v7782_v1  ;;  %7579 = vmatprep.mubr.msk.bf16.mxu1 %vm2729_vm5, %v12075_v35  ;;  %v7412_v21 = vpop.f32.mrf.mxu0  ;;  %v7377_v8 = vpop.f32.mrf.mxu1 }
 0x2b5   : > { %v10652_v33 = vadd.f32 %v7411_v62, %v7377_v8 }
 0x2b6   : > { %v3391_v1 = vpop.f32.mrf.mxu0  ;;  %v3173_v35 = vpop.f32.mrf.mxu1 }
 0x2b7   : > { %v10658_v24 = vadd.f32 %v3388_v44, %v3173_v35 }
 0x2b8   : > { %v7415_v45 = vpop.f32.mrf.mxu0  ;;  %v7378_v12 = vpop.f32.mrf.mxu1 }
 0x2b9   : > { %v10664_v29 = vadd.f32 %v7412_v21, %v7378_v12 }
 0x2ba   : > { %7618 = vmatmul.mubr.msk.bf16.gmra.mxu0 %vm2729_vm5, %v12092_v32  ;;  %v3404_v4 = vpop.f32.mrf.mxu0  ;;  %v3176_v9 = vpop.f32.mrf.mxu1 }
 0x2bb   : > { %7580 = vmatmul.mubr.msk.bf16.gmra.mxu1 %vm2729_vm5, %v12076_v59  ;;  %7621 = vmatprep.mubr.msk.bf16.mxu0 %vm2729_vm5, %v12093_v17  ;;  %v10666_v59 = vadd.f32 %v3391_v1, %v3176_v9 }
 0x2bc   : > { %7583 = vmatprep.mubr.msk.bf16.mxu1 %vm2729_vm5, %v12077_v10  ;;  %v7416_v60 = vpop.f32.mrf.mxu0 }
 0x2be   : > { %v7381_v22 = vpop.f32.mrf.mxu1  ;;  %v3407_v10 = vpop.f32.mrf.mxu0 }
 0x2bf   : > { %v10668_v52 = vadd.f32 %v7415_v45, %v7381_v22 }
 0x2c0   : > { %v3189_v32 = vpop.f32.mrf.mxu1  ;;  %v7419_v62 = vpop.f32.mrf.mxu0 }
 0x2c1   : > { %v10674_v17 = vadd.f32 %v3404_v4, %v3189_v32 }
 0x2c2   : > { %7622 = vmatmul.mubr.msk.bf16.gmra.mxu0 %vm2729_vm5, %v12094_v40  ;;  %v7382_v34 = vpop.f32.mrf.mxu1  ;;  %v3420_v44 = vpop.f32.mrf.mxu0 }
 0x2c3   : > { %7584 = vmatmul.mubr.msk.bf16.gmra.mxu1 %vm2729_vm5, %v12078_v26  ;;  %7625 = vmatprep.mubr.msk.bf16.mxu0 %vm2729_vm5, %v12095_v46  ;;  %v10680_v21 = vadd.f32 %v7416_v60, %v7382_v34 }
 0x2c4   : > { %7587 = vmatprep.mubr.msk.bf16.mxu1 %vm2729_vm5, %v12079_v43  ;;  %v3192_v8 = vpop.f32.mrf.mxu1  ;;  %v7420_v1 = vpop.f32.mrf.mxu0 }
 0x2c5   : > { %v10682_v26 = vadd.f32 %v3407_v10, %v3192_v8 }
 0x2c6   : > { %v3423_v35 = vpop.f32.mrf.mxu0  ;;  %v7385_v43 = vpop.f32.mrf.mxu1 }
 0x2c7   : > { %v10686_v45 = vadd.f32 %v7419_v62, %v7385_v43  ;;  %v4722_v43 = vrot.slane %v10613_v41, 1 }
 0x2c8   : > { %v7423_v40 = vpop.f32.mrf.mxu0  ;;  %v3205_v12 = vpop.f32.mrf.mxu1 }
 0x2c9   : > { %v10692_v46 = vadd.f32 %v3420_v44, %v3205_v12 }
 0x2ca   : > { %7626 = vmatmul.mubr.msk.bf16.gmra.mxu0 %vm2729_vm5, %v12096_v38  ;;  %v10696_v4 = vpop.f32.mrf.mxu0  ;;  %v7386_v9 = vpop.f32.mrf.mxu1 }
 0x2cb   : > { %7588 = vmatmul.mubr.msk.bf16.gmra.mxu1 %vm2729_vm5, %v12080_v57  ;;  %7629 = vmatprep.mubr.msk.bf16.mxu0 %vm2729_vm5, %v12097_v55  ;;  %v10698_v60 = vadd.f32 %v7420_v1, %v7386_v9 }
 0x2cc   : > { %7591 = vmatprep.mubr.msk.bf16.mxu1 %vm2729_vm5, %v12081_v31  ;;  %v7424_v57 = vpop.f32.mrf.mxu0  ;;  %v3208_v22 = vpop.f32.mrf.mxu1 }
 0x2cd   : > { %v10700_v10 = vadd.f32 %v3423_v35, %v3208_v22 }
 0x2ce   : > { %v10702_v31 = vpop.f32.mrf.mxu0  ;;  %v7389_v32 = vpop.f32.mrf.mxu1 }
 0x2cf   : > { %v10706_v38 = vadd.f32 %v7423_v40, %v7389_v32  ;;  %v4724_v40 = vrot.slane %v10619_v53, 1 }
 0x2d0   : > { %v7427_v55 = vpop.f32.mrf.mxu0  ;;  %v10710_v62 = vpop.f32.mrf.mxu1 }
 0x2d2   : > { %7630 = vmatmul.mubr.msk.bf16.gmra.mxu0 %vm2729_vm5, %v10267_v2  ;;  %v10716_v34 = vpop.f32.mrf.mxu0  ;;  %v7390_v44 = vpop.f32.mrf.mxu1 }
 0x2d3   : > { %7592 = vmatmul.mubr.msk.bf16.gmra.mxu1 %vm2729_vm5, %v12082_v13  ;;  %7633 = vmatprep.mubr.msk.bf16.mxu0 %vm2729_vm5, %v10269_v54  ;;  %v10718_v8 = vadd.f32 %v7424_v57, %v7390_v44 }
 0x2d4   : > { %7595 = vmatprep.mubr.msk.bf16.mxu1 %vm2729_vm5, %v12083_v49  ;;  %v7428_v13 = vpop.f32.mrf.mxu0  ;;  %v10720_v1 = vpop.f32.mrf.mxu1  ;;  %v4721_v49 = vrot.slane %v10611_v18, 1 }
 0x2d6   : > { %v10722_v35 = vpop.f32.mrf.mxu0  ;;  %v7393_v2 = vpop.f32.mrf.mxu1  ;;  %v4723_v53 = vsel %vm477_vm2, %v4721_v49, %v4722_v43 }
 0x2d7   : > { %v10729_v54 = vadd.f32 %v7427_v55, %v7393_v2 }
 0x2d8   : > { %v7431_v12 = vpop.f32.mrf.mxu0  ;;  %v10733_v9 = vpop.f32.mrf.mxu1 }
 0x2da   : > { %7634 = vmatmul.mubr.msk.bf16.gmra.mxu0 %vm2729_vm5, %v10348_v30  ;;  %v10739_v57 = vpop.f32.mrf.mxu0  ;;  %v7394_v22 = vpop.f32.mrf.mxu1 }
 0x2db   : > { %7596 = vmatmul.mubr.msk.bf16.gmra.mxu1 %vm2729_vm5, %v12084_v63  ;;  %7637 = vmatprep.mubr.msk.bf16.mxu0 %vm2729_vm5, %v10474_v11  ;;  %v4725_v63 = vsel %vm477_vm2, %v4722_v43, %v4724_v40  ;;  %v10743_v32 = vadd.f32 %v7428_v13, %v7394_v22  ;;  %v4512_v40 = vpack.c.bf16 %v10613_v41, %v10611_v18 }
 0x2dc   : > { %7599 = vmatprep.mubr.msk.bf16.mxu1 %vm2729_vm5, %v12085_v27  ;;  %v7432_v55 = vpop.f32.mrf.mxu0  ;;  %v10745_v27 = vpop.f32.mrf.mxu1  ;;  %v4728_v44 = vpack.c.bf16 %v4725_v63, %v4723_v53 }
 0x2de   : > { %v10747_v2 = vpop.f32.mrf.mxu0  ;;  %v7397_v51 = vpop.f32.mrf.mxu1 }
 0x2df   : > { %v10751_v30 = vadd.f32 %v7431_v12, %v7397_v51 }
 0x2e0   : > { %v10755_v49 = vpop.f32.mrf.mxu1 }
 0x2e2   : > { %v7435_v11 = vpop.f32.mrf.mxu0  ;;  %7638 = vmatmul.mubr.msk.bf16.gmra.mxu0 %vm2729_vm5, %v4728_v44  ;;  %v7398_v43 = vpop.f32.mrf.mxu1 }
 0x2e3   : > { %7600 = vmatmul.mubr.msk.bf16.gmra.mxu1 %vm2729_vm5, %v10319_v23  ;;  %v10762_v53 = vadd.f32 %v7432_v55, %v7398_v43 }
 0x2e4   : > { %7603 = vmatprep.mubr.msk.bf16.mxu1 %vm2729_vm5, %v10529_v7  ;;  %v10758_v13 = vpop.f32.mrf.mxu0  ;;  %v10764_v23 = vpop.f32.mrf.mxu1 }
 0x2e5   : > { %12099 = vst [vmem:[#allocation81_spill] sm:$0xff] %v10758_v13 }
 0x2e6   : > { %v7436_v63 = vpop.f32.mrf.mxu0  ;;  %v7401_v12 = vpop.f32.mrf.mxu1 }
 0x2e7   : > { %v10769_v7 = vadd.f32 %v7435_v11, %v7401_v12 }
 0x2e8   : > { %v10766_v51 = vpop.f32.mrf.mxu0  ;;  %v10773_v44 = vpop.f32.mrf.mxu1 }
 0x2e9   : > { %12100 = vst [vmem:[#allocation34_spill] sm:$0xff] %v10766_v51 }
 0x2ea   : > { %v7475_v22 = vpop.f32.mrf.mxu0  ;;  %v7402_v18 = vpop.f32.mrf.mxu1 }
 0x2eb   : > { %7604 = vmatmul.mubr.msk.bf16.gmra.mxu1 %vm2729_vm5, %v4512_v40  ;;  %v10777_v41 = vadd.f32 %v7436_v63, %v7402_v18 }
 0x2ec   : > { %7643 = vmatprep.mubr.msk.bf16.mxu1 %vm2729_vm5, %v10279_v19  ;;  %v10775_v13 = vpop.f32.mrf.mxu0  ;;  %v10779_v43 = vpop.f32.mrf.mxu1 }
 0x2ed   : > { %12101 = vst [vmem:[#allocation83_spill] sm:$0xff] %v10775_v13  ;;  %12102 = vst [vmem:[#allocation9_spill] sm:$0xff] %v10777_v41 }
 0x2ee   : > { %v7476_v55 = vpop.f32.mrf.mxu0  ;;  %12103 = vst [vmem:[#allocation85_spill] sm:$0xff] %v10779_v43 }
 0x2f0   : > { %v10781_v51 = vpop.f32.mrf.mxu0 }
 0x2f1   : > { %12104 = vst [vmem:[#allocation77_spill] sm:$0xff] %v10781_v51 }
 0x2f2   : > { %v7479_v40 = vpop.f32.mrf.mxu0 }
 0x2f3   : > { %v7441_v3 = vpop.f32.mrf.mxu1  ;;  %7644 = vmatmul.mubr.msk.bf16.vlgmr.msra.gmra.mxu1 %vm2729_vm5, %v10326_v50 }
 0x2f4   : > { %v3847_v11 = vadd.f32 %v7441_v3, %v10636_v15  ;;  %7647 = vmatprep.mubr.msk.bf16.mxu1 %vm2729_vm5, %v10343_v28  ;;  %v10793_v13 = vpop.f32.mrf.mxu0 }
 0x2f5   : > { %v3718_v19 = vpop.f32.mrf.mxu1 }
 0x2f6   : > { %v10789_v12 = vadd.f32 %v3718_v19, %v10640_v39  ;;  %v10791_v63 = vadd.f32 %v7475_v22, %v3847_v11  ;;  %v7480_v43 = vpop.f32.mrf.mxu0 }
 0x2f7   : > { %v7442_v18 = vpop.f32.mrf.mxu1 }
 0x2f8   : > { %v3848_v51 = vadd.f32 %v7442_v18, %v10644_v14  ;;  %v10803_v15 = vpop.f32.mrf.mxu0 }
 0x2f9   : > { %v3721_v41 = vpop.f32.mrf.mxu1 }
 0x2fa   : > { %v10797_v50 = vadd.f32 %v3721_v41, %v10650_v36  ;;  %v10799_v3 = vadd.f32 %v7476_v55, %v3848_v51  ;;  %v7483_v14 = vpop.f32.mrf.mxu0 }
 0x2fb   : > { %v7445_v28 = vpop.f32.mrf.mxu1  ;;  %7648 = vmatmul.mubr.msk.bf16.gmra.mxu1 %vm2729_vm5, %v10350_v61  ;;  %v5219_v61 = vld [vmem:[%s11697_s5 + $0x8] sm:$0xff] }
 0x2fc   : > { %v3851_v39 = vadd.f32 %v7445_v28, %v10652_v33  ;;  %7651 = vmatprep.mubr.msk.bf16.mxu1 %vm2729_vm5, %v10352_v6  ;;  %v10813_v41 = vpop.f32.mrf.mxu0  ;;  %7675 = vmatprep.subr.mxu0 %v5219_v61 }
 0x2fd   : > { %v3734_v22 = vpop.f32.mrf.mxu1  ;;  %7676 = vmatpush3.msra.mxu0 %v5219_v61 }
 0x2fe   : > { %v10809_v11 = vadd.f32 %v3734_v22, %v10658_v24  ;;  %v10811_v36 = vadd.f32 %v7479_v40, %v3851_v39  ;;  %v7484_v19 = vpop.f32.mrf.mxu0 }
 0x2ff   : > { %v7446_v51 = vpop.f32.mrf.mxu1 }
 0x300   : > { %v3852_v55 = vadd.f32 %v7446_v51, %v10664_v29  ;;  %v10826_v40 = vpop.f32.mrf.mxu0 }
 0x301   : > { %v3737_v33 = vpop.f32.mrf.mxu1 }
 0x302   : > { %v10820_v6 = vadd.f32 %v3737_v33, %v10666_v59  ;;  %v10822_v18 = vadd.f32 %v7480_v43, %v3852_v55  ;;  %v7487_v39 = vpop.f32.mrf.mxu0 }
 0x303   : > { %v7449_v24 = vpop.f32.mrf.mxu1  ;;  %7652 = vmatmul.mubr.msk.bf16.gmra.mxu1 %vm2729_vm5, %v10369_v58 }
 0x304   : > { %v3855_v29 = vadd.f32 %v7449_v24, %v10668_v52  ;;  %7655 = vmatprep.mubr.msk.bf16.mxu1 %vm2729_vm5, %v10394_v47  ;;  %v10836_v51 = vpop.f32.mrf.mxu0 }
 0x305   : > { %v3750_v28 = vpop.f32.mrf.mxu1 }
 0x306   : > { %v10832_v22 = vadd.f32 %v3750_v28, %v10674_v17  ;;  %v10834_v59 = vadd.f32 %v7483_v14, %v3855_v29  ;;  %v7488_v61 = vpop.f32.mrf.mxu0 }
 0x307   : > { %v7450_v43 = vpop.f32.mrf.mxu1 }
 0x308   : > { %v3856_v55 = vadd.f32 %v7450_v43, %v10680_v21  ;;  %v10846_v17 = vpop.f32.mrf.mxu0 }
 0x309   : > { %v3753_v58 = vpop.f32.mrf.mxu1 }
 0x30a   : > { %v10840_v33 = vadd.f32 %v3753_v58, %v10682_v26  ;;  %v10842_v52 = vadd.f32 %v7484_v19, %v3856_v55  ;;  %v7491_v21 = vpop.f32.mrf.mxu0 }
 0x30b   : > { %v7453_v47 = vpop.f32.mrf.mxu1  ;;  %7656 = vmatmul.mubr.msk.bf16.gmra.mxu1 %vm2729_vm5, %v10396_v20 }
 0x30c   : > { %v3859_v14 = vadd.f32 %v7453_v47, %v10686_v45  ;;  %7659 = vmatprep.mubr.msk.bf16.mxu1 %vm2729_vm5, %v10402_v16  ;;  %v3988_v28 = vpop.f32.mrf.mxu0 }
 0x30d   : > { %v3766_v24 = vpop.f32.mrf.mxu1 }
 0x30e   : > { %v10852_v29 = vadd.f32 %v3766_v24, %v10692_v46  ;;  %v10854_v26 = vadd.f32 %v7487_v39, %v3859_v14  ;;  %v7492_v20 = vpop.f32.mrf.mxu0  ;;  %v3437_v46 = vadd.f32 %v10696_v4, %v10710_v62 }
 0x30f   : > { %v7454_v19 = vpop.f32.mrf.mxu1 }
 0x310   : > { %v3860_v43 = vadd.f32 %v7454_v19, %v10698_v60  ;;  %v3991_v16 = vpop.f32.mrf.mxu0 }
 0x311   : > { %v3769_v55 = vpop.f32.mrf.mxu1 }
 0x312   : > { %v10858_v58 = vadd.f32 %v3769_v55, %v10700_v10  ;;  %v10860_v45 = vadd.f32 %v7488_v61, %v3860_v43  ;;  %v7495_v14 = vpop.f32.mrf.mxu0  ;;  %v3440_v43 = vadd.f32 %v10702_v31, %v10720_v1 }
 0x313   : > { %v7457_v47 = vpop.f32.mrf.mxu1  ;;  %7660 = vmatmul.mubr.msk.bf16.gmra.mxu1 %vm2729_vm5, %v10419_v37 }
 0x314   : > { %v3863_v39 = vadd.f32 %v7457_v47, %v10706_v38  ;;  %7663 = vmatprep.mubr.msk.bf16.mxu1 %vm2729_vm5, %v10437_v5  ;;  %v4004_v19 = vpop.f32.mrf.mxu0 }
 0x315   : > { %v3782_v60 = vpop.f32.mrf.mxu1 }
 0x316   : > { %v3861_v24 = vadd.f32 %v3782_v60, %v3437_v46  ;;  %v10869_v10 = vadd.f32 %v7491_v21, %v3863_v39  ;;  %v7496_v62 = vpop.f32.mrf.mxu0  ;;  %v3453_v46 = vadd.f32 %v10716_v34, %v10733_v9 }
 0x317   : > { %v7458_v61 = vpop.f32.mrf.mxu1 }
 0x318   : > { %v3864_v37 = vadd.f32 %v7458_v61, %v10718_v8  ;;  %v10874_v55 = vadd.f32 %v3988_v28, %v3861_v24  ;;  %v4007_v21 = vpop.f32.mrf.mxu0 }
 0x319   : > { %v3785_v4 = vpop.f32.mrf.mxu1 }
 0x31a   : > { %v3862_v38 = vadd.f32 %v3785_v4, %v3440_v43  ;;  %v10876_v47 = vadd.f32 %v7492_v20, %v3864_v37  ;;  %v7499_v1 = vpop.f32.mrf.mxu0 }
 0x31b   : > { %v7461_v5 = vpop.f32.mrf.mxu1  ;;  %7664 = vmatmul.mubr.msk.bf16.gmra.mxu1 %vm2729_vm5, %v10449_v42  ;;  %v3456_v42 = vadd.f32 %v10722_v35, %v10745_v27 }
 0x31c   : > { %v3867_v39 = vadd.f32 %v7461_v5, %v10729_v54  ;;  %7667 = vmatprep.mubr.msk.bf16.mxu1 %vm2729_vm5, %v10457_v25  ;;  %v10885_v31 = vadd.f32 %v3991_v16, %v3862_v38  ;;  %v4020_v24 = vpop.f32.mrf.mxu0  ;;  %v5218_v25 = vld [vmem:[%s11697_s5] sm:$0xff] }
 0x31d   : > { %v3798_v8 = vpop.f32.mrf.mxu1  ;;  %7677 = vmatprep.subr.mxu0 %v5218_v25 }
 0x31e   : > { %v3865_v28 = vadd.f32 %v3798_v8, %v3453_v46  ;;  %v10887_v20 = vadd.f32 %v7495_v14, %v3867_v39  ;;  %v7500_v9 = vpop.f32.mrf.mxu0  ;;  %7678 = vmatpush3.msra.mxu0 %v5218_v25 }
 0x31f   : > { %v7462_v60 = vpop.f32.mrf.mxu1 }
 0x320   : > { %v3868_v61 = vadd.f32 %v7462_v60, %v10743_v32  ;;  %v10892_v34 = vadd.f32 %v4004_v19, %v3865_v28  ;;  %v4023_v35 = vpop.f32.mrf.mxu0  ;;  %v3469_v32 = vadd.f32 %v10739_v57, %v10755_v49  ;;  %v12105_v28 = vld [vmem:[#allocation13_spill] sm:$0xff] }
 0x321   : > { %v3801_v54 = vpop.f32.mrf.mxu1  ;;  %v12106_v60 = vpack.c.bf16 %v10632_v48, %v12105_v28  ;;  %v12109_v48 = vld [vmem:[#allocation34_spill] sm:$0xff] }
 0x322   : > { %v3866_v16 = vadd.f32 %v3801_v54, %v3456_v42  ;;  %v10897_v43 = vadd.f32 %v7496_v62, %v3868_v61  ;;  %v7503_v4 = vpop.f32.mrf.mxu0  ;;  %v12107_v42 = vld [vmem:[#allocation81_spill] sm:$0xff] }
 0x323   : > { %v7465_v14 = vpop.f32.mrf.mxu1  ;;  %7668 = vmatmul.mubr.msk.bf16.gmra.mxu1 %vm2729_vm5, %v10468_v0  ;;  %v3472_v0 = vadd.f32 %v10747_v2, %v10764_v23  ;;  %v3485_v61 = vadd.f32 %v12107_v42, %v10773_v44 }
 0x324   : > { %v3871_v27 = vadd.f32 %v7465_v14, %v10751_v30  ;;  %7671 = vmatprep.mubr.msk.bf16.mxu1 %vm2729_vm5, %v10603_v56  ;;  %v10906_v19 = vadd.f32 %v4007_v21, %v3866_v16  ;;  %v4036_v46 = vpop.f32.mrf.mxu0  ;;  %v12108_v14 = vld [vmem:[#allocation85_spill] sm:$0xff] }
 0x325   : > { %v3814_v37 = vpop.f32.mrf.mxu1 }
 0x326   : > { %v3869_v62 = vadd.f32 %v3814_v37, %v3469_v32  ;;  %v10908_v38 = vadd.f32 %v7499_v1, %v3871_v27  ;;  %v7504_v49 = vpop.f32.mrf.mxu0  ;;  %v3488_v32 = vadd.f32 %v12109_v48, %v12108_v14  ;;  %v12110_v27 = vld [vmem:[#allocation9_spill] sm:$0xff] }
 0x327   : > { %v7466_v5 = vpop.f32.mrf.mxu1 }
 0x328   : > { %v3872_v39 = vadd.f32 %v7466_v5, %v10762_v53  ;;  %v10913_v57 = vadd.f32 %v4020_v24, %v3869_v62  ;;  %v4039_v1 = vpop.f32.mrf.mxu0 }
 0x329   : > { %v3817_v30 = vpop.f32.mrf.mxu1 }
 0x32a   : > { %v3870_v8 = vadd.f32 %v3817_v30, %v3472_v0  ;;  %v10915_v56 = vadd.f32 %v7500_v9, %v3872_v39  ;;  %v7543_v24 = vpop.f32.mrf.mxu0  ;;  %v12111_v30 = vld [vmem:[#allocation83_spill] sm:$0xff] }
 0x32b   : > { %v7469_v21 = vpop.f32.mrf.mxu1  ;;  %7672 = vmatmul.mubr.msk.bf16.gmra.mxu1 %vm2729_vm5, %v12106_v60 }
 0x32c   : > { %v3875_v2 = vadd.f32 %v7469_v21, %v10769_v7  ;;  %v10924_v53 = vadd.f32 %v4023_v35, %v3870_v8  ;;  %v10928_v16 = vpop.f32.mrf.mxu0  ;;  %v4051_v8 = vadd.f32 %v12111_v30, %v10789_v12 }
 0x32d   : > { %v3830_v23 = vpop.f32.mrf.mxu1 }
 0x32e   : > { %v3873_v25 = vadd.f32 %v3830_v23, %v3485_v61  ;;  %v10926_v54 = vadd.f32 %v7503_v4, %v3875_v2  ;;  %v7544_v5 = vpop.f32.mrf.mxu0  ;;  %v12112_v23 = vld [vmem:[#allocation77_spill] sm:$0xff] }
 0x32f   : > { %v7470_v9 = vpop.f32.mrf.mxu1 }
 0x330   : > { %v3876_v37 = vadd.f32 %v7470_v9, %v12110_v27  ;;  %v10933_v62 = vadd.f32 %v4036_v46, %v3873_v25  ;;  %v10937_v39 = vpop.f32.mrf.mxu0  ;;  %v4052_v25 = vadd.f32 %v12112_v23, %v10797_v50 }
 0x331   : > { %v3833_v44 = vpop.f32.mrf.mxu1 }
 0x332   : > { %v3874_v7 = vadd.f32 %v3833_v44, %v3488_v32  ;;  %v10935_v35 = vadd.f32 %v7504_v49, %v3876_v37  ;;  %v7547_v60 = vpop.f32.mrf.mxu0  ;;  %v4055_v32 = vadd.f32 %v10793_v13, %v10809_v11 }
 0x333   : > { %v7509_v0 = vpop.f32.mrf.mxu1 }
 0x334   : > { %v4269_v4 = vadd.f32 %v7509_v0, %v10791_v63  ;;  %v10942_v21 = vadd.f32 %v4039_v1, %v3874_v7  ;;  %v10948_v2 = vpop.f32.mrf.mxu0  ;;  %v4056_v0 = vadd.f32 %v10803_v15, %v10820_v6 }
 0x335   : > { %v4140_v28 = vpop.f32.mrf.mxu1 }
 0x336   : > { %v10944_v42 = vadd.f32 %v4140_v28, %v4051_v8  ;;  %v10946_v46 = vadd.f32 %v7543_v24, %v4269_v4  ;;  %v7548_v9 = vpop.f32.mrf.mxu0 }
 0x337   : > { %v7510_v61 = vpop.f32.mrf.mxu1 }
 0x338   : > { %v4270_v49 = vadd.f32 %v7510_v61, %v10799_v3  ;;  %v10957_v48 = vpop.f32.mrf.mxu0 }
 0x339   : > { %v4143_v63 = vpop.f32.mrf.mxu1 }
 0x33a   : > { %v10953_v14 = vadd.f32 %v4143_v63, %v4052_v25  ;;  %v10955_v12 = vadd.f32 %v7544_v5, %v4270_v49  ;;  %v7551_v37 = vpop.f32.mrf.mxu0  ;;  %v4060_v63 = vadd.f32 %v10826_v40, %v10840_v33 }
 0x33b   : > { %v7513_v1 = vpop.f32.mrf.mxu1 }
 0x33c   : > { %v4273_v24 = vadd.f32 %v7513_v1, %v10811_v36  ;;  %v10966_v7 = vpop.f32.mrf.mxu0 }
 0x33d   : > { %v4156_v27 = vpop.f32.mrf.mxu1 }
 0x33e   : > { %v10962_v3 = vadd.f32 %v4156_v27, %v4055_v32  ;;  %v10964_v44 = vadd.f32 %v7547_v60, %v4273_v24  ;;  %v7552_v30 = vpop.f32.mrf.mxu0  ;;  %v4059_v60 = vadd.f32 %v10813_v41, %v10832_v22  ;;  %v4063_v27 = vadd.f32 %v10836_v51, %v10852_v29 }
 0x33f   : > { %v7514_v50 = vpop.f32.mrf.mxu1 }
 0x340   : > { %v4274_v5 = vadd.f32 %v7514_v50, %v10822_v18  ;;  %v10975_v11 = vpop.f32.mrf.mxu0 }
 0x341   : > { %v4159_v4 = vpop.f32.mrf.mxu1 }
 0x342   : > { %v10971_v36 = vadd.f32 %v4159_v4, %v4056_v0  ;;  %v10973_v8 = vadd.f32 %v7548_v9, %v4274_v5  ;;  %v7555_v49 = vpop.f32.mrf.mxu0  ;;  %v4064_v4 = vadd.f32 %v10846_v17, %v10858_v58 }
 0x343   : > { %v7517_v13 = vpop.f32.mrf.mxu1 }
 0x344   : > { %v4277_v28 = vadd.f32 %v7517_v13, %v10834_v59  ;;  %v10984_v6 = vpop.f32.mrf.mxu0 }
 0x345   : > { %v4172_v61 = vpop.f32.mrf.mxu1 }
 0x346   : > { %v10980_v18 = vadd.f32 %v4172_v61, %v4059_v60  ;;  %v10982_v23 = vadd.f32 %v7551_v37, %v4277_v28  ;;  %v7556_v1 = vpop.f32.mrf.mxu0 }
 0x347   : > { %v7518_v15 = vpop.f32.mrf.mxu1 }
 0x348   : > { %v4278_v25 = vadd.f32 %v7518_v15, %v10842_v52  ;;  %v10993_v22 = vpop.f32.mrf.mxu0 }
 0x349   : > { %v4175_v9 = vpop.f32.mrf.mxu1 }
 0x34a   : > { %v10989_v59 = vadd.f32 %v4175_v9, %v4060_v63  ;;  %v10991_v24 = vadd.f32 %v7552_v30, %v4278_v25  ;;  %v7559_v50 = vpop.f32.mrf.mxu0 }
 0x34b   : > { %v7521_v41 = vpop.f32.mrf.mxu1 }
 0x34c   : > { %v4281_v32 = vadd.f32 %v7521_v41, %v10854_v26  ;;  %v11002_v33 = vpop.f32.mrf.mxu0 }
 0x34d   : > { %v4188_v37 = vpop.f32.mrf.mxu1 }
 0x34e   : > { %v10998_v52 = vadd.f32 %v4188_v37, %v4063_v27  ;;  %v11000_v5 = vadd.f32 %v7555_v49, %v4281_v32  ;;  %v7560_v13 = vpop.f32.mrf.mxu0 }
 0x34f   : > { %v7522_v40 = vpop.f32.mrf.mxu1 }
 0x350   : > { %v4282_v0 = vadd.f32 %v7522_v40, %v10860_v45  ;;  %v11011_v29 = vpop.f32.mrf.mxu0 }
 0x351   : > { %v4191_v30 = vpop.f32.mrf.mxu1  ;;  %12113 = vst [vmem:[#allocation87_spill] sm:$0xff] %v11011_v29 }
 0x352   : > { %v11007_v26 = vadd.f32 %v4191_v30, %v4064_v4  ;;  %v11009_v28 = vadd.f32 %v7556_v1, %v4282_v0  ;;  %v7563_v49 = vpop.f32.mrf.mxu0 }
 0x353   : > { %v7525_v51 = vpop.f32.mrf.mxu1 }
 0x354   : > { %v4285_v60 = vadd.f32 %v7525_v51, %v10869_v10  ;;  %v11019_v17 = vpop.f32.mrf.mxu0 }
 0x355   : > { %v4204_v61 = vpop.f32.mrf.mxu1  ;;  %12114 = vst [vmem:[#allocation16_spill] sm:$0xff] %v11019_v17 }
 0x356   : > { %v11015_v15 = vadd.f32 %v4204_v61, %v10874_v55  ;;  %v11017_v45 = vadd.f32 %v7559_v50, %v4285_v60  ;;  %v7564_v9 = vpop.f32.mrf.mxu0 }
 0x357   : > { %v7526_v25 = vpop.f32.mrf.mxu1 }
 0x358   : > { %v4286_v58 = vadd.f32 %v7526_v25, %v10876_v47  ;;  %v11027_v32 = vpop.f32.mrf.mxu0 }
 0x359   : > { %v4207_v63 = vpop.f32.mrf.mxu1  ;;  %12115 = vst [vmem:[#allocation89_spill] sm:$0xff] %v11027_v32 }
 0x35a   : > { %v11023_v1 = vadd.f32 %v4207_v63, %v10885_v31  ;;  %v11025_v41 = vadd.f32 %v7560_v13, %v4286_v58  ;;  %v7567_v37 = vpop.f32.mrf.mxu0 }
 0x35b   : > { %v7529_v10 = vpop.f32.mrf.mxu1 }
 0x35c   : > { %v4289_v55 = vadd.f32 %v7529_v10, %v10887_v20  ;;  %v11035_v0 = vpop.f32.mrf.mxu0 }
 0x35d   : > { %v4220_v27 = vpop.f32.mrf.mxu1  ;;  %12117 = vst [vmem:[#allocation91_spill] sm:$0xff] %v11035_v0 }
 0x35e   : > { %v11031_v50 = vadd.f32 %v4220_v27, %v10892_v34  ;;  %v11033_v40 = vadd.f32 %v7563_v49, %v4289_v55  ;;  %v7568_v30 = vpop.f32.mrf.mxu0 }
 0x35f   : > { %v7530_v47 = vpop.f32.mrf.mxu1 }
 0x360   : > { %12116 = vst [vmem:[#allocation51_spill] sm:$0xff] %v11031_v50  ;;  %v4290_v31 = vadd.f32 %v7530_v47, %v10897_v43  ;;  %v11043_v60 = vpop.f32.mrf.mxu0 }
 0x361   : > { %v4223_v4 = vpop.f32.mrf.mxu1  ;;  %12119 = vst [vmem:[#allocation93_spill] sm:$0xff] %v11043_v60 }
 0x362   : > { %v11039_v13 = vadd.f32 %v4223_v4, %v10906_v19  ;;  %v11041_v51 = vadd.f32 %v7564_v9, %v4290_v31  ;;  %v7571_v49 = vpop.f32.mrf.mxu0 }
 0x363   : > { %v7533_v20 = vpop.f32.mrf.mxu1 }
 0x364   : > { %12118 = vst [vmem:[#allocation52_spill] sm:$0xff] %v11039_v13  ;;  %v4293_v34 = vadd.f32 %v7533_v20, %v10908_v38  ;;  %v11051_v63 = vpop.f32.mrf.mxu0 }
 0x365   : > { %v4236_v61 = vpop.f32.mrf.mxu1  ;;  %12121 = vst [vmem:[#allocation82_spill] sm:$0xff] %v11051_v63 }
 0x366   : > { %v11047_v25 = vadd.f32 %v4236_v61, %v10913_v57  ;;  %v11049_v58 = vadd.f32 %v7567_v37, %v4293_v34  ;;  %v7572_v55 = vpop.f32.mrf.mxu0 }
 0x367   : > { %v7534_v43 = vpop.f32.mrf.mxu1 }
 0x368   : > { %12120 = vst [vmem:[#allocation80_spill] sm:$0xff] %v11047_v25  ;;  %v4294_v19 = vadd.f32 %v7534_v43, %v10915_v56  ;;  %v11063_v37 = vpop.f32.mrf.mxu0 }
 0x369   : > { %v4239_v10 = vpop.f32.mrf.mxu1  ;;  %12124 = vst [vmem:[#allocation86_spill] sm:$0xff] %v11063_v37 }
 0x36a   : > { %v11055_v9 = vadd.f32 %v4239_v10, %v10924_v53  ;;  %v11057_v27 = vadd.f32 %v7568_v30, %v4294_v19  ;;  %v11068_v53 = vpop.f32.mrf.mxu0 }
 0x36b   : > { %v7537_v38 = vpop.f32.mrf.mxu1 }
 0x36c   : > { %12122 = vst [vmem:[#allocation84_spill] sm:$0xff] %v11055_v9  ;;  %v4297_v47 = vadd.f32 %v7537_v38, %v10926_v54  ;;  %v11078_v19 = vpop.f32.mrf.mxu0 }
 0x36d   : > { %v4252_v31 = vpop.f32.mrf.mxu1 }
 0x36e   : > { %v11061_v57 = vadd.f32 %v4252_v31, %v10933_v62  ;;  %v11065_v4 = vadd.f32 %v7571_v49, %v4297_v47  ;;  %v11083_v38 = vpop.f32.mrf.mxu0 }
 0x36f   : > { %v7538_v20 = vpop.f32.mrf.mxu1 }
 0x370   : > { %12123 = vst [vmem:[#allocation95_spill] sm:$0xff] %v11061_v57  ;;  %v4298_v56 = vadd.f32 %v7538_v20, %v10935_v35  ;;  %v11090_v31 = vpop.f32.mrf.mxu0 }
 0x371   : > { %v4255_v34 = vpop.f32.mrf.mxu1 }
 0x372   : > { %v11071_v30 = vadd.f32 %v4255_v34, %v10942_v21  ;;  %v11073_v61 = vadd.f32 %v7572_v55, %v4298_v56  ;;  %v11097_v34 = vpop.f32.mrf.mxu0 }
 0x373   : > { %v7577_v54 = vpop.f32.mrf.mxu1 }
 0x374   : > { %12125 = vst [vmem:[#allocation88_spill] sm:$0xff] %v11071_v30  ;;  %v11076_v43 = vadd.f32 %v7577_v54, %v10946_v46 }
 0x375   : > { %v4559_v62 = vpop.f32.mrf.mxu1 }
 0x377   : > { %v7578_v49 = vpop.f32.mrf.mxu1 }
 0x378   : > { %v11081_v10 = vadd.f32 %v7578_v49, %v10955_v12 }
 0x379   : > { %v4562_v35 = vpop.f32.mrf.mxu1 }
 0x37b   : > { %v7581_v47 = vpop.f32.mrf.mxu1 }
 0x37c   : > { %v11086_v21 = vadd.f32 %v7581_v47, %v10964_v44  ;;  %v11104_v44 = vpop.f32.mrf.mxu0 }
 0x37d   : > { %v11088_v55 = vpop.f32.mrf.mxu1 }
 0x37f   : > { %v7582_v46 = vpop.f32.mrf.mxu1 }
 0x380   : > { %v11093_v20 = vadd.f32 %v7582_v46, %v10973_v8  ;;  %v11111_v8 = vpop.f32.mrf.mxu0 }
 0x381   : > { %v11095_v56 = vpop.f32.mrf.mxu1 }
 0x383   : > { %v7585_v12 = vpop.f32.mrf.mxu1 }
 0x384   : > { %v11100_v54 = vadd.f32 %v7585_v12, %v10982_v23  ;;  %v11118_v23 = vpop.f32.mrf.mxu0 }
 0x385   : > { %v11102_v49 = vpop.f32.mrf.mxu1 }
 0x387   : > { %v7586_v47 = vpop.f32.mrf.mxu1 }
 0x388   : > { %v11107_v37 = vadd.f32 %v7586_v47, %v10991_v24  ;;  %v11125_v24 = vpop.f32.mrf.mxu0 }
 0x389   : > { %v11109_v30 = vpop.f32.mrf.mxu1 }
 0x38b   : > { %v7589_v46 = vpop.f32.mrf.mxu1 }
 0x38c   : > { %v11114_v63 = vadd.f32 %v7589_v46, %v11000_v5  ;;  %v11132_v5 = vpop.f32.mrf.mxu0 }
 0x38d   : > { %v11116_v57 = vpop.f32.mrf.mxu1 }
 0x38f   : > { %v7590_v12 = vpop.f32.mrf.mxu1 }
 0x390   : > { %v11121_v60 = vadd.f32 %v7590_v12, %v11009_v28  ;;  %v11139_v28 = vpop.f32.mrf.mxu0 }
 0x391   : > { %v11123_v9 = vpop.f32.mrf.mxu1 }
 0x393   : > { %v7593_v47 = vpop.f32.mrf.mxu1 }
 0x394   : > { %v11128_v0 = vadd.f32 %v7593_v47, %v11017_v45  ;;  %v11146_v45 = vpop.f32.mrf.mxu0 }
 0x395   : > { %v11130_v25 = vpop.f32.mrf.mxu1 }
 0x396   : > { %12126 = vst [vmem:[#allocation90_spill] sm:$0xff] %v11128_v0 }
 0x397   : > { %v7594_v46 = vpop.f32.mrf.mxu1 }
 0x398   : > { %v11135_v32 = vadd.f32 %v7594_v46, %v11025_v41  ;;  %v11153_v41 = vpop.f32.mrf.mxu0 }
 0x399   : > { %v11137_v13 = vpop.f32.mrf.mxu1 }
 0x39a   : > { %12127 = vst [vmem:[#allocation92_spill] sm:$0xff] %v11135_v32  ;;  %12128 = vst [vmem:[#allocation94_spill] sm:$0xff] %v11137_v13 }
 0x39b   : > { %v7597_v12 = vpop.f32.mrf.mxu1 }
 0x39c   : > { %v11142_v17 = vadd.f32 %v7597_v12, %v11033_v40  ;;  %v11160_v40 = vpop.f32.mrf.mxu0 }
 0x39d   : > { %v11144_v50 = vpop.f32.mrf.mxu1 }
 0x39e   : > { %12129 = vst [vmem:[#allocation53_spill] sm:$0xff] %v11142_v17  ;;  %12130 = vst [vmem:[#allocation97_spill] sm:$0xff] %v11144_v50 }
 0x39f   : > { %v7598_v47 = vpop.f32.mrf.mxu1 }
 0x3a0   : > { %v11149_v0 = vadd.f32 %v7598_v47, %v11041_v51  ;;  %v11167_v51 = vpop.f32.mrf.mxu0 }
 0x3a1   : > { %v11151_v29 = vpop.f32.mrf.mxu1 }
 0x3a2   : > { %12131 = vst [vmem:[#allocation54_spill] sm:$0xff] %v11149_v0  ;;  %12132 = vst [vmem:[#allocation55_spill] sm:$0xff] %v11151_v29 }
 0x3a3   : > { %v7601_v46 = vpop.f32.mrf.mxu1 }
 0x3a4   : > { %v11156_v32 = vadd.f32 %v7601_v46, %v11049_v58  ;;  %v4480_v58 = vadd.f32 %v10928_v16, %v10944_v42  ;;  %v11176_v46 = vpop.f32.mrf.mxu0 }
 0x3a5   : > { %v11158_v13 = vpop.f32.mrf.mxu1 }
 0x3a6   : > { %12133 = vst [vmem:[#allocation56_spill] sm:$0xff] %v11156_v32  ;;  %12134 = vst [vmem:[#allocation57_spill] sm:$0xff] %v11158_v13  ;;  %v4686_v13 = vadd.f32 %v4559_v62, %v4480_v58  ;;  %v4484_v62 = vadd.f32 %v10948_v2, %v10962_v3  ;;  %v4485_v3 = vadd.f32 %v10957_v48, %v10971_v36 }
 0x3a7   : > { %v7602_v12 = vpop.f32.mrf.mxu1  ;;  %v4488_v36 = vadd.f32 %v10966_v7, %v10980_v18 }
 0x3a8   : > { %v11163_v17 = vadd.f32 %v7602_v12, %v11057_v27  ;;  %v4902_v16 = vadd.f32 %v11078_v19, %v4686_v13 }
 0x3a9   : > { %v11165_v50 = vpop.f32.mrf.mxu1 }
 0x3aa   : > { %12135 = vst [vmem:[#allocation58_spill] sm:$0xff] %v11163_v17  ;;  %12136 = vst [vmem:[#allocation96_spill] sm:$0xff] %v11165_v50  ;;  %v4481_v17 = vadd.f32 %v10937_v39, %v10953_v14  ;;  %v11185_v50 = vpop.f32.mrf.mxu0  ;;  %v4905_v39 = vadd.f32 %v11083_v38, %v11081_v10  ;;  %v11199_v14 = vld [vmem:[%s11696_s4] ss:$0 sm:$0xff] }
 0x3ab   : > { %v7605_v47 = vpop.f32.mrf.mxu1 }
 0x3ac   : > { %v11170_v0 = vadd.f32 %v7605_v47, %v11065_v4  ;;  %v4687_v47 = vadd.f32 %v4562_v35, %v4481_v17 }
 0x3ad   : > { %v11172_v29 = vpop.f32.mrf.mxu1 }
 0x3ae   : > { %12137 = vst [vmem:[#allocation98_spill] sm:$0xff] %v11170_v0  ;;  %v4904_v0 = vadd.f32 %v11068_v53, %v11076_v43  ;;  %v4690_v53 = vadd.f32 %v11088_v55, %v4484_v62  ;;  %v4903_v2 = vadd.f32 %v11090_v31, %v4687_v47  ;;  %v4908_v31 = vadd.f32 %v11097_v34, %v11086_v21 }
 0x3af   : > { %v7606_v32 = vpop.f32.mrf.mxu1  ;;  %v4909_v62 = vadd.f32 %v11111_v8, %v11093_v20  ;;  %v4489_v20 = vadd.f32 %v10975_v11, %v10989_v59 }
 0x3b0   : > { %v11179_v27 = vadd.f32 %v7606_v32, %v11073_v61  ;;  %v11192_v32 = vpop.f32.mrf.mxu0  ;;  %v4906_v48 = vadd.f32 %v11104_v44, %v4690_v53 }
 0x3b1   : > { %v11181_v12 = vpop.f32.mrf.mxu1 }
 0x3b2   : > { %v11206_v19 = vpop.f32.mrf.mxu0 }
 0x3b3   : > { %v7645_v4 = vpop.f32.mrf.mxu1 }
 0x3b4   : > { %v5117_v61 = vadd.f32 %v7645_v4, %v4904_v0  ;;  %v4691_v4 = vadd.f32 %v11095_v56, %v4485_v3  ;;  %v11220_v56 = vpop.f32.mrf.mxu0 }
 0x3b5   : > { %v4988_v42 = vpop.f32.mrf.mxu1 }
 0x3b6   : > { %v5115_v58 = vadd.f32 %v4988_v42, %v4902_v16  ;;  %v5156_v10 = vadd.f32 %v11199_v14, %v5117_v61  ;;  %v4907_v44 = vadd.f32 %v11118_v23, %v4691_v4  ;;  %v4912_v4 = vadd.f32 %v11125_v24, %v11100_v54 }
 0x3b7   : > { %v7646_v17 = vpop.f32.mrf.mxu1  ;;  %v4913_v54 = vadd.f32 %v11139_v28, %v11107_v37  ;;  %v4493_v37 = vadd.f32 %v10993_v22, %v11007_v26 }
 0x3b8   : > { %v5154_v13 = vadd.f32 %v11199_v14, %v5115_v58  ;;  %v5118_v43 = vadd.f32 %v7646_v17, %v4905_v39  ;;  %v5188_v61 = vmax.f32 %v5156_v10, 0.0 }
 0x3b9   : > { %v4991_v0 = vpop.f32.mrf.mxu1 }
 0x3ba   : > { %v5186_v35 = vmax.f32 %v5154_v13, 0.0  ;;  %v5116_v38 = vadd.f32 %v4991_v0, %v4903_v2  ;;  %v5157_v55 = vadd.f32 %v11199_v14, %v5118_v43  ;;  %v4694_v13 = vadd.f32 %v11102_v49, %v4488_v36  ;;  %v11231_v49 = vpop.f32.mrf.mxu0 }
 0x3bb   : > { %v7649_v16 = vpop.f32.mrf.mxu1  ;;  %v5584_v3 = vsel %vm2729_vm5, %v5188_v61, 0.0 }
 0x3bc   : > { %v5155_v42 = vadd.f32 %v11199_v14, %v5116_v38  ;;  %7679 = vmatprep.mubr.msk.f32.mxu0 %vm2729_vm5, %v5186_v35  ;;  %v5121_v39 = vadd.f32 %v7649_v16, %v4908_v31  ;;  %v5581_v21 = vsel %vm2729_vm5, %v5186_v35, 0.0  ;;  %v5189_v53 = vmax.f32 %v5157_v55, 0.0  ;;  %v11248_v24 = vpop.f32.mrf.mxu0 }
 0x3bd   : > { %v5004_v47 = vpop.f32.mrf.mxu1  ;;  %v4695_v35 = vadd.f32 %v11109_v30, %v4489_v20  ;;  %v4492_v31 = vadd.f32 %v10984_v6, %v10998_v52 }
 0x3be   : > { %v5187_v58 = vmax.f32 %v5155_v42, 0.0  ;;  %v5119_v17 = vadd.f32 %v5004_v47, %v4906_v48  ;;  %v5160_v23 = vadd.f32 %v11199_v14, %v5121_v39  ;;  %v5586_v11 = vsel %vm2729_vm5, %v5189_v53, 0.0 }
 0x3bf   : > { %v7650_v34 = vpop.f32.mrf.mxu1  ;;  %v4910_v42 = vadd.f32 %v11132_v5, %v4694_v13  ;;  %v4698_v5 = vadd.f32 %v11116_v57, %v4492_v31  ;;  %v4911_v6 = vadd.f32 %v11146_v45, %v4695_v35  ;;  %v11260_v57 = vpop.f32.mrf.mxu0 }
 0x3c0   : > { %v5582_v7 = vsel %vm2729_vm5, %v5187_v58, 0.0  ;;  %v5158_v18 = vadd.f32 %v11199_v14, %v5119_v17  ;;  %v5122_v43 = vadd.f32 %v7650_v34, %v4909_v62  ;;  %7680 = vmatmul.mubr.msk.f32.vlgmr.msra.gmra.mxu0 %vm2729_vm5, %v5187_v58  ;;  %v5192_v47 = vmax.f32 %v5160_v23, 0.0 }
 0x3c1   : > { %v5583_v8 = vadd.f32 %v5582_v7, %v5581_v21  ;;  %v5007_v2 = vpop.f32.mrf.mxu1  ;;  %7682 = vmatprep.mubr.msk.f32.mxu0 %vm2729_vm5, %v5188_v61  ;;  %v4914_v23 = vadd.f32 %v11160_v40, %v4698_v5 }
 0x3c2   : > { %v5190_v0 = vmax.f32 %v5158_v18, 0.0  ;;  %v5120_v10 = vadd.f32 %v5007_v2, %v4907_v44  ;;  %v5161_v59 = vadd.f32 %v11199_v14, %v5122_v43  ;;  %v5592_v45 = vsel %vm2729_vm5, %v5192_v47, 0.0 }
 0x3c3   : > { %v5585_v38 = vadd.f32 %v5584_v3, %v5583_v8  ;;  %v7653_v16 = vpop.f32.mrf.mxu1  ;;  %v4699_v43 = vadd.f32 %v11123_v9, %v4493_v37  ;;  %v4916_v8 = vadd.f32 %v11153_v41, %v11114_v63  ;;  %v4917_v63 = vadd.f32 %v11167_v51, %v11121_v60  ;;  %v11276_v41 = vpop.f32.mrf.mxu0  ;;  %v12138_v60 = vld [vmem:[#allocation87_spill] sm:$0xff]  ;;  %v12142_v37 = vld [vmem:[#allocation16_spill] sm:$0xff] }
 0x3c4   : > { %v5159_v55 = vadd.f32 %v11199_v14, %v5120_v10  ;;  %7683 = vmatmul.mubr.msk.f32.gmra.mxu0 %vm2729_vm5, %v5189_v53  ;;  %v5125_v30 = vadd.f32 %v7653_v16, %v4912_v4  ;;  %v5588_v62 = vsel %vm2729_vm5, %v5190_v0, 0.0  ;;  %v5193_v52 = vmax.f32 %v5161_v59, 0.0 }
 0x3c5   : > { %v5587_v48 = vadd.f32 %v5586_v11, %v5585_v38  ;;  %v5020_v36 = vpop.f32.mrf.mxu1  ;;  %7685 = vmatprep.mubr.msk.f32.mxu0 %vm2729_vm5, %v5190_v0  ;;  %v4496_v0 = vadd.f32 %v11002_v33, %v11015_v15  ;;  %v4915_v33 = vadd.f32 %v11176_v46, %v4699_v43  ;;  %v4497_v51 = vadd.f32 %v12138_v60, %v11023_v1 }
 0x3c6   : > { %v5191_v61 = vmax.f32 %v5159_v55, 0.0  ;;  %v5123_v58 = vadd.f32 %v5020_v36, %v4910_v42  ;;  %v5164_v44 = vadd.f32 %v11199_v14, %v5125_v30  ;;  %v5594_v22 = vsel %vm2729_vm5, %v5193_v52, 0.0 }
 0x3c7   : > { %v5589_v39 = vadd.f32 %v5588_v62, %v5587_v48  ;;  %v7654_v17 = vpop.f32.mrf.mxu1  ;;  %v4702_v40 = vadd.f32 %v11130_v25, %v4496_v0  ;;  %v11287_v25 = vpop.f32.mrf.mxu0 }
 0x3c8   : > { %v5590_v13 = vsel %vm2729_vm5, %v5191_v61, 0.0  ;;  %v5162_v21 = vadd.f32 %v11199_v14, %v5123_v58  ;;  %v5126_v34 = vadd.f32 %v7654_v17, %v4913_v54  ;;  %7686 = vmatmul.mubr.msk.f32.gmra.mxu0 %vm2729_vm5, %v5191_v61  ;;  %v5196_v10 = vmax.f32 %v5164_v44, 0.0  ;;  %v12139_v61 = vld [vmem:[#allocation94_spill] sm:$0xff] }
 0x3c9   : > { %v5591_v28 = vadd.f32 %v5590_v13, %v5589_v39  ;;  %v5023_v53 = vpop.f32.mrf.mxu1  ;;  %7688 = vmatprep.mubr.msk.f32.mxu0 %vm2729_vm5, %v5192_v47  ;;  %v4703_v58 = vadd.f32 %v12139_v61, %v4497_v51  ;;  %v12140_v39 = vld [vmem:[#allocation90_spill] sm:$0xff] }
 0x3ca   : > { %v5194_v7 = vmax.f32 %v5162_v21, 0.0  ;;  %v5124_v18 = vadd.f32 %v5023_v53, %v4911_v6  ;;  %v5165_v26 = vadd.f32 %v11199_v14, %v5126_v34  ;;  %v5600_v54 = vsel %vm2729_vm5, %v5196_v10, 0.0  ;;  %v12141_v34 = vld [vmem:[#allocation51_spill] sm:$0xff] }
 0x3cb   : > { %v5593_v20 = vadd.f32 %v5592_v45, %v5591_v28  ;;  %v7657_v2 = vpop.f32.mrf.mxu1  ;;  %v4920_v17 = vadd.f32 %v11185_v50, %v12140_v39  ;;  %v4918_v21 = vadd.f32 %v11192_v32, %v4702_v40  ;;  %v4500_v28 = vadd.f32 %v12142_v37, %v12141_v34  ;;  %v12143_v50 = vld [vmem:[#allocation92_spill] sm:$0xff] }
 0x3cc   : > { %v5163_v3 = vadd.f32 %v11199_v14, %v5124_v18  ;;  %7689 = vmatmul.mubr.msk.f32.gmra.mxu0 %vm2729_vm5, %v5193_v52  ;;  %v5596_v38 = vsel %vm2729_vm5, %v5194_v7, 0.0  ;;  %v5129_v16 = vadd.f32 %v7657_v2, %v4916_v8  ;;  %v5197_v15 = vmax.f32 %v5165_v26, 0.0  ;;  %v11304_v18 = vpop.f32.mrf.mxu0 }
 0x3cd   : > { %v5595_v9 = vadd.f32 %v5594_v22, %v5593_v20  ;;  %v5036_v35 = vpop.f32.mrf.mxu1  ;;  %7691 = vmatprep.mubr.msk.f32.mxu0 %vm2729_vm5, %v5194_v7  ;;  %v4921_v7 = vadd.f32 %v11206_v19, %v12143_v50  ;;  %v12144_v22 = vld [vmem:[#allocation97_spill] sm:$0xff]  ;;  %v12145_v19 = vld [vmem:[#allocation52_spill] sm:$0xff] }
 0x3ce   : > { %v5195_v4 = vmax.f32 %v5163_v3, 0.0  ;;  %v5127_v11 = vadd.f32 %v5036_v35, %v4914_v23  ;;  %v5168_v46 = vadd.f32 %v11199_v14, %v5129_v16  ;;  %v5602_v1 = vsel %vm2729_vm5, %v5197_v15, 0.0  ;;  %v7636_v40 = vpop.f32.mrf.mxu0 }
 0x3cf   : > { %v5597_v59 = vadd.f32 %v5596_v38, %v5595_v9  ;;  %v7658_v55 = vpop.f32.mrf.mxu1  ;;  %v4706_v32 = vadd.f32 %v12144_v22, %v4500_v28  ;;  %v4919_v23 = vadd.f32 %v11220_v56, %v4703_v58 }
 0x3d0   : > { %v5598_v42 = vsel %vm2729_vm5, %v5195_v4, 0.0  ;;  %v5166_v31 = vadd.f32 %v11199_v14, %v5127_v11  ;;  %v5130_v48 = vadd.f32 %v7658_v55, %v4917_v63  ;;  %7692 = vmatmul.mubr.msk.f32.gmra.mxu0 %vm2729_vm5, %v5195_v4  ;;  %v5200_v43 = vmax.f32 %v5168_v46, 0.0  ;;  %v12146_v63 = vld [vmem:[#allocation89_spill] sm:$0xff]  ;;  %v12149_v46 = vld [vmem:[#allocation80_spill] sm:$0xff] }
 0x3d1   : > { %v5599_v30 = vadd.f32 %v5598_v42, %v5597_v59  ;;  %v5039_v36 = vpop.f32.mrf.mxu1  ;;  %7694 = vmatprep.mubr.msk.f32.mxu0 %vm2729_vm5, %v5196_v10  ;;  %v4501_v38 = vadd.f32 %v12146_v63, %v12145_v19 }
 0x3d2   : > { %v5198_v47 = vmax.f32 %v5166_v31, 0.0  ;;  %v5128_v62 = vadd.f32 %v5039_v36, %v4915_v33  ;;  %v5169_v52 = vadd.f32 %v11199_v14, %v5130_v48  ;;  %v5608_v56 = vsel %vm2729_vm5, %v5200_v43, 0.0  ;;  %v12147_v33 = vld [vmem:[#allocation55_spill] sm:$0xff]  ;;  %v12148_v31 = vld [vmem:[#allocation53_spill] sm:$0xff] }
 0x3d3   : > { %v5601_v5 = vadd.f32 %v5600_v54, %v5599_v30  ;;  %v7661_v6 = vpop.f32.mrf.mxu1  ;;  %v4924_v48 = vadd.f32 %v11231_v49, %v12148_v31  ;;  %v4922_v54 = vadd.f32 %v11248_v24, %v4706_v32  ;;  %v12151_v49 = vld [vmem:[#allocation54_spill] sm:$0xff] }
 0x3d4   : > { %v5167_v13 = vadd.f32 %v11199_v14, %v5128_v62  ;;  %7695 = vmatmul.mubr.msk.f32.gmra.mxu0 %vm2729_vm5, %v5197_v15  ;;  %v5133_v53 = vadd.f32 %v7661_v6, %v4920_v17  ;;  %v5604_v20 = vsel %vm2729_vm5, %v5198_v47, 0.0  ;;  %v5201_v0 = vmax.f32 %v5169_v52, 0.0  ;;  %v4874_v17 = vpop.f32.mrf.mxu0 }
 0x3d5   : > { %v5603_v44 = vadd.f32 %v5602_v1, %v5601_v5  ;;  %v5052_v45 = vpop.f32.mrf.mxu1  ;;  %7697 = vmatprep.mubr.msk.f32.mxu0 %vm2729_vm5, %v5198_v47  ;;  %v4707_v15 = vadd.f32 %v12147_v33, %v4501_v38  ;;  %v12150_v47 = vld [vmem:[#allocation91_spill] sm:$0xff]  ;;  %v4925_v39 = vadd.f32 %v11260_v57, %v12151_v49  ;;  %v12153_v57 = vld [vmem:[#allocation84_spill] sm:$0xff] }
 0x3d6   : > { %v5199_v8 = vmax.f32 %v5167_v13, 0.0  ;;  %v5131_v2 = vadd.f32 %v5052_v45, %v4918_v21  ;;  %v5172_v16 = vadd.f32 %v11199_v14, %v5133_v53  ;;  %v5610_v51 = vsel %vm2729_vm5, %v5201_v0, 0.0  ;;  %v12152_v21 = vld [vmem:[#allocation57_spill] sm:$0xff] }
 0x3d7   : > { %v5605_v26 = vadd.f32 %v5604_v20, %v5603_v44  ;;  %v7662_v3 = vpop.f32.mrf.mxu1  ;;  %v4504_v62 = vadd.f32 %v12150_v47, %v12149_v46  ;;  %v4923_v28 = vadd.f32 %v11276_v41, %v4707_v15  ;;  %v7639_v44 = vpop.f32.mrf.mxu0 }
 0x3d8   : > { %v5606_v10 = vsel %vm2729_vm5, %v5199_v8, 0.0  ;;  %v5170_v9 = vadd.f32 %v11199_v14, %v5131_v2  ;;  %v5134_v35 = vadd.f32 %v7662_v3, %v4921_v7  ;;  %7698 = vmatmul.mubr.msk.f32.gmra.mxu0 %vm2729_vm5, %v5199_v8  ;;  %v5204_v61 = vmax.f32 %v5172_v16, 0.0  ;;  %v12155_v3 = vld [vmem:[#allocation96_spill] sm:$0xff] }
 0x3d9   : > { %v5607_v4 = vadd.f32 %v5606_v10, %v5605_v26  ;;  %v5055_v11 = vpop.f32.mrf.mxu1  ;;  %7700 = vmatprep.mubr.msk.f32.mxu0 %vm2729_vm5, %v5200_v43  ;;  %v4710_v34 = vadd.f32 %v12152_v21, %v4504_v62  ;;  %v12154_v43 = vld [vmem:[#allocation93_spill] sm:$0xff]  ;;  %v12156_v10 = vld [vmem:[#allocation56_spill] sm:$0xff]  ;;  %v4887_v19 = vpop.f32.mrf.mxu0 }
 0x3da   : > { %v5202_v59 = vmax.f32 %v5170_v9, 0.0  ;;  %v5132_v55 = vadd.f32 %v5055_v11, %v4919_v23  ;;  %v5173_v30 = vadd.f32 %v11199_v14, %v5134_v35  ;;  %v4505_v20 = vadd.f32 %v12154_v43, %v12153_v57  ;;  %v12157_v11 = vld [vmem:[#allocation95_spill] sm:$0xff] }
 0x3db   : > { %v5609_v42 = vadd.f32 %v5608_v56, %v5607_v4  ;;  %v7665_v60 = vpop.f32.mrf.mxu1  ;;  %v5616_v22 = vsel %vm2729_vm5, %v5204_v61, 0.0  ;;  %v4928_v9 = vadd.f32 %v11287_v25, %v12156_v10  ;;  %v4926_v16 = vadd.f32 %v11304_v18, %v4710_v34  ;;  %v12158_v56 = vld [vmem:[#allocation82_spill] sm:$0xff]  ;;  %v7640_v46 = vpop.f32.mrf.mxu0 }
 0x3dc   : > { %v5171_v36 = vadd.f32 %v11199_v14, %v5132_v55  ;;  %7701 = vmatmul.mubr.msk.f32.gmra.mxu0 %vm2729_vm5, %v5201_v0  ;;  %v5612_v6 = vsel %vm2729_vm5, %v5202_v59, 0.0  ;;  %v5137_v52 = vadd.f32 %v7665_v60, %v4924_v48  ;;  %v5205_v53 = vmax.f32 %v5173_v30, 0.0  ;;  %v12159_v25 = vld [vmem:[#allocation58_spill] sm:$0xff] }
 0x3dd   : > { %v5611_v58 = vadd.f32 %v5610_v51, %v5609_v42  ;;  %v5068_v5 = vpop.f32.mrf.mxu1  ;;  %7703 = vmatprep.mubr.msk.f32.mxu0 %vm2729_vm5, %v5202_v59  ;;  %v4711_v23 = vadd.f32 %v12155_v3, %v4505_v20  ;;  %v4508_v59 = vadd.f32 %v12158_v56, %v12157_v11  ;;  %v4929_v42 = vadd.f32 %v7636_v40, %v12159_v25  ;;  %v12160_v40 = vld [vmem:[#allocation88_spill] sm:$0xff] }
 0x3de   : > { %v5203_v1 = vmax.f32 %v5171_v36, 0.0  ;;  %v5135_v13 = vadd.f32 %v5068_v5, %v4922_v54  ;;  %v5176_v41 = vadd.f32 %v11199_v14, %v5137_v52  ;;  %v5618_v63 = vsel %vm2729_vm5, %v5205_v53, 0.0  ;;  %v12161_v5 = vld [vmem:[#allocation86_spill] sm:$0xff] }
 0x3df   : > { %v5613_v24 = vadd.f32 %v5612_v6, %v5611_v58  ;;  %v7666_v37 = vpop.f32.mrf.mxu1  ;;  %v4714_v30 = vadd.f32 %v11172_v29, %v4508_v59  ;;  %v4927_v18 = vadd.f32 %v4874_v17, %v4711_v23  ;;  %v4509_v49 = vadd.f32 %v12161_v5, %v12160_v40  ;;  %v11451_v5 = vld [vmem:[#allocation3] ss:$0 sm:$0xff] }
 0x3e0   : > { %v5614_v45 = vsel %vm2729_vm5, %v5203_v1, 0.0  ;;  %v5174_v50 = vadd.f32 %v11199_v14, %v5135_v13  ;;  %v5138_v7 = vadd.f32 %v7666_v37, %v4925_v39  ;;  %7704 = vmatmul.mubr.msk.f32.gmra.mxu0 %vm2729_vm5, %v5203_v1  ;;  %v5208_v31 = vmax.f32 %v5176_v41, 0.0  ;;  %v12162_v13 = vld [vmem:[#allocation98_spill] sm:$0xff] }
 0x3e1   : > { %v5615_v8 = vadd.f32 %v5614_v45, %v5613_v24  ;;  %v5071_v2 = vpop.f32.mrf.mxu1  ;;  %7706 = vmatprep.mubr.msk.f32.mxu0 %vm2729_vm5, %v5204_v61  ;;  %v4932_v21 = vadd.f32 %v7639_v44, %v12162_v13  ;;  %v4715_v34 = vadd.f32 %v11181_v12, %v4509_v49  ;;  %v4933_v57 = vadd.f32 %v7640_v46, %v11179_v27 }
 0x3e2   : > { %v5206_v32 = vmax.f32 %v5174_v50, 0.0  ;;  %v5136_v26 = vadd.f32 %v5071_v2, %v4923_v28  ;;  %v5177_v38 = vadd.f32 %v11199_v14, %v5138_v7  ;;  %v5624_v29 = vsel %vm2729_vm5, %v5208_v31, 0.0 }
 0x3e3   : > { %v5617_v0 = vadd.f32 %v5616_v22, %v5615_v8  ;;  %v7669_v35 = vpop.f32.mrf.mxu1  ;;  %v4930_v28 = vadd.f32 %v4887_v19, %v4714_v30  ;;  %v12163_v40 = vmov 0.0  }
 0x3e4   : > { %v5175_v4 = vadd.f32 %v11199_v14, %v5136_v26  ;;  %7707 = vmatmul.mubr.msk.f32.gmra.mxu0 %vm2729_vm5, %v5205_v53  ;;  %v5141_v33 = vadd.f32 %v7669_v35, %v4928_v9  ;;  %v5620_v48 = vsel %vm2729_vm5, %v5206_v32, 0.0  ;;  %v5209_v47 = vmax.f32 %v5177_v38, 0.0  ;;  %v4890_v53 = vpop.f32.mrf.mxu0  ;;  %5880 = vst.msk [vmem:[%s9154_s25 + $0x10] sm:$0x3] %vm5879_vm8, %v12163_v40  ;;  %5883 = vst.msk [vmem:[%s9154_s25 + $0x28] sm:$0x3] %vm5879_vm8, %v12163_v40 }
 0x3e5   : > { %v5619_v55 = vadd.f32 %v5618_v63, %v5617_v0  ;;  %v5084_v15 = vpop.f32.mrf.mxu1  ;;  %7709 = vmatprep.mubr.msk.f32.mxu0 %vm2729_vm5, %v5206_v32  ;;  %v4931_v41 = vadd.f32 %v4890_v53, %v4715_v34  ;;  %5931 = vst.msk [vmem:[%s9154_s25 + $0x1a8] sm:$0x3] %vm5879_vm8, %v12163_v40  ;;  %5886 = vst.msk [vmem:[%s9154_s25 + $0x40] sm:$0x3] %vm5879_vm8, %v12163_v40 }
 0x3e6   : > { %v5207_v60 = vmax.f32 %v5175_v4, 0.0  ;;  %v5139_v51 = vadd.f32 %v5084_v15, %v4926_v16  ;;  %v5180_v6 = vadd.f32 %v11199_v14, %v5141_v33  ;;  %v5626_v45 = vsel %vm2729_vm5, %v5209_v47, 0.0  ;;  %5889 = vst.msk [vmem:[%s9154_s25 + $0x58] sm:$0x3] %vm5879_vm8, %v12163_v40  ;;  %5892 = vst.msk [vmem:[%s9154_s25 + $0x70] sm:$0x3] %vm5879_vm8, %v12163_v40 }
 0x3e7   : > { %v5621_v36 = vadd.f32 %v5620_v48, %v5619_v55  ;;  %v7670_v54 = vpop.f32.mrf.mxu1  ;;  %5895 = vst.msk [vmem:[%s9154_s25 + $0x88] sm:$0x3] %vm5879_vm8, %v12163_v40  ;;  %5898 = vst.msk [vmem:[%s9154_s25 + $0xa0] sm:$0x3] %vm5879_vm8, %v12163_v40 }
 0x3e8   : > { %v5622_v62 = vsel %vm2729_vm5, %v5207_v60, 0.0  ;;  %v5178_v61 = vadd.f32 %v11199_v14, %v5139_v51  ;;  %v5142_v58 = vadd.f32 %v7670_v54, %v4929_v42  ;;  %7710 = vmatmul.mubr.msk.f32.gmra.mxu0 %vm2729_vm5, %v5207_v60  ;;  %v5212_v43 = vmax.f32 %v5180_v6, 0.0  ;;  %5901 = vst.msk [vmem:[%s9154_s25 + $0xb8] sm:$0x3] %vm5879_vm8, %v12163_v40  ;;  %5904 = vst.msk [vmem:[%s9154_s25 + $0xd0] sm:$0x3] %vm5879_vm8, %v12163_v40 }
 0x3e9   : > { %v5623_v39 = vadd.f32 %v5622_v62, %v5621_v36  ;;  %v5087_v1 = vpop.f32.mrf.mxu1  ;;  %7712 = vmatprep.mubr.msk.f32.mxu0 %vm2729_vm5, %v5208_v31  ;;  %5907 = vst.msk [vmem:[%s9154_s25 + $0xe8] sm:$0x3] %vm5879_vm8, %v12163_v40  ;;  %5910 = vst.msk [vmem:[%s9154_s25 + $0x100] sm:$0x3] %vm5879_vm8, %v12163_v40 }
 0x3ea   : > { %v5210_v17 = vmax.f32 %v5178_v61, 0.0  ;;  %v5140_v52 = vadd.f32 %v5087_v1, %v4927_v18  ;;  %v5181_v50 = vadd.f32 %v11199_v14, %v5142_v58  ;;  %v5632_v27 = vsel %vm2729_vm5, %v5212_v43, 0.0  ;;  %5913 = vst.msk [vmem:[%s9154_s25 + $0x118] sm:$0x3] %vm5879_vm8, %v12163_v40  ;;  %5916 = vst.msk [vmem:[%s9154_s25 + $0x130] sm:$0x3] %vm5879_vm8, %v12163_v40 }
 0x3eb   : > { %v5625_v24 = vadd.f32 %v5624_v29, %v5623_v39  ;;  %v7673_v37 = vpop.f32.mrf.mxu1  ;;  %v7975_v58 = vmov 0   ;;  %5919 = vst.msk [vmem:[%s9154_s25 + $0x148] sm:$0x3] %vm5879_vm8, %v12163_v40  ;;  %5922 = vst.msk [vmem:[%s9154_s25 + $0x160] sm:$0x3] %vm5879_vm8, %v12163_v40 }
 0x3ec   : > { %v5179_v7 = vadd.f32 %v11199_v14, %v5140_v52  ;;  %7713 = vmatmul.mubr.msk.f32.gmra.mxu0 %vm2729_vm5, %v5209_v47  ;;  %v5628_v12 = vsel %vm2729_vm5, %v5210_v17, 0.0  ;;  %v5145_v2 = vadd.f32 %v7673_v37, %v4932_v21  ;;  %v5213_v3 = vmax.f32 %v5181_v50, 0.0  ;;  %7772 = vset.pattern.permute.xlu0 %v7975_v58  ;;  %5925 = vst.msk [vmem:[%s9154_s25 + $0x178] sm:$0x3] %vm5879_vm8, %v12163_v40 }
 0x3ed   : > { %v5627_v20 = vadd.f32 %v5626_v45, %v5625_v24  ;;  %v5100_v8 = vpop.f32.mrf.mxu1  ;;  %7715 = vmatprep.mubr.msk.f32.mxu0 %vm2729_vm5, %v5210_v17  ;;  %7773 = vset.pattern.permute.xlu1 %v7975_v58  ;;  %5928 = vst.msk [vmem:[%s9154_s25 + $0x190] sm:$0x3] %vm5879_vm8, %v12163_v40 }
 0x3ee   : > { %v5211_v44 = vmax.f32 %v5179_v7, 0.0  ;;  %v5143_v22 = vadd.f32 %v5100_v8, %v4930_v28  ;;  %v5184_v19 = vadd.f32 %v11199_v14, %v5145_v2  ;;  %v5634_v11 = vsel %vm2729_vm5, %v5213_v3, 0.0 }
 0x3ef   : > { %v5629_v32 = vadd.f32 %v5628_v12, %v5627_v20  ;;  %v7674_v26 = vpop.f32.mrf.mxu1 }
 0x3f0   : > { %v5630_v23 = vsel %vm2729_vm5, %v5211_v44, 0.0  ;;  %v5182_v0 = vadd.f32 %v11199_v14, %v5143_v22  ;;  %v5146_v10 = vadd.f32 %v7674_v26, %v4933_v57  ;;  %7716 = vmatmul.mubr.msk.f32.gmra.mxu0 %vm2729_vm5, %v5211_v44  ;;  %v5216_v55 = vmax.f32 %v5184_v19, 0.0 }
 0x3f1   : > { %v5631_v9 = vadd.f32 %v5630_v23, %v5629_v32  ;;  %v5103_v35 = vpop.f32.mrf.mxu1  ;;  %7718 = vmatprep.mubr.msk.f32.mxu0 %vm2729_vm5, %v5212_v43 }
 0x3f2   : > { %v5214_v63 = vmax.f32 %v5182_v0, 0.0  ;;  %v5185_v38 = vadd.f32 %v11199_v14, %v5146_v10  ;;  %v5144_v4 = vadd.f32 %v5103_v35, %v4931_v41 }
 0x3f3   : > { %v5633_v16 = vadd.f32 %v5632_v27, %v5631_v9 }
 0x3f4   : > { %v5183_v56 = vadd.f32 %v11199_v14, %v5144_v4  ;;  %7719 = vmatmul.mubr.msk.f32.gmra.mxu0 %vm2729_vm5, %v5213_v3  ;;  %v5636_v33 = vsel %vm2729_vm5, %v5214_v63, 0.0  ;;  %v5217_v42 = vmax.f32 %v5185_v38, 0.0  ;;  %v5640_v14 = vsel %vm2729_vm5, %v5216_v55, 0.0 }
 0x3f5   : > { %v5635_v59 = vadd.f32 %v5634_v11, %v5633_v16  ;;  %7721 = vmatprep.mubr.msk.f32.mxu0 %vm2729_vm5, %v5214_v63 }
 0x3f6   : > { %v5215_v15 = vmax.f32 %v5183_v56, 0.0  ;;  %v5642_v51 = vsel %vm2729_vm5, %v5217_v42, 0.0 }
 0x3f7   : > { %v5637_v25 = vadd.f32 %v5636_v33, %v5635_v59 }
 0x3f8   : > { %v5638_v31 = vsel %vm2729_vm5, %v5215_v15, 0.0  ;;  %7722 = vmatmul.mubr.msk.f32.gmra.mxu0 %vm2729_vm5, %v5215_v15 }
 0x3f9   : > { %v5639_v48 = vadd.f32 %v5638_v31, %v5637_v25  ;;  %7724 = vmatprep.mubr.msk.f32.mxu0 %vm2729_vm5, %v5216_v55 }
 0x3fb   : > { %v5641_v60 = vadd.f32 %v5640_v14, %v5639_v48 }
 0x3fc   : > { %7725 = vmatmul.mubr.msk.f32.gmra.mxu0 %vm2729_vm5, %v5217_v42 }
 0x3fd   : > { %v5643_v30 = vadd.f32 %v5642_v51, %v5641_v60 }
 0x3ff   : > { %v5644_v36 = vrot.slane %v5643_v30, 4 }
 0x401   : > { %v5645_v54 = vadd.f32 %v5644_v36, %v5643_v30 }
 0x403   : > { %v5646_v18 = vrot.slane %v5645_v54, 2 }
 0x405   : > { %v5647_v46 = vadd.f32 %v5646_v18, %v5645_v54 }
 0x407   : > { %v5648_v47 = vrot.slane %v5647_v46, 1 }
 0x409   : > { %v5649_v62 = vadd.f32 %v5648_v47, %v5647_v46 }
 0x40b   : > { %v5650_v61 = vmul.f32 0.00390625, %v5649_v62 }
 0x40d   : > { %5652 = vst.msk [vmem:[%s11393_s30] sm:$0x1] %vm5651_vm7, %v5650_v61 }
 0x480   : > { %v7681_v49 = vpop.f32.mrf.mxu0 }
 0x481   : > { %v5395_v39 = vadd.f32 %v7681_v49, %v11451_v5 }
 0x482   : > { %v5389_v6 = vpop.f32.mrf.mxu0 }
 0x483   : > { %5550 = vst.msk [vmem:[%s11456_s22 + $0x8] sm:$0xff] %vm5548_vm9, %v5395_v39  ;;  %v6656_v1 = vmul.f32 -1.442695, %v5395_v39  ;;  %v5390_v29 = vadd.f32 %v11451_v5, %v5389_v6 }
 0x484   : > { %v7684_v17 = vpop.f32.mrf.mxu0 }
 0x485   : > { %7783 = vpow2.f32 %v6656_v1  ;;  %5549 = vst.msk [vmem:[%s11456_s22] sm:$0xff] %vm5548_vm9, %v5390_v29  ;;  %v6655_v52 = vmul.f32 -1.442695, %v5390_v29  ;;  %v5405_v13 = vadd.f32 %v7684_v17, %v11451_v5 }
 0x486   : > { %v5399_v21 = vpop.f32.mrf.mxu0 }
 0x487   : > { %7785 = vpow2.f32 %v6655_v52  ;;  %5552 = vst.msk [vmem:[%s11456_s22 + $0x18] sm:$0xff] %vm5548_vm9, %v5405_v13  ;;  %v6658_v34 = vmul.f32 -1.442695, %v5405_v13  ;;  %v5400_v24 = vadd.f32 %v11451_v5, %v5399_v21 }
 0x488   : > { %v7687_v37 = vpop.f32.mrf.mxu0 }
 0x489   : > { %7787 = vpow2.f32 %v6658_v34  ;;  %5551 = vst.msk [vmem:[%s11456_s22 + $0x10] sm:$0xff] %vm5548_vm9, %v5400_v24  ;;  %v6657_v28 = vmul.f32 -1.442695, %v5400_v24  ;;  %v5415_v53 = vadd.f32 %v7687_v37, %v11451_v5 }
 0x48a   : > { %v5409_v45 = vpop.f32.mrf.mxu0 }
 0x48b   : > { %7789 = vpow2.f32 %v6657_v28  ;;  %5554 = vst.msk [vmem:[%s11456_s22 + $0x28] sm:$0xff] %vm5548_vm9, %v5415_v53  ;;  %v6660_v50 = vmul.f32 -1.442695, %v5415_v53  ;;  %v5410_v7 = vadd.f32 %v11451_v5, %v5409_v45 }
 0x48c   : > { %v7690_v57 = vpop.f32.mrf.mxu0 }
 0x48d   : > { %7791 = vpow2.f32 %v6660_v50  ;;  %5553 = vst.msk [vmem:[%s11456_s22 + $0x20] sm:$0xff] %vm5548_vm9, %v5410_v7  ;;  %v6659_v43 = vmul.f32 -1.442695, %v5410_v7  ;;  %v5425_v20 = vadd.f32 %v7690_v57, %v11451_v5 }
 0x48e   : > { %v5419_v8 = vpop.f32.mrf.mxu0 }
 0x48f   : > { %7793 = vpow2.f32 %v6659_v43  ;;  %5556 = vst.msk [vmem:[%s11456_s22 + $0x38] sm:$0xff] %vm5548_vm9, %v5425_v20  ;;  %v6662_v12 = vmul.f32 -1.442695, %v5425_v20  ;;  %v5420_v44 = vadd.f32 %v11451_v5, %v5419_v8 }
 0x490   : > { %v7693_v2 = vpop.f32.mrf.mxu0 }
 0x491   : > { %7795 = vpow2.f32 %v6662_v12  ;;  %5555 = vst.msk [vmem:[%s11456_s22 + $0x30] sm:$0xff] %vm5548_vm9, %v5420_v44  ;;  %v6661_v22 = vmul.f32 -1.442695, %v5420_v44  ;;  %v5435_v41 = vadd.f32 %v7693_v2, %v11451_v5 }
 0x492   : > { %v7784_v32 = vpop.eup %7783  ;;  %v5429_v26 = vpop.f32.mrf.mxu0 }
 0x493   : > { %7797 = vpow2.f32 %v6661_v22  ;;  %5558 = vst.msk [vmem:[%s11456_s22 + $0x48] sm:$0xff] %vm5548_vm9, %v5435_v41  ;;  %v6664_v3 = vmul.f32 -1.442695, %v5435_v41  ;;  %v5430_v23 = vadd.f32 %v11451_v5, %v5429_v26  ;;  %v5750_v0 = vadd.f32 1.0, %v7784_v32 }
 0x494   : > { %v7786_v10 = vpop.eup %7785  ;;  %v7696_v27 = vpop.f32.mrf.mxu0 }
 0x495   : > { %v5749_v9 = vadd.f32 1.0, %v7786_v10  ;;  %7799 = vpow2.f32 %v6664_v3  ;;  %5557 = vst.msk [vmem:[%s11456_s22 + $0x40] sm:$0xff] %vm5548_vm9, %v5430_v23  ;;  %v6663_v35 = vmul.f32 -1.442695, %v5430_v23  ;;  %v5445_v19 = vadd.f32 %v7696_v27, %v11451_v5 }
 0x496   : > { %v7788_v63 = vpop.eup %7787  ;;  %v5439_v38 = vpop.f32.mrf.mxu0  ;;  %7801 = vrcp.f32 %v5750_v0 }
 0x497   : > { %7803 = vrcp.f32 %v5749_v9  ;;  %5560 = vst.msk [vmem:[%s11456_s22 + $0x58] sm:$0xff] %vm5548_vm9, %v5445_v19  ;;  %v6666_v4 = vmul.f32 -1.442695, %v5445_v19  ;;  %v5440_v16 = vadd.f32 %v11451_v5, %v5439_v38  ;;  %v5752_v11 = vadd.f32 1.0, %v7788_v63 }
 0x498   : > { %v7790_v56 = vpop.eup %7789  ;;  %7805 = vpow2.f32 %v6663_v35  ;;  %v7699_v59 = vpop.f32.mrf.mxu0 }
 0x499   : > { %v5751_v55 = vadd.f32 1.0, %v7790_v56  ;;  %7807 = vpow2.f32 %v6666_v4  ;;  %5559 = vst.msk [vmem:[%s11456_s22 + $0x50] sm:$0xff] %vm5548_vm9, %v5440_v16  ;;  %v6665_v33 = vmul.f32 -1.442695, %v5440_v16  ;;  %v5455_v15 = vadd.f32 %v7699_v59, %v11451_v5 }
 0x49a   : > { %v7792_v25 = vpop.eup %7791  ;;  %v5449_v42 = vpop.f32.mrf.mxu0  ;;  %7809 = vrcp.f32 %v5752_v11 }
 0x49b   : > { %7811 = vrcp.f32 %v5751_v55  ;;  %v5754_v31 = vadd.f32 1.0, %v7792_v25  ;;  %5562 = vst.msk [vmem:[%s11456_s22 + $0x68] sm:$0xff] %vm5548_vm9, %v5455_v15  ;;  %v6668_v48 = vmul.f32 -1.442695, %v5455_v15  ;;  %v5450_v14 = vadd.f32 %v11451_v5, %v5449_v42 }
 0x49c   : > { %v7794_v60 = vpop.eup %7793  ;;  %7813 = vpow2.f32 %v6665_v33  ;;  %v7702_v51 = vpop.f32.mrf.mxu0 }
 0x49d   : > { %7815 = vrcp.f32 %v5754_v31  ;;  %v5753_v30 = vadd.f32 1.0, %v7794_v60  ;;  %5561 = vst.msk [vmem:[%s11456_s22 + $0x60] sm:$0xff] %vm5548_vm9, %v5450_v14  ;;  %v6667_v36 = vmul.f32 -1.442695, %v5450_v14  ;;  %v5465_v54 = vadd.f32 %v7702_v51, %v11451_v5 }
 0x49e   : > { %v7796_v18 = vpop.eup %7795  ;;  %7817 = vpow2.f32 %v6668_v48  ;;  %v5459_v46 = vpop.f32.mrf.mxu0 }
 0x49f   : > { %7819 = vrcp.f32 %v5753_v30  ;;  %v5756_v47 = vadd.f32 1.0, %v7796_v18  ;;  %5564 = vst.msk [vmem:[%s11456_s22 + $0x78] sm:$0xff] %vm5548_vm9, %v5465_v54  ;;  %v6670_v62 = vmul.f32 -1.442695, %v5465_v54  ;;  %v5460_v61 = vadd.f32 %v11451_v5, %v5459_v46 }
 0x4a0   : > { %v7798_v58 = vpop.eup %7797  ;;  %7821 = vpow2.f32 %v6667_v36  ;;  %v7705_v40 = vpop.f32.mrf.mxu0 }
 0x4a1   : > { %7823 = vrcp.f32 %v5756_v47  ;;  %v5755_v49 = vadd.f32 1.0, %v7798_v58  ;;  %5563 = vst.msk [vmem:[%s11456_s22 + $0x70] sm:$0xff] %vm5548_vm9, %v5460_v61  ;;  %v6669_v39 = vmul.f32 -1.442695, %v5460_v61  ;;  %v5475_v6 = vadd.f32 %v7705_v40, %v11451_v5 }
 0x4a2   : > { %v7800_v1 = vpop.eup %7799  ;;  %7825 = vpow2.f32 %v6670_v62  ;;  %v5469_v29 = vpop.f32.mrf.mxu0 }
 0x4a3   : > { %v7802_v17 = vpop.eup %7801  ;;  %7827 = vrcp.f32 %v5755_v49  ;;  %v5758_v52 = vadd.f32 1.0, %v7800_v1  ;;  %5566 = vst.msk [vmem:[%s11456_s22 + $0x88] sm:$0xff] %vm5548_vm9, %v5475_v6  ;;  %v6672_v13 = vmul.f32 -1.442695, %v5475_v6  ;;  %v5470_v21 = vadd.f32 %v11451_v5, %v5469_v29 }
 0x4a4   : > { %v7804_v34 = vpop.eup %7803  ;;  %7829 = vpow2.f32 %v6669_v39  ;;  %v7708_v24 = vpop.f32.mrf.mxu0  ;;  %v5846_v37 = vadd.f32 1.0, %v7802_v17 }
 0x4a5   : > { %v7806_v28 = vpop.eup %7805  ;;  %7831 = vrcp.f32 %v5758_v52  ;;  %5565 = vst.msk [vmem:[%s11456_s22 + $0x80] sm:$0xff] %vm5548_vm9, %v5470_v21  ;;  %v6671_v53 = vmul.f32 -1.442695, %v5470_v21  ;;  %v5485_v45 = vadd.f32 %v7708_v24, %v11451_v5  ;;  %v5845_v41 = vadd.f32 1.0, %v7804_v34 }
 0x4a6   : > { %v7808_v50 = vpop.eup %7807  ;;  %v5757_v7 = vadd.f32 1.0, %v7806_v28  ;;  %7833 = vpow2.f32 %v6672_v13  ;;  %5939 = vperm.xlu0 %7772, %v5846_v37   ;;  %v5479_v57 = vpop.f32.mrf.mxu0 }
 0x4a7   : > { %v7810_v43 = vpop.eup %7809  ;;  %v5760_v20 = vadd.f32 1.0, %v7808_v50  ;;  %7835 = vpow2.f32 %v6671_v53  ;;  %5568 = vst.msk [vmem:[%s11456_s22 + $0x98] sm:$0xff] %vm5548_vm9, %v5485_v45  ;;  %v6674_v8 = vmul.f32 -1.442695, %v5485_v45  ;;  %v5480_v12 = vadd.f32 %v11451_v5, %v5479_v57 }
 0x4a8   : > { %v7812_v44 = vpop.eup %7811  ;;  %7837 = vrcp.f32 %v5757_v7  ;;  %v7711_v2 = vpop.f32.mrf.mxu0  ;;  %v5848_v22 = vadd.f32 1.0, %v7810_v43 }
 0x4a9   : > { %v7814_v32 = vpop.eup %7813  ;;  %7839 = vrcp.f32 %v5760_v20  ;;  %5567 = vst.msk [vmem:[%s11456_s22 + $0x90] sm:$0xff] %vm5548_vm9, %v5480_v12  ;;  %v6673_v26 = vmul.f32 -1.442695, %v5480_v12  ;;  %v5495_v3 = vadd.f32 %v7711_v2, %v11451_v5  ;;  %v5847_v4 = vadd.f32 1.0, %v7812_v44 }
 0x4aa   : > { %v7816_v23 = vpop.eup %7815  ;;  %v5759_v0 = vadd.f32 1.0, %v7814_v32  ;;  %7841 = vpow2.f32 %v6674_v8  ;;  %5949 = vperm.xlu1 %7773, %v5848_v22   ;;  %5934 = vperm.xlu0 %7772, %v5845_v41   ;;  %v5489_v10 = vpop.f32.mrf.mxu0 }
 0x4ab   : > { %v7818_v27 = vpop.eup %7817  ;;  %7843 = vpow2.f32 %v6673_v26  ;;  %5570 = vst.msk [vmem:[%s11456_s22 + $0xa8] sm:$0xff] %vm5548_vm9, %v5495_v3  ;;  %v6676_v9 = vmul.f32 -1.442695, %v5495_v3  ;;  %v5490_v35 = vadd.f32 %v11451_v5, %v5489_v10  ;;  %v5850_v51 = vadd.f32 1.0, %v7816_v23 }
 0x4ac   : > { %v7820_v19 = vpop.eup %7819  ;;  %7845 = vrcp.f32 %v5759_v0  ;;  %v5762_v63 = vadd.f32 1.0, %v7818_v27  ;;  %v7714_v38 = vpop.f32.mrf.mxu0 }
 0x4ad   : > { %v7822_v16 = vpop.eup %7821  ;;  %7847 = vpow2.f32 %v6676_v9  ;;  %5569 = vst.msk [vmem:[%s11456_s22 + $0xa0] sm:$0xff] %vm5548_vm9, %v5490_v35  ;;  %v6675_v11 = vmul.f32 -1.442695, %v5490_v35  ;;  %v5505_v56 = vadd.f32 %v7714_v38, %v11451_v5  ;;  %v5849_v59 = vadd.f32 1.0, %v7820_v19 }
 0x4ae   : > { %v7824_v55 = vpop.eup %7823  ;;  %7849 = vrcp.f32 %v5762_v63  ;;  %v5761_v33 = vadd.f32 1.0, %v7822_v16  ;;  %5944 = vperm.xlu1 %7773, %v5847_v4   ;;  %v5499_v15 = vpop.f32.mrf.mxu0 }
 0x4af   : > { %v7826_v25 = vpop.eup %7825  ;;  %7851 = vpow2.f32 %v6675_v11  ;;  %5572 = vst.msk [vmem:[%s11456_s22 + $0xb8] sm:$0xff] %vm5548_vm9, %v5505_v56  ;;  %v6678_v42 = vmul.f32 -1.442695, %v5505_v56  ;;  %v5500_v31 = vadd.f32 %v11451_v5, %v5499_v15  ;;  %5954 = vperm.xlu0 %7772, %v5849_v59   ;;  %v5852_v1 = vadd.f32 1.0, %v7824_v55 }
 0x4b0   : > { %v7828_v48 = vpop.eup %7827  ;;  %7853 = vrcp.f32 %v5761_v33  ;;  %v5764_v14 = vadd.f32 1.0, %v7826_v25  ;;  %v7717_v60 = vpop.f32.mrf.mxu0 }
 0x4b1   : > { %v7830_v30 = vpop.eup %7829  ;;  %7855 = vpow2.f32 %v6678_v42  ;;  %5571 = vst.msk [vmem:[%s11456_s22 + $0xb0] sm:$0xff] %vm5548_vm9, %v5500_v31  ;;  %v6677_v36 = vmul.f32 -1.442695, %v5500_v31  ;;  %v5515_v54 = vadd.f32 %v7717_v60, %v11451_v5  ;;  %v5851_v18 = vadd.f32 1.0, %v7828_v48 }
 0x4b2   : > { %v7832_v46 = vpop.eup %7831  ;;  %7857 = vrcp.f32 %v5764_v14  ;;  %v5763_v47 = vadd.f32 1.0, %v7830_v30  ;;  %5959 = vperm.xlu1 %7773, %v5850_v51   ;;  %v5509_v62 = vpop.f32.mrf.mxu0 }
 0x4b3   : > { %v7834_v61 = vpop.eup %7833  ;;  %7859 = vpow2.f32 %v6677_v36  ;;  %5574 = vst.msk [vmem:[%s11456_s22 + $0xc8] sm:$0xff] %vm5548_vm9, %v5515_v54  ;;  %v6680_v58 = vmul.f32 -1.442695, %v5515_v54  ;;  %v5510_v40 = vadd.f32 %v11451_v5, %v5509_v62  ;;  %5964 = vperm.xlu0 %7772, %v5851_v18   ;;  %v5854_v57 = vadd.f32 1.0, %v7832_v46 }
 0x4b4   : > { %v7836_v49 = vpop.eup %7835  ;;  %7861 = vrcp.f32 %v5763_v47  ;;  %v5766_v39 = vadd.f32 1.0, %v7834_v61  ;;  %v7720_v6 = vpop.f32.mrf.mxu0 }
 0x4b5   : > { %v7838_v29 = vpop.eup %7837  ;;  %v5765_v17 = vadd.f32 1.0, %v7836_v49  ;;  %7863 = vpow2.f32 %v6680_v58  ;;  %5573 = vst.msk [vmem:[%s11456_s22 + $0xc0] sm:$0xff] %vm5548_vm9, %v5510_v40  ;;  %v6679_v52 = vmul.f32 -1.442695, %v5510_v40  ;;  %v5525_v13 = vadd.f32 %v7720_v6, %v11451_v5 }
 0x4b6   : > { %v7840_v21 = vpop.eup %7839  ;;  %7865 = vrcp.f32 %v5766_v39  ;;  %5969 = vperm.xlu1 %7773, %v5852_v1   ;;  %v5519_v34 = vpop.f32.mrf.mxu0  ;;  %v5853_v24 = vadd.f32 1.0, %v7838_v29 }
 0x4b7   : > { %v7842_v37 = vpop.eup %7841  ;;  %7867 = vrcp.f32 %v5765_v17  ;;  %5576 = vst.msk [vmem:[%s11456_s22 + $0xd8] sm:$0xff] %vm5548_vm9, %v5525_v13  ;;  %v6682_v28 = vmul.f32 -1.442695, %v5525_v13  ;;  %v5520_v53 = vadd.f32 %v11451_v5, %v5519_v34  ;;  %v5856_v10 = vadd.f32 1.0, %v7840_v21 }
 0x4b8   : > { %v7844_v45 = vpop.eup %7843  ;;  %v5768_v50 = vadd.f32 1.0, %v7842_v37  ;;  %7869 = vpow2.f32 %v6679_v52  ;;  %5974 = vperm.xlu0 %7772, %v5853_v24   ;;  %v7723_v7 = vpop.f32.mrf.mxu0 }
 0x4b9   : > { %v7846_v43 = vpop.eup %7845  ;;  %v5767_v20 = vadd.f32 1.0, %v7844_v45  ;;  %7871 = vpow2.f32 %v6682_v28  ;;  %5575 = vst.msk [vmem:[%s11456_s22 + $0xd0] sm:$0xff] %vm5548_vm9, %v5520_v53  ;;  %v6681_v8 = vmul.f32 -1.442695, %v5520_v53  ;;  %v5535_v12 = vadd.f32 %v7723_v7, %v11451_v5 }
 0x4ba   : > { %v7848_v44 = vpop.eup %7847  ;;  %7873 = vrcp.f32 %v5768_v50  ;;  %5979 = vperm.xlu1 %7773, %v5854_v57   ;;  %v5529_v2 = vpop.f32.mrf.mxu0  ;;  %v5855_v22 = vadd.f32 1.0, %v7846_v43 }
 0x4bb   : > { %v7850_v41 = vpop.eup %7849  ;;  %7875 = vrcp.f32 %v5767_v20  ;;  %v5770_v32 = vadd.f32 1.0, %v7848_v44  ;;  %5578 = vst.msk [vmem:[%s11456_s22 + $0xe8] sm:$0xff] %vm5548_vm9, %v5535_v12  ;;  %v6684_v26 = vmul.f32 -1.442695, %v5535_v12  ;;  %v5530_v3 = vadd.f32 %v11451_v5, %v5529_v2 }
 0x4bc   : > { %v7852_v23 = vpop.eup %7851  ;;  %7877 = vpow2.f32 %v6681_v8  ;;  %5984 = vperm.xlu0 %7772, %v5855_v22   ;;  %v7726_v0 = vpop.f32.mrf.mxu0  ;;  %v5858_v33 = vadd.f32 1.0, %v7850_v41 }
 0x4bd   : > { %v7854_v27 = vpop.eup %7853  ;;  %7879 = vrcp.f32 %v5770_v32  ;;  %v5769_v9 = vadd.f32 1.0, %v7852_v23  ;;  %5577 = vst.msk [vmem:[%s11456_s22 + $0xe0] sm:$0xff] %vm5548_vm9, %v5530_v3  ;;  %v6683_v35 = vmul.f32 -1.442695, %v5530_v3  ;;  %v5545_v19 = vadd.f32 %v7726_v0, %v11451_v5 }
 0x4be   : > { %v7856_v63 = vpop.eup %7855  ;;  %7881 = vpow2.f32 %v6684_v26  ;;  %5989 = vperm.xlu1 %7773, %v5856_v10   ;;  %v5539_v38 = vpop.f32.mrf.mxu0  ;;  %v5857_v4 = vadd.f32 1.0, %v7854_v27 }
 0x4bf   : > { %v7858_v16 = vpop.eup %7857  ;;  %7883 = vrcp.f32 %v5769_v9  ;;  %v5772_v11 = vadd.f32 1.0, %v7856_v63  ;;  %5580 = vst.msk [vmem:[%s11456_s22 + $0xf8] sm:$0xff] %vm5548_vm9, %v5545_v19  ;;  %v6686_v56 = vmul.f32 -1.442695, %v5545_v19  ;;  %v5540_v59 = vadd.f32 %v11451_v5, %v5539_v38 }
 0x4c0   : > { %v7860_v55 = vpop.eup %7859  ;;  %7885 = vpow2.f32 %v6683_v35  ;;  %5994 = vperm.xlu0 %7772, %v5857_v4   ;;  %v5860_v5 = vadd.f32 1.0, %v7858_v16 }
 0x4c1   : > { %v7862_v15 = vpop.eup %7861  ;;  %7887 = vrcp.f32 %v5772_v11  ;;  %v5771_v25 = vadd.f32 1.0, %v7860_v55  ;;  %5579 = vst.msk [vmem:[%s11456_s22 + $0xf0] sm:$0xff] %vm5548_vm9, %v5540_v59  ;;  %v6685_v42 = vmul.f32 -1.442695, %v5540_v59  ;;  %s7917_s22 = scalar_lea.vmem %s7916_s17, 32 }
 0x4c2   : > { %v7864_v31 = vpop.eup %7863  ;;  %7889 = vpow2.f32 %v6686_v56  ;;  %5999 = vperm.xlu1 %7773, %v5858_v33   ;;  %v5859_v48 = vadd.f32 1.0, %v7862_v15  ;;  %p7919_p1 = scmp.lt.s32.totalorder %s7917_s22, %s7911_s10 }
 0x4c3   : > { %v7866_v14 = vpop.eup %7865  ;;  %7891 = vrcp.f32 %v5771_v25  ;;  %v5774_v60 = vadd.f32 1.0, %v7864_v31 }
 0x4c4   : > { %v7868_v51 = vpop.eup %7867  ;;  %7893 = vpow2.f32 %v6685_v42  ;;  %6004 = vperm.xlu0 %7772, %v5859_v48   ;;  %v5862_v61 = vadd.f32 1.0, %v7866_v14  ;;  %p7920_p2 = por %p7919_p1, %p7918_p0 }
 0x4c5   : > { %v7870_v30 = vpop.eup %7869  ;;  %v5861_v36 = vadd.f32 1.0, %v7868_v51  ;;  %7895 = vrcp.f32 %v5774_v60 }
 0x4c6   : > { %v7872_v54 = vpop.eup %7871  ;;  %v5773_v18 = vadd.f32 1.0, %v7870_v30  ;;  %6009 = vperm.xlu1 %7773, %v5860_v5   ;;  %p7921_p3 = pnand %p7920_p2, %p7914_p13 }
 0x4c7   : > { %v7874_v46 = vpop.eup %7873  ;;  %v5776_v47 = vadd.f32 1.0, %v7872_v54 }
 0x4c8   : > { %v7876_v62 = vpop.eup %7875  ;;  %7897 = vrcp.f32 %v5773_v18  ;;  %6014 = vperm.xlu0 %7772, %v5861_v36   ;;  %v5864_v17 = vadd.f32 1.0, %v7874_v46 }
 0x4c9   : > { %v7878_v58 = vpop.eup %7877  ;;  %v5863_v40 = vadd.f32 1.0, %v7876_v62  ;;  %7899 = vrcp.f32 %v5776_v47 }
 0x4ca   : > { %v7880_v49 = vpop.eup %7879  ;;  %v5775_v39 = vadd.f32 1.0, %v7878_v58  ;;  %6019 = vperm.xlu1 %7773, %v5862_v61  }
 0x4cb   : > { %v7882_v6 = vpop.eup %7881  ;;  %v5866_v53 = vadd.f32 1.0, %v7880_v49 }
 0x4cc   : > { %v7884_v1 = vpop.eup %7883  ;;  %7901 = vrcp.f32 %v5775_v39  ;;  %v5778_v29 = vadd.f32 1.0, %v7882_v6  ;;  %6024 = vperm.xlu0 %7772, %v5863_v40  }
 0x4cd   : > { %v7886_v52 = vpop.eup %7885  ;;  %v5865_v13 = vadd.f32 1.0, %v7884_v1 }
 0x4ce   : > { %v7888_v21 = vpop.eup %7887  ;;  %v5777_v34 = vadd.f32 1.0, %v7886_v52  ;;  %6029 = vperm.xlu1 %7773, %v5864_v17   ;;  %7903 = vrcp.f32 %v5778_v29 }
 0x4cf   : > { %v7890_v24 = vpop.eup %7889  ;;  %v5868_v43 = vadd.f32 1.0, %v7888_v21 }
 0x4d0   : > { %v7892_v37 = vpop.eup %7891  ;;  %7905 = vrcp.f32 %v5777_v34  ;;  %v5780_v28 = vadd.f32 1.0, %v7890_v24  ;;  %6034 = vperm.xlu0 %7772, %v5865_v13  }
 0x4d1   : > { %v7894_v45 = vpop.eup %7893  ;;  %v5867_v50 = vadd.f32 1.0, %v7892_v37 }
 0x4d2   : > { %v5779_v7 = vadd.f32 1.0, %v7894_v45  ;;  %6039 = vperm.xlu1 %7773, %v5866_v53   ;;  %7907 = vrcp.f32 %v5780_v28  ;;  %v7896_v57 = vpop.eup %7895 }
 0x4d3   : > { %v5870_v44 = vadd.f32 1.0, %v7896_v57 }
 0x4d4   : > { %7909 = vrcp.f32 %v5779_v7  ;;  %6044 = vperm.xlu0 %7772, %v5867_v50  }
 0x4d5   : > { %v7898_v20 = vpop.eup %7897 }
 0x4d6   : > { %6049 = vperm.xlu1 %7773, %v5868_v43   ;;  %v5869_v8 = vadd.f32 1.0, %v7898_v20  ;;  %v7900_v12 = vpop.eup %7899 }
 0x4d7   : > { %v5872_v32 = vadd.f32 1.0, %v7900_v12 }
 0x4d8   : > { %6054 = vperm.xlu0 %7772, %v5869_v8  }
 0x4d9   : > { %v7902_v2 = vpop.eup %7901 }
 0x4da   : > { %6059 = vperm.xlu1 %7773, %v5870_v44   ;;  %v5871_v22 = vadd.f32 1.0, %v7902_v2 }
 0x4db   : > { %v7904_v41 = vpop.eup %7903 }
 0x4dc   : > { %6064 = vperm.xlu0 %7772, %v5871_v22   ;;  %v5874_v0 = vadd.f32 1.0, %v7904_v41 }
 0x4dd   : > { %v7906_v26 = vpop.eup %7905 }
 0x4de   : > { %6069 = vperm.xlu1 %7773, %v5872_v32   ;;  %v5873_v3 = vadd.f32 1.0, %v7906_v26 }
 0x4df   : > { %v7908_v23 = vpop.eup %7907 }
 0x4e0   : > { %6074 = vperm.xlu0 %7772, %v5873_v3   ;;  %v5876_v9 = vadd.f32 1.0, %v7908_v23 }
 0x4e1   : > { %v7910_v10 = vpop.eup %7909 }
 0x4e2   : > { %6079 = vperm.xlu1 %7773, %v5874_v0   ;;  %v5875_v27 = vadd.f32 1.0, %v7910_v10 }
 0x4e4   : > { %6084 = vperm.xlu0 %7772, %v5875_v27  }
 0x4e6   : > { %6089 = vperm.xlu1 %7773, %v5876_v9  }
 0x4e7   : > { %7924 = shalt.err (!%p7921_p3)
}
 0x4e8   : > { %s7925_s6 = scalar_lea.hbm %s11558_s24, 16  ;;  %s7929_s26 = scalar_lea.hbm %s11700_s8, 32 }
 0x4e9   : > { %p7926_p4 = scmp.ne.s32.totalorder %s11558_s24, %s7925_s6  ;;  %p7930_p9 = scmp.lt.s32.totalorder %s11558_s24, %s11700_s8 }
 0x4ea   : > { %p7931_p10 = scmp.lt.s32.totalorder %s7929_s26, %s7925_s6 }
 0x4eb   : > { %p7927_p7 = pnand %p7926_p4, %p8068_p5 }
 0x4ec   : > { %p7932_p11 = por %p7931_p10, %p7930_p9 }
 0x4ed   : > { %p7928_p8 = pneg %p7927_p7 }
 0x4ef   : > { %p7933_p12 = pnand %p7932_p11, %p7928_p8 }
 0x4f1   : > { %7936 = shalt.err (!%p7933_p12)
}
 0x4f2   : > { %7730 = dma.vmem_to_hbm [thread:$0]  (%p8068_p5), %s6184_s29, 16, %s11558_s24, %s6163_s27   ;;  %v12164_v19 = vld [vmem:[#allocation11_spill] sm:$0xff]  ;;  %v12165_v16 = vld [vmem:[#allocation18_spill] sm:$0xff]  ;;  %v12167_v33 = vld [vmem:[#allocation17_spill] sm:$0xff] }
 0x4f3   : > { %v12166_v56 = vld [vmem:[#allocation10_spill] sm:$0xff]  ;;  %v12168_v42 = vld [vmem:[#allocation24_spill] sm:$0xff]  ;;  %v12171_v54 = vld [vmem:[#allocation33_spill] sm:$0xff] }
 0x4f4   : > { %v12169_v14 = vld [vmem:[#allocation26_spill] sm:$0xff]  ;;  %v12172_v47 = vld [vmem:[#allocation39_spill] sm:$0xff]  ;;  %v12173_v58 = vld [vmem:[#allocation40_spill] sm:$0xff] }
 0x4f5   : > { %v12170_v5 = vld [vmem:[#allocation30_spill] sm:$0xff]  ;;  %v12174_v39 = vld [vmem:[#allocation43_spill] sm:$0xff]  ;;  %v12175_v29 = vld [vmem:[#allocation44_spill] sm:$0xff] }
 0x4f6   : > { %v12176_v13 = vld [vmem:[#allocation47_spill] sm:$0xff]  ;;  %v12177_v24 = vld [vmem:[#allocation48_spill] sm:$0xff]  ;;  %v12180_v20 = vld [vmem:[#allocation14_spill] sm:$0xff] }
 0x4f7   : > { %v12178_v53 = vld [vmem:[#allocation7_spill] sm:$0xff]  ;;  %v12179_v7 = vld [vmem:[#allocation8_spill] sm:$0xff]  ;;  %v12182_v41 = vld [vmem:[#allocation21_spill] sm:$0xff] }
 0x4f8   : > { %v12181_v44 = vld [vmem:[#allocation15_spill] sm:$0xff]  ;;  %v12183_v3 = vld [vmem:[#allocation22_spill] sm:$0xff] }
 0x4f9   : > { %v12184_v10 = vld [vmem:[#allocation27_spill] sm:$0xff] }
 0x521   : > { %v5940_v35 = vpop.permute.xlu0 %5939 }
 0x522   : > { %v6093_v63 = vmul.f32 %v5940_v35, %v12164_v19  ;;  %v12185_v35 = vld [vmem:[#allocation29_spill] sm:$0xff] }
 0x524   : > { %6688 = vst.msk [vmem:[%s9154_s25 + $0x21] sm:$0xff] %vm608_vm3, %v6093_v63 }
 0x525   : > { %v5950_v38 = vpop.permute.xlu1 %5949  ;;  %v5935_v4 = vpop.permute.xlu0 %5934 }
 0x526   : > { %v6095_v11 = vmul.f32 %v5950_v38, %v12165_v16  ;;  %v6092_v59 = vmul.f32 %v5935_v4, %v12166_v56  ;;  %v12186_v38 = vld [vmem:[#allocation35_spill] sm:$0xff] }
 0x528   : > { %6690 = vst.msk [vmem:[%s9154_s25 + $0x39] sm:$0xff] %vm608_vm3, %v6095_v11  ;;  %6687 = vst.msk [vmem:[%s9154_s25 + $0x19] sm:$0xff] %vm608_vm3, %v6092_v59  ;;  %v12187_v11 = vld [vmem:[#allocation37_spill] sm:$0xff] }
 0x529   : > { %v5945_v55 = vpop.permute.xlu1 %5944 }
 0x52a   : > { %v6094_v15 = vmul.f32 %v5945_v55, %v12167_v33  ;;  %v5955_v25 = vpop.permute.xlu0 %5954  ;;  %v12188_v55 = vld [vmem:[#allocation41_spill] sm:$0xff] }
 0x52b   : > { %v6096_v31 = vmul.f32 %v5955_v25, %v12168_v42  ;;  %v12189_v25 = vld [vmem:[#allocation42_spill] sm:$0xff] }
 0x52c   : > { %6689 = vst.msk [vmem:[%s9154_s25 + $0x31] sm:$0xff] %vm608_vm3, %v6094_v15 }
 0x52d   : > { %6691 = vst.msk [vmem:[%s9154_s25 + $0x49] sm:$0xff] %vm608_vm3, %v6096_v31  ;;  %v5960_v48 = vpop.permute.xlu1 %5959 }
 0x52e   : > { %v6097_v60 = vmul.f32 %v5960_v48, %v12169_v14  ;;  %v5965_v51 = vpop.permute.xlu0 %5964  ;;  %v12190_v48 = vld [vmem:[#allocation45_spill] sm:$0xff] }
 0x52f   : > { %v6098_v30 = vmul.f32 %v5965_v51, %v12170_v5  ;;  %v12191_v51 = vld [vmem:[#allocation46_spill] sm:$0xff] }
 0x530   : > { %6692 = vst.msk [vmem:[%s9154_s25 + $0x51] sm:$0xff] %vm608_vm3, %v6097_v60 }
 0x531   : > { %6693 = vst.msk [vmem:[%s9154_s25 + $0x61] sm:$0xff] %vm608_vm3, %v6098_v30  ;;  %v5970_v36 = vpop.permute.xlu1 %5969 }
 0x532   : > { %v6099_v18 = vmul.f32 %v5970_v36, %v12171_v54  ;;  %v12192_v36 = vld [vmem:[#allocation49_spill] sm:$0xff] }
 0x533   : > { %v5975_v46 = vpop.permute.xlu0 %5974 }
 0x534   : > { %6694 = vst.msk [vmem:[%s9154_s25 + $0x69] sm:$0xff] %vm608_vm3, %v6099_v18  ;;  %v6100_v62 = vmul.f32 %v5975_v46, %v12172_v47  ;;  %v12193_v46 = vld [vmem:[#allocation50_spill] sm:$0xff] }
 0x535   : > { %v5980_v61 = vpop.permute.xlu1 %5979 }
 0x536   : > { %6695 = vst.msk [vmem:[%s9154_s25 + $0x79] sm:$0xff] %vm608_vm3, %v6100_v62  ;;  %v6101_v40 = vmul.f32 %v5980_v61, %v12173_v58  ;;  %v12194_v61 = vld [vmem:[#allocation12_spill] sm:$0xff] }
 0x537   : > { %v5985_v49 = vpop.permute.xlu0 %5984 }
 0x538   : > { %6696 = vst.msk [vmem:[%s9154_s25 + $0x81] sm:$0xff] %vm608_vm3, %v6101_v40  ;;  %v6102_v6 = vmul.f32 %v5985_v49, %v12174_v39  ;;  %v12195_v49 = vld [vmem:[#allocation19_spill] sm:$0xff] }
 0x539   : > { %v5990_v1 = vpop.permute.xlu1 %5989 }
 0x53a   : > { %6697 = vst.msk [vmem:[%s9154_s25 + $0x91] sm:$0xff] %vm608_vm3, %v6102_v6  ;;  %v6103_v17 = vmul.f32 %v5990_v1, %v12175_v29 }
 0x53b   : > { %v5995_v52 = vpop.permute.xlu0 %5994 }
 0x53c   : > { %6698 = vst.msk [vmem:[%s9154_s25 + $0x99] sm:$0xff] %vm608_vm3, %v6103_v17  ;;  %v6104_v21 = vmul.f32 %v5995_v52, %v12176_v13 }
 0x53d   : > { %v6000_v34 = vpop.permute.xlu1 %5999 }
 0x53e   : > { %6699 = vst.msk [vmem:[%s9154_s25 + $0xa9] sm:$0xff] %vm608_vm3, %v6104_v21  ;;  %v6105_v37 = vmul.f32 %v6000_v34, %v12177_v24 }
 0x53f   : > { %v6005_v28 = vpop.permute.xlu0 %6004 }
 0x540   : > { %6700 = vst.msk [vmem:[%s9154_s25 + $0xb1] sm:$0xff] %vm608_vm3, %v6105_v37  ;;  %v6106_v45 = vmul.f32 %v6005_v28, %v12178_v53 }
 0x541   : > { %v6010_v50 = vpop.permute.xlu1 %6009 }
 0x542   : > { %6701 = vst.msk [vmem:[%s9154_s25 + $0xc1] sm:$0xff] %vm608_vm3, %v6106_v45  ;;  %v6107_v57 = vmul.f32 %v6010_v50, %v12179_v7 }
 0x543   : > { %v6015_v43 = vpop.permute.xlu0 %6014 }
 0x544   : > { %6702 = vst.msk [vmem:[%s9154_s25 + $0xc9] sm:$0xff] %vm608_vm3, %v6107_v57  ;;  %v6108_v8 = vmul.f32 %v6015_v43, %v12180_v20 }
 0x545   : > { %v6020_v12 = vpop.permute.xlu1 %6019 }
 0x546   : > { %6703 = vst.msk [vmem:[%s9154_s25 + $0xd9] sm:$0xff] %vm608_vm3, %v6108_v8  ;;  %v6109_v2 = vmul.f32 %v6020_v12, %v12181_v44 }
 0x547   : > { %v6025_v22 = vpop.permute.xlu0 %6024 }
 0x548   : > { %6704 = vst.msk [vmem:[%s9154_s25 + $0xe1] sm:$0xff] %vm608_vm3, %v6109_v2  ;;  %v6110_v32 = vmul.f32 %v6025_v22, %v12182_v41 }
 0x549   : > { %v6030_v26 = vpop.permute.xlu1 %6029 }
 0x54a   : > { %6705 = vst.msk [vmem:[%s9154_s25 + $0xf1] sm:$0xff] %vm608_vm3, %v6110_v32  ;;  %v6111_v23 = vmul.f32 %v6030_v26, %v12183_v3 }
 0x54b   : > { %v6035_v0 = vpop.permute.xlu0 %6034 }
 0x54c   : > { %6706 = vst.msk [vmem:[%s9154_s25 + $0xf9] sm:$0xff] %vm608_vm3, %v6111_v23  ;;  %v6112_v27 = vmul.f32 %v6035_v0, %v12184_v10 }
 0x54d   : > { %v6040_v9 = vpop.permute.xlu1 %6039 }
 0x54e   : > { %6707 = vst.msk [vmem:[%s9154_s25 + $0x109] sm:$0xff] %vm608_vm3, %v6112_v27  ;;  %v6113_v19 = vmul.f32 %v6040_v9, %v12185_v35 }
 0x54f   : > { %v6045_v63 = vpop.permute.xlu0 %6044 }
 0x550   : > { %6708 = vst.msk [vmem:[%s9154_s25 + $0x111] sm:$0xff] %vm608_vm3, %v6113_v19  ;;  %v6114_v4 = vmul.f32 %v6045_v63, %v12186_v38 }
 0x551   : > { %v6050_v16 = vpop.permute.xlu1 %6049 }
 0x552   : > { %6709 = vst.msk [vmem:[%s9154_s25 + $0x121] sm:$0xff] %vm608_vm3, %v6114_v4  ;;  %v6115_v56 = vmul.f32 %v6050_v16, %v12187_v11 }
 0x553   : > { %v6055_v59 = vpop.permute.xlu0 %6054 }
 0x554   : > { %6710 = vst.msk [vmem:[%s9154_s25 + $0x129] sm:$0xff] %vm608_vm3, %v6115_v56  ;;  %v6116_v33 = vmul.f32 %v6055_v59, %v12188_v55 }
 0x555   : > { %v6060_v15 = vpop.permute.xlu1 %6059 }
 0x556   : > { %6711 = vst.msk [vmem:[%s9154_s25 + $0x139] sm:$0xff] %vm608_vm3, %v6116_v33  ;;  %v6117_v42 = vmul.f32 %v6060_v15, %v12189_v25 }
 0x557   : > { %v6065_v31 = vpop.permute.xlu0 %6064 }
 0x558   : > { %6712 = vst.msk [vmem:[%s9154_s25 + $0x141] sm:$0xff] %vm608_vm3, %v6117_v42  ;;  %v6118_v14 = vmul.f32 %v6065_v31, %v12190_v48 }
 0x559   : > { %v6070_v60 = vpop.permute.xlu1 %6069 }
 0x55a   : > { %6713 = vst.msk [vmem:[%s9154_s25 + $0x151] sm:$0xff] %vm608_vm3, %v6118_v14  ;;  %v6119_v5 = vmul.f32 %v6070_v60, %v12191_v51 }
 0x55b   : > { %v6075_v30 = vpop.permute.xlu0 %6074 }
 0x55c   : > { %6714 = vst.msk [vmem:[%s9154_s25 + $0x159] sm:$0xff] %vm608_vm3, %v6119_v5  ;;  %v6120_v54 = vmul.f32 %v6075_v30, %v12192_v36 }
 0x55d   : > { %v6080_v18 = vpop.permute.xlu1 %6079 }
 0x55e   : > { %6715 = vst.msk [vmem:[%s9154_s25 + $0x169] sm:$0xff] %vm608_vm3, %v6120_v54  ;;  %v6121_v47 = vmul.f32 %v6080_v18, %v12193_v46 }
 0x55f   : > { %v6085_v62 = vpop.permute.xlu0 %6084 }
 0x560   : > { %6716 = vst.msk [vmem:[%s9154_s25 + $0x171] sm:$0xff] %vm608_vm3, %v6121_v47  ;;  %v6122_v58 = vmul.f32 %v6085_v62, %v12194_v61 }
 0x561   : > { %v6090_v40 = vpop.permute.xlu1 %6089 }
 0x562   : > { %6717 = vst.msk [vmem:[%s9154_s25 + $0x181] sm:$0xff] %vm608_vm3, %v6122_v58  ;;  %v6123_v39 = vmul.f32 %v6090_v40, %v12195_v49 }
 0x564   : > { %6718 = vst.msk [vmem:[%s9154_s25 + $0x189] sm:$0xff] %vm608_vm3, %v6123_v39 }
 0x565 PF: > { %p7736_p5 = scmp.ge.s32.totalorder %s7971_s14, 2  ;;  %s6206_s20 = sand.u32 1, %s7959_s11  }
 0x566   : > { %s6207_s24 = scalar_lea.sflag [#allocation5], %s6206_s20 }
 0x567   : > { %p7733_p13 = pnand %p7736_p5, %p8072_p6 }
 0x569   : > { %p7734_p0 = pneg %p7733_p13 }
 0x56b   : > { %7954 = dma.done.wait (%p7734_p0), %s6207_s24, 16  }
 0x56c   : > { %7956 = vsyncadd (%p7734_p0), %s6207_s24, 4294967280  ;;  %p22_p1 = scmp.ge.s32.totalorder %s8055_s16, 4   ;;  %s12196_s11 = smov %s7963_s12 }
 0x56d   : > { %s12197_s12 = smov %s7967_s13  ;;  %s12198_s13 = smov %s8066_s19 }
 0x56e   : > { %s12199_s14 = smov %s8055_s16  ;;  %24 = sbr.rel (!%p22_p1) target bundleno = 6 (0x6), region = 125 }
 0x573   :  { %6219 = vsyncpa [#allocation5], 1 }
 0x574   :  { %6221 = vsyncpa [#allocation5 + $0x1], 1 }

// kernel: triple_fr_unet_forward.3
= control target key start
LH: loop header
LB: loop body
LE: loop exit
PB: predicated region body
PF: predicated region fallthrough
CT: control target
= control target key end

     0   :  { %s7280_s27 = smov 0   ;;  %s10474_s0 = inlined_call_operand.vmem [shape: f32[2,18,18,3], index: 0, kind: input, shape index: {}]   ;;  %s10475_s1 = inlined_call_operand.vmem [shape: bf16[3,3,3,32], index: 1, kind: input, shape index: {}]   ;;  %s10476_s2 = inlined_call_operand.vmem [shape: f32[1,32], index: 2, kind: input, shape index: {}]   ;;  %s10477_s3 = inlined_call_operand.vmem [shape: bf16[3,3,32,32], index: 3, kind: input, shape index: {}]   ;;  %s10478_s4 = inlined_call_operand.vmem [shape: f32[1,32], index: 4, kind: input, shape index: {}]   ;;  %s10479_s5 = inlined_call_operand.vmem [shape: f32[32,2], index: 5, kind: input, shape index: {}]   ;;  %s10480_s6 = inlined_call_operand.vmem [shape: f32[1,2], index: 6, kind: input, shape index: {}]   ;;  %s10481_s7 = inlined_call_operand.vmem [shape: f32[2,16,16,2], index: 7, kind: output, shape index: {0}]   ;;  %s10482_s8 = inlined_call_operand.vmem [shape: f32[2,1,32], index: 8, kind: output, shape index: {1}]  }
   0x1 LB: > { %s5765_s28 = sadd.s32 4294967295, %s7231_s27   ;;  %p5769_p0 = scmp.ge.s32.totalorder %s7231_s27, 1  ;;  %s7231_s27 = sphi %s7280_s27, %s19_s27  }
   0x2   : > { %p265_p1 = scmp.lt.s32.totalorder %s7231_s27, 3 }
   0x4   : > { %p266_p2 = pnand %p5769_p0, %p265_p1 }
   0x6   : > { %269 = sbr.rel (%p266_p2) target bundleno = 1200 (0x4b0), region = 48 }
   0xb   : > { %v5773_v0 = vld [vmem:[%s10475_s1 + $0x2] sm:$0x3]  ;;  %vm615_vm0 = vcmask 1040384   ;;  %vm616_vm1 = vcmask 1041408   ;;  %p302_p3 = scmp.lt.s32.totalorder %s5765_s28, 1  ;;  %v7233_v1 = vmov 65535  }
   0xc   : > { %v617_v2 = vsel %vm615_vm0, 4294967295, %v7233_v1  ;;  %v386_v3 = vld [vmem:[%s10475_s1] sm:$0x3]  ;;  %v5806_v5 = vld [vmem:[%s10475_s1 + $0x4] sm:$0x3]  ;;  %vm435_vm2 = vcmask 1046528  }
   0xd   : > { %v7294_v4 = vsel %vm616_vm1, %v617_v2, 0  ;;  %s10888_s28 = smov (!%p302_p3, %s5765_s28), 1  ;;  %v5823_v9 = vld [vmem:[%s10475_s1 + $0x6] sm:$0x3]  ;;  %v5840_v10 = vld [vmem:[%s10475_s1 + $0x8] sm:$0x3] }
   0xe   : > { %v620_v6 = vand.u32 %v5773_v0, %v7294_v4  ;;  %v7303_v7 = vand.u32 %v7294_v4, %v386_v3  ;;  %v7306_v8 = vand.u32 %v5806_v5, %v7294_v4  ;;  %s7196_s13 = smul.u32 432, %s10888_s28  ;;  %vm566_vm3 = vcmask 23552   ;;  %s314_s19 = scalar_lea.vmem %s10482_s8, %s10888_s28 }
   0xf   : > { %v7346_v22 = vand.u32 %v5823_v9, %v7294_v4  ;;  %v7361_v29 = vand.u32 %v5840_v10, %v7294_v4  ;;  %vm995_vm4 = vcmask 1045504   ;;  %vm2687_vm5 = vcmask 261120  }
  0x10   : > { %7194 = vmatprep.subr.bf16.mxu1 %v620_v6  ;;  %6508 = vmatprep.subr.bf16.mxu0 %v620_v6  ;;  %s7318_s20 = scalar_lea.vmem %s10474_s0, %s7196_s13  ;;  %vm2690_vm6 = vcmask 254976   ;;  %vm5683_vm7 = vcmask 253952   ;;  %vm5580_vm8 = vcmask 15360  }
  0x11   : > { %7195 = vmatpush3.bf16.msra.mxu1 %v620_v6  ;;  %6509 = vmatpush3.bf16.msra.mxu0 %v620_v6  ;;  %v7321_v11 = vld [vmem:[%s7318_s20] sm:$0xff]  ;;  %v7324_v12 = vld [vmem:[%s7318_s20 + $0x8] sm:$0xff]  ;;  %v7327_v13 = vld [vmem:[%s7318_s20 + $0x10] sm:$0x3] }
  0x12   : > { %6542 = vmatprep.subr.bf16.mxu1 %v7303_v7  ;;  %6576 = vmatprep.subr.bf16.mxu0 %v7306_v8  ;;  %v436_v14 = vrot.slane %v7321_v11, 1  ;;  %v437_v15 = vrot.slane %v7324_v12, 1  ;;  %v439_v16 = vrot.slane %v7327_v13, 1  ;;  %v7335_v17 = vld [vmem:[%s7318_s20 + $0xc0] sm:$0xff]  ;;  %v7338_v18 = vld [vmem:[%s7318_s20 + $0xc8] sm:$0xff]  ;;  %v7352_v26 = vld [vmem:[%s7318_s20 + $0x18] sm:$0xff] }
  0x13   : > { %v7341_v19 = vld [vmem:[%s7318_s20 + $0xd0] sm:$0x3]  ;;  %v476_v20 = vrot.slane %v7335_v17, 1  ;;  %v477_v21 = vrot.slane %v7338_v18, 1  ;;  %v7355_v27 = vld [vmem:[%s7318_s20 + $0x20] sm:$0xff]  ;;  %v441_v32 = vrot.slane %v7352_v26, 1 }
  0x14   : > { %10561 = vst [vmem:[#allocation3_spill] sm:$0xff] %v7341_v19  ;;  %v438_v23 = vsel %vm435_vm2, %v436_v14, %v437_v15  ;;  %v440_v24 = vsel %vm435_vm2, %v437_v15, %v439_v16  ;;  %v479_v25 = vrot.slane %v7341_v19, 1  ;;  %v7358_v28 = vld [vmem:[%s7318_s20 + $0x28] sm:$0x3]  ;;  %v442_v33 = vrot.slane %v7355_v27, 1  ;;  %v7367_v34 = vld [vmem:[%s7318_s20 + $0xd8] sm:$0xff] }
  0x15   : > { %v548_v30 = vpack.c.bf16 %v440_v24, %v438_v23  ;;  %v478_v31 = vsel %vm435_vm2, %v476_v20, %v477_v21  ;;  %v7370_v35 = vld [vmem:[%s7318_s20 + $0xe0] sm:$0xff]  ;;  %v7373_v36 = vld [vmem:[%s7318_s20 + $0xe8] sm:$0x3]  ;;  %v444_v40 = vrot.slane %v7358_v28, 1  ;;  %v7380_v41 = vld [vmem:[%s7318_s20 + $0x30] sm:$0xff]  ;;  %v481_v47 = vrot.slane %v7367_v34, 1 }
  0x16   : > { %10562 = vst [vmem:[#allocation4_spill] sm:$0xff] %v7373_v36  ;;  %v480_v39 = vsel %vm435_vm2, %v477_v21, %v479_v25  ;;  %v7383_v42 = vld [vmem:[%s7318_s20 + $0x38] sm:$0xff]  ;;  %v7386_v43 = vld [vmem:[%s7318_s20 + $0xf0] sm:$0xff]  ;;  %v443_v46 = vsel %vm435_vm2, %v441_v32, %v442_v33  ;;  %v7395_v48 = vld [vmem:[%s7318_s20 + $0x40] sm:$0x3]  ;;  %v482_v51 = vrot.slane %v7370_v35, 1 }
  0x17   : > { %6510 = vmatprep.mubr.msk.bf16.mxu0 %vm566_vm3, %v548_v30  ;;  %v7390_v45 = vpack.c.bf16 %v480_v39, %v478_v31  ;;  %v7398_v49 = vld [vmem:[%s7318_s20 + $0xf8] sm:$0xff]  ;;  %v445_v50 = vsel %vm435_vm2, %v442_v33, %v444_v40  ;;  %v484_v52 = vrot.slane %v7373_v36, 1  ;;  %v446_v53 = vrot.slane %v7380_v41, 1  ;;  %v7405_v54 = vld [vmem:[%s7318_s20 + $0x100] sm:$0x3]  ;;  %v7408_v55 = vld [vmem:[%s7318_s20 + $0x48] sm:$0xff] }
  0x18   : > { %10564 = vst [vmem:[#allocation6_spill] sm:$0xff] %v7405_v54  ;;  %v7412_v56 = vpack.c.bf16 %v445_v50, %v443_v46  ;;  %v447_v57 = vrot.slane %v7383_v42, 1  ;;  %v449_v58 = vrot.slane %v7395_v48, 1  ;;  %v486_v59 = vrot.slane %v7386_v43, 1  ;;  %v7418_v60 = vld [vmem:[%s7318_s20 + $0x50] sm:$0xff]  ;;  %v7428_v2 = vld [vmem:[%s7318_s20 + $0x108] sm:$0xff] }
  0x19   : > { %10563 = vst [vmem:[#allocation5_spill] sm:$0xff] %v7390_v45  ;;  %6526 = vmatprep.mubr.msk.bf16.mxu1 %vm566_vm3, %v7390_v45  ;;  %v483_v61 = vsel %vm435_vm2, %v481_v47, %v482_v51  ;;  %v485_v62 = vsel %vm435_vm2, %v482_v51, %v484_v52  ;;  %v487_v63 = vrot.slane %v7398_v49, 1  ;;  %v489_v0 = vrot.slane %v7405_v54, 1  ;;  %v7425_v1 = vld [vmem:[%s7318_s20 + $0x58] sm:$0x3]  ;;  %v7431_v3 = vld [vmem:[%s7318_s20 + $0x110] sm:$0xff] }
  0x1a   : > { %10565 = vst [vmem:[#allocation7_spill] sm:$0xff] %v7412_v56  ;;  %6511 = vmatmul.mubr.msk.bf16.vlgmr.msra.gmra.mxu0 %vm566_vm3, %v7412_v56  ;;  %v7435_v5 = vpack.c.bf16 %v485_v62, %v483_v61  ;;  %v448_v6 = vsel %vm435_vm2, %v446_v53, %v447_v57  ;;  %v450_v9 = vsel %vm435_vm2, %v447_v57, %v449_v58  ;;  %v451_v10 = vrot.slane %v7408_v55, 1  ;;  %v7441_v14 = vld [vmem:[%s7318_s20 + $0x118] sm:$0x3]  ;;  %v7444_v15 = vld [vmem:[%s7318_s20 + $0x60] sm:$0xff]  ;;  %v7447_v16 = vld [vmem:[%s7318_s20 + $0x68] sm:$0xff] }
  0x1b   : > { %10567 = vst [vmem:[#allocation9_spill] sm:$0xff] %v7441_v14  ;;  %6577 = vmatpush3.bf16.msra.mxu0 %v7306_v8  ;;  %v7450_v20 = vpack.c.bf16 %v450_v9, %v448_v6  ;;  %v488_v21 = vsel %vm435_vm2, %v486_v59, %v487_v63  ;;  %v490_v23 = vsel %vm435_vm2, %v487_v63, %v489_v0  ;;  %v452_v24 = vrot.slane %v7418_v60, 1  ;;  %v7456_v25 = vld [vmem:[%s7318_s20 + $0x70] sm:$0x3]  ;;  %v7459_v30 = vld [vmem:[%s7318_s20 + $0x120] sm:$0xff]  ;;  %v7469_v39 = vld [vmem:[%s7318_s20 + $0x128] sm:$0xff] }
  0x1c   : > { %10566 = vst [vmem:[#allocation8_spill] sm:$0xff] %v7435_v5  ;;  %6527 = vmatmul.mubr.msk.bf16.vlgmr.msra.gmra.mxu1 %vm566_vm3, %v7435_v5  ;;  %v7463_v31 = vpack.c.bf16 %v490_v23, %v488_v21  ;;  %v454_v8 = vrot.slane %v7425_v1, 1  ;;  %v491_v32 = vrot.slane %v7428_v2, 1  ;;  %v492_v33 = vrot.slane %v7431_v3, 1  ;;  %6644 = vmatprep.subr.bf16.mxu0 %v7361_v29  ;;  %v7480_v51 = vld [vmem:[%s7318_s20 + $0x130] sm:$0x3] }
  0x1d   : > { %10568 = vst [vmem:[#allocation10_spill] sm:$0xff] %v7450_v20  ;;  %6543 = vmatpush3.bf16.msra.mxu1 %v7303_v7  ;;  %6514 = vmatprep.mubr.msk.bf16.mxu0 %vm566_vm3, %v7450_v20  ;;  %v453_v40 = vsel %vm435_vm2, %v451_v10, %v452_v24  ;;  %v494_v46 = vrot.slane %v7441_v14, 1  ;;  %v456_v47 = vrot.slane %v7444_v15, 1  ;;  %v457_v50 = vrot.slane %v7447_v16, 1  ;;  %10570 = vst [vmem:[#allocation12_spill] sm:$0xff] %v7480_v51  ;;  %v7483_v52 = vld [vmem:[%s7318_s20 + $0x78] sm:$0xff] }
  0x1e   : > { %10569 = vst [vmem:[#allocation11_spill] sm:$0xff] %v7463_v31  ;;  %6530 = vmatprep.mubr.msk.bf16.mxu1 %vm566_vm3, %v7463_v31  ;;  %v455_v7 = vsel %vm435_vm2, %v452_v24, %v454_v8  ;;  %v493_v53 = vsel %vm435_vm2, %v491_v32, %v492_v33  ;;  %v459_v57 = vrot.slane %v7456_v25, 1  ;;  %v496_v58 = vrot.slane %v7459_v30, 1  ;;  %v7492_v59 = vld [vmem:[%s7318_s20 + $0x80] sm:$0xff]  ;;  %v7495_v61 = vld [vmem:[%s7318_s20 + $0x88] sm:$0x3]  ;;  %6610 = vmatprep.subr.bf16.mxu1 %v7346_v22 }
  0x1f   : > { %v7498_v62 = vpack.c.bf16 %v455_v7, %v453_v40  ;;  %v495_v63 = vsel %vm435_vm2, %v492_v33, %v494_v46  ;;  %v458_v0 = vsel %vm435_vm2, %v456_v47, %v457_v50  ;;  %v497_v6 = vrot.slane %v7469_v39, 1  ;;  %v7504_v9 = vld [vmem:[%s7318_s20 + $0x138] sm:$0xff]  ;;  %v7507_v10 = vld [vmem:[%s7318_s20 + $0x140] sm:$0xff]  ;;  %v7510_v21 = vld [vmem:[%s7318_s20 + $0x148] sm:$0x3] }
  0x20   : > { %10572 = vst [vmem:[#allocation14_spill] sm:$0xff] %v7510_v21  ;;  %v7512_v23 = vpack.c.bf16 %v495_v63, %v493_v53  ;;  %v460_v24 = vsel %vm435_vm2, %v457_v50, %v459_v57  ;;  %v499_v8 = vrot.slane %v7480_v51, 1  ;;  %v461_v32 = vrot.slane %v7483_v52, 1  ;;  %v7518_v33 = vld [vmem:[%s7318_s20 + $0x90] sm:$0xff]  ;;  %v7521_v40 = vld [vmem:[%s7318_s20 + $0x98] sm:$0xff]  ;;  %v7547_v38 = vld [vmem:[%s7318_s20 + $0xa8] sm:$0xff] }
  0x21   : > { %10571 = vst [vmem:[#allocation13_spill] sm:$0xff] %v7498_v62  ;;  %v7524_v46 = vld [vmem:[%s7318_s20 + $0xa0] sm:$0x3]  ;;  %v7526_v47 = vpack.c.bf16 %v460_v24, %v458_v0  ;;  %v498_v7 = vsel %vm435_vm2, %v496_v58, %v497_v6  ;;  %v462_v53 = vrot.slane %v7492_v59, 1  ;;  %v464_v50 = vrot.slane %v7495_v61, 1  ;;  %v7532_v57 = vld [vmem:[%s7318_s20 + $0x150] sm:$0xff] }
  0x22   : > { %10573 = vst [vmem:[#allocation15_spill] sm:$0xff] %v7512_v23  ;;  %v7535_v63 = vld [vmem:[%s7318_s20 + $0x158] sm:$0xff]  ;;  %v7538_v44 = vld [vmem:[%s7318_s20 + $0x160] sm:$0x3]  ;;  %6515 = vmatmul.mubr.msk.bf16.gmra.mxu0 %vm566_vm3, %v7498_v62  ;;  %v500_v0 = vsel %vm435_vm2, %v497_v6, %v499_v8  ;;  %v501_v58 = vrot.slane %v7504_v9, 1  ;;  %v502_v24 = vrot.slane %v7507_v10, 1 }
  0x23   : > { %10574 = vst [vmem:[#allocation16_spill] sm:$0xff] %v7526_v47  ;;  %10575 = vst [vmem:[#allocation17_spill] sm:$0xff] %v7538_v44  ;;  %v504_v37 = vrot.slane %v7510_v21, 1  ;;  %v7550_v31 = vld [vmem:[%s7318_s20 + $0xb8] sm:$0x3]  ;;  %6518 = vmatprep.mubr.msk.bf16.mxu0 %vm566_vm3, %v7526_v47  ;;  %v7554_v5 = vpack.c.bf16 %v500_v0, %v498_v7  ;;  %v463_v45 = vsel %vm435_vm2, %v461_v32, %v462_v53  ;;  %v466_v8 = vrot.slane %v7518_v33, 1 }
  0x24   : > { %v465_v6 = vsel %vm435_vm2, %v462_v53, %v464_v50  ;;  %v7560_v62 = vld [vmem:[%s7318_s20 + $0xb0] sm:$0xff]  ;;  %6531 = vmatmul.mubr.msk.bf16.gmra.mxu1 %vm566_vm3, %v7512_v23  ;;  %v503_v20 = vsel %vm435_vm2, %v501_v58, %v502_v24  ;;  %v467_v56 = vrot.slane %v7521_v40, 1  ;;  %v7567_v21 = vld [vmem:[%s7318_s20 + $0x168] sm:$0xff]  ;;  %v469_v7 = vrot.slane %v7524_v46, 1  ;;  %v7584_v14 = vld [vmem:[%s7318_s20 + $0x178] sm:$0x3] }
  0x25   : > { %10576 = vst [vmem:[#allocation18_spill] sm:$0xff] %v7554_v5  ;;  %6534 = vmatprep.mubr.msk.bf16.mxu1 %vm566_vm3, %v7554_v5  ;;  %v505_v32 = vsel %vm435_vm2, %v502_v24, %v504_v37  ;;  %v506_v53 = vrot.slane %v7532_v57, 1  ;;  %v507_v50 = vrot.slane %v7535_v63, 1  ;;  %v7576_v0 = vld [vmem:[%s7318_s20 + $0x170] sm:$0xff]  ;;  %v7578_v23 = vpack.c.bf16 %v465_v6, %v463_v45 }
  0x26   : > { %v468_v58 = vsel %vm435_vm2, %v466_v8, %v467_v56  ;;  %v509_v47 = vrot.slane %v7538_v44, 1  ;;  %v471_v51 = vrot.slane %v7547_v38, 1  ;;  %v470_v37 = vsel %vm435_vm2, %v467_v56, %v469_v7 }
  0x27   : > { %v508_v24 = vsel %vm435_vm2, %v506_v53, %v507_v50  ;;  %v472_v5 = vrot.slane %v7560_v62, 1  ;;  %v474_v54 = vrot.slane %v7550_v31, 1  ;;  %v7590_v36 = vpack.c.bf16 %v505_v32, %v503_v20 }
  0x28   : > { %v7592_v45 = vpack.c.bf16 %v470_v37, %v468_v58  ;;  %v510_v6 = vsel %vm435_vm2, %v507_v50, %v509_v47  ;;  %v511_v8 = vrot.slane %v7567_v21, 1  ;;  %v512_v19 = vrot.slane %v7576_v0, 1 }
  0x29   : > { %10577 = vst [vmem:[#allocation19_spill] sm:$0xff] %v7590_v36  ;;  %v7596_v44 = vpack.c.bf16 %v510_v6, %v508_v24  ;;  %v514_v56 = vrot.slane %v7584_v14, 1  ;;  %v473_v20 = vsel %vm435_vm2, %v471_v51, %v472_v5  ;;  %v475_v32 = vsel %vm435_vm2, %v472_v5, %v474_v54 }
  0x2a   : > { %6519 = vmatmul.mubr.msk.bf16.gmra.mxu0 %vm566_vm3, %v7578_v23  ;;  %v10578_v47 = vrot.slane %v7324_v12, 2  ;;  %v10579_v7 = vrot.slane %v7321_v11, 2  ;;  %v10580_v50 = vrot.slane %v7327_v13, 2  ;;  %v513_v54 = vsel %vm435_vm2, %v511_v8, %v512_v19  ;;  %v5874_v8 = vld [vmem:[%s10475_s1 + $0xc] sm:$0x3] }
  0x2b   : > { %6522 = vmatprep.mubr.msk.bf16.mxu0 %vm566_vm3, %v7592_v45  ;;  %v515_v5 = vsel %vm435_vm2, %v512_v19, %v514_v56  ;;  %v1001_v51 = vrot.slane %v7352_v26, 2  ;;  %v1002_v24 = vrot.slane %v7355_v27, 2  ;;  %v7624_v6 = vpack.c.bf16 %v475_v32, %v473_v20 }
  0x2c   : > { %6535 = vmatmul.mubr.msk.bf16.gmra.mxu1 %vm566_vm3, %v7590_v36  ;;  %v998_v53 = vsel %vm995_vm4, %v10579_v7, %v10578_v47  ;;  %v10581_v58 = vmov %v10578_v47  ;;  %v1004_v47 = vrot.slane %v7358_v28, 2  ;;  %v1006_v7 = vrot.slane %v7380_v41, 2 }
  0x2d   : > { %v1000_v37 = vsel %vm995_vm4, %v10581_v58, %v10580_v50  ;;  %6538 = vmatprep.mubr.msk.bf16.mxu1 %vm566_vm3, %v7596_v44  ;;  %v7628_v36 = vpack.c.bf16 %v515_v5, %v513_v54  ;;  %v1007_v50 = vrot.slane %v7383_v42, 2  ;;  %v1009_v58 = vrot.slane %v7395_v48, 2 }
  0x2e   : > { %v1108_v13 = vpack.c.bf16 %v1000_v37, %v998_v53  ;;  %v370_v19 = vpack.c.bf16 %v7324_v12, %v7321_v11  ;;  %v1003_v28 = vsel %vm995_vm4, %v1001_v51, %v1002_v24  ;;  %v1005_v56 = vsel %vm995_vm4, %v1002_v24, %v1004_v47 }
  0x2f   : > { %v1008_v48 = vsel %vm995_vm4, %v1006_v7, %v1007_v50  ;;  %v1010_v11 = vsel %vm995_vm4, %v1007_v50, %v1009_v58  ;;  %v7648_v12 = vand.u32 %v5874_v8, %v7294_v4  ;;  %v7652_v20 = vpack.c.bf16 %v7355_v27, %v7352_v26  ;;  %v5857_v26 = vld [vmem:[%s10475_s1 + $0xa] sm:$0x3] }
  0x30   : > { %v7654_v32 = vpack.c.bf16 %v1005_v56, %v1003_v28  ;;  %v1011_v53 = vrot.slane %v7408_v55, 2  ;;  %v7659_v37 = vpack.c.bf16 %v7338_v18, %v7335_v17  ;;  %v7661_v54 = vpack.c.bf16 %v1010_v11, %v1008_v48 }
  0x31   : > { %v1012_v5 = vrot.slane %v7418_v60, 2  ;;  %v1014_v51 = vrot.slane %v7425_v1, 2  ;;  %v7667_v24 = vpack.c.bf16 %v7370_v35, %v7367_v34  ;;  %v1016_v27 = vrot.slane %v7444_v15, 2 }
  0x32   : > { %6523 = vmatmul.mubr.msk.bf16.gmra.mxu0 %vm566_vm3, %v7624_v6  ;;  %v1017_v47 = vrot.slane %v7447_v16, 2  ;;  %v7677_v7 = vpack.c.bf16 %v7398_v49, %v7386_v43  ;;  %v7681_v1 = vpack.c.bf16 %v7383_v42, %v7380_v41  ;;  %v7686_v50 = vand.u32 %v5857_v26, %v7294_v4 }
  0x33   : > { %6578 = vmatprep.mubr.msk.bf16.mxu0 %vm566_vm3, %v1108_v13  ;;  %v1019_v13 = vrot.slane %v7456_v25, 2  ;;  %v1013_v25 = vsel %vm995_vm4, %v1011_v53, %v1012_v5  ;;  %v1015_v58 = vsel %vm995_vm4, %v1012_v5, %v1014_v51  ;;  %v7711_v8 = vpack.c.bf16 %v7418_v60, %v7408_v55 }
  0x34   : > { %6539 = vmatmul.mubr.msk.bf16.gmra.mxu1 %vm566_vm3, %v7628_v36  ;;  %v1018_v41 = vsel %vm995_vm4, %v1016_v27, %v1017_v47  ;;  %v7713_v28 = vpack.c.bf16 %v1015_v58, %v1013_v25  ;;  %v7717_v56 = vpack.c.bf16 %v7507_v10, %v7504_v9  ;;  %v1021_v11 = vrot.slane %v7483_v52, 2 }
  0x35   : > { %6544 = vmatprep.mubr.msk.bf16.mxu1 %vm566_vm3, %v370_v19  ;;  %v7695_v19 = vpack.c.bf16 %v7431_v3, %v7428_v2  ;;  %v1020_v42 = vsel %vm995_vm4, %v1017_v47, %v1019_v13  ;;  %v1024_v53 = vrot.slane %v7495_v61, 2  ;;  %v1026_v5 = vrot.slane %v7518_v33, 2 }
  0x36   : > { %v7720_v48 = vpack.c.bf16 %v1020_v42, %v1018_v41  ;;  %v1027_v55 = vrot.slane %v7521_v40, 2  ;;  %v1029_v60 = vrot.slane %v7524_v46, 2  ;;  %v7730_v51 = vpack.c.bf16 %v7535_v63, %v7532_v57  ;;  %v10582_v42 = vld [vmem:[#allocation3_spill] sm:$0xff] }
  0x37   : > { %v7734_v26 = vpack.c.bf16 %v7447_v16, %v7444_v15  ;;  %v7738_v27 = vpack.c.bf16 %v7576_v0, %v7567_v21  ;;  %v1031_v25 = vrot.slane %v7547_v38, 2  ;;  %v1032_v58 = vrot.slane %v7560_v62, 2 }
  0x38   : > { %v1028_v15 = vsel %vm995_vm4, %v1026_v5, %v1027_v55  ;;  %v1030_v16 = vsel %vm995_vm4, %v1027_v55, %v1029_v60  ;;  %v1034_v41 = vrot.slane %v7550_v31, 2  ;;  %v1037_v5 = vrot.slane %v7338_v18, 2 }
  0x39   : > { %v7754_v13 = vpack.c.bf16 %v1030_v16, %v1028_v15  ;;  %v7768_v55 = vpack.c.bf16 %v7521_v40, %v7518_v33  ;;  %v1033_v31 = vsel %vm995_vm4, %v1031_v25, %v1032_v58  ;;  %v1041_v33 = vrot.slane %v7367_v34, 2 }
  0x3a   : > { %6579 = vmatmul.mubr.msk.bf16.vlgmr.msra.gmra.mxu0 %vm566_vm3, %v7654_v32  ;;  %v1035_v60 = vsel %vm995_vm4, %v1032_v58, %v1034_v41  ;;  %v1042_v40 = vrot.slane %v7370_v35, 2  ;;  %v7791_v15 = vpack.c.bf16 %v7560_v62, %v7547_v38  ;;  %v1046_v16 = vrot.slane %v7386_v43, 2  ;;  %v10584_v58 = vld [vmem:[#allocation6_spill] sm:$0xff] }
  0x3b   : > { %6645 = vmatpush3.bf16.msra.mxu0 %v7361_v29  ;;  %6582 = vmatprep.mubr.msk.bf16.mxu0 %vm566_vm3, %v7661_v54  ;;  %v7703_v29 = vpack.c.bf16 %v7469_v39, %v7459_v30  ;;  %v1047_v25 = vrot.slane %v7398_v49, 2  ;;  %v1049_v41 = vrot.slane %v10584_v58, 2  ;;  %v1066_v58 = vrot.slane %v7532_v57, 2 }
  0x3c   : > { %6545 = vmatmul.mubr.msk.bf16.vlgmr.msra.gmra.mxu1 %vm566_vm3, %v7652_v20  ;;  %6712 = vmatprep.subr.bf16.mxu0 %v7648_v12  ;;  %v1043_v34 = vsel %vm995_vm4, %v1041_v33, %v1042_v40 }
  0x3d   : > { %6611 = vmatpush3.bf16.msra.mxu1 %v7346_v22  ;;  %6548 = vmatprep.mubr.msk.bf16.mxu1 %vm566_vm3, %v7681_v1  ;;  %v1022_v22 = vrot.slane %v7492_v59, 2  ;;  %v1048_v38 = vsel %vm995_vm4, %v1046_v16, %v1047_v25  ;;  %v1050_v43 = vsel %vm995_vm4, %v1047_v25, %v1049_v41  ;;  %v10587_v16 = vld [vmem:[#allocation14_spill] sm:$0xff]  ;;  %v1067_v41 = vrot.slane %v7535_v63, 2 }
  0x3e   : > { %6678 = vmatprep.subr.bf16.mxu1 %v7686_v50  ;;  %v7810_v62 = vpack.c.bf16 %v1050_v43, %v1048_v38  ;;  %v1064_v25 = vrot.slane %v10587_v16, 2  ;;  %v5891_v16 = vld [vmem:[%s10475_s1 + $0xe] sm:$0x3] }
  0x3f   : > { %v1023_v61 = vsel %vm995_vm4, %v1021_v11, %v1022_v22  ;;  %v1025_v46 = vsel %vm995_vm4, %v1022_v22, %v1024_v53  ;;  %v1039_v11 = vrot.slane %v10582_v42, 2  ;;  %v7762_v22 = vpack.c.bf16 %v7492_v59, %v7483_v52 }
  0x40   : > { %v7752_v47 = vpack.c.bf16 %v1025_v46, %v1023_v61  ;;  %v1036_v53 = vrot.slane %v7335_v17, 2  ;;  %v7782_v52 = vpack.c.bf16 %v1035_v60, %v1033_v31  ;;  %v10583_v61 = vld [vmem:[#allocation4_spill] sm:$0xff]  ;;  %v1051_v42 = vrot.slane %v7428_v2, 2 }
  0x41   : > { %v1040_v18 = vsel %vm995_vm4, %v1037_v5, %v1039_v11  ;;  %v1044_v46 = vrot.slane %v10583_v61, 2  ;;  %v1052_v11 = vrot.slane %v7431_v3, 2  ;;  %v1056_v31 = vrot.slane %v7459_v30, 2 }
  0x42   : > { %6583 = vmatmul.mubr.msk.bf16.gmra.mxu0 %vm566_vm3, %v7713_v28  ;;  %v1038_v17 = vsel %vm995_vm4, %v1036_v53, %v1037_v5  ;;  %v10585_v53 = vld [vmem:[#allocation9_spill] sm:$0xff]  ;;  %v1057_v60 = vrot.slane %v7469_v39, 2  ;;  %v1061_v61 = vrot.slane %v7504_v9, 2 }
  0x43   : > { %6586 = vmatprep.mubr.msk.bf16.mxu0 %vm566_vm3, %v7720_v48  ;;  %v7784_v59 = vpack.c.bf16 %v1040_v18, %v1038_v17  ;;  %v1045_v35 = vsel %vm995_vm4, %v1042_v40, %v1044_v46  ;;  %v1054_v5 = vrot.slane %v10585_v53, 2  ;;  %v10586_v17 = vld [vmem:[#allocation12_spill] sm:$0xff]  ;;  %v1053_v33 = vsel %vm995_vm4, %v1051_v42, %v1052_v11 }
  0x44   : > { %6549 = vmatmul.mubr.msk.bf16.gmra.mxu1 %vm566_vm3, %v7711_v8  ;;  %v7808_v49 = vpack.c.bf16 %v1045_v35, %v1043_v34  ;;  %v1059_v18 = vrot.slane %v10586_v17, 2  ;;  %v1058_v3 = vsel %vm995_vm4, %v1056_v31, %v1057_v60  ;;  %v1062_v46 = vrot.slane %v7507_v10, 2  ;;  %v10588_v34 = vld [vmem:[#allocation17_spill] sm:$0xff]  ;;  %v365_v17 = vld [vmem:[%s7318_s20 + $0x188] sm:$0xff] }
  0x45   : > { %6552 = vmatprep.mubr.msk.bf16.mxu1 %vm566_vm3, %v7734_v26  ;;  %v1055_v2 = vsel %vm995_vm4, %v1052_v11, %v1054_v5  ;;  %v1069_v35 = vrot.slane %v10588_v34, 2  ;;  %v1068_v10 = vsel %vm995_vm4, %v1066_v58, %v1067_v41  ;;  %v1071_v42 = vrot.slane %v7567_v21, 2  ;;  %v10590_v58 = vld [vmem:[#allocation10_spill] sm:$0xff]  ;;  %v10591_v34 = vld [vmem:[#allocation13_spill] sm:$0xff] }
  0x46   : > { %v1060_v30 = vsel %vm995_vm4, %v1057_v60, %v1059_v18  ;;  %v7830_v39 = vpack.c.bf16 %v1055_v2, %v1053_v33  ;;  %v1063_v38 = vsel %vm995_vm4, %v1061_v61, %v1062_v46  ;;  %v1065_v9 = vsel %vm995_vm4, %v1062_v46, %v1064_v25  ;;  %v364_v60 = vld [vmem:[%s7318_s20 + $0x180] sm:$0xff]  ;;  %v366_v18 = vld [vmem:[%s7318_s20 + $0x190] sm:$0x3] }
  0x47   : > { %v7832_v40 = vpack.c.bf16 %v1060_v30, %v1058_v3  ;;  %v1070_v57 = vsel %vm995_vm4, %v1067_v41, %v1069_v35  ;;  %v7852_v63 = vpack.c.bf16 %v1065_v9, %v1063_v38  ;;  %v1072_v11 = vrot.slane %v7576_v0, 2  ;;  %v10589_v61 = vld [vmem:[#allocation7_spill] sm:$0xff]  ;;  %v10597_v38 = vld [vmem:[#allocation18_spill] sm:$0xff] }
  0x48   : > { %v7854_v43 = vpack.c.bf16 %v1070_v57, %v1068_v10  ;;  %v1074_v53 = vrot.slane %v7584_v14, 2  ;;  %v1784_v21 = vrot.slane %v364_v60, 2  ;;  %v1785_v14 = vrot.slane %v365_v17, 2  ;;  %v5908_v46 = vld [vmem:[%s10475_s1 + $0x10] sm:$0x3] }
  0x49   : > { %v1073_v5 = vsel %vm995_vm4, %v1071_v42, %v1072_v11  ;;  %v1787_v33 = vrot.slane %v366_v18, 2  ;;  %v2421_v25 = vand.u32 %v5908_v46, %v7294_v4  ;;  %v2212_v41 = vand.u32 %v5891_v16, %v7294_v4  ;;  %v10593_v4 = vld [vmem:[#allocation5_spill] sm:$0xff]  ;;  %v10596_v35 = vld [vmem:[#allocation15_spill] sm:$0xff] }
  0x4a   : > { %6587 = vmatmul.mubr.msk.bf16.gmra.mxu0 %vm566_vm3, %v7752_v47  ;;  %v1075_v31 = vsel %vm995_vm4, %v1072_v11, %v1074_v53  ;;  %v1786_v2 = vsel %vm995_vm4, %v1784_v21, %v1785_v14  ;;  %v10598_v9 = vld [vmem:[#allocation19_spill] sm:$0xff]  ;;  %v1575_v10 = vrot.slane %v364_v60, 1  ;;  %v1576_v57 = vrot.slane %v365_v17, 1 }
  0x4b   : > { %6590 = vmatprep.mubr.msk.bf16.mxu0 %vm566_vm3, %v7754_v13  ;;  %v7871_v0 = vpack.c.bf16 %v1075_v31, %v1073_v5  ;;  %v1788_v3 = vsel %vm995_vm4, %v1785_v14, %v1787_v33  ;;  %v1578_v42 = vrot.slane %v366_v18, 1  ;;  %v1370_v31 = vpack.c.bf16 %v365_v17, %v364_v60  ;;  %v8041_v14 = vld [vmem:[%s7318_s20 + $0x198] sm:$0xff]  ;;  %v8044_v18 = vld [vmem:[%s7318_s20 + $0x1a0] sm:$0xff] }
  0x4c   : > { %6553 = vmatmul.mubr.msk.bf16.gmra.mxu1 %vm566_vm3, %v7762_v22  ;;  %v7878_v30 = vpack.c.bf16 %v1788_v3, %v1786_v2  ;;  %v1577_v11 = vsel %vm435_vm2, %v1575_v10, %v1576_v57 }
  0x4d   : > { %6556 = vmatprep.mubr.msk.bf16.mxu1 %vm566_vm3, %v7768_v55  ;;  %v1579_v53 = vsel %vm435_vm2, %v1576_v57, %v1578_v42 }
  0x4e   : > { %v7954_v5 = vpack.c.bf16 %v1579_v53, %v1577_v11 }
  0x50   : > { %10599 = vst [vmem:[#allocation3_spill] sm:$0xff] %v7954_v5 }
  0x52   : > { %6591 = vmatmul.mubr.msk.bf16.gmra.mxu0 %vm566_vm3, %v7782_v52 }
  0x53   : > { %6594 = vmatprep.mubr.msk.bf16.mxu0 %vm566_vm3, %v7784_v59 }
  0x54   : > { %6557 = vmatmul.mubr.msk.bf16.gmra.mxu1 %vm566_vm3, %v7791_v15 }
  0x55   : > { %6560 = vmatprep.mubr.msk.bf16.mxu1 %vm566_vm3, %v7659_v37 }
  0x5a   : > { %6595 = vmatmul.mubr.msk.bf16.gmra.mxu0 %vm566_vm3, %v7808_v49 }
  0x5b   : > { %6598 = vmatprep.mubr.msk.bf16.mxu0 %vm566_vm3, %v7810_v62 }
  0x5c   : > { %6561 = vmatmul.mubr.msk.bf16.gmra.mxu1 %vm566_vm3, %v7667_v24 }
  0x5d   : > { %6564 = vmatprep.mubr.msk.bf16.mxu1 %vm566_vm3, %v7677_v7 }
  0x62   : > { %6599 = vmatmul.mubr.msk.bf16.gmra.mxu0 %vm566_vm3, %v7830_v39 }
  0x63   : > { %6602 = vmatprep.mubr.msk.bf16.mxu0 %vm566_vm3, %v7832_v40 }
  0x64   : > { %6565 = vmatmul.mubr.msk.bf16.gmra.mxu1 %vm566_vm3, %v7695_v19 }
  0x65   : > { %6568 = vmatprep.mubr.msk.bf16.mxu1 %vm566_vm3, %v7703_v29 }
  0x6a   : > { %6603 = vmatmul.mubr.msk.bf16.gmra.mxu0 %vm566_vm3, %v7852_v63 }
  0x6b   : > { %6606 = vmatprep.mubr.msk.bf16.mxu0 %vm566_vm3, %v7854_v43 }
  0x6c   : > { %6569 = vmatmul.mubr.msk.bf16.gmra.mxu1 %vm566_vm3, %v7717_v56 }
  0x6d   : > { %6572 = vmatprep.mubr.msk.bf16.mxu1 %vm566_vm3, %v7730_v51 }
  0x72   : > { %6607 = vmatmul.mubr.msk.bf16.gmra.mxu0 %vm566_vm3, %v7871_v0 }
  0x73   : > { %6646 = vmatprep.mubr.msk.bf16.mxu0 %vm566_vm3, %v10589_v61 }
  0x74   : > { %6573 = vmatmul.mubr.msk.bf16.gmra.mxu1 %vm566_vm3, %v7738_v27 }
  0x75   : > { %6612 = vmatprep.mubr.msk.bf16.mxu1 %vm566_vm3, %v7652_v20  ;;  %v10592_v20 = vld [vmem:[#allocation16_spill] sm:$0xff] }
  0x7a   : > { %6647 = vmatmul.mubr.msk.bf16.vlgmr.msra.gmra.mxu0 %vm566_vm3, %v10590_v58 }
  0x7b   : > { %6713 = vmatpush3.bf16.msra.mxu0 %v7648_v12  ;;  %6650 = vmatprep.mubr.msk.bf16.mxu0 %vm566_vm3, %v10591_v34  ;;  %v10594_v12 = vld [vmem:[#allocation8_spill] sm:$0xff] }
  0x7c   : > { %6613 = vmatmul.mubr.msk.bf16.vlgmr.msra.gmra.mxu1 %vm566_vm3, %v7681_v1  ;;  %6780 = vmatprep.subr.bf16.mxu0 %v2421_v25 }
  0x7d   : > { %6679 = vmatpush3.bf16.msra.mxu1 %v7686_v50  ;;  %6616 = vmatprep.mubr.msk.bf16.mxu1 %vm566_vm3, %v7711_v8  ;;  %v10595_v50 = vld [vmem:[#allocation11_spill] sm:$0xff] }
  0x7e   : > { %6746 = vmatprep.subr.bf16.mxu1 %v2212_v41 }
  0x82   : > { %6651 = vmatmul.mubr.msk.bf16.gmra.mxu0 %vm566_vm3, %v10592_v20 }
  0x83   : > { %6654 = vmatprep.mubr.msk.bf16.mxu0 %vm566_vm3, %v7578_v23 }
  0x84   : > { %6617 = vmatmul.mubr.msk.bf16.gmra.mxu1 %vm566_vm3, %v7734_v26 }
  0x85   : > { %6620 = vmatprep.mubr.msk.bf16.mxu1 %vm566_vm3, %v7762_v22 }
  0x8a   : > { %6655 = vmatmul.mubr.msk.bf16.gmra.mxu0 %vm566_vm3, %v7592_v45 }
  0x8b   : > { %6658 = vmatprep.mubr.msk.bf16.mxu0 %vm566_vm3, %v7624_v6 }
  0x8c   : > { %6621 = vmatmul.mubr.msk.bf16.gmra.mxu1 %vm566_vm3, %v7768_v55 }
  0x8d   : > { %6624 = vmatprep.mubr.msk.bf16.mxu1 %vm566_vm3, %v7791_v15 }
  0x92   : > { %6659 = vmatmul.mubr.msk.bf16.gmra.mxu0 %vm566_vm3, %v10593_v4 }
  0x93   : > { %6662 = vmatprep.mubr.msk.bf16.mxu0 %vm566_vm3, %v10594_v12 }
  0x94   : > { %6625 = vmatmul.mubr.msk.bf16.gmra.mxu1 %vm566_vm3, %v7659_v37 }
  0x95   : > { %6628 = vmatprep.mubr.msk.bf16.mxu1 %vm566_vm3, %v7667_v24 }
  0x9a   : > { %6663 = vmatmul.mubr.msk.bf16.gmra.mxu0 %vm566_vm3, %v10595_v50 }
  0x9b   : > { %6666 = vmatprep.mubr.msk.bf16.mxu0 %vm566_vm3, %v10596_v35 }
  0x9c   : > { %6629 = vmatmul.mubr.msk.bf16.gmra.mxu1 %vm566_vm3, %v7677_v7 }
  0x9d   : > { %6632 = vmatprep.mubr.msk.bf16.mxu1 %vm566_vm3, %v7695_v19 }
  0xa2   : > { %6667 = vmatmul.mubr.msk.bf16.gmra.mxu0 %vm566_vm3, %v10597_v38 }
  0xa3   : > { %6670 = vmatprep.mubr.msk.bf16.mxu0 %vm566_vm3, %v10598_v9 }
  0xa4   : > { %6633 = vmatmul.mubr.msk.bf16.gmra.mxu1 %vm566_vm3, %v7703_v29 }
  0xa5   : > { %6636 = vmatprep.mubr.msk.bf16.mxu1 %vm566_vm3, %v7717_v56 }
  0xaa   : > { %6671 = vmatmul.mubr.msk.bf16.gmra.mxu0 %vm566_vm3, %v7596_v44 }
  0xab   : > { %6674 = vmatprep.mubr.msk.bf16.mxu0 %vm566_vm3, %v7628_v36 }
  0xac   : > { %6637 = vmatmul.mubr.msk.bf16.gmra.mxu1 %vm566_vm3, %v7730_v51 }
  0xad   : > { %6640 = vmatprep.mubr.msk.bf16.mxu1 %vm566_vm3, %v7738_v27 }
  0xb2   : > { %6675 = vmatmul.mubr.msk.bf16.gmra.mxu0 %vm566_vm3, %v7954_v5 }
  0xb3   : > { %6714 = vmatprep.mubr.msk.bf16.mxu0 %vm566_vm3, %v7681_v1 }
  0xb4   : > { %6641 = vmatmul.mubr.msk.bf16.gmra.mxu1 %vm566_vm3, %v1370_v31 }
  0xb5   : > { %6680 = vmatprep.mubr.msk.bf16.mxu1 %vm566_vm3, %v7654_v32 }
  0xba   : > { %6715 = vmatmul.mubr.msk.bf16.vlgmr.msra.gmra.mxu0 %vm566_vm3, %v7711_v8 }
  0xbb   : > { %6781 = vmatpush3.bf16.msra.mxu0 %v2421_v25  ;;  %6718 = vmatprep.mubr.msk.bf16.mxu0 %vm566_vm3, %v7734_v26 }
  0xbc   : > { %6681 = vmatmul.mubr.msk.bf16.vlgmr.msra.gmra.mxu1 %vm566_vm3, %v7661_v54 }
  0xbd   : > { %6747 = vmatpush3.bf16.msra.mxu1 %v2212_v41  ;;  %6684 = vmatprep.mubr.msk.bf16.mxu1 %vm566_vm3, %v7713_v28 }
  0xc2   : > { %6719 = vmatmul.mubr.msk.bf16.gmra.mxu0 %vm566_vm3, %v7762_v22 }
  0xc3   : > { %6722 = vmatprep.mubr.msk.bf16.mxu0 %vm566_vm3, %v7768_v55 }
  0xc4   : > { %6685 = vmatmul.mubr.msk.bf16.gmra.mxu1 %vm566_vm3, %v7720_v48 }
  0xc5   : > { %6688 = vmatprep.mubr.msk.bf16.mxu1 %vm566_vm3, %v7752_v47 }
  0xca   : > { %6723 = vmatmul.mubr.msk.bf16.gmra.mxu0 %vm566_vm3, %v7791_v15 }
  0xcb   : > { %6726 = vmatprep.mubr.msk.bf16.mxu0 %vm566_vm3, %v7659_v37 }
  0xcc   : > { %6689 = vmatmul.mubr.msk.bf16.gmra.mxu1 %vm566_vm3, %v7754_v13 }
  0xcd   : > { %6692 = vmatprep.mubr.msk.bf16.mxu1 %vm566_vm3, %v7782_v52 }
  0xd2   : > { %6727 = vmatmul.mubr.msk.bf16.gmra.mxu0 %vm566_vm3, %v7667_v24 }
  0xd3   : > { %6730 = vmatprep.mubr.msk.bf16.mxu0 %vm566_vm3, %v7677_v7 }
  0xd4   : > { %6693 = vmatmul.mubr.msk.bf16.gmra.mxu1 %vm566_vm3, %v7784_v59 }
  0xd5   : > { %6696 = vmatprep.mubr.msk.bf16.mxu1 %vm566_vm3, %v7808_v49 }
  0xda   : > { %v6512_v32 = vpop.f32.mrf.mxu0  ;;  %6731 = vmatmul.mubr.msk.bf16.gmra.mxu0 %vm566_vm3, %v7695_v19 }
  0xdb   : > { %6734 = vmatprep.mubr.msk.bf16.mxu0 %vm566_vm3, %v7703_v29 }
  0xdc   : > { %v7999_v37 = vpop.f32.mrf.mxu1  ;;  %6697 = vmatmul.mubr.msk.bf16.gmra.mxu1 %vm566_vm3, %v7810_v62  ;;  %v656_v24 = vpop.f32.mrf.mxu0 }
  0xdd   : > { %6700 = vmatprep.mubr.msk.bf16.mxu1 %vm566_vm3, %v7830_v39 }
  0xde   : > { %v8005_v7 = vpop.f32.mrf.mxu1  ;;  %v6513_v1 = vpop.f32.mrf.mxu0 }
  0xe0   : > { %v8007_v8 = vpop.f32.mrf.mxu1  ;;  %v659_v26 = vpop.f32.mrf.mxu0 }
  0xe2   : > { %v8009_v22 = vpop.f32.mrf.mxu1  ;;  %v8011_v19 = vpop.f32.mrf.mxu0  ;;  %6735 = vmatmul.mubr.msk.bf16.gmra.mxu0 %vm566_vm3, %v7717_v56 }
  0xe3   : > { %10600 = vst [vmem:[#allocation4_spill] sm:$0xff] %v8009_v22  ;;  %6738 = vmatprep.mubr.msk.bf16.mxu0 %vm566_vm3, %v7730_v51 }
  0xe4   : > { %v8017_v29 = vpop.f32.mrf.mxu1  ;;  %6701 = vmatmul.mubr.msk.bf16.gmra.mxu1 %vm566_vm3, %v7832_v40  ;;  %v8021_v55 = vpop.f32.mrf.mxu0 }
  0xe5   : > { %6704 = vmatprep.mubr.msk.bf16.mxu1 %vm566_vm3, %v7852_v63 }
  0xe6   : > { %v8025_v15 = vpop.f32.mrf.mxu1  ;;  %v8027_v60 = vpop.f32.mrf.mxu0 }
  0xe8   : > { %v8029_v17 = vpop.f32.mrf.mxu1  ;;  %v8031_v56 = vpop.f32.mrf.mxu0 }
  0xea   : > { %v8033_v21 = vpop.f32.mrf.mxu1  ;;  %v8035_v51 = vpop.f32.mrf.mxu0  ;;  %6739 = vmatmul.mubr.msk.bf16.gmra.mxu0 %vm566_vm3, %v7738_v27  ;;  %v1993_v27 = vpack.c.bf16 %v8044_v18, %v8041_v14 }
  0xeb   : > { %10601 = vst [vmem:[#allocation6_spill] sm:$0xff] %v8033_v21  ;;  %6742 = vmatprep.mubr.msk.bf16.mxu0 %vm566_vm3, %v1370_v31 }
  0xec   : > { %v8046_v33 = vpop.f32.mrf.mxu1  ;;  %6705 = vmatmul.mubr.msk.bf16.gmra.mxu1 %vm566_vm3, %v7854_v43  ;;  %v8050_v2 = vpop.f32.mrf.mxu0 }
  0xed   : > { %6708 = vmatprep.mubr.msk.bf16.mxu1 %vm566_vm3, %v7871_v0 }
  0xee   : > { %v8054_v3 = vpop.f32.mrf.mxu1  ;;  %v8056_v61 = vpop.f32.mrf.mxu0 }
  0xef   : > { %10602 = vst [vmem:[#allocation9_spill] sm:$0xff] %v8054_v3 }
  0xf0   : > { %v8060_v46 = vpop.f32.mrf.mxu1  ;;  %v8062_v16 = vpop.f32.mrf.mxu0 }
  0xf1   : > { %10603 = vst [vmem:[#allocation12_spill] sm:$0xff] %v8060_v46 }
  0xf2   : > { %v8064_v25 = vpop.f32.mrf.mxu1  ;;  %v8066_v41 = vpop.f32.mrf.mxu0  ;;  %6743 = vmatmul.mubr.msk.bf16.gmra.mxu0 %vm566_vm3, %v1993_v27 }
  0xf3   : > { %10604 = vst [vmem:[#allocation14_spill] sm:$0xff] %v8064_v25  ;;  %6782 = vmatprep.mubr.msk.bf16.mxu0 %vm566_vm3, %v7661_v54 }
  0xf4   : > { %v8071_v10 = vpop.f32.mrf.mxu1  ;;  %6709 = vmatmul.mubr.msk.bf16.gmra.mxu1 %vm566_vm3, %v7878_v30  ;;  %v8075_v57 = vpop.f32.mrf.mxu0 }
  0xf5   : > { %10605 = vst [vmem:[#allocation17_spill] sm:$0xff] %v8071_v10  ;;  %6748 = vmatprep.mubr.msk.bf16.mxu1 %vm566_vm3, %v10590_v58 }
  0xf6   : > { %v8079_v42 = vpop.f32.mrf.mxu1  ;;  %v8081_v11 = vpop.f32.mrf.mxu0 }
  0xf7   : > { %10606 = vst [vmem:[#allocation7_spill] sm:$0xff] %v8079_v42 }
  0xf8   : > { %v8083_v53 = vpop.f32.mrf.mxu1  ;;  %v8085_v31 = vpop.f32.mrf.mxu0 }
  0xf9   : > { %10607 = vst [vmem:[#allocation10_spill] sm:$0xff] %v8083_v53 }
  0xfa   : > { %v8087_v27 = vpop.f32.mrf.mxu1  ;;  %v6580_v54 = vpop.f32.mrf.mxu0  ;;  %6783 = vmatmul.mubr.msk.bf16.vlgmr.msra.gmra.mxu0 %vm566_vm3, %v7713_v28 }
  0xfb   : > { %10608 = vst [vmem:[#allocation13_spill] sm:$0xff] %v8087_v27  ;;  %6786 = vmatprep.mubr.msk.bf16.mxu0 %vm566_vm3, %v7720_v48 }
  0xfc   : > { %v6546_v25 = vpop.f32.mrf.mxu1  ;;  %6749 = vmatmul.mubr.msk.bf16.vlgmr.msra.gmra.mxu1 %vm566_vm3, %v10591_v34  ;;  %v1211_v58 = vpop.f32.mrf.mxu0 }
  0xfd   : > { %v877_v21 = vadd.f32 %v6546_v25, %v6512_v32  ;;  %6752 = vmatprep.mubr.msk.bf16.mxu1 %vm566_vm3, %v10592_v20 }
  0xfe   : > { %v868_v22 = vpop.f32.mrf.mxu1  ;;  %v6581_v53 = vpop.f32.mrf.mxu0 }
  0xff   : > { %v8097_v42 = vadd.f32 %v6580_v54, %v877_v21  ;;  %v869_v27 = vadd.f32 %v868_v22, %v656_v24 }
 0x100   : > { %v6547_v10 = vpop.f32.mrf.mxu1  ;;  %v1214_v46 = vpop.f32.mrf.mxu0 }
 0x101   : > { %v8099_v28 = vadd.f32 %v1211_v58, %v869_v27  ;;  %v880_v3 = vadd.f32 %v6547_v10, %v6513_v1 }
 0x102   : > { %v871_v48 = vpop.f32.mrf.mxu1  ;;  %v6584_v5 = vpop.f32.mrf.mxu0  ;;  %6787 = vmatmul.mubr.msk.bf16.gmra.mxu0 %vm566_vm3, %v7752_v47 }
 0x103   : > { %v8103_v34 = vadd.f32 %v6581_v53, %v880_v3  ;;  %v872_v32 = vadd.f32 %v871_v48, %v659_v26  ;;  %6790 = vmatprep.mubr.msk.bf16.mxu0 %vm566_vm3, %v7754_v13 }
 0x104   : > { %v6550_v20 = vpop.f32.mrf.mxu1  ;;  %6753 = vmatmul.mubr.msk.bf16.gmra.mxu1 %vm566_vm3, %v7578_v23  ;;  %v1227_v24 = vpop.f32.mrf.mxu0 }
 0x105   : > { %v8109_v22 = vadd.f32 %v1214_v46, %v872_v32  ;;  %v893_v1 = vadd.f32 %v6550_v20, %v8011_v19  ;;  %6756 = vmatprep.mubr.msk.bf16.mxu1 %vm566_vm3, %v7592_v45 }
 0x106   : > { %v884_v21 = vpop.f32.mrf.mxu1  ;;  %v6585_v47 = vpop.f32.mrf.mxu0 }
 0x107   : > { %v8114_v3 = vadd.f32 %v6584_v5, %v893_v1  ;;  %v885_v26 = vadd.f32 %v884_v21, %v8021_v55 }
 0x108   : > { %v6551_v25 = vpop.f32.mrf.mxu1  ;;  %v1230_v13 = vpop.f32.mrf.mxu0 }
 0x109   : > { %v8117_v10 = vadd.f32 %v1227_v24, %v885_v26  ;;  %v896_v23 = vadd.f32 %v6551_v25, %v8027_v60 }
 0x10a   : > { %v887_v53 = vpop.f32.mrf.mxu1  ;;  %v6588_v46 = vpop.f32.mrf.mxu0  ;;  %6791 = vmatmul.mubr.msk.bf16.gmra.mxu0 %vm566_vm3, %v7782_v52 }
 0x10b   : > { %v8122_v19 = vadd.f32 %v6585_v47, %v896_v23  ;;  %v888_v45 = vadd.f32 %v887_v53, %v8031_v56  ;;  %6794 = vmatprep.mubr.msk.bf16.mxu0 %vm566_vm3, %v7784_v59  ;;  %v7207_v23 = vld [vmem:[%s10477_s3 + $0x18] sm:$0xff]  }
 0x10c   : > { %v6554_v5 = vpop.f32.mrf.mxu1  ;;  %6757 = vmatmul.mubr.msk.bf16.gmra.mxu1 %vm566_vm3, %v7624_v6  ;;  %v1243_v55 = vpop.f32.mrf.mxu0  ;;  %6814 = vmatprep.subr.bf16.mxu1 %v7207_v23 }
 0x10d   : > { %v8129_v27 = vadd.f32 %v1230_v13, %v888_v45  ;;  %v909_v60 = vadd.f32 %v6554_v5, %v8035_v51  ;;  %6760 = vmatprep.mubr.msk.bf16.mxu1 %vm566_vm3, %v10593_v4  ;;  %6815 = vmatpush3.bf16.msra.mxu1 %v7207_v23  ;;  %v10609_v23 = vld [vmem:[#allocation3_spill] sm:$0xff] }
 0x10e   : > { %v900_v52 = vpop.f32.mrf.mxu1  ;;  %v6589_v54 = vpop.f32.mrf.mxu0 }
 0x10f   : > { %v8134_v58 = vadd.f32 %v6588_v46, %v909_v60  ;;  %v901_v56 = vadd.f32 %v900_v52, %v8050_v2 }
 0x110   : > { %v6555_v48 = vpop.f32.mrf.mxu1  ;;  %v1246_v59 = vpop.f32.mrf.mxu0 }
 0x111   : > { %v8137_v32 = vadd.f32 %v1243_v55, %v901_v56  ;;  %v912_v6 = vadd.f32 %v6555_v48, %v8056_v61 }
 0x112   : > { %v903_v20 = vpop.f32.mrf.mxu1  ;;  %v6592_v24 = vpop.f32.mrf.mxu0  ;;  %6795 = vmatmul.mubr.msk.bf16.gmra.mxu0 %vm566_vm3, %v7808_v49 }
 0x113   : > { %v8142_v51 = vadd.f32 %v6589_v54, %v912_v6  ;;  %v904_v4 = vadd.f32 %v903_v20, %v8062_v16  ;;  %6798 = vmatprep.mubr.msk.bf16.mxu0 %vm566_vm3, %v7810_v62 }
 0x114   : > { %v6558_v1 = vpop.f32.mrf.mxu1  ;;  %6761 = vmatmul.mubr.msk.bf16.gmra.mxu1 %vm566_vm3, %v10594_v12  ;;  %v1259_v2 = vpop.f32.mrf.mxu0 }
 0x115   : > { %v8149_v21 = vadd.f32 %v1246_v59, %v904_v4  ;;  %v925_v61 = vadd.f32 %v6558_v1, %v8066_v41  ;;  %6764 = vmatprep.mubr.msk.bf16.mxu1 %vm566_vm3, %v10595_v50  ;;  %v369_v59 = vld [vmem:[%s7318_s20 + $0x1a8] sm:$0x3]  ;;  %s6156_s20 = sshll.u32 %s10888_s28, 8 }
 0x116   : > { %v916_v49 = vpop.f32.mrf.mxu1  ;;  %v6593_v47 = vpop.f32.mrf.mxu0  ;;  %v2410_v1 = vrot.slane %v369_v59, 2  ;;  %s10373_s25 = scalar_lea.vmem %s10481_s7, %s6156_s20 }
 0x117   : > { %v8154_v26 = vadd.f32 %v6592_v24, %v925_v61  ;;  %v917_v16 = vadd.f32 %v916_v49, %v8075_v57  ;;  %v2408_v24 = vrot.slane %v8044_v18, 2 }
 0x118   : > { %v6559_v25 = vpop.f32.mrf.mxu1  ;;  %v1262_v62 = vpop.f32.mrf.mxu0 }
 0x119   : > { %v8157_v13 = vadd.f32 %v1259_v2, %v917_v16  ;;  %v928_v12 = vadd.f32 %v6559_v25, %v8081_v11 }
 0x11a   : > { %v919_v41 = vpop.f32.mrf.mxu1  ;;  %v6596_v53 = vpop.f32.mrf.mxu0  ;;  %6799 = vmatmul.mubr.msk.bf16.gmra.mxu0 %vm566_vm3, %v7830_v39 }
 0x11b   : > { %v8165_v50 = vadd.f32 %v6593_v47, %v928_v12  ;;  %v920_v46 = vadd.f32 %v919_v41, %v8085_v31  ;;  %6802 = vmatprep.mubr.msk.bf16.mxu0 %vm566_vm3, %v7832_v40  ;;  %v2201_v47 = vrot.slane %v369_v59, 1 }
 0x11c   : > { %v6562_v57 = vpop.f32.mrf.mxu1  ;;  %6765 = vmatmul.mubr.msk.bf16.gmra.mxu1 %vm566_vm3, %v10596_v35  ;;  %v1275_v11 = vpop.f32.mrf.mxu0 }
 0x11d   : > { %v8172_v45 = vadd.f32 %v1262_v62, %v920_v46  ;;  %v941_v5 = vadd.f32 %v6562_v57, %v7999_v37  ;;  %6768 = vmatprep.mubr.msk.bf16.mxu1 %vm566_vm3, %v10597_v38 }
 0x11e   : > { %v932_v39 = vpop.f32.mrf.mxu1  ;;  %v6597_v31 = vpop.f32.mrf.mxu0 }
 0x11f   : > { %v8177_v55 = vadd.f32 %v6596_v53, %v941_v5  ;;  %v933_v40 = vadd.f32 %v932_v39, %v8005_v7 }
 0x120   : > { %v6563_v60 = vpop.f32.mrf.mxu1  ;;  %v8180_v52 = vpop.f32.mrf.mxu0 }
 0x121   : > { %v8182_v35 = vadd.f32 %v1275_v11, %v933_v40  ;;  %v944_v54 = vadd.f32 %v6563_v60, %v8007_v8  ;;  %v2407_v8 = vrot.slane %v8041_v14, 2  ;;  %v10610_v11 = vld [vmem:[#allocation9_spill] sm:$0xff] }
 0x122   : > { %v8185_v56 = vpop.f32.mrf.mxu1  ;;  %v6600_v37 = vpop.f32.mrf.mxu0  ;;  %6803 = vmatmul.mubr.msk.bf16.gmra.mxu0 %vm566_vm3, %v7852_v63 }
 0x123   : > { %v8189_v38 = vadd.f32 %v6597_v31, %v944_v54  ;;  %6806 = vmatprep.mubr.msk.bf16.mxu0 %vm566_vm3, %v7854_v43 }
 0x124   : > { %v6566_v48 = vpop.f32.mrf.mxu1  ;;  %6769 = vmatmul.mubr.msk.bf16.gmra.mxu1 %vm566_vm3, %v10598_v9  ;;  %v1291_v7 = vpop.f32.mrf.mxu0  ;;  %v2198_v9 = vrot.slane %v8041_v14, 1  ;;  %v2409_v14 = vsel %vm995_vm4, %v2407_v8, %v2408_v24 }
 0x125   : > { %v957_v6 = vadd.f32 %v6566_v48, %v8017_v29  ;;  %6772 = vmatprep.mubr.msk.bf16.mxu1 %vm566_vm3, %v7596_v44  ;;  %v2199_v29 = vrot.slane %v8044_v18, 1  ;;  %v2411_v18 = vsel %vm995_vm4, %v2408_v24, %v2410_v1 }
 0x126   : > { %v948_v20 = vpop.f32.mrf.mxu1  ;;  %v6601_v63 = vpop.f32.mrf.mxu0  ;;  %v2414_v46 = vpack.c.bf16 %v2411_v18, %v2409_v14 }
 0x127   : > { %v8201_v4 = vadd.f32 %v6600_v37, %v957_v6  ;;  %v949_v43 = vadd.f32 %v948_v20, %v8025_v15  ;;  %v2202_v41 = vsel %vm435_vm2, %v2199_v29, %v2201_v47  ;;  %v10612_v6 = vld [vmem:[#allocation17_spill] sm:$0xff] }
 0x128   : > { %v6567_v2 = vpop.f32.mrf.mxu1  ;;  %v8205_v61 = vpop.f32.mrf.mxu0 }
 0x129   : > { %v8208_v49 = vadd.f32 %v1291_v7, %v949_v43  ;;  %v960_v44 = vadd.f32 %v6567_v2, %v8029_v17  ;;  %v10613_v43 = vld [vmem:[#allocation7_spill] sm:$0xff] }
 0x12a   : > { %v8211_v16 = vpop.f32.mrf.mxu1  ;;  %v6604_v25 = vpop.f32.mrf.mxu0  ;;  %6807 = vmatmul.mubr.msk.bf16.gmra.mxu0 %vm566_vm3, %v7871_v0  ;;  %v2200_v0 = vsel %vm435_vm2, %v2198_v9, %v2199_v29 }
 0x12b   : > { %v8215_v15 = vadd.f32 %v6601_v63, %v960_v44  ;;  %6810 = vmatprep.mubr.msk.bf16.mxu0 %vm566_vm3, %v7878_v30  ;;  %v10614_v44 = vld [vmem:[#allocation10_spill] sm:$0xff] }
 0x12c   : > { %v6570_v62 = vpop.f32.mrf.mxu1  ;;  %6773 = vmatmul.mubr.msk.bf16.gmra.mxu1 %vm566_vm3, %v7628_v36  ;;  %v1307_v17 = vpop.f32.mrf.mxu0  ;;  %v2205_v36 = vpack.c.bf16 %v2202_v41, %v2200_v0 }
 0x12d   : > { %v973_v12 = vadd.f32 %v6570_v62, %v8046_v33  ;;  %6776 = vmatprep.mubr.msk.bf16.mxu1 %vm566_vm3, %v10609_v23  ;;  %v10611_v33 = vld [vmem:[#allocation12_spill] sm:$0xff] }
 0x12e   : > { %v964_v53 = vpop.f32.mrf.mxu1  ;;  %v6605_v30 = vpop.f32.mrf.mxu0 }
 0x12f   : > { %v8228_v57 = vadd.f32 %v6604_v25, %v973_v12  ;;  %v965_v5 = vadd.f32 %v964_v53, %v10610_v11  ;;  %v7208_v25 = vld [vmem:[%s10477_s3 + $0x10] sm:$0xff]  }
 0x130   : > { %v6571_v39 = vpop.f32.mrf.mxu1  ;;  %v8231_v31 = vpop.f32.mrf.mxu0  ;;  %6816 = vmatprep.subr.bf16.mxu1 %v7208_v25 }
 0x131   : > { %v8233_v40 = vadd.f32 %v1307_v17, %v965_v5  ;;  %v976_v60 = vadd.f32 %v6571_v39, %v10611_v33  ;;  %6817 = vmatpush3.bf16.msra.mxu1 %v7208_v25 }
 0x132   : > { %v8236_v54 = vpop.f32.mrf.mxu1  ;;  %v6608_v37 = vpop.f32.mrf.mxu0  ;;  %6811 = vmatmul.mubr.msk.bf16.gmra.mxu0 %vm566_vm3, %v2414_v46 }
 0x133   : > { %v8239_v48 = vadd.f32 %v6605_v30, %v976_v60 }
 0x134   : > { %v6574_v7 = vpop.f32.mrf.mxu1  ;;  %6777 = vmatmul.mubr.msk.bf16.gmra.mxu1 %vm566_vm3, %v2205_v36  ;;  %v1323_v59 = vpop.f32.mrf.mxu0 }
 0x135   : > { %v989_v8 = vadd.f32 %v6574_v7, %v10612_v6  ;;  %v7234_v7 = vmov 0.0  }
 0x136   : > { %v980_v20 = vpop.f32.mrf.mxu1  ;;  %v6609_v63 = vpop.f32.mrf.mxu0  ;;  %2695 = vst.msk [vmem:[#allocation2 + $0x30] sm:$0xff] %vm2687_vm5, %v7234_v7  ;;  %2696 = vst.msk [vmem:[#allocation2 + $0x38] sm:$0xff] %vm2687_vm5, %v7234_v7 }
 0x137   : > { %v8243_v24 = vadd.f32 %v6608_v37, %v989_v8  ;;  %v981_v1 = vadd.f32 %v980_v20, %v10613_v43  ;;  %2688 = vst.msk [vmem:[#allocation2] sm:$0xff] %vm2687_vm5, %v7234_v7  ;;  %2689 = vst.msk [vmem:[#allocation2 + $0x8] sm:$0xff] %vm2687_vm5, %v7234_v7 }
 0x138   : > { %v6575_v9 = vpop.f32.mrf.mxu1  ;;  %v8246_v2 = vpop.f32.mrf.mxu0  ;;  %2692 = vst.msk [vmem:[#allocation2 + $0x18] sm:$0xff] %vm2687_vm5, %v7234_v7  ;;  %2693 = vst.msk [vmem:[#allocation2 + $0x20] sm:$0xff] %vm2687_vm5, %v7234_v7 }
 0x139   : > { %v8248_v29 = vadd.f32 %v1323_v59, %v981_v1  ;;  %v992_v47 = vadd.f32 %v6575_v9, %v10614_v44  ;;  %2698 = vst.msk [vmem:[#allocation2 + $0x48] sm:$0xff] %vm2687_vm5, %v7234_v7  ;;  %2699 = vst.msk [vmem:[#allocation2 + $0x50] sm:$0xff] %vm2687_vm5, %v7234_v7  ;;  %v7209_v44 = vld [vmem:[%s10477_s3 + $0x8] sm:$0xff]  }
 0x13a   : > { %v8254_v14 = vpop.f32.mrf.mxu1  ;;  %v6648_v18 = vpop.f32.mrf.mxu0  ;;  %2701 = vst.msk [vmem:[#allocation2 + $0x60] sm:$0xff] %vm2687_vm5, %v7234_v7  ;;  %2702 = vst.msk [vmem:[#allocation2 + $0x68] sm:$0xff] %vm2687_vm5, %v7234_v7  ;;  %6850 = vmatprep.subr.bf16.mxu0 %v7209_v44 }
 0x13b   : > { %v8256_v62 = vadd.f32 %v6609_v63, %v992_v47  ;;  %2704 = vst.msk [vmem:[#allocation2 + $0x78] sm:$0xff] %vm2687_vm5, %v7234_v7  ;;  %2705 = vst.msk [vmem:[#allocation2 + $0x80] sm:$0xff] %vm2687_vm5, %v7234_v7  ;;  %6851 = vmatpush3.bf16.msra.mxu0 %v7209_v44 }
 0x13c   : > { %v6614_v17 = vpop.f32.mrf.mxu1  ;;  %v1625_v12 = vpop.f32.mrf.mxu0  ;;  %2707 = vst.msk [vmem:[#allocation2 + $0x90] sm:$0xff] %vm2687_vm5, %v7234_v7  ;;  %2708 = vst.msk [vmem:[#allocation2 + $0x98] sm:$0xff] %vm2687_vm5, %v7234_v7 }
 0x13d   : > { %v1542_v23 = vadd.f32 %v6614_v17, %v8097_v42  ;;  %2710 = vst.msk [vmem:[#allocation2 + $0xa8] sm:$0xff] %vm2687_vm5, %v7234_v7  ;;  %2711 = vst.msk [vmem:[#allocation2 + $0xb0] sm:$0xff] %vm2687_vm5, %v7234_v7 }
 0x13e   : > { %v1413_v0 = vpop.f32.mrf.mxu1  ;;  %v6649_v41 = vpop.f32.mrf.mxu0  ;;  %2713 = vst.msk [vmem:[#allocation2 + $0xc0] sm:$0xff] %vm2687_vm5, %v7234_v7  ;;  %2714 = vst.msk [vmem:[#allocation2 + $0xc8] sm:$0xff] %vm2687_vm5, %v7234_v7 }
 0x13f   : > { %v8259_v53 = vadd.f32 %v6648_v18, %v1542_v23  ;;  %v1540_v30 = vadd.f32 %v1413_v0, %v8099_v28  ;;  %2716 = vst.msk [vmem:[#allocation2 + $0xd8] sm:$0xff] %vm2687_vm5, %v7234_v7  ;;  %2717 = vst.msk [vmem:[#allocation2 + $0xe0] sm:$0xff] %vm2687_vm5, %v7234_v7  ;;  %v7210_v0 = vld [vmem:[%s10477_s3] sm:$0xff]  }
 0x140   : > { %v6615_v46 = vpop.f32.mrf.mxu1  ;;  %v8262_v11 = vpop.f32.mrf.mxu0  ;;  %2719 = vst.msk [vmem:[#allocation2 + $0xf0] sm:$0xff] %vm2687_vm5, %v7234_v7  ;;  %2720 = vst.msk [vmem:[#allocation2 + $0xf8] sm:$0xff] %vm2687_vm5, %v7234_v7  ;;  %6852 = vmatprep.subr.bf16.mxu0 %v7210_v0 }
 0x141   : > { %v8264_v5 = vadd.f32 %v1625_v12, %v1540_v30  ;;  %v1543_v39 = vadd.f32 %v6615_v46, %v8103_v34  ;;  %2722 = vst.msk [vmem:[#allocation2 + $0x108] sm:$0xff] %vm2687_vm5, %v7234_v7  ;;  %2723 = vst.msk [vmem:[#allocation2 + $0x110] sm:$0xff] %vm2687_vm5, %v7234_v7  ;;  %6853 = vmatpush3.bf16.msra.mxu0 %v7210_v0 }
 0x142   : > { %v8267_v36 = vpop.f32.mrf.mxu1  ;;  %v6652_v33 = vpop.f32.mrf.mxu0  ;;  %2725 = vst.msk [vmem:[#allocation2 + $0x120] sm:$0xff] %vm2687_vm5, %v7234_v7  ;;  %2726 = vst.msk [vmem:[#allocation2 + $0x128] sm:$0xff] %vm2687_vm5, %v7234_v7 }
 0x143   : > { %v8269_v60 = vadd.f32 %v6649_v41, %v1543_v39  ;;  %2728 = vst.msk [vmem:[#allocation2 + $0x138] sm:$0xff] %vm2687_vm5, %v7234_v7  ;;  %2729 = vst.msk [vmem:[#allocation2 + $0x140] sm:$0xff] %vm2687_vm5, %v7234_v7 }
 0x144   : > { %v6618_v42 = vpop.f32.mrf.mxu1  ;;  %v8271_v37 = vpop.f32.mrf.mxu0  ;;  %2731 = vst.msk [vmem:[#allocation2 + $0x150] sm:$0xff] %vm2687_vm5, %v7234_v7  ;;  %2732 = vst.msk [vmem:[#allocation2 + $0x158] sm:$0xff] %vm2687_vm5, %v7234_v7 }
 0x145   : > { %2734 = vst.msk [vmem:[#allocation2 + $0x168] sm:$0xff] %vm2687_vm5, %v7234_v7  ;;  %2735 = vst.msk [vmem:[#allocation2 + $0x170] sm:$0xff] %vm2687_vm5, %v7234_v7  ;;  %v1546_v28 = vadd.f32 %v6618_v42, %v8114_v3 }
 0x146   : > { %2737 = vst.msk [vmem:[#allocation2 + $0x180] sm:$0xff] %vm2687_vm5, %v7234_v7  ;;  %2738 = vst.msk [vmem:[#allocation2 + $0x188] sm:$0xff] %vm2687_vm5, %v7234_v7  ;;  %v1429_v34 = vpop.f32.mrf.mxu1  ;;  %v6653_v59 = vpop.f32.mrf.mxu0 }
 0x147   : > { %2740 = vst.msk [vmem:[#allocation2 + $0x198] sm:$0xff] %vm2687_vm5, %v7234_v7  ;;  %2741 = vst.msk [vmem:[#allocation2 + $0x1a0] sm:$0xff] %vm2687_vm5, %v7234_v7  ;;  %v8310_v6 = vadd.f32 %v6652_v33, %v1546_v28  ;;  %v1544_v8 = vadd.f32 %v1429_v34, %v8117_v10  ;;  %v8358_v33 = vld [vmem:[#allocation2 + $0x8] sm:$0xff] }
 0x148   : > { %v6619_v20 = vpop.f32.mrf.mxu1  ;;  %v8313_v63 = vpop.f32.mrf.mxu0  ;;  %2697 = vst.msk [vmem:[#allocation2 + $0x40] sm:$0x3] %vm2690_vm6, %v7234_v7  ;;  %2691 = vst.msk [vmem:[#allocation2 + $0x10] sm:$0x3] %vm2690_vm6, %v7234_v7  ;;  %v2899_v28 = vrot.slane %v8358_v33, 1 }
 0x149   : > { %2694 = vst.msk [vmem:[#allocation2 + $0x28] sm:$0x3] %vm2690_vm6, %v7234_v7  ;;  %2700 = vst.msk [vmem:[#allocation2 + $0x58] sm:$0x3] %vm2690_vm6, %v7234_v7  ;;  %v8334_v3 = vadd.f32 %v8271_v37, %v1544_v8  ;;  %v1547_v10 = vadd.f32 %v6619_v20, %v8122_v19 }
 0x14a   : > { %2703 = vst.msk [vmem:[#allocation2 + $0x70] sm:$0x3] %vm2690_vm6, %v7234_v7  ;;  %2706 = vst.msk [vmem:[#allocation2 + $0x88] sm:$0x3] %vm2690_vm6, %v7234_v7  ;;  %v8337_v43 = vpop.f32.mrf.mxu1  ;;  %v6656_v1 = vpop.f32.mrf.mxu0 }
 0x14b   : > { %2709 = vst.msk [vmem:[#allocation2 + $0xa0] sm:$0x3] %vm2690_vm6, %v7234_v7  ;;  %2712 = vst.msk [vmem:[#allocation2 + $0xb8] sm:$0x3] %vm2690_vm6, %v7234_v7  ;;  %v8339_v9 = vadd.f32 %v6653_v59, %v1547_v10 }
 0x14c   : > { %2715 = vst.msk [vmem:[#allocation2 + $0xd0] sm:$0x3] %vm2690_vm6, %v7234_v7  ;;  %2718 = vst.msk [vmem:[#allocation2 + $0xe8] sm:$0x3] %vm2690_vm6, %v7234_v7  ;;  %v6622_v47 = vpop.f32.mrf.mxu1  ;;  %v1657_v25 = vpop.f32.mrf.mxu0 }
 0x14d   : > { %2721 = vst.msk [vmem:[#allocation2 + $0x100] sm:$0x3] %vm2690_vm6, %v7234_v7  ;;  %2724 = vst.msk [vmem:[#allocation2 + $0x118] sm:$0x3] %vm2690_vm6, %v7234_v7  ;;  %v1550_v18 = vadd.f32 %v6622_v47, %v8134_v58  ;;  %v8356_v58 = vld [vmem:[#allocation2] sm:$0xff] }
 0x14e   : > { %2727 = vst.msk [vmem:[#allocation2 + $0x130] sm:$0x3] %vm2690_vm6, %v7234_v7  ;;  %2730 = vst.msk [vmem:[#allocation2 + $0x148] sm:$0x3] %vm2690_vm6, %v7234_v7  ;;  %v1445_v17 = vpop.f32.mrf.mxu1  ;;  %v6657_v12 = vpop.f32.mrf.mxu0 }
 0x14f   : > { %2733 = vst.msk [vmem:[#allocation2 + $0x160] sm:$0x3] %vm2690_vm6, %v7234_v7  ;;  %2736 = vst.msk [vmem:[#allocation2 + $0x178] sm:$0x3] %vm2690_vm6, %v7234_v7  ;;  %v8345_v23 = vadd.f32 %v6656_v1, %v1550_v18  ;;  %v1548_v19 = vadd.f32 %v1445_v17, %v8137_v32  ;;  %v2830_v32 = vpack.c.bf16 %v8358_v33, %v8356_v58  ;;  %v8366_v34 = vld [vmem:[#allocation2 + $0x10] sm:$0x3] }
 0x150   : > { %2739 = vst.msk [vmem:[#allocation2 + $0x190] sm:$0x3] %vm2690_vm6, %v7234_v7  ;;  %2742 = vst.msk [vmem:[#allocation2 + $0x1a8] sm:$0x3] %vm2690_vm6, %v7234_v7  ;;  %v6623_v41 = vpop.f32.mrf.mxu1  ;;  %v8351_v30 = vpop.f32.mrf.mxu0  ;;  %v2898_v7 = vrot.slane %v8356_v58, 1 }
 0x151   : > { %v8353_v46 = vadd.f32 %v1657_v25, %v1548_v19  ;;  %v1551_v39 = vadd.f32 %v6623_v41, %v8142_v51  ;;  %v2901_v51 = vrot.slane %v8366_v34, 1  ;;  %6854 = vmatprep.mubr.msk.bf16.mxu0 %vm2687_vm5, %v2830_v32 }
 0x152   : > { %v8360_v42 = vpop.f32.mrf.mxu1  ;;  %v6660_v37 = vpop.f32.mrf.mxu0  ;;  %v2900_v1 = vsel %vm435_vm2, %v2898_v7, %v2899_v28 }
 0x153   : > { %v8368_v59 = vadd.f32 %v6657_v12, %v1551_v39  ;;  %v2902_v44 = vsel %vm435_vm2, %v2899_v28, %v2901_v51 }
 0x154   : > { %v6626_v8 = vpop.f32.mrf.mxu1  ;;  %v1673_v20 = vpop.f32.mrf.mxu0  ;;  %v3010_v18 = vpack.c.bf16 %v2902_v44, %v2900_v1 }
 0x155   : > { %v1554_v10 = vadd.f32 %v6626_v8, %v8154_v26 }
 0x156   : > { %v1461_v47 = vpop.f32.mrf.mxu1  ;;  %v6661_v25 = vpop.f32.mrf.mxu0  ;;  %6818 = vmatprep.mubr.msk.bf16.mxu1 %vm2687_vm5, %v3010_v18 }
 0x157   : > { %v8375_v17 = vadd.f32 %v6660_v37, %v1554_v10  ;;  %v1552_v12 = vadd.f32 %v1461_v47, %v8157_v13 }
 0x158   : > { %v6627_v19 = vpop.f32.mrf.mxu1  ;;  %v8378_v0 = vpop.f32.mrf.mxu0 }
 0x159   : > { %10615 = vst [vmem:[#allocation16_spill] sm:$0xff] %v8375_v17  ;;  %v8381_v41 = vadd.f32 %v1673_v20, %v1552_v12  ;;  %v1555_v26 = vadd.f32 %v6627_v19, %v8165_v50  ;;  %v8395_v20 = vld [vmem:[%s10477_s3 + $0x28] sm:$0xff]  }
 0x15a   : > { %v8384_v39 = vpop.f32.mrf.mxu1  ;;  %v6664_v32 = vpop.f32.mrf.mxu0  ;;  %10619 = vst [vmem:[#allocation15_spill] sm:$0xff] %v8395_v20  ;;  %6886 = vmatprep.subr.bf16.mxu1 %v8395_v20 }
 0x15b   : > { %10616 = vst [vmem:[#allocation5_spill] sm:$0xff] %v8381_v41  ;;  %v8386_v7 = vadd.f32 %v6661_v25, %v1555_v26 }
 0x15c   : > { %v6630_v28 = vpop.f32.mrf.mxu1  ;;  %v1689_v51 = vpop.f32.mrf.mxu0 }
 0x15d   : > { %10617 = vst [vmem:[#allocation8_spill] sm:$0xff] %v8386_v7  ;;  %v1558_v37 = vadd.f32 %v6630_v28, %v8177_v55 }
 0x15e   : > { %v1477_v8 = vpop.f32.mrf.mxu1  ;;  %v6665_v13 = vpop.f32.mrf.mxu0 }
 0x15f   : > { %v8389_v10 = vadd.f32 %v6664_v32, %v1558_v37  ;;  %v1556_v1 = vadd.f32 %v1477_v8, %v8182_v35 }
 0x160   : > { %v6631_v50 = vpop.f32.mrf.mxu1  ;;  %v8397_v44 = vpop.f32.mrf.mxu0 }
 0x161   : > { %10618 = vst [vmem:[#allocation11_spill] sm:$0xff] %v8389_v10  ;;  %v8399_v47 = vadd.f32 %v1689_v51, %v1556_v1  ;;  %v1559_v25 = vadd.f32 %v6631_v50, %v8189_v38 }
 0x162   : > { %v8403_v55 = vpop.f32.mrf.mxu1  ;;  %v6668_v18 = vpop.f32.mrf.mxu0 }
 0x163   : > { %10620 = vst [vmem:[#allocation18_spill] sm:$0xff] %v8399_v47  ;;  %v8405_v12 = vadd.f32 %v6665_v13, %v1559_v25 }
 0x164   : > { %v6634_v35 = vpop.f32.mrf.mxu1  ;;  %v1705_v19 = vpop.f32.mrf.mxu0 }
 0x165   : > { %10621 = vst [vmem:[#allocation19_spill] sm:$0xff] %v8405_v12  ;;  %v1562_v26 = vadd.f32 %v6634_v35, %v8201_v4 }
 0x166   : > { %v1493_v32 = vpop.f32.mrf.mxu1  ;;  %v6669_v28 = vpop.f32.mrf.mxu0 }
 0x167   : > { %v8408_v37 = vadd.f32 %v6668_v18, %v1562_v26  ;;  %v1560_v51 = vadd.f32 %v1493_v32, %v8208_v49 }
 0x168   : > { %v6635_v8 = vpop.f32.mrf.mxu1  ;;  %v8411_v1 = vpop.f32.mrf.mxu0 }
 0x169   : > { %10622 = vst [vmem:[#allocation3_spill] sm:$0xff] %v8408_v37  ;;  %v8413_v38 = vadd.f32 %v1705_v19, %v1560_v51  ;;  %v1563_v50 = vadd.f32 %v6635_v8, %v8215_v15 }
 0x16a   : > { %v8416_v20 = vpop.f32.mrf.mxu1  ;;  %v6672_v13 = vpop.f32.mrf.mxu0 }
 0x16b   : > { %10623 = vst [vmem:[#allocation9_spill] sm:$0xff] %v8413_v38  ;;  %v8418_v25 = vadd.f32 %v6669_v28, %v1563_v50 }
 0x16c   : > { %v6638_v12 = vpop.f32.mrf.mxu1  ;;  %v1721_v4 = vpop.f32.mrf.mxu0 }
 0x16d   : > { %10624 = vst [vmem:[#allocation12_spill] sm:$0xff] %v8418_v25  ;;  %v1566_v35 = vadd.f32 %v6638_v12, %v8228_v57 }
 0x16e   : > { %v1509_v18 = vpop.f32.mrf.mxu1  ;;  %v6673_v26 = vpop.f32.mrf.mxu0 }
 0x16f   : > { %v8421_v37 = vadd.f32 %v6672_v13, %v1566_v35  ;;  %v1564_v49 = vadd.f32 %v1509_v18, %v8233_v40 }
 0x170   : > { %v6639_v32 = vpop.f32.mrf.mxu1  ;;  %v8424_v19 = vpop.f32.mrf.mxu0 }
 0x171   : > { %10625 = vst [vmem:[#allocation17_spill] sm:$0xff] %v8421_v37  ;;  %v8426_v51 = vadd.f32 %v1721_v4, %v1564_v49  ;;  %v1567_v15 = vadd.f32 %v6639_v32, %v8239_v48 }
 0x172   : > { %v8429_v8 = vpop.f32.mrf.mxu1  ;;  %v6676_v28 = vpop.f32.mrf.mxu0 }
 0x173   : > { %10626 = vst [vmem:[#allocation7_spill] sm:$0xff] %v8426_v51  ;;  %v8431_v50 = vadd.f32 %v6673_v26, %v1567_v15 }
 0x174   : > { %v6642_v25 = vpop.f32.mrf.mxu1  ;;  %v1737_v57 = vpop.f32.mrf.mxu0 }
 0x175   : > { %10627 = vst [vmem:[#allocation10_spill] sm:$0xff] %v8431_v50  ;;  %v1570_v12 = vadd.f32 %v6642_v25, %v8243_v24 }
 0x176   : > { %v1525_v13 = vpop.f32.mrf.mxu1  ;;  %v6677_v35 = vpop.f32.mrf.mxu0 }
 0x177   : > { %v8434_v37 = vadd.f32 %v6676_v28, %v1570_v12  ;;  %v1568_v40 = vadd.f32 %v1525_v13, %v8248_v29 }
 0x178   : > { %v6643_v18 = vpop.f32.mrf.mxu1  ;;  %v8437_v4 = vpop.f32.mrf.mxu0 }
 0x179   : > { %10628 = vst [vmem:[#allocation20_spill] sm:$0xff] %v8434_v37  ;;  %v8439_v49 = vadd.f32 %v1737_v57, %v1568_v40  ;;  %v1571_v48 = vadd.f32 %v6643_v18, %v8256_v62 }
 0x17a   : > { %v8442_v32 = vpop.f32.mrf.mxu1  ;;  %v8444_v26 = vpop.f32.mrf.mxu0 }
 0x17b   : > { %10629 = vst [vmem:[#allocation21_spill] sm:$0xff] %v8439_v49  ;;  %v8446_v15 = vadd.f32 %v6677_v35, %v1571_v48 }
 0x17c   : > { %v8448_v24 = vpop.f32.mrf.mxu1  ;;  %v8450_v25 = vpop.f32.mrf.mxu0 }
 0x17d   : > { %10630 = vst [vmem:[#allocation22_spill] sm:$0xff] %v8446_v15 }
 0x17e   : > { %v8452_v28 = vpop.f32.mrf.mxu1  ;;  %v8454_v29 = vpop.f32.mrf.mxu0 }
 0x17f   : > { %10631 = vst [vmem:[#allocation23_spill] sm:$0xff] %v8454_v29 }
 0x180   : > { %v8456_v12 = vpop.f32.mrf.mxu1  ;;  %v8458_v57 = vpop.f32.mrf.mxu0 }
 0x181   : > { %10632 = vst [vmem:[#allocation24_spill] sm:$0xff] %v8458_v57 }
 0x182   : > { %v8460_v13 = vpop.f32.mrf.mxu1  ;;  %v8462_v62 = vpop.f32.mrf.mxu0 }
 0x183   : > { %10633 = vst [vmem:[#allocation25_spill] sm:$0xff] %v8462_v62  ;;  %v3474_v62 = vrot.slane %v8358_v33, 2 }
 0x184   : > { %v8464_v40 = vpop.f32.mrf.mxu1  ;;  %v8466_v35 = vpop.f32.mrf.mxu0 }
 0x185   : > { %10634 = vst [vmem:[#allocation26_spill] sm:$0xff] %v8466_v35 }
 0x186   : > { %v8468_v18 = vpop.f32.mrf.mxu1  ;;  %v8470_v48 = vpop.f32.mrf.mxu0 }
 0x187   : > { %10635 = vst [vmem:[#allocation27_spill] sm:$0xff] %v8470_v48  ;;  %v8491_v48 = vld [vmem:[%s10477_s3 + $0x38] sm:$0xff]  }
 0x188   : > { %v8472_v15 = vpop.f32.mrf.mxu1  ;;  %v8474_v49 = vpop.f32.mrf.mxu0  ;;  %10640 = vst [vmem:[#allocation32_spill] sm:$0xff] %v8491_v48  ;;  %6922 = vmatprep.subr.bf16.mxu0 %v8491_v48  ;;  %v3476_v48 = vrot.slane %v8366_v34, 2 }
 0x189   : > { %10636 = vst [vmem:[#allocation28_spill] sm:$0xff] %v8474_v49 }
 0x18a   : > { %v8476_v37 = vpop.f32.mrf.mxu1  ;;  %v8478_v50 = vpop.f32.mrf.mxu0 }
 0x18b   : > { %10637 = vst [vmem:[#allocation29_spill] sm:$0xff] %v8478_v50 }
 0x18c   : > { %v8480_v51 = vpop.f32.mrf.mxu1  ;;  %v8482_v38 = vpop.f32.mrf.mxu0 }
 0x18d   : > { %10638 = vst [vmem:[#allocation30_spill] sm:$0xff] %v8482_v38  ;;  %v3473_v38 = vrot.slane %v8356_v58, 2  ;;  %v8521_v58 = vsel %vm995_vm4, %v3474_v62, %v3476_v48 }
 0x18e   : > { %v8484_v47 = vpop.f32.mrf.mxu1  ;;  %v8486_v10 = vpop.f32.mrf.mxu0  ;;  %10650 = vst [vmem:[#allocation42_spill] sm:$0xff] %v8521_v58 }
 0x18f   : > { %10639 = vst [vmem:[#allocation31_spill] sm:$0xff] %v8486_v10 }
 0x190   : > { %v8493_v7 = vpop.f32.mrf.mxu1  ;;  %v8495_v49 = vpop.f32.mrf.mxu0 }
 0x191   : > { %10641 = vst [vmem:[#allocation33_spill] sm:$0xff] %v8495_v49  ;;  %v8513_v49 = vsel %vm995_vm4, %v3473_v38, %v3474_v62 }
 0x192   : > { %v8498_v50 = vpop.f32.mrf.mxu1  ;;  %v8500_v35 = vpop.f32.mrf.mxu0  ;;  %10647 = vst [vmem:[#allocation39_spill] sm:$0xff] %v8513_v49 }
 0x193   : > { %10642 = vst [vmem:[#allocation34_spill] sm:$0xff] %v8500_v35 }
 0x194   : > { %v8504_v10 = vpop.f32.mrf.mxu1  ;;  %v8506_v57 = vpop.f32.mrf.mxu0 }
 0x195   : > { %10643 = vst [vmem:[#allocation35_spill] sm:$0xff] %v8504_v10  ;;  %10644 = vst [vmem:[#allocation36_spill] sm:$0xff] %v8506_v57 }
 0x196   : > { %v8508_v41 = vpop.f32.mrf.mxu1  ;;  %v8510_v17 = vpop.f32.mrf.mxu0 }
 0x197   : > { %10645 = vst [vmem:[#allocation37_spill] sm:$0xff] %v8508_v41  ;;  %10646 = vst [vmem:[#allocation38_spill] sm:$0xff] %v8510_v17 }
 0x198   : > { %v8516_v29 = vpop.f32.mrf.mxu1  ;;  %v8518_v35 = vpop.f32.mrf.mxu0 }
 0x199   : > { %10648 = vst [vmem:[#allocation40_spill] sm:$0xff] %v8516_v29  ;;  %10649 = vst [vmem:[#allocation41_spill] sm:$0xff] %v8518_v35 }
 0x19a   : > { %v8523_v33 = vpop.f32.mrf.mxu1  ;;  %v8525_v10 = vpop.f32.mrf.mxu0 }
 0x19b   : > { %10651 = vst [vmem:[#allocation43_spill] sm:$0xff] %v8523_v33  ;;  %10652 = vst [vmem:[#allocation44_spill] sm:$0xff] %v8525_v10 }
 0x19c   : > { %v8529_v17 = vpop.f32.mrf.mxu1  ;;  %v8531_v38 = vpop.f32.mrf.mxu0 }
 0x19d   : > { %10653 = vst [vmem:[#allocation45_spill] sm:$0xff] %v8529_v17  ;;  %10654 = vst [vmem:[#allocation46_spill] sm:$0xff] %v8531_v38 }
 0x19e   : > { %v8533_v41 = vpop.f32.mrf.mxu1  ;;  %v8535_v34 = vpop.f32.mrf.mxu0 }
 0x19f   : > { %10655 = vst [vmem:[#allocation47_spill] sm:$0xff] %v8533_v41  ;;  %10656 = vst [vmem:[#allocation48_spill] sm:$0xff] %v8535_v34  ;;  %v10673_v41 = vld [vmem:[#allocation14_spill] sm:$0xff] }
 0x1a0   : > { %v8537_v29 = vpop.f32.mrf.mxu1  ;;  %v8539_v35 = vpop.f32.mrf.mxu0 }
 0x1a1   : > { %10657 = vst [vmem:[#allocation49_spill] sm:$0xff] %v8537_v29  ;;  %10658 = vst [vmem:[#allocation50_spill] sm:$0xff] %v8539_v35 }
 0x1a2   : > { %v8541_v62 = vpop.f32.mrf.mxu1  ;;  %v8543_v48 = vpop.f32.mrf.mxu0 }
 0x1a3   : > { %10659 = vst [vmem:[#allocation51_spill] sm:$0xff] %v8541_v62  ;;  %10660 = vst [vmem:[#allocation52_spill] sm:$0xff] %v8543_v48  ;;  %v10671_v48 = vld [vmem:[#allocation4_spill] sm:$0xff] }
 0x1a4   : > { %v8545_v10 = vpop.f32.mrf.mxu1  ;;  %v8547_v33 = vpop.f32.mrf.mxu0 }
 0x1a5   : > { %10661 = vst [vmem:[#allocation53_spill] sm:$0xff] %v8545_v10  ;;  %10662 = vst [vmem:[#allocation54_spill] sm:$0xff] %v8547_v33  ;;  %v936_v10 = vadd.f32 %v8185_v56, %v10671_v48  ;;  %v10672_v33 = vld [vmem:[#allocation6_spill] sm:$0xff] }
 0x1a6   : > { %v8549_v57 = vpop.f32.mrf.mxu1  ;;  %v8551_v49 = vpop.f32.mrf.mxu0 }
 0x1a7   : > { %10663 = vst [vmem:[#allocation55_spill] sm:$0xff] %v8549_v57  ;;  %10664 = vst [vmem:[#allocation56_spill] sm:$0xff] %v8551_v49  ;;  %v952_v57 = vadd.f32 %v8211_v16, %v10672_v33  ;;  %v968_v49 = vadd.f32 %v8236_v54, %v10673_v41  ;;  %v1541_v54 = vadd.f32 %v8267_v36, %v8109_v22 }
 0x1a8   : > { %v8553_v58 = vpop.f32.mrf.mxu1  ;;  %v8555_v38 = vpop.f32.mrf.mxu0  ;;  %v1545_v41 = vadd.f32 %v8337_v43, %v8129_v27  ;;  %v1549_v33 = vadd.f32 %v8360_v42, %v8149_v21 }
 0x1a9   : > { %10665 = vst [vmem:[#allocation57_spill] sm:$0xff] %v8553_v58  ;;  %10666 = vst [vmem:[#allocation58_spill] sm:$0xff] %v8555_v38  ;;  %v1359_v56 = vadd.f32 %v8205_v61, %v952_v57  ;;  %v1363_v16 = vadd.f32 %v8231_v31, %v968_v49  ;;  %v1753_v43 = vadd.f32 %v8262_v11, %v1541_v54 }
 0x1aa   : > { %v8557_v34 = vpop.f32.mrf.mxu1  ;;  %v8559_v29 = vpop.f32.mrf.mxu0  ;;  %v1757_v42 = vadd.f32 %v8313_v63, %v1545_v41  ;;  %v1964_v11 = vadd.f32 %v8456_v12, %v8269_v60  ;;  %v10675_v12 = vld [vmem:[#allocation23_spill] sm:$0xff] }
 0x1ab   : > { %10667 = vst [vmem:[#allocation59_spill] sm:$0xff] %v8557_v34  ;;  %10668 = vst [vmem:[#allocation60_spill] sm:$0xff] %v8559_v29  ;;  %v10674_v34 = vld [vmem:[#allocation13_spill] sm:$0xff]  ;;  %v1561_v31 = vadd.f32 %v8416_v20, %v1359_v56  ;;  %v1565_v22 = vadd.f32 %v8429_v8, %v1363_v16 }
 0x1ac   : > { %v8561_v35 = vpop.f32.mrf.mxu1  ;;  %v8563_v62 = vpop.f32.mrf.mxu0  ;;  %v984_v29 = vadd.f32 %v8254_v14, %v10674_v34  ;;  %v1553_v14 = vadd.f32 %v8384_v39, %v8172_v45  ;;  %v1963_v45 = vadd.f32 %v8448_v24, %v8259_v53  ;;  %v1961_v53 = vadd.f32 %v8452_v28, %v8264_v5 }
 0x1ad   : > { %10669 = vst [vmem:[#allocation61_spill] sm:$0xff] %v8561_v35  ;;  %10670 = vst [vmem:[#allocation62_spill] sm:$0xff] %v8563_v62  ;;  %v1355_v62 = vadd.f32 %v8180_v52, %v936_v10  ;;  %v8617_v8 = vadd.f32 %v8411_v1, %v1561_v31  ;;  %v8624_v63 = vadd.f32 %v8424_v19, %v1565_v22  ;;  %v10688_v22 = vld [vmem:[#allocation29_spill] sm:$0xff] }
 0x1ae   : > { %v8571_v58 = vpop.f32.mrf.mxu1  ;;  %v8573_v38 = vpop.f32.mrf.mxu0  ;;  %v1367_v52 = vadd.f32 %v8246_v2, %v984_v29  ;;  %v1761_v2 = vadd.f32 %v8351_v30, %v1549_v33  ;;  %v1765_v39 = vadd.f32 %v8378_v0, %v1553_v14  ;;  %v1962_v30 = vadd.f32 %v8460_v13, %v1753_v43  ;;  %v10678_v13 = vld [vmem:[#allocation5_spill] sm:$0xff]  ;;  %v10686_v33 = vld [vmem:[#allocation28_spill] sm:$0xff] }
 0x1af   : > { %v1557_v61 = vadd.f32 %v8403_v55, %v1355_v62  ;;  %v1967_v0 = vadd.f32 %v8464_v40, %v8310_v6  ;;  %v2165_v60 = vadd.f32 %v8444_v26, %v1963_v45  ;;  %v1968_v19 = vadd.f32 %v8472_v15, %v8339_v9  ;;  %v10676_v15 = vld [vmem:[#allocation16_spill] sm:$0xff]  ;;  %v10689_v45 = vld [vmem:[#allocation30_spill] sm:$0xff] }
 0x1b0   : > { %v8577_v17 = vpop.f32.mrf.mxu1  ;;  %v8579_v35 = vpop.f32.mrf.mxu0  ;;  %v1569_v21 = vadd.f32 %v8442_v32, %v1367_v52  ;;  %v1966_v32 = vadd.f32 %v8476_v37, %v1757_v42  ;;  %v1971_v6 = vadd.f32 %v8480_v51, %v8345_v23  ;;  %v1972_v24 = vadd.f32 %v8493_v7, %v8368_v59  ;;  %v10677_v37 = vld [vmem:[#allocation35_spill] sm:$0xff]  ;;  %v10679_v23 = vld [vmem:[#allocation37_spill] sm:$0xff]  ;;  %v10680_v40 = vld [vmem:[#allocation24_spill] sm:$0xff] }
 0x1b1   : > { %v1769_v55 = vadd.f32 %v8397_v44, %v1557_v61  ;;  %v1965_v44 = vadd.f32 %v8468_v18, %v8334_v3  ;;  %v1969_v3 = vadd.f32 %v8484_v47, %v8353_v46  ;;  %v1970_v28 = vadd.f32 %v8498_v50, %v1761_v2  ;;  %v10681_v47 = vld [vmem:[#allocation25_spill] sm:$0xff]  ;;  %v10682_v59 = vld [vmem:[#allocation26_spill] sm:$0xff]  ;;  %v10683_v50 = vld [vmem:[#allocation8_spill] sm:$0xff] }
 0x1b2   : > { %v8592_v34 = vpop.f32.mrf.mxu1  ;;  %v8594_v48 = vpop.f32.mrf.mxu0  ;;  %v8636_v5 = vadd.f32 %v8437_v4, %v1569_v21  ;;  %v2163_v26 = vadd.f32 %v8450_v25, %v1961_v53  ;;  %v2166_v9 = vadd.f32 %v10675_v12, %v1964_v11  ;;  %v1975_v57 = vadd.f32 %v10677_v37, %v10676_v15  ;;  %v10684_v62 = vld [vmem:[#allocation40_spill] sm:$0xff]  ;;  %v10685_v25 = vld [vmem:[#allocation27_spill] sm:$0xff]  ;;  %v10691_v53 = vld [vmem:[#allocation33_spill] sm:$0xff] }
 0x1b3   : > { %v1973_v51 = vadd.f32 %v10679_v23, %v10678_v13  ;;  %v2164_v46 = vadd.f32 %v10680_v40, %v1962_v30  ;;  %v2169_v18 = vadd.f32 %v10681_v47, %v1967_v0  ;;  %v2167_v7 = vadd.f32 %v10682_v59, %v1965_v44  ;;  %v10687_v52 = vld [vmem:[#allocation43_spill] sm:$0xff]  ;;  %v8684_v30 = vld [vmem:[%s10476_s2] ss:$0 sm:$0xff]  ;;  %v10692_v44 = vld [vmem:[#allocation34_spill] sm:$0xff] }
 0x1b4   : > { %v8600_v36 = vpop.f32.mrf.mxu1  ;;  %v8602_v27 = vpop.f32.mrf.mxu0  ;;  %v1976_v56 = vadd.f32 %v10684_v62, %v10683_v50  ;;  %v8663_v41 = vadd.f32 %v10685_v25, %v1968_v19  ;;  %v8666_v14 = vadd.f32 %v10686_v33, %v1966_v32  ;;  %v1974_v61 = vadd.f32 %v10687_v52, %v1765_v39  ;;  %v10690_v42 = vld [vmem:[#allocation31_spill] sm:$0xff]  ;;  %v10693_v19 = vld [vmem:[#allocation36_spill] sm:$0xff]  ;;  %v10696_v15 = vld [vmem:[#allocation45_spill] sm:$0xff] }
 0x1b5   : > { %v8670_v21 = vadd.f32 %v10688_v22, %v1971_v6  ;;  %v8673_v43 = vadd.f32 %v10689_v45, %v1969_v3  ;;  %v8676_v2 = vadd.f32 %v10690_v42, %v1972_v24  ;;  %v8679_v11 = vadd.f32 %v10691_v53, %v1970_v28  ;;  %v10694_v24 = vld [vmem:[#allocation38_spill] sm:$0xff]  ;;  %v10695_v28 = vld [vmem:[#allocation11_spill] sm:$0xff]  ;;  %v10700_v59 = vld [vmem:[#allocation49_spill] sm:$0xff] }
 0x1b6   : > { %v8611_v10 = vpop.f32.mrf.mxu1  ;;  %v8613_v20 = vpop.f32.mrf.mxu0  ;;  %v8690_v32 = vadd.f32 %v10693_v19, %v1973_v51  ;;  %v8693_v12 = vadd.f32 %v10694_v24, %v1976_v56  ;;  %v1979_v37 = vadd.f32 %v10696_v15, %v10695_v28  ;;  %v10697_v13 = vld [vmem:[#allocation18_spill] sm:$0xff]  ;;  %v10698_v23 = vld [vmem:[#allocation47_spill] sm:$0xff]  ;;  %v10705_v45 = vld [vmem:[#allocation9_spill] sm:$0xff] }
 0x1b7   : > { %v1977_v40 = vadd.f32 %v10698_v23, %v10697_v13  ;;  %v10699_v47 = vld [vmem:[#allocation19_spill] sm:$0xff]  ;;  %v10711_v23 = vld [vmem:[#allocation48_spill] sm:$0xff] }
 0x1b8   : > { %v8631_v49 = vpop.f32.mrf.mxu1  ;;  %v8633_v1 = vpop.f32.mrf.mxu0  ;;  %v1980_v50 = vadd.f32 %v10700_v59, %v10699_v47  ;;  %v10702_v56 = vld [vmem:[#allocation51_spill] sm:$0xff] }
 0x1b9   : > { %v1978_v33 = vadd.f32 %v10702_v56, %v1769_v55  ;;  %v10703_v52 = vld [vmem:[#allocation3_spill] sm:$0xff]  ;;  %v10710_v55 = vld [vmem:[#allocation46_spill] sm:$0xff] }
 0x1ba   : > { %v8649_v4 = vpop.f32.mrf.mxu1  ;;  %v6784_v29 = vpop.f32.mrf.mxu0  ;;  %v10706_v42 = vld [vmem:[#allocation55_spill] sm:$0xff]  ;;  %v8720_v47 = vadd.f32 %v10711_v23, %v1980_v50  ;;  %v10715_v50 = vld [vmem:[#allocation54_spill] sm:$0xff] }
 0x1bb   : > { %v1981_v53 = vadd.f32 %v10706_v42, %v10705_v45  ;;  %v10712_v59 = vld [vmem:[#allocation59_spill] sm:$0xff]  ;;  %v10716_v45 = vld [vmem:[#allocation56_spill] sm:$0xff] }
 0x1bc   : > { %v6750_v16 = vpop.f32.mrf.mxu1  ;;  %v2457_v54 = vpop.f32.mrf.mxu0 }
 0x1bd   : > { %v2377_v31 = vadd.f32 %v6750_v16, %v2165_v60  ;;  %v8687_v60 = vadd.f32 %v10692_v44, %v1975_v57  ;;  %v10701_v16 = vld [vmem:[#allocation41_spill] sm:$0xff] }
 0x1be   : > { %v2248_v0 = vpop.f32.mrf.mxu1  ;;  %v6785_v39 = vpop.f32.mrf.mxu0  ;;  %v8702_v25 = vadd.f32 %v10701_v16, %v1974_v61  ;;  %v10708_v44 = vld [vmem:[#allocation57_spill] sm:$0xff] }
 0x1bf   : > { %v2586_v6 = vadd.f32 %v6784_v29, %v2377_v31  ;;  %v2375_v3 = vadd.f32 %v2248_v0, %v2163_v26  ;;  %v10704_v31 = vld [vmem:[#allocation53_spill] sm:$0xff]  ;;  %v10707_v0 = vld [vmem:[#allocation12_spill] sm:$0xff] }
 0x1c0   : > { %v6751_v62 = vpop.f32.mrf.mxu1  ;;  %v2460_v57 = vpop.f32.mrf.mxu0  ;;  %v1983_v22 = vadd.f32 %v10704_v31, %v10703_v52  ;;  %v1984_v19 = vadd.f32 %v10708_v44, %v10707_v0  ;;  %v8733_v31 = vadd.f32 %v10715_v50, %v1981_v53  ;;  %v10720_v53 = vld [vmem:[#allocation7_spill] sm:$0xff] }
 0x1c1   : > { %v2625_v29 = vadd.f32 %v8684_v30, %v2586_v6  ;;  %v2584_v26 = vadd.f32 %v2457_v54, %v2375_v3  ;;  %v2378_v51 = vadd.f32 %v6751_v62, %v2166_v9  ;;  %v10709_v54 = vld [vmem:[#allocation44_spill] sm:$0xff]  ;;  %v8717_v3 = vadd.f32 %v10710_v55, %v1977_v40 }
 0x1c2   : > { %v2251_v24 = vpop.f32.mrf.mxu1  ;;  %v6788_v28 = vpop.f32.mrf.mxu0  ;;  %v8714_v9 = vadd.f32 %v10709_v54, %v1979_v37  ;;  %v1982_v62 = vadd.f32 %v10712_v59, %v8617_v8  ;;  %v10713_v37 = vld [vmem:[#allocation50_spill] sm:$0xff]  ;;  %v10714_v40 = vld [vmem:[#allocation52_spill] sm:$0xff]  ;;  %v8736_v8 = vadd.f32 %v10716_v45, %v1984_v19 }
 0x1c3   : > { %v2657_v15 = vmax.f32 %v2625_v29, 0.0  ;;  %v2623_v61 = vadd.f32 %v8684_v30, %v2584_v26  ;;  %v2587_v13 = vadd.f32 %v6785_v39, %v2378_v51  ;;  %v2376_v6 = vadd.f32 %v2251_v24, %v2164_v46  ;;  %v10721_v19 = vld [vmem:[#allocation10_spill] sm:$0xff] }
 0x1c4   : > { %v6754_v16 = vpop.f32.mrf.mxu1  ;;  %v2473_v56 = vpop.f32.mrf.mxu0  ;;  %v8727_v51 = vadd.f32 %v10713_v37, %v1978_v33  ;;  %v8730_v52 = vadd.f32 %v10714_v40, %v1983_v22  ;;  %v10717_v33 = vld [vmem:[#allocation58_spill] sm:$0xff]  ;;  %v10718_v22 = vld [vmem:[#allocation17_spill] sm:$0xff]  ;;  %v1988_v54 = vadd.f32 %v8577_v17, %v10721_v19 }
 0x1c5   : > { %2746 = vst.msk [vmem:[#allocation2 + $0x31] sm:$0xff] %vm2687_vm5, %v2657_v15  ;;  %v2655_v29 = vmax.f32 %v2623_v61, 0.0  ;;  %v2626_v39 = vadd.f32 %v8684_v30, %v2587_v13  ;;  %v2585_v46 = vadd.f32 %v2460_v57, %v2376_v6  ;;  %v2381_v26 = vadd.f32 %v6754_v16, %v2169_v18  ;;  %v10719_v61 = vld [vmem:[#allocation61_spill] sm:$0xff]  ;;  %v10724_v17 = vld [vmem:[#allocation22_spill] sm:$0xff] }
 0x1c6   : > { %v2264_v42 = vpop.f32.mrf.mxu1  ;;  %v6789_v0 = vpop.f32.mrf.mxu0  ;;  %v8741_v15 = vadd.f32 %v10717_v33, %v1982_v62  ;;  %v1987_v13 = vadd.f32 %v10719_v61, %v10718_v22  ;;  %v1985_v6 = vadd.f32 %v8571_v58, %v10720_v53  ;;  %v1986_v16 = vadd.f32 %v8592_v34, %v8624_v63  ;;  %v10723_v58 = vld [vmem:[#allocation21_spill] sm:$0xff]  ;;  %v10725_v34 = vld [vmem:[#allocation60_spill] sm:$0xff] }
 0x1c7   : > { %2744 = vst.msk [vmem:[#allocation2 + $0x19] sm:$0xff] %vm2687_vm5, %v2655_v29  ;;  %v2658_v44 = vmax.f32 %v2626_v39, 0.0  ;;  %v2624_v57 = vadd.f32 %v8684_v30, %v2585_v46  ;;  %v2590_v18 = vadd.f32 %v6788_v28, %v2381_v26  ;;  %v2379_v24 = vadd.f32 %v2264_v42, %v2167_v7  ;;  %v10722_v29 = vld [vmem:[#allocation20_spill] sm:$0xff] }
 0x1c8   : > { %v6755_v55 = vpop.f32.mrf.mxu1  ;;  %v2476_v23 = vpop.f32.mrf.mxu0  ;;  %v1991_v39 = vadd.f32 %v8600_v36, %v10722_v29  ;;  %v1989_v46 = vadd.f32 %v8611_v10, %v10723_v58  ;;  %v1992_v26 = vadd.f32 %v8631_v49, %v10724_v17  ;;  %v8764_v63 = vadd.f32 %v10725_v34, %v1987_v13  ;;  %v10726_v36 = vld [vmem:[#allocation62_spill] sm:$0xff] }
 0x1c9   : > { %2747 = vst.msk [vmem:[#allocation2 + $0x39] sm:$0xff] %vm2687_vm5, %v2658_v44  ;;  %v2656_v59 = vmax.f32 %v2624_v57, 0.0  ;;  %v2629_v28 = vadd.f32 %v8684_v30, %v2590_v18  ;;  %v2588_v7 = vadd.f32 %v2473_v56, %v2379_v24  ;;  %v2382_v62 = vadd.f32 %v6755_v55, %v8663_v41 }
 0x1ca   : > { %v2267_v37 = vpop.f32.mrf.mxu1  ;;  %v6792_v40 = vpop.f32.mrf.mxu0  ;;  %v8767_v42 = vadd.f32 %v10726_v36, %v1985_v6  ;;  %v8770_v10 = vadd.f32 %v8573_v38, %v1988_v54  ;;  %v1990_v49 = vadd.f32 %v8649_v4, %v8636_v5  ;;  %v8780_v22 = vadd.f32 %v8579_v35, %v1986_v16 }
 0x1cb   : > { %2745 = vst.msk [vmem:[#allocation2 + $0x21] sm:$0xff] %vm2687_vm5, %v2656_v59  ;;  %v2661_v50 = vmax.f32 %v2629_v28, 0.0  ;;  %v2627_v56 = vadd.f32 %v8684_v30, %v2588_v7  ;;  %v2591_v41 = vadd.f32 %v6789_v0, %v2382_v62  ;;  %v2380_v45 = vadd.f32 %v2267_v37, %v8666_v14 }
 0x1cc   : > { %v6758_v44 = vpop.f32.mrf.mxu1  ;;  %v2489_v57 = vpop.f32.mrf.mxu0  ;;  %v8777_v33 = vld [vmem:[#allocation2 + $0x30] sm:$0xff]  ;;  %v8783_v38 = vadd.f32 %v8594_v48, %v1991_v39  ;;  %v8786_v5 = vadd.f32 %v8602_v27, %v1989_v46  ;;  %v8789_v4 = vadd.f32 %v8613_v20, %v1992_v26  ;;  %v8797_v48 = vadd.f32 %v8633_v1, %v1990_v49 }
 0x1cd   : > { %2750 = vst.msk [vmem:[#allocation2 + $0x61] sm:$0xff] %vm2687_vm5, %v2661_v50  ;;  %v2659_v18 = vmax.f32 %v2627_v56, 0.0  ;;  %v2630_v0 = vadd.f32 %v8684_v30, %v2591_v41  ;;  %v2589_v14 = vadd.f32 %v2476_v23, %v2380_v45  ;;  %v2385_v24 = vadd.f32 %v6758_v44, %v8670_v21 }
 0x1ce   : > { %v2280_v61 = vpop.f32.mrf.mxu1  ;;  %v6793_v13 = vpop.f32.mrf.mxu0  ;;  %v8791_v53 = vld [vmem:[#allocation2 + $0x18] sm:$0xff]  ;;  %v2908_v23 = vrot.slane %v8777_v33, 1 }
 0x1cf   : > { %2748 = vst.msk [vmem:[#allocation2 + $0x49] sm:$0xff] %vm2687_vm5, %v2659_v18  ;;  %v2662_v21 = vmax.f32 %v2630_v0, 0.0  ;;  %v2628_v6 = vadd.f32 %v8684_v30, %v2589_v14  ;;  %v2594_v35 = vadd.f32 %v6792_v40, %v2385_v24  ;;  %v2383_v19 = vadd.f32 %v2280_v61, %v8673_v43 }
 0x1d0   : > { %v6759_v27 = vpop.f32.mrf.mxu1  ;;  %v2492_v54 = vpop.f32.mrf.mxu0  ;;  %v2903_v20 = vrot.slane %v8791_v53, 1  ;;  %v8800_v55 = vld [vmem:[#allocation2 + $0x38] sm:$0xff]  ;;  %v8804_v28 = vld [vmem:[#allocation2 + $0x40] sm:$0x3] }
 0x1d1   : > { %2751 = vst.msk [vmem:[#allocation2 + $0x69] sm:$0xff] %vm2687_vm5, %v2662_v21  ;;  %v2660_v7 = vmax.f32 %v2628_v6, 0.0  ;;  %v2633_v43 = vadd.f32 %v8684_v30, %v2594_v35  ;;  %v2592_v62 = vadd.f32 %v2489_v57, %v2383_v19  ;;  %v2386_v1 = vadd.f32 %v6759_v27, %v8676_v2  ;;  %v7214_v57 = vld [vmem:[%s10477_s3 + $0x30] sm:$0xff]  }
 0x1d2   : > { %v2283_v16 = vpop.f32.mrf.mxu1  ;;  %v6796_v29 = vpop.f32.mrf.mxu0  ;;  %v8809_v39 = vld [vmem:[#allocation2 + $0x20] sm:$0xff]  ;;  %v8814_v46 = vpack.c.bf16 %v8800_v55, %v8777_v33  ;;  %v2909_v17 = vrot.slane %v8800_v55, 1  ;;  %v8817_v26 = vld [vmem:[#allocation2 + $0x28] sm:$0x3]  ;;  %v2911_v37 = vrot.slane %v8804_v28, 1 }
 0x1d3   : > { %2749 = vst.msk [vmem:[#allocation2 + $0x51] sm:$0xff] %vm2687_vm5, %v2660_v7  ;;  %v2665_v40 = vmax.f32 %v2633_v43, 0.0  ;;  %v2631_v2 = vadd.f32 %v8684_v30, %v2592_v62  ;;  %v2595_v50 = vadd.f32 %v6793_v13, %v2386_v1  ;;  %v2384_v56 = vadd.f32 %v2283_v16, %v8679_v11  ;;  %v10727_v43 = vld [vmem:[#allocation32_spill] sm:$0xff] }
 0x1d4   : > { %v6762_v41 = vpop.f32.mrf.mxu1  ;;  %v8825_v45 = vpack.c.bf16 %v8809_v39, %v8791_v53  ;;  %v2904_v34 = vrot.slane %v8809_v39, 1  ;;  %v2505_v36 = vpop.f32.mrf.mxu0  ;;  %v2906_v44 = vrot.slane %v8817_v26, 1  ;;  %v2910_v6 = vsel %vm435_vm2, %v2908_v23, %v2909_v17 }
 0x1d5   : > { %2754 = vst.msk [vmem:[#allocation2 + $0x91] sm:$0xff] %vm2687_vm5, %v2665_v40  ;;  %v2663_v18 = vmax.f32 %v2631_v2, 0.0  ;;  %v2634_v11 = vadd.f32 %v8684_v30, %v2595_v50  ;;  %v2593_v0 = vadd.f32 %v2492_v54, %v2384_v56  ;;  %v2389_v14 = vadd.f32 %v6762_v41, %v8687_v60  ;;  %v8869_v41 = vld [vmem:[%s10477_s3 + $0x58] sm:$0xff]  }
 0x1d6   : > { %6855 = vmatmul.mubr.msk.bf16.vlgmr.msra.gmra.mxu0 %vm2687_vm5, %v8825_v45  ;;  %v2296_v24 = vpop.f32.mrf.mxu1  ;;  %v6797_v61 = vpop.f32.mrf.mxu0  ;;  %v2905_v13 = vsel %vm435_vm2, %v2903_v20, %v2904_v34  ;;  %v2907_v21 = vsel %vm435_vm2, %v2904_v34, %v2906_v44  ;;  %v2912_v35 = vsel %vm435_vm2, %v2909_v17, %v2911_v37  ;;  %v8842_v19 = vld [vmem:[#allocation2 + $0x48] sm:$0xff]  ;;  %v8849_v20 = vld [vmem:[#allocation2 + $0x60] sm:$0xff] }
 0x1d7   : > { %2752 = vst.msk [vmem:[#allocation2 + $0x79] sm:$0xff] %vm2687_vm5, %v2663_v18  ;;  %v2666_v27 = vmax.f32 %v2634_v11, 0.0  ;;  %v2632_v60 = vadd.f32 %v8684_v30, %v2593_v0  ;;  %v2598_v54 = vadd.f32 %v6796_v29, %v2389_v14  ;;  %v2387_v7 = vadd.f32 %v2296_v24, %v8690_v32  ;;  %6858 = vmatprep.mubr.msk.bf16.mxu0 %vm2687_vm5, %v8814_v46  ;;  %v7212_v32 = vld [vmem:[%s10477_s3 + $0x20] sm:$0xff]  }
 0x1d8   : > { %6923 = vmatpush3.bf16.msra.mxu0 %v10727_v43  ;;  %v6763_v62 = vpop.f32.mrf.mxu1  ;;  %v8853_v1 = vpack.c.bf16 %v2907_v21, %v2905_v13  ;;  %v8855_v16 = vpack.c.bf16 %v2912_v35, %v2910_v6  ;;  %v2508_v17 = vpop.f32.mrf.mxu0  ;;  %v2913_v37 = vrot.slane %v8842_v19, 1  ;;  %v8858_v29 = vld [vmem:[#allocation2 + $0x68] sm:$0xff]  ;;  %v10731_v21 = vld [vmem:[#allocation15_spill] sm:$0xff] }
 0x1d9   : > { %6924 = vmatprep.subr.bf16.mxu0 %v7214_v57  ;;  %2755 = vst.msk [vmem:[#allocation2 + $0x99] sm:$0xff] %vm2687_vm5, %v2666_v27  ;;  %v2664_v40 = vmax.f32 %v2632_v60, 0.0  ;;  %v2637_v2 = vadd.f32 %v8684_v30, %v2598_v54  ;;  %v2596_v50 = vadd.f32 %v2505_v36, %v2387_v7  ;;  %v2390_v56 = vadd.f32 %v6763_v62, %v8693_v12  ;;  %v8890_v27 = vld [vmem:[#allocation2 + $0x70] sm:$0x3] }
 0x1da   : > { %10728 = vst [vmem:[#allocation4_spill] sm:$0xff] %v8853_v1  ;;  %10729 = vst [vmem:[#allocation6_spill] sm:$0xff] %v8855_v16  ;;  %6819 = vmatmul.mubr.msk.bf16.vlgmr.msra.gmra.mxu1 %vm2687_vm5, %v8853_v1  ;;  %v2299_v34 = vpop.f32.mrf.mxu1  ;;  %v6800_v44 = vpop.f32.mrf.mxu0  ;;  %v8873_v18 = vld [vmem:[#allocation2 + $0x50] sm:$0xff]  ;;  %v8878_v0 = vpack.c.bf16 %v8858_v29, %v8849_v20  ;;  %v2918_v12 = vrot.slane %v8849_v20, 1  ;;  %v2919_v36 = vrot.slane %v8858_v29, 1 }
 0x1db   : > { %2753 = vst.msk [vmem:[#allocation2 + $0x81] sm:$0xff] %vm2687_vm5, %v2664_v40  ;;  %v2669_v14 = vmax.f32 %v2637_v2, 0.0  ;;  %v2635_v24 = vadd.f32 %v8684_v30, %v2596_v50  ;;  %v2599_v13 = vadd.f32 %v6797_v61, %v2390_v56  ;;  %6887 = vmatpush3.bf16.msra.mxu1 %v10731_v21  ;;  %6822 = vmatprep.mubr.msk.bf16.mxu1 %vm2687_vm5, %v8855_v16  ;;  %v8888_v35 = vld [vmem:[#allocation2 + $0x58] sm:$0x3]  ;;  %v2914_v7 = vrot.slane %v8873_v18, 1 }
 0x1dc   : > { %10730 = vst [vmem:[#allocation14_spill] sm:$0xff] %v8878_v0  ;;  %v2388_v6 = vadd.f32 %v2299_v34, %v8702_v25  ;;  %v6766_v60 = vpop.f32.mrf.mxu1  ;;  %v8894_v54 = vpack.c.bf16 %v8873_v18, %v8842_v19  ;;  %v2521_v43 = vpop.f32.mrf.mxu0  ;;  %6888 = vmatprep.subr.bf16.mxu1 %v7212_v32  ;;  %6925 = vmatpush3.bf16.msra.mxu0 %v7214_v57  ;;  %v8902_v25 = vld [vmem:[%s10477_s3 + $0x48] sm:$0xff]   ;;  %v2916_v62 = vrot.slane %v8888_v35, 1 }
 0x1dd   : > { %10732 = vst [vmem:[#allocation13_spill] sm:$0xff] %v8902_v25  ;;  %2758 = vst.msk [vmem:[#allocation2 + $0xc1] sm:$0xff] %vm2687_vm5, %v2669_v14  ;;  %v2667_v40 = vmax.f32 %v2635_v24, 0.0  ;;  %v2638_v2 = vadd.f32 %v8684_v30, %v2599_v13  ;;  %v2393_v56 = vadd.f32 %v6766_v60, %v8714_v9  ;;  %6994 = vmatprep.subr.bf16.mxu0 %v8869_v41  ;;  %v2921_v14 = vrot.slane %v8890_v27, 1 }
 0x1de   : > { %v2597_v50 = vadd.f32 %v2508_v17, %v2388_v6  ;;  %6859 = vmatmul.mubr.msk.bf16.gmra.mxu0 %vm2687_vm5, %v8894_v54  ;;  %v2312_v34 = vpop.f32.mrf.mxu1  ;;  %v6801_v57 = vpop.f32.mrf.mxu0  ;;  %v2915_v21 = vsel %vm435_vm2, %v2913_v37, %v2914_v7  ;;  %v2920_v11 = vsel %vm435_vm2, %v2918_v12, %v2919_v36  ;;  %v8914_v24 = vld [vmem:[#allocation2 + $0x78] sm:$0xff]  ;;  %v2917_v12 = vsel %vm435_vm2, %v2914_v7, %v2916_v62 }
 0x1df   : > { %2756 = vst.msk [vmem:[#allocation2 + $0xa9] sm:$0xff] %vm2687_vm5, %v2667_v40  ;;  %v2670_v9 = vmax.f32 %v2638_v2, 0.0  ;;  %v2602_v13 = vadd.f32 %v6800_v44, %v2393_v56  ;;  %v2391_v6 = vadd.f32 %v2312_v34, %v8717_v3  ;;  %6862 = vmatprep.mubr.msk.bf16.mxu0 %vm2687_vm5, %v8878_v0  ;;  %6889 = vmatpush3.bf16.msra.mxu1 %v7212_v32  ;;  %v2923_v40 = vrot.slane %v8914_v24, 1  ;;  %v8931_v56 = vld [vmem:[#allocation2 + $0x90] sm:$0xff] }
 0x1e0   : > { %v2636_v17 = vadd.f32 %v8684_v30, %v2597_v50  ;;  %v6767_v60 = vpop.f32.mrf.mxu1  ;;  %v2922_v61 = vsel %vm435_vm2, %v2919_v36, %v2921_v14  ;;  %v2524_v59 = vpop.f32.mrf.mxu0  ;;  %v8925_v2 = vld [vmem:[#allocation2 + $0x98] sm:$0xff]  ;;  %6958 = vmatprep.subr.bf16.mxu1 %v8902_v25  ;;  %v8933_v7 = vpack.c.bf16 %v2917_v12, %v2915_v21  ;;  %v2928_v12 = vrot.slane %v8931_v56, 1 }
 0x1e1   : > { %2759 = vst.msk [vmem:[#allocation2 + $0xc9] sm:$0xff] %vm2687_vm5, %v2670_v9  ;;  %v2641_v44 = vadd.f32 %v8684_v30, %v2602_v13  ;;  %v2600_v32 = vadd.f32 %v2521_v43, %v2391_v6  ;;  %v2394_v50 = vadd.f32 %v6767_v60, %v8720_v47  ;;  %v8935_v36 = vpack.c.bf16 %v2922_v61, %v2920_v11 }
 0x1e2   : > { %v2668_v3 = vmax.f32 %v2636_v17, 0.0  ;;  %10733 = vst [vmem:[#allocation23_spill] sm:$0xff] %v8933_v7  ;;  %v2315_v62 = vpop.f32.mrf.mxu1  ;;  %v6804_v34 = vpop.f32.mrf.mxu0  ;;  %v8937_v14 = vld [vmem:[#allocation2 + $0x80] sm:$0xff]  ;;  %v8942_v9 = vpack.c.bf16 %v8925_v2, %v8931_v56  ;;  %v8947_v11 = vld [vmem:[#allocation2 + $0x88] sm:$0x3]  ;;  %6823 = vmatmul.mubr.msk.bf16.gmra.mxu1 %vm2687_vm5, %v8933_v7  ;;  %v10756_v0 = vrot.slane %v8777_v33, 2 }
 0x1e3   : > { %10734 = vst [vmem:[#allocation16_spill] sm:$0xff] %v8935_v36  ;;  %v2673_v43 = vmax.f32 %v2641_v44, 0.0  ;;  %v2639_v47 = vadd.f32 %v8684_v30, %v2600_v32  ;;  %v2603_v17 = vadd.f32 %v6801_v57, %v2394_v50  ;;  %v2392_v21 = vadd.f32 %v2315_v62, %v8727_v51  ;;  %6826 = vmatprep.mubr.msk.bf16.mxu1 %vm2687_vm5, %v8935_v36  ;;  %v8963_v50 = vld [vmem:[#allocation2 + $0xa0] sm:$0x3] }
 0x1e4   : > { %10735 = vst [vmem:[#allocation35_spill] sm:$0xff] %v8942_v9  ;;  %2757 = vst.msk [vmem:[#allocation2 + $0xb1] sm:$0xff] %vm2687_vm5, %v2668_v3  ;;  %v6770_v61 = vpop.f32.mrf.mxu1  ;;  %v8953_v13 = vpack.c.bf16 %v8937_v14, %v8914_v24  ;;  %v2924_v6 = vrot.slane %v8937_v14, 1  ;;  %v2537_v60 = vpop.f32.mrf.mxu0  ;;  %v2929_v3 = vrot.slane %v8925_v2, 1  ;;  %v10757_v33 = vrot.slane %v8809_v39, 2 }
 0x1e5   : > { %2762 = vst.msk [vmem:[#allocation2 + $0xf1] sm:$0xff] %vm2687_vm5, %v2673_v43  ;;  %v2671_v51 = vmax.f32 %v2639_v47, 0.0  ;;  %v2642_v57 = vadd.f32 %v8684_v30, %v2603_v17  ;;  %v2601_v44 = vadd.f32 %v2524_v59, %v2392_v21  ;;  %v2397_v32 = vadd.f32 %v6770_v61, %v8730_v52 }
 0x1e6   : > { %10736 = vst [vmem:[#allocation5_spill] sm:$0xff] %v8953_v13  ;;  %6863 = vmatmul.mubr.msk.bf16.gmra.mxu0 %vm2687_vm5, %v8953_v13  ;;  %v2328_v37 = vpop.f32.mrf.mxu1  ;;  %v6805_v43 = vpop.f32.mrf.mxu0  ;;  %v2925_v47 = vsel %vm435_vm2, %v2923_v40, %v2924_v6  ;;  %v2926_v17 = vrot.slane %v8947_v11, 1  ;;  %v8976_v62 = vld [vmem:[#allocation2 + $0xa8] sm:$0xff]  ;;  %v2930_v23 = vsel %vm435_vm2, %v2928_v12, %v2929_v3 }
 0x1e7   : > { %2760 = vst.msk [vmem:[#allocation2 + $0xd9] sm:$0xff] %vm2687_vm5, %v2671_v51  ;;  %v2674_v59 = vmax.f32 %v2642_v57, 0.0  ;;  %v2640_v52 = vadd.f32 %v8684_v30, %v2601_v44  ;;  %v2606_v21 = vadd.f32 %v6804_v34, %v2397_v32  ;;  %v2395_v61 = vadd.f32 %v2328_v37, %v8733_v31  ;;  %6866 = vmatprep.mubr.msk.bf16.mxu0 %vm2687_vm5, %v8942_v9 }
 0x1e8   : > { %v6771_v58 = vpop.f32.mrf.mxu1  ;;  %v2927_v40 = vsel %vm435_vm2, %v2924_v6, %v2926_v17  ;;  %v2931_v51 = vrot.slane %v8963_v50, 1  ;;  %v2540_v57 = vpop.f32.mrf.mxu0  ;;  %v8985_v32 = vld [vmem:[#allocation2 + $0xc8] sm:$0xff]  ;;  %v2933_v7 = vrot.slane %v8976_v62, 1 }
 0x1e9   : > { %2763 = vst.msk [vmem:[#allocation2 + $0xf9] sm:$0xff] %vm2687_vm5, %v2674_v59  ;;  %v2672_v34 = vmax.f32 %v2640_v52, 0.0  ;;  %v2645_v31 = vadd.f32 %v8684_v30, %v2606_v21  ;;  %v2604_v37 = vadd.f32 %v2537_v60, %v2395_v61  ;;  %v2398_v44 = vadd.f32 %v6771_v58, %v8736_v8 }
 0x1ea   : > { %v8987_v36 = vpack.c.bf16 %v2927_v40, %v2925_v47  ;;  %v2932_v49 = vsel %vm435_vm2, %v2929_v3, %v2931_v51  ;;  %v2331_v6 = vpop.f32.mrf.mxu1  ;;  %v6808_v17 = vpop.f32.mrf.mxu0  ;;  %v8998_v47 = vld [vmem:[#allocation2 + $0xc0] sm:$0xff] }
 0x1eb   : > { %v8990_v12 = vld [vmem:[#allocation2 + $0xb0] sm:$0xff]  ;;  %2761 = vst.msk [vmem:[#allocation2 + $0xe1] sm:$0xff] %vm2687_vm5, %v2672_v34  ;;  %v2677_v52 = vmax.f32 %v2645_v31, 0.0  ;;  %v2643_v60 = vadd.f32 %v8684_v30, %v2604_v37  ;;  %v2607_v8 = vadd.f32 %v6805_v43, %v2398_v44  ;;  %v8996_v58 = vpack.c.bf16 %v2932_v49, %v2930_v23  ;;  %v9018_v31 = vld [vmem:[#allocation2 + $0xb8] sm:$0x3] }
 0x1ec   : > { %10737 = vst [vmem:[#allocation37_spill] sm:$0xff] %v8987_v36  ;;  %6827 = vmatmul.mubr.msk.bf16.gmra.mxu1 %vm2687_vm5, %v8987_v36  ;;  %v2396_v3 = vadd.f32 %v2331_v6, %v8741_v15  ;;  %v6774_v21 = vpop.f32.mrf.mxu1  ;;  %v9005_v61 = vpack.c.bf16 %v8990_v12, %v8976_v62  ;;  %v2934_v40 = vrot.slane %v8990_v12, 1  ;;  %v2553_v51 = vpop.f32.mrf.mxu0  ;;  %v9010_v43 = vpack.c.bf16 %v8985_v32, %v8998_v47  ;;  %v9020_v37 = vld [vmem:[#allocation2 + $0xd0] sm:$0x3] }
 0x1ed   : > { %10738 = vst [vmem:[#allocation24_spill] sm:$0xff] %v8996_v58  ;;  %2766 = vst.msk [vmem:[#allocation2 + $0x121] sm:$0xff] %vm2687_vm5, %v2677_v52  ;;  %v2675_v49 = vmax.f32 %v2643_v60, 0.0  ;;  %v2646_v23 = vadd.f32 %v8684_v30, %v2607_v8  ;;  %6830 = vmatprep.mubr.msk.bf16.mxu1 %vm2687_vm5, %v8996_v58  ;;  %v2401_v15 = vadd.f32 %v6774_v21, %v8764_v63  ;;  %v2938_v52 = vrot.slane %v8998_v47, 1 }
 0x1ee   : > { %10739 = vst [vmem:[#allocation25_spill] sm:$0xff] %v9005_v61  ;;  %10740 = vst [vmem:[#allocation26_spill] sm:$0xff] %v9010_v43  ;;  %v2605_v44 = vadd.f32 %v2540_v57, %v2396_v3  ;;  %6867 = vmatmul.mubr.msk.bf16.gmra.mxu0 %vm2687_vm5, %v9005_v61  ;;  %v2344_v6 = vpop.f32.mrf.mxu1  ;;  %v2939_v60 = vrot.slane %v8985_v32, 1  ;;  %v6809_v59 = vpop.f32.mrf.mxu0  ;;  %v9032_v3 = vld [vmem:[#allocation2 + $0xd8] sm:$0xff]  ;;  %v2935_v16 = vsel %vm435_vm2, %v2933_v7, %v2934_v40  ;;  %v2936_v8 = vrot.slane %v9018_v31, 1 }
 0x1ef   : > { %2764 = vst.msk [vmem:[#allocation2 + $0x109] sm:$0xff] %vm2687_vm5, %v2675_v49  ;;  %v2678_v63 = vmax.f32 %v2646_v23, 0.0  ;;  %v2610_v21 = vadd.f32 %v6808_v17, %v2401_v15  ;;  %v2399_v34 = vadd.f32 %v2344_v6, %v8767_v42  ;;  %6870 = vmatprep.mubr.msk.bf16.mxu0 %vm2687_vm5, %v9010_v43  ;;  %v2941_v49 = vrot.slane %v9020_v37, 1 }
 0x1f0   : > { %v2644_v58 = vadd.f32 %v8684_v30, %v2605_v44  ;;  %v6775_v36 = vpop.f32.mrf.mxu1  ;;  %v2556_v23 = vpop.f32.mrf.mxu0  ;;  %v2940_v6 = vsel %vm435_vm2, %v2938_v52, %v2939_v60  ;;  %v2937_v44 = vsel %vm435_vm2, %v2934_v40, %v2936_v8  ;;  %v2943_v9 = vrot.slane %v9032_v3, 1 }
 0x1f1   : > { %2767 = vst.msk [vmem:[#allocation2 + $0x129] sm:$0xff] %vm2687_vm5, %v2678_v63  ;;  %v2649_v42 = vadd.f32 %v8684_v30, %v2610_v21  ;;  %v2608_v17 = vadd.f32 %v2553_v51, %v2399_v34  ;;  %v2402_v15 = vadd.f32 %v6775_v36, %v8770_v10  ;;  %v2942_v1 = vsel %vm435_vm2, %v2939_v60, %v2941_v49  ;;  %v9050_v10 = vld [vmem:[#allocation2 + $0xf8] sm:$0xff]  ;;  %v9061_v60 = vld [vmem:[#allocation2 + $0xf0] sm:$0xff] }
 0x1f2   : > { %v2676_v57 = vmax.f32 %v2644_v58, 0.0  ;;  %v2347_v7 = vpop.f32.mrf.mxu1  ;;  %v6812_v43 = vpop.f32.mrf.mxu0  ;;  %v9044_v61 = vld [vmem:[#allocation2 + $0xe0] sm:$0xff]  ;;  %v9048_v51 = vpack.c.bf16 %v2937_v44, %v2935_v16  ;;  %v9053_v36 = vpack.c.bf16 %v2942_v1, %v2940_v6 }
 0x1f3   : > { %v2681_v13 = vmax.f32 %v2649_v42, 0.0  ;;  %v2647_v63 = vadd.f32 %v8684_v30, %v2608_v17  ;;  %v2611_v21 = vadd.f32 %v6809_v59, %v2402_v15  ;;  %v2400_v58 = vadd.f32 %v2347_v7, %v8780_v22  ;;  %v9084_v7 = vld [vmem:[#allocation2 + $0x100] sm:$0x3] }
 0x1f4   : > { %10741 = vst [vmem:[#allocation8_spill] sm:$0xff] %v9048_v51  ;;  %2765 = vst.msk [vmem:[#allocation2 + $0x111] sm:$0xff] %vm2687_vm5, %v2676_v57  ;;  %v6778_v40 = vpop.f32.mrf.mxu1  ;;  %v9058_v34 = vpack.c.bf16 %v9044_v61, %v9032_v3  ;;  %v2944_v52 = vrot.slane %v9044_v61, 1  ;;  %6831 = vmatmul.mubr.msk.bf16.gmra.mxu1 %vm2687_vm5, %v9048_v51  ;;  %v2569_v8 = vpop.f32.mrf.mxu0  ;;  %v9069_v57 = vld [vmem:[#allocation2 + $0xe8] sm:$0x3]  ;;  %v9078_v17 = vpack.c.bf16 %v9050_v10, %v9061_v60 }
 0x1f5   : > { %10742 = vst [vmem:[#allocation40_spill] sm:$0xff] %v9053_v36  ;;  %2770 = vst.msk [vmem:[#allocation2 + $0x151] sm:$0xff] %vm2687_vm5, %v2681_v13  ;;  %v2679_v16 = vmax.f32 %v2647_v63, 0.0  ;;  %v2650_v59 = vadd.f32 %v8684_v30, %v2611_v21  ;;  %v2405_v1 = vadd.f32 %v6778_v40, %v8783_v38  ;;  %6834 = vmatprep.mubr.msk.bf16.mxu1 %vm2687_vm5, %v9053_v36  ;;  %v2949_v38 = vrot.slane %v9050_v10, 1 }
 0x1f6   : > { %10743 = vst [vmem:[#allocation27_spill] sm:$0xff] %v9058_v34  ;;  %v2609_v49 = vadd.f32 %v2556_v23, %v2400_v58  ;;  %6871 = vmatmul.mubr.msk.bf16.gmra.mxu0 %vm2687_vm5, %v9058_v34  ;;  %v2360_v42 = vpop.f32.mrf.mxu1  ;;  %10744 = vst [vmem:[#allocation28_spill] sm:$0xff] %v9078_v17  ;;  %v2948_v23 = vrot.slane %v9061_v60, 1  ;;  %v2945_v40 = vsel %vm435_vm2, %v2943_v9, %v2944_v52  ;;  %v2951_v13 = vrot.slane %v9084_v7, 1  ;;  %v9099_v36 = vld [vmem:[#allocation2 + $0x108] sm:$0xff] }
 0x1f7   : > { %2768 = vst.msk [vmem:[#allocation2 + $0x139] sm:$0xff] %vm2687_vm5, %v2679_v16  ;;  %v2682_v15 = vmax.f32 %v2650_v59, 0.0  ;;  %v2614_v6 = vadd.f32 %v6812_v43, %v2405_v1  ;;  %v2403_v44 = vadd.f32 %v2360_v42, %v8786_v5  ;;  %6874 = vmatprep.mubr.msk.bf16.mxu0 %vm2687_vm5, %v9078_v17  ;;  %v2946_v16 = vrot.slane %v9069_v57, 1 }
 0x1f8   : > { %v2648_v63 = vadd.f32 %v8684_v30, %v2609_v49  ;;  %v6779_v58 = vpop.f32.mrf.mxu1  ;;  %v6813_v49 = vpop.f32.mrf.mxu0  ;;  %v2950_v21 = vsel %vm435_vm2, %v2948_v23, %v2949_v38 }
 0x1f9   : > { %2771 = vst.msk [vmem:[#allocation2 + $0x159] sm:$0xff] %vm2687_vm5, %v2682_v15  ;;  %v2653_v5 = vadd.f32 %v8684_v30, %v2614_v6  ;;  %v2612_v43 = vadd.f32 %v2569_v8, %v2403_v44  ;;  %v2406_v1 = vadd.f32 %v6779_v58, %v8789_v4  ;;  %v2947_v22 = vsel %vm435_vm2, %v2944_v52, %v2946_v16  ;;  %v9106_v4 = vld [vmem:[#allocation2 + $0x128] sm:$0xff]  ;;  %v9116_v16 = vld [vmem:[#allocation2 + $0x120] sm:$0xff] }
 0x1fa   : > { %v2680_v42 = vmax.f32 %v2648_v63, 0.0  ;;  %v2363_v9 = vpop.f32.mrf.mxu1  ;;  %v9102_v8 = vpack.c.bf16 %v2947_v22, %v2945_v40  ;;  %v2952_v52 = vsel %vm435_vm2, %v2949_v38, %v2951_v13  ;;  %v2572_v13 = vpop.f32.mrf.mxu0 }
 0x1fb   : > { %v2685_v51 = vmax.f32 %v2653_v5, 0.0  ;;  %v2651_v15 = vadd.f32 %v8684_v30, %v2612_v43  ;;  %v2615_v6 = vadd.f32 %v6813_v49, %v2406_v1  ;;  %v9104_v44 = vld [vmem:[#allocation2 + $0x110] sm:$0xff]  ;;  %v2404_v23 = vadd.f32 %v2363_v9, %v8797_v48  ;;  %v9125_v38 = vld [vmem:[#allocation2 + $0x118] sm:$0x3] }
 0x1fc   : > { %10745 = vst [vmem:[#allocation43_spill] sm:$0xff] %v9102_v8  ;;  %2769 = vst.msk [vmem:[#allocation2 + $0x141] sm:$0xff] %vm2687_vm5, %v2680_v42  ;;  %v9113_v63 = vpack.c.bf16 %v9104_v44, %v9099_v36  ;;  %v2954_v58 = vrot.slane %v9104_v44, 1  ;;  %6835 = vmatmul.mubr.msk.bf16.gmra.mxu1 %vm2687_vm5, %v9102_v8  ;;  %v9122_v5 = vpack.c.bf16 %v2952_v52, %v2950_v21  ;;  %v2953_v48 = vrot.slane %v9099_v36, 1  ;;  %v9127_v43 = vld [vmem:[#allocation2 + $0x130] sm:$0x3] }
 0x1fd   : > { %2774 = vst.msk [vmem:[#allocation2 + $0x181] sm:$0xff] %vm2687_vm5, %v2685_v51  ;;  %v2683_v22 = vmax.f32 %v2651_v15, 0.0  ;;  %v2654_v40 = vadd.f32 %v8684_v30, %v2615_v6  ;;  %v2613_v1 = vadd.f32 %v2572_v13, %v2404_v23  ;;  %v9135_v42 = vpack.c.bf16 %v9106_v4, %v9116_v16 }
 0x1fe   : > { %10746 = vst [vmem:[#allocation29_spill] sm:$0xff] %v9113_v63  ;;  %10747 = vst [vmem:[#allocation30_spill] sm:$0xff] %v9122_v5  ;;  %6875 = vmatmul.mubr.msk.bf16.gmra.mxu0 %vm2687_vm5, %v9113_v63  ;;  %v9137_v21 = vld [vmem:[#allocation2 + $0x138] sm:$0xff]  ;;  %6838 = vmatprep.mubr.msk.bf16.mxu1 %vm2687_vm5, %v9122_v5  ;;  %v2958_v15 = vrot.slane %v9116_v16, 1  ;;  %v2959_v6 = vrot.slane %v9106_v4, 1  ;;  %v2955_v13 = vsel %vm435_vm2, %v2953_v48, %v2954_v58  ;;  %v2956_v51 = vrot.slane %v9125_v38, 1 }
 0x1ff   : > { %10748 = vst [vmem:[#allocation31_spill] sm:$0xff] %v9135_v42  ;;  %2772 = vst.msk [vmem:[#allocation2 + $0x169] sm:$0xff] %vm2687_vm5, %v2683_v22  ;;  %v2686_v9 = vmax.f32 %v2654_v40, 0.0  ;;  %v2652_v23 = vadd.f32 %v8684_v30, %v2613_v1  ;;  %6878 = vmatprep.mubr.msk.bf16.mxu0 %vm2687_vm5, %v9135_v42  ;;  %v2961_v22 = vrot.slane %v9127_v43, 1  ;;  %v9151_v40 = vld [vmem:[#allocation2 + $0x150] sm:$0xff]  ;;  %v2963_v30 = vrot.slane %v9137_v21, 1 }
 0x200   : > { %v9153_v49 = vld [vmem:[#allocation2 + $0x158] sm:$0xff]  ;;  %v2960_v52 = vsel %vm435_vm2, %v2958_v15, %v2959_v6  ;;  %v2957_v48 = vsel %vm435_vm2, %v2954_v58, %v2956_v51  ;;  %v9166_v63 = vld [vmem:[#allocation2 + $0x160] sm:$0x3]  ;;  %v2968_v17 = vrot.slane %v9151_v40, 1 }
 0x201   : > { %2775 = vst.msk [vmem:[#allocation2 + $0x189] sm:$0xff] %vm2687_vm5, %v2686_v9  ;;  %v2684_v5 = vmax.f32 %v2652_v23, 0.0  ;;  %v2962_v8 = vsel %vm435_vm2, %v2959_v6, %v2961_v22  ;;  %v9164_v42 = vpack.c.bf16 %v9153_v49, %v9151_v40  ;;  %v9168_v9 = vpack.c.bf16 %v2957_v48, %v2955_v13 }
 0x202   : > { %v9170_v59 = vpack.c.bf16 %v2962_v8, %v2960_v52  ;;  %v2969_v23 = vrot.slane %v9153_v49, 1  ;;  %v2971_v22 = vrot.slane %v9166_v63, 1  ;;  %v10754_v48 = vrot.slane %v8791_v53, 2 }
 0x203   : > { %10749 = vst [vmem:[#allocation33_spill] sm:$0xff] %v9164_v42  ;;  %10750 = vst [vmem:[#allocation34_spill] sm:$0xff] %v9168_v9  ;;  %v9172_v15 = vld [vmem:[#allocation2 + $0x140] sm:$0xff]  ;;  %v9176_v1 = vld [vmem:[#allocation2 + $0x148] sm:$0x3] }
 0x204   : > { %10751 = vst [vmem:[#allocation36_spill] sm:$0xff] %v9170_v59  ;;  %2773 = vst.msk [vmem:[#allocation2 + $0x171] sm:$0xff] %vm2687_vm5, %v2684_v5  ;;  %v9181_v58 = vpack.c.bf16 %v9172_v15, %v9137_v21  ;;  %v2964_v51 = vrot.slane %v9172_v15, 1  ;;  %6839 = vmatmul.mubr.msk.bf16.gmra.mxu1 %vm2687_vm5, %v9168_v9  ;;  %v2966_v52 = vrot.slane %v9176_v1, 1  ;;  %v2970_v13 = vsel %vm435_vm2, %v2968_v17, %v2969_v23 }
 0x205   : > { %v10753_v5 = vrot.slane %v8809_v39, 2  ;;  %6842 = vmatprep.mubr.msk.bf16.mxu1 %vm2687_vm5, %v9170_v59  ;;  %v3481_v17 = vrot.slane %v8817_v26, 2  ;;  %v10755_v9 = vrot.slane %v8800_v55, 2  ;;  %v10761_v39 = vrot.slane %v8858_v29, 2 }
 0x206   : > { %10752 = vst [vmem:[#allocation38_spill] sm:$0xff] %v9181_v58  ;;  %6879 = vmatmul.mubr.msk.bf16.gmra.mxu0 %vm2687_vm5, %v9181_v58  ;;  %v2965_v8 = vsel %vm435_vm2, %v2963_v30, %v2964_v51  ;;  %v9201_v6 = vld [vmem:[#allocation2 + $0x168] sm:$0xff]  ;;  %v2967_v59 = vsel %vm435_vm2, %v2964_v51, %v2966_v52  ;;  %v2972_v30 = vsel %vm435_vm2, %v2969_v23, %v2971_v22  ;;  %v10759_v23 = vrot.slane %v8873_v18, 2 }
 0x207   : > { %v3480_v34 = vsel %vm995_vm4, %v10754_v48, %v10753_v5  ;;  %v3485_v53 = vsel %vm995_vm4, %v10756_v0, %v10755_v9  ;;  %v3486_v5 = vrot.slane %v8804_v28, 2  ;;  %6882 = vmatprep.mubr.msk.bf16.mxu0 %vm2687_vm5, %v9164_v42  ;;  %v2973_v58 = vrot.slane %v9201_v6, 1 }
 0x208   : > { %v9216_v26 = vpack.c.bf16 %v2967_v59, %v2965_v8  ;;  %v9218_v25 = vpack.c.bf16 %v2972_v30, %v2970_v13  ;;  %v3482_v0 = vsel %vm995_vm4, %v10757_v33, %v3481_v17  ;;  %v10758_v28 = vmov %v10755_v9 }
 0x209   : > { %v3487_v9 = vsel %vm995_vm4, %v10758_v28, %v3486_v5  ;;  %v9226_v42 = vpack.c.bf16 %v3482_v0, %v3480_v34  ;;  %v10760_v51 = vrot.slane %v8842_v19, 2  ;;  %v3491_v8 = vrot.slane %v8888_v35, 2 }
 0x20a   : > { %v9228_v48 = vpack.c.bf16 %v3487_v9, %v3485_v53  ;;  %v10762_v52 = vrot.slane %v8849_v20, 2  ;;  %v3496_v13 = vrot.slane %v8890_v27, 2  ;;  %v10763_v34 = vrot.slane %v8937_v14, 2 }
 0x20b   : > { %v3490_v59 = vsel %vm995_vm4, %v10760_v51, %v10759_v23  ;;  %v10764_v22 = vrot.slane %v8914_v24, 2  ;;  %v3501_v19 = vrot.slane %v8947_v11, 2  ;;  %v9248_v53 = vld [vmem:[#allocation2 + $0x170] sm:$0xff]  ;;  %v9250_v5 = vld [vmem:[#allocation2 + $0x178] sm:$0x3]  ;;  %v10765_v35 = vmov %v10759_v23 }
 0x20c   : > { %v3495_v55 = vsel %vm995_vm4, %v10762_v52, %v10761_v39  ;;  %v3492_v20 = vsel %vm995_vm4, %v10765_v35, %v3491_v8  ;;  %v10766_v30 = vrot.slane %v8925_v2, 2  ;;  %v10767_v27 = vrot.slane %v8931_v56, 2  ;;  %6843 = vmatmul.mubr.msk.bf16.gmra.mxu1 %vm2687_vm5, %v9216_v26 }
 0x20d   : > { %v3500_v17 = vsel %vm995_vm4, %v10764_v22, %v10763_v34  ;;  %v3506_v24 = vrot.slane %v8963_v50, 2  ;;  %v10768_v0 = vrot.slane %v8990_v12, 2  ;;  %v10769_v11 = vrot.slane %v8976_v62, 2  ;;  %6846 = vmatprep.mubr.msk.bf16.mxu1 %vm2687_vm5, %v9218_v25 }
 0x20e   : > { %v3505_v33 = vsel %vm995_vm4, %v10767_v27, %v10766_v30  ;;  %v9268_v9 = vpack.c.bf16 %v9248_v53, %v9201_v6  ;;  %v2974_v18 = vrot.slane %v9248_v53, 1  ;;  %v3549_v23 = vrot.slane %v9248_v53, 2  ;;  %v10799_v53 = vld [vmem:[#allocation14_spill] sm:$0xff] }
 0x20f   : > { %v3510_v28 = vsel %vm995_vm4, %v10769_v11, %v10768_v0  ;;  %v2976_v56 = vrot.slane %v9250_v5, 1  ;;  %v9275_v50 = vpack.c.bf16 %v3492_v20, %v3490_v59  ;;  %v10770_v51 = vmov %v10761_v39 }
 0x210   : > { %v3497_v62 = vsel %vm995_vm4, %v10770_v51, %v3496_v13  ;;  %v10771_v8 = vmov %v10763_v34  ;;  %v10772_v52 = vmov %v10766_v30  ;;  %6883 = vmatmul.mubr.msk.bf16.gmra.mxu0 %vm2687_vm5, %v9268_v9  ;;  %v2975_v59 = vsel %vm435_vm2, %v2973_v58, %v2974_v18 }
 0x211   : > { %v3502_v39 = vsel %vm995_vm4, %v10771_v8, %v3501_v19  ;;  %v3507_v34 = vsel %vm995_vm4, %v10772_v52, %v3506_v24  ;;  %v2977_v29 = vsel %vm435_vm2, %v2974_v18, %v2976_v56  ;;  %v9292_v22 = vpack.c.bf16 %v3497_v62, %v3495_v55  ;;  %6926 = vmatprep.mubr.msk.bf16.mxu0 %vm2687_vm5, %v8825_v45 }
 0x212   : > { %v3511_v14 = vrot.slane %v9018_v31, 2  ;;  %v9297_v2 = vpack.c.bf16 %v2977_v29, %v2975_v59  ;;  %v9299_v13 = vpack.c.bf16 %v3502_v39, %v3500_v17  ;;  %v9301_v19 = vpack.c.bf16 %v3507_v34, %v3505_v33 }
 0x213   : > { %v10773_v35 = vrot.slane %v8985_v32, 2  ;;  %v10774_v20 = vrot.slane %v8998_v47, 2  ;;  %v10775_v55 = vmov %v10768_v0  ;;  %v3516_v31 = vrot.slane %v9020_v37, 2 }
 0x214   : > { %v3512_v30 = vsel %vm995_vm4, %v10775_v55, %v3511_v14  ;;  %v10776_v45 = vrot.slane %v9044_v61, 2  ;;  %v10777_v27 = vrot.slane %v9032_v3, 2  ;;  %v3521_v33 = vrot.slane %v9069_v57, 2  ;;  %6847 = vmatmul.mubr.msk.bf16.gmra.mxu1 %vm2687_vm5, %v9297_v2 }
 0x215   : > { %v3515_v58 = vsel %vm995_vm4, %v10774_v20, %v10773_v35  ;;  %v9318_v24 = vpack.c.bf16 %v3512_v30, %v3510_v28  ;;  %v10778_v47 = vrot.slane %v9050_v10, 2  ;;  %v10779_v0 = vrot.slane %v9061_v60, 2  ;;  %v9362_v20 = vld [vmem:[#allocation2 + $0x180] sm:$0xff]  ;;  %v9364_v10 = vld [vmem:[#allocation2 + $0x188] sm:$0xff] }
 0x216   : > { %v3520_v17 = vsel %vm995_vm4, %v10777_v27, %v10776_v45  ;;  %v3526_v11 = vrot.slane %v9084_v7, 2  ;;  %v10780_v37 = vrot.slane %v9104_v44, 2  ;;  %v10781_v18 = vrot.slane %v9099_v36, 2  ;;  %v10793_v27 = vld [vmem:[#allocation42_spill] sm:$0xff] }
 0x217   : > { %v3525_v12 = vsel %vm995_vm4, %v10779_v0, %v10778_v47  ;;  %v10782_v56 = vmov %v10773_v35  ;;  %v10783_v28 = vmov %v10776_v45  ;;  %v3531_v60 = vrot.slane %v9125_v38, 2  ;;  %v9394_v0 = vld [vmem:[#allocation2 + $0x190] sm:$0x3] }
 0x218   : > { %v3530_v3 = vsel %vm995_vm4, %v10781_v18, %v10780_v37  ;;  %v3517_v57 = vsel %vm995_vm4, %v10782_v56, %v3516_v31  ;;  %v3522_v51 = vsel %vm995_vm4, %v10783_v28, %v3521_v33  ;;  %v10784_v62 = vrot.slane %v9106_v4, 2  ;;  %6927 = vmatmul.mubr.msk.bf16.vlgmr.msra.gmra.mxu0 %vm2687_vm5, %v8814_v46  ;;  %v7216_v28 = vld [vmem:[%s10477_s3 + $0x40] sm:$0xff]  }
 0x219   : > { %v10785_v7 = vrot.slane %v9116_v16, 2  ;;  %v9343_v39 = vpack.c.bf16 %v3517_v57, %v3515_v58  ;;  %v9345_v36 = vpack.c.bf16 %v3522_v51, %v3520_v17  ;;  %v10786_v32 = vmov %v10778_v47  ;;  %v10794_v17 = vld [vmem:[#allocation39_spill] sm:$0xff]  ;;  %6930 = vmatprep.mubr.msk.bf16.mxu0 %vm2687_vm5, %v8894_v54  ;;  %6995 = vmatpush3.bf16.msra.mxu0 %v8869_v41 }
 0x21a   : > { %v3527_v52 = vsel %vm995_vm4, %v10786_v32, %v3526_v11  ;;  %v3536_v61 = vrot.slane %v9127_v43, 2  ;;  %v10787_v38 = vmov %v10780_v37  ;;  %v10788_v16 = vrot.slane %v9172_v15, 2  ;;  %v7218_v43 = vld [vmem:[%s10477_s3 + $0x50] sm:$0xff]   ;;  %v10802_v32 = vld [vmem:[#allocation25_spill] sm:$0xff] }
 0x21b   : > { %v3535_v8 = vsel %vm995_vm4, %v10785_v7, %v10784_v62  ;;  %v9351_v34 = vpack.c.bf16 %v3527_v52, %v3525_v12  ;;  %v3532_v59 = vsel %vm995_vm4, %v10787_v38, %v3531_v60  ;;  %v10789_v29 = vrot.slane %v9137_v21, 2  ;;  %6996 = vmatprep.subr.bf16.mxu0 %v7218_v43  ;;  %v10800_v7 = vld [vmem:[#allocation5_spill] sm:$0xff]  ;;  %v10803_v52 = vld [vmem:[#allocation26_spill] sm:$0xff]  ;;  %v10805_v38 = vld [vmem:[#allocation28_spill] sm:$0xff] }
 0x21c   : > { %v3541_v35 = vrot.slane %v9176_v1, 2  ;;  %v9371_v44 = vpack.c.bf16 %v3532_v59, %v3530_v3  ;;  %v10790_v58 = vmov %v10784_v62  ;;  %v10791_v55 = vrot.slane %v9153_v49, 2  ;;  %v7221_v49 = vld [vmem:[%s10477_s3 + $0x78] sm:$0xff]   ;;  %v10798_v62 = vld [vmem:[#allocation13_spill] sm:$0xff] }
 0x21d   : > { %v3540_v14 = vsel %vm995_vm4, %v10789_v29, %v10788_v16  ;;  %v3537_v21 = vsel %vm995_vm4, %v10790_v58, %v3536_v61  ;;  %v10792_v1 = vrot.slane %v9151_v40, 2  ;;  %v3546_v31 = vrot.slane %v9166_v63, 2  ;;  %6997 = vmatpush3.bf16.msra.mxu0 %v7218_v43  ;;  %v10804_v61 = vld [vmem:[#allocation27_spill] sm:$0xff]  ;;  %v10806_v59 = vld [vmem:[#allocation29_spill] sm:$0xff]  ;;  %v10808_v29 = vld [vmem:[#allocation38_spill] sm:$0xff] }
 0x21e   : > { %v3548_v45 = vrot.slane %v9201_v6, 2  ;;  %v10795_v33 = vpack.c.bf16 %v10793_v27, %v10794_v17  ;;  %v9389_v4 = vpack.c.bf16 %v3537_v21, %v3535_v8  ;;  %v10796_v47 = vmov %v10788_v16  ;;  %7066 = vmatprep.subr.bf16.mxu0 %v7221_v49  ;;  %v10801_v8 = vld [vmem:[#allocation35_spill] sm:$0xff]  ;;  %v10810_v58 = vld [vmem:[#allocation4_spill] sm:$0xff]  ;;  %v10811_v21 = vld [vmem:[#allocation6_spill] sm:$0xff] }
 0x21f   : > { %v3545_v30 = vsel %vm995_vm4, %v10792_v1, %v10791_v55  ;;  %v3542_v40 = vsel %vm995_vm4, %v10796_v47, %v3541_v35  ;;  %v10797_v6 = vmov %v10791_v55  ;;  %v4076_v11 = vrot.slane %v9362_v20, 1  ;;  %v10807_v16 = vld [vmem:[#allocation31_spill] sm:$0xff]  ;;  %v7223_v1 = vld [vmem:[%s10477_s3 + $0x88] sm:$0xff]   ;;  %v10816_v27 = vld [vmem:[#allocation8_spill] sm:$0xff] }
 0x220   : > { %6890 = vmatprep.mubr.msk.bf16.mxu1 %vm2687_vm5, %v10795_v33  ;;  %v9398_v63 = vpack.c.bf16 %v3542_v40, %v3540_v14  ;;  %v3547_v12 = vsel %vm995_vm4, %v10797_v6, %v3546_v31  ;;  %v4077_v37 = vrot.slane %v9364_v10, 1  ;;  %v3550_v18 = vsel %vm995_vm4, %v3548_v45, %v3549_v23  ;;  %6931 = vmatmul.mubr.msk.bf16.gmra.mxu0 %vm2687_vm5, %v10799_v53  ;;  %v10809_v14 = vld [vmem:[#allocation33_spill] sm:$0xff]  ;;  %v7222_v43 = vld [vmem:[%s10477_s3 + $0x70] sm:$0xff]   ;;  %v10815_v45 = vld [vmem:[#allocation24_spill] sm:$0xff] }
 0x221   : > { %v9406_v15 = vpack.c.bf16 %v3547_v12, %v3545_v30  ;;  %v3551_v3 = vrot.slane %v9250_v5, 2  ;;  %v4079_v57 = vrot.slane %v9394_v0, 1  ;;  %6891 = vmatmul.mubr.msk.bf16.vlgmr.msra.gmra.mxu1 %vm2687_vm5, %v9226_v42  ;;  %6934 = vmatprep.mubr.msk.bf16.mxu0 %vm2687_vm5, %v10800_v7  ;;  %v9484_v35 = vpack.c.bf16 %v9364_v10, %v9362_v20  ;;  %v10812_v55 = vld [vmem:[#allocation23_spill] sm:$0xff]  ;;  %v10813_v30 = vld [vmem:[#allocation16_spill] sm:$0xff]  ;;  %v10814_v31 = vld [vmem:[#allocation37_spill] sm:$0xff] }
 0x222   : > { %v4078_v56 = vsel %vm435_vm2, %v4076_v11, %v4077_v37  ;;  %6959 = vmatpush3.bf16.msra.mxu1 %v10798_v62  ;;  %6894 = vmatprep.mubr.msk.bf16.mxu1 %vm2687_vm5, %v9228_v48  ;;  %v10817_v17 = vld [vmem:[#allocation40_spill] sm:$0xff]  ;;  %v10818_v33 = vld [vmem:[#allocation43_spill] sm:$0xff]  ;;  %v10819_v47 = vld [vmem:[#allocation30_spill] sm:$0xff]  ;;  %v4298_v12 = vrot.slane %v9364_v10, 2  ;;  %v4300_v11 = vrot.slane %v9394_v0, 2 }
 0x223   : > { %v3552_v41 = vsel %vm995_vm4, %v3549_v23, %v3551_v3  ;;  %v4080_v5 = vsel %vm435_vm2, %v4077_v37, %v4079_v57  ;;  %6960 = vmatprep.subr.bf16.mxu1 %v7216_v28  ;;  %v7219_v23 = vld [vmem:[%s10477_s3 + $0x68] sm:$0xff]   ;;  %v10821_v6 = vld [vmem:[#allocation36_spill] sm:$0xff]  ;;  %v4297_v37 = vrot.slane %v9362_v20, 2  ;;  %v9574_v0 = vld [vmem:[#allocation2 + $0x1a0] sm:$0xff] }
 0x224   : > { %v9423_v51 = vpack.c.bf16 %v3552_v41, %v3550_v18  ;;  %v9426_v60 = vpack.c.bf16 %v4080_v5, %v4078_v56  ;;  %v10820_v40 = vld [vmem:[#allocation34_spill] sm:$0xff]  ;;  %v4301_v3 = vsel %vm995_vm4, %v4298_v12, %v4300_v11  ;;  %v9572_v20 = vld [vmem:[#allocation2 + $0x198] sm:$0xff]  ;;  %v4957_v56 = vrot.slane %v9574_v0, 2 }
 0x225   : > { %v4299_v18 = vsel %vm995_vm4, %v4297_v37, %v4298_v12  ;;  %v9580_v57 = vld [vmem:[#allocation2 + $0x1a8] sm:$0x3] }
 0x226   : > { %6961 = vmatpush3.bf16.msra.mxu1 %v7216_v28  ;;  %v9564_v10 = vpack.c.bf16 %v4301_v3, %v4299_v18  ;;  %v4959_v5 = vrot.slane %v9580_v57, 2 }
 0x227   : > { %7030 = vmatprep.subr.bf16.mxu1 %v7219_v23 }
 0x228   : > { %6935 = vmatmul.mubr.msk.bf16.gmra.mxu0 %vm2687_vm5, %v10801_v8 }
 0x229   : > { %6895 = vmatmul.mubr.msk.bf16.gmra.mxu1 %vm2687_vm5, %v9275_v50  ;;  %6938 = vmatprep.mubr.msk.bf16.mxu0 %vm2687_vm5, %v10802_v32 }
 0x22a   : > { %6898 = vmatprep.mubr.msk.bf16.mxu1 %vm2687_vm5, %v9292_v22 }
 0x230   : > { %6939 = vmatmul.mubr.msk.bf16.gmra.mxu0 %vm2687_vm5, %v10803_v52 }
 0x231   : > { %6899 = vmatmul.mubr.msk.bf16.gmra.mxu1 %vm2687_vm5, %v9299_v13  ;;  %6942 = vmatprep.mubr.msk.bf16.mxu0 %vm2687_vm5, %v10804_v61 }
 0x232   : > { %6902 = vmatprep.mubr.msk.bf16.mxu1 %vm2687_vm5, %v9301_v19 }
 0x238   : > { %6943 = vmatmul.mubr.msk.bf16.gmra.mxu0 %vm2687_vm5, %v10805_v38 }
 0x239   : > { %6903 = vmatmul.mubr.msk.bf16.gmra.mxu1 %vm2687_vm5, %v9318_v24  ;;  %6946 = vmatprep.mubr.msk.bf16.mxu0 %vm2687_vm5, %v10806_v59 }
 0x23a   : > { %6906 = vmatprep.mubr.msk.bf16.mxu1 %vm2687_vm5, %v9343_v39 }
 0x240   : > { %6947 = vmatmul.mubr.msk.bf16.gmra.mxu0 %vm2687_vm5, %v10807_v16 }
 0x241   : > { %6907 = vmatmul.mubr.msk.bf16.gmra.mxu1 %vm2687_vm5, %v9345_v36  ;;  %6950 = vmatprep.mubr.msk.bf16.mxu0 %vm2687_vm5, %v10808_v29 }
 0x242   : > { %6910 = vmatprep.mubr.msk.bf16.mxu1 %vm2687_vm5, %v9351_v34 }
 0x248   : > { %6951 = vmatmul.mubr.msk.bf16.gmra.mxu0 %vm2687_vm5, %v10809_v14 }
 0x249   : > { %6911 = vmatmul.mubr.msk.bf16.gmra.mxu1 %vm2687_vm5, %v9371_v44  ;;  %6954 = vmatprep.mubr.msk.bf16.mxu0 %vm2687_vm5, %v9268_v9 }
 0x24a   : > { %6914 = vmatprep.mubr.msk.bf16.mxu1 %vm2687_vm5, %v9389_v4 }
 0x250   : > { %6955 = vmatmul.mubr.msk.bf16.gmra.mxu0 %vm2687_vm5, %v9484_v35 }
 0x251   : > { %6915 = vmatmul.mubr.msk.bf16.gmra.mxu1 %vm2687_vm5, %v9398_v63  ;;  %6998 = vmatprep.mubr.msk.bf16.mxu0 %vm2687_vm5, %v9226_v42  ;;  %v7220_v42 = vld [vmem:[%s10477_s3 + $0x60] sm:$0xff]  }
 0x252   : > { %6918 = vmatprep.mubr.msk.bf16.mxu1 %vm2687_vm5, %v9406_v15 }
 0x258   : > { %6999 = vmatmul.mubr.msk.bf16.vlgmr.msra.gmra.mxu0 %vm2687_vm5, %v9228_v48 }
 0x259   : > { %6919 = vmatmul.mubr.msk.bf16.gmra.mxu1 %vm2687_vm5, %v9423_v51  ;;  %7002 = vmatprep.mubr.msk.bf16.mxu0 %vm2687_vm5, %v9275_v50 }
 0x25a   : > { %6962 = vmatprep.mubr.msk.bf16.mxu1 %vm2687_vm5, %v10810_v58  ;;  %7067 = vmatpush3.bf16.msra.mxu0 %v7221_v49  ;;  %v4956_v49 = vrot.slane %v9572_v20, 2 }
 0x25b   : > { %7068 = vmatprep.subr.bf16.mxu0 %v7222_v43 }
 0x25c   : > { %v9585_v28 = vsel %vm995_vm4, %v4956_v49, %v4957_v56 }
 0x25d   : > { %10822 = vst [vmem:[#allocation11_spill] sm:$0xff] %v9585_v28 }
 0x25e   : > { %7069 = vmatpush3.bf16.msra.mxu0 %v7222_v43 }
 0x260   : > { %7003 = vmatmul.mubr.msk.bf16.gmra.mxu0 %vm2687_vm5, %v9292_v22 }
 0x261   : > { %6963 = vmatmul.mubr.msk.bf16.vlgmr.msra.gmra.mxu1 %vm2687_vm5, %v10811_v21  ;;  %7006 = vmatprep.mubr.msk.bf16.mxu0 %vm2687_vm5, %v9299_v13 }
 0x262   : > { %7031 = vmatpush3.bf16.msra.mxu1 %v7219_v23  ;;  %6966 = vmatprep.mubr.msk.bf16.mxu1 %vm2687_vm5, %v10812_v55  ;;  %v9593_v23 = vsel %vm995_vm4, %v4957_v56, %v4959_v5 }
 0x263   : > { %7032 = vmatprep.subr.bf16.mxu1 %v7220_v42 }
 0x266   : > { %7033 = vmatpush3.bf16.msra.mxu1 %v7220_v42 }
 0x267   : > { %7102 = vmatprep.subr.bf16.mxu1 %v7223_v1 }
 0x268   : > { %7007 = vmatmul.mubr.msk.bf16.gmra.mxu0 %vm2687_vm5, %v9301_v19 }
 0x269   : > { %6967 = vmatmul.mubr.msk.bf16.gmra.mxu1 %vm2687_vm5, %v10813_v30  ;;  %7010 = vmatprep.mubr.msk.bf16.mxu0 %vm2687_vm5, %v9318_v24 }
 0x26a   : > { %6970 = vmatprep.mubr.msk.bf16.mxu1 %vm2687_vm5, %v10814_v31 }
 0x270   : > { %7011 = vmatmul.mubr.msk.bf16.gmra.mxu0 %vm2687_vm5, %v9343_v39 }
 0x271   : > { %6971 = vmatmul.mubr.msk.bf16.gmra.mxu1 %vm2687_vm5, %v10815_v45  ;;  %7014 = vmatprep.mubr.msk.bf16.mxu0 %vm2687_vm5, %v9345_v36 }
 0x272   : > { %6974 = vmatprep.mubr.msk.bf16.mxu1 %vm2687_vm5, %v10816_v27 }
 0x278   : > { %7015 = vmatmul.mubr.msk.bf16.gmra.mxu0 %vm2687_vm5, %v9351_v34 }
 0x279   : > { %6975 = vmatmul.mubr.msk.bf16.gmra.mxu1 %vm2687_vm5, %v10817_v17  ;;  %7018 = vmatprep.mubr.msk.bf16.mxu0 %vm2687_vm5, %v9371_v44 }
 0x27a   : > { %6978 = vmatprep.mubr.msk.bf16.mxu1 %vm2687_vm5, %v10818_v33 }
 0x280   : > { %7019 = vmatmul.mubr.msk.bf16.gmra.mxu0 %vm2687_vm5, %v9389_v4 }
 0x281   : > { %6979 = vmatmul.mubr.msk.bf16.gmra.mxu1 %vm2687_vm5, %v10819_v47  ;;  %7022 = vmatprep.mubr.msk.bf16.mxu0 %vm2687_vm5, %v9398_v63 }
 0x282   : > { %6982 = vmatprep.mubr.msk.bf16.mxu1 %vm2687_vm5, %v10820_v40 }
 0x288   : > { %7023 = vmatmul.mubr.msk.bf16.gmra.mxu0 %vm2687_vm5, %v9406_v15 }
 0x289   : > { %6983 = vmatmul.mubr.msk.bf16.gmra.mxu1 %vm2687_vm5, %v10821_v6  ;;  %7026 = vmatprep.mubr.msk.bf16.mxu0 %vm2687_vm5, %v9423_v51 }
 0x28a   : > { %6986 = vmatprep.mubr.msk.bf16.mxu1 %vm2687_vm5, %v9216_v26 }
 0x290   : > { %7027 = vmatmul.mubr.msk.bf16.gmra.mxu0 %vm2687_vm5, %v9564_v10 }
 0x291   : > { %6987 = vmatmul.mubr.msk.bf16.gmra.mxu1 %vm2687_vm5, %v9218_v25  ;;  %7070 = vmatprep.mubr.msk.bf16.mxu0 %vm2687_vm5, %v10811_v21  ;;  %v7224_v21 = vld [vmem:[%s10477_s3 + $0x80] sm:$0xff]  }
 0x292   : > { %6990 = vmatprep.mubr.msk.bf16.mxu1 %vm2687_vm5, %v9297_v2 }
 0x296   : > { %v6856_v41 = vpop.f32.mrf.mxu0 }
 0x298   : > { %7071 = vmatmul.mubr.msk.bf16.vlgmr.msra.gmra.mxu0 %vm2687_vm5, %v10812_v55  ;;  %v3346_v62 = vpop.f32.mrf.mxu0 }
 0x299   : > { %6991 = vmatmul.mubr.msk.bf16.gmra.mxu1 %vm2687_vm5, %v9426_v60  ;;  %7074 = vmatprep.mubr.msk.bf16.mxu0 %vm2687_vm5, %v10813_v30 }
 0x29a   : > { %7034 = vmatprep.mubr.msk.bf16.mxu1 %vm2687_vm5, %v8814_v46  ;;  %v6820_v46 = vpop.f32.mrf.mxu1  ;;  %v6857_v58 = vpop.f32.mrf.mxu0 }
 0x29b   : > { %v9597_v42 = vadd.f32 %v6856_v41, %v6820_v46 }
 0x29c   : > { %v3125_v12 = vpop.f32.mrf.mxu1  ;;  %v3349_v55 = vpop.f32.mrf.mxu0 }
 0x29d   : > { %v9604_v30 = vadd.f32 %v3346_v62, %v3125_v12 }
 0x29e   : > { %v6821_v11 = vpop.f32.mrf.mxu1  ;;  %v6860_v37 = vpop.f32.mrf.mxu0 }
 0x29f   : > { %v9608_v18 = vadd.f32 %v6857_v58, %v6821_v11 }
 0x2a0   : > { %7075 = vmatmul.mubr.msk.bf16.gmra.mxu0 %vm2687_vm5, %v10814_v31  ;;  %v3128_v3 = vpop.f32.mrf.mxu1  ;;  %v3362_v49 = vpop.f32.mrf.mxu0 }
 0x2a1   : > { %7035 = vmatmul.mubr.msk.bf16.vlgmr.msra.gmra.mxu1 %vm2687_vm5, %v8894_v54  ;;  %7078 = vmatprep.mubr.msk.bf16.mxu0 %vm2687_vm5, %v10815_v45  ;;  %v9614_v54 = vadd.f32 %v3349_v55, %v3128_v3 }
 0x2a2   : > { %7103 = vmatpush3.bf16.msra.mxu1 %v7223_v1  ;;  %7038 = vmatprep.mubr.msk.bf16.mxu1 %vm2687_vm5, %v10799_v53  ;;  %v6861_v56 = vpop.f32.mrf.mxu0  ;;  %v6824_v1 = vpop.f32.mrf.mxu1 }
 0x2a3   : > { %7104 = vmatprep.subr.bf16.mxu1 %v7224_v21  ;;  %v9616_v53 = vadd.f32 %v6860_v37, %v6824_v1 }
 0x2a4   : > { %v3365_v41 = vpop.f32.mrf.mxu0  ;;  %v3141_v31 = vpop.f32.mrf.mxu1 }
 0x2a5   : > { %v9622_v62 = vadd.f32 %v3362_v49, %v3141_v31 }
 0x2a6   : > { %7105 = vmatpush3.bf16.msra.mxu1 %v7224_v21  ;;  %v6864_v5 = vpop.f32.mrf.mxu0  ;;  %v6825_v45 = vpop.f32.mrf.mxu1 }
 0x2a7   : > { %v9628_v58 = vadd.f32 %v6861_v56, %v6825_v45 }
 0x2a8   : > { %7079 = vmatmul.mubr.msk.bf16.gmra.mxu0 %vm2687_vm5, %v10816_v27  ;;  %v3378_v46 = vpop.f32.mrf.mxu0  ;;  %v3144_v21 = vpop.f32.mrf.mxu1 }
 0x2a9   : > { %7039 = vmatmul.mubr.msk.bf16.gmra.mxu1 %vm2687_vm5, %v10800_v7  ;;  %7082 = vmatprep.mubr.msk.bf16.mxu0 %vm2687_vm5, %v10817_v17  ;;  %v9630_v7 = vadd.f32 %v3365_v41, %v3144_v21 }
 0x2aa   : > { %7042 = vmatprep.mubr.msk.bf16.mxu1 %vm2687_vm5, %v10801_v8  ;;  %v6865_v12 = vpop.f32.mrf.mxu0 }
 0x2ac   : > { %v6828_v55 = vpop.f32.mrf.mxu1  ;;  %v3381_v8 = vpop.f32.mrf.mxu0 }
 0x2ad   : > { %v9632_v11 = vadd.f32 %v6864_v5, %v6828_v55 }
 0x2ae   : > { %v3157_v27 = vpop.f32.mrf.mxu1  ;;  %v6868_v37 = vpop.f32.mrf.mxu0 }
 0x2af   : > { %v9638_v17 = vadd.f32 %v3378_v46, %v3157_v27 }
 0x2b0   : > { %7083 = vmatmul.mubr.msk.bf16.gmra.mxu0 %vm2687_vm5, %v10818_v33  ;;  %v6829_v3 = vpop.f32.mrf.mxu1  ;;  %v3394_v49 = vpop.f32.mrf.mxu0 }
 0x2b1   : > { %7043 = vmatmul.mubr.msk.bf16.gmra.mxu1 %vm2687_vm5, %v10802_v32  ;;  %7086 = vmatprep.mubr.msk.bf16.mxu0 %vm2687_vm5, %v10819_v47  ;;  %v9644_v56 = vadd.f32 %v6865_v12, %v6829_v3 }
 0x2b2   : > { %7046 = vmatprep.mubr.msk.bf16.mxu1 %vm2687_vm5, %v10803_v52  ;;  %v3160_v1 = vpop.f32.mrf.mxu1  ;;  %v6869_v41 = vpop.f32.mrf.mxu0 }
 0x2b3   : > { %v9646_v32 = vadd.f32 %v3381_v8, %v3160_v1 }
 0x2b4   : > { %v3397_v31 = vpop.f32.mrf.mxu0  ;;  %v6832_v52 = vpop.f32.mrf.mxu1 }
 0x2b5   : > { %v9650_v5 = vadd.f32 %v6868_v37, %v6832_v52  ;;  %v4736_v52 = vrot.slane %v9574_v0, 1 }
 0x2b6   : > { %v6872_v33 = vpop.f32.mrf.mxu0  ;;  %v3173_v45 = vpop.f32.mrf.mxu1 }
 0x2b7   : > { %v9656_v47 = vadd.f32 %v3394_v49, %v3173_v45 }
 0x2b8   : > { %7087 = vmatmul.mubr.msk.bf16.gmra.mxu0 %vm2687_vm5, %v10820_v40  ;;  %v9660_v46 = vpop.f32.mrf.mxu0  ;;  %v6833_v21 = vpop.f32.mrf.mxu1 }
 0x2b9   : > { %7047 = vmatmul.mubr.msk.bf16.gmra.mxu1 %vm2687_vm5, %v10804_v61  ;;  %7090 = vmatprep.mubr.msk.bf16.mxu0 %vm2687_vm5, %v10821_v6  ;;  %v9662_v12 = vadd.f32 %v6869_v41, %v6833_v21 }
 0x2ba   : > { %7050 = vmatprep.mubr.msk.bf16.mxu1 %vm2687_vm5, %v10805_v38  ;;  %v6873_v61 = vpop.f32.mrf.mxu0  ;;  %v3176_v55 = vpop.f32.mrf.mxu1 }
 0x2bb   : > { %v9664_v8 = vadd.f32 %v3397_v31, %v3176_v55 }
 0x2bc   : > { %v9666_v38 = vpop.f32.mrf.mxu0  ;;  %v6836_v27 = vpop.f32.mrf.mxu1 }
 0x2bd   : > { %v9670_v40 = vadd.f32 %v6872_v33, %v6836_v27  ;;  %v4738_v33 = vrot.slane %v9580_v57, 1 }
 0x2be   : > { %v6876_v6 = vpop.f32.mrf.mxu0  ;;  %v9674_v37 = vpop.f32.mrf.mxu1 }
 0x2c0   : > { %7091 = vmatmul.mubr.msk.bf16.gmra.mxu0 %vm2687_vm5, %v9216_v26  ;;  %v9680_v3 = vpop.f32.mrf.mxu0  ;;  %v6837_v49 = vpop.f32.mrf.mxu1 }
 0x2c1   : > { %7051 = vmatmul.mubr.msk.bf16.gmra.mxu1 %vm2687_vm5, %v10806_v59  ;;  %7094 = vmatprep.mubr.msk.bf16.mxu0 %vm2687_vm5, %v9218_v25  ;;  %v9682_v1 = vadd.f32 %v6873_v61, %v6837_v49 }
 0x2c2   : > { %7054 = vmatprep.mubr.msk.bf16.mxu1 %vm2687_vm5, %v10807_v16  ;;  %v6877_v59 = vpop.f32.mrf.mxu0  ;;  %v9684_v41 = vpop.f32.mrf.mxu1  ;;  %v4735_v16 = vrot.slane %v9572_v20, 1 }
 0x2c4   : > { %v9686_v31 = vpop.f32.mrf.mxu0  ;;  %v6840_v26 = vpop.f32.mrf.mxu1  ;;  %v4737_v57 = vsel %vm435_vm2, %v4735_v16, %v4736_v52 }
 0x2c5   : > { %v9693_v25 = vadd.f32 %v6876_v6, %v6840_v26 }
 0x2c6   : > { %v6880_v45 = vpop.f32.mrf.mxu0  ;;  %v9697_v21 = vpop.f32.mrf.mxu1 }
 0x2c8   : > { %7095 = vmatmul.mubr.msk.bf16.gmra.mxu0 %vm2687_vm5, %v9297_v2  ;;  %v9703_v61 = vpop.f32.mrf.mxu0  ;;  %v6841_v55 = vpop.f32.mrf.mxu1 }
 0x2c9   : > { %7055 = vmatmul.mubr.msk.bf16.gmra.mxu1 %vm2687_vm5, %v10808_v29  ;;  %7098 = vmatprep.mubr.msk.bf16.mxu0 %vm2687_vm5, %v9426_v60  ;;  %v4739_v29 = vsel %vm435_vm2, %v4736_v52, %v4738_v33  ;;  %v9707_v27 = vadd.f32 %v6877_v59, %v6841_v55  ;;  %v4518_v33 = vpack.c.bf16 %v9574_v0, %v9572_v20 }
 0x2ca   : > { %7058 = vmatprep.mubr.msk.bf16.mxu1 %vm2687_vm5, %v10809_v14  ;;  %v6881_v6 = vpop.f32.mrf.mxu0  ;;  %v9709_v14 = vpop.f32.mrf.mxu1  ;;  %v4742_v49 = vpack.c.bf16 %v4739_v29, %v4737_v57 }
 0x2cc   : > { %v9711_v26 = vpop.f32.mrf.mxu0  ;;  %v6844_v43 = vpop.f32.mrf.mxu1 }
 0x2cd   : > { %v9715_v2 = vadd.f32 %v6880_v45, %v6844_v43 }
 0x2ce   : > { %v9719_v16 = vpop.f32.mrf.mxu1 }
 0x2d0   : > { %v6884_v60 = vpop.f32.mrf.mxu0  ;;  %7099 = vmatmul.mubr.msk.bf16.gmra.mxu0 %vm2687_vm5, %v4742_v49  ;;  %v6845_v52 = vpop.f32.mrf.mxu1 }
 0x2d1   : > { %7059 = vmatmul.mubr.msk.bf16.gmra.mxu1 %vm2687_vm5, %v9268_v9  ;;  %v9726_v57 = vadd.f32 %v6881_v6, %v6845_v52 }
 0x2d2   : > { %7062 = vmatprep.mubr.msk.bf16.mxu1 %vm2687_vm5, %v9484_v35  ;;  %v9722_v59 = vpop.f32.mrf.mxu0  ;;  %v9728_v9 = vpop.f32.mrf.mxu1 }
 0x2d3   : > { %10823 = vst [vmem:[#allocation45_spill] sm:$0xff] %v9722_v59 }
 0x2d4   : > { %v6885_v29 = vpop.f32.mrf.mxu0  ;;  %v6848_v45 = vpop.f32.mrf.mxu1 }
 0x2d5   : > { %v9733_v35 = vadd.f32 %v6884_v60, %v6848_v45 }
 0x2d6   : > { %v9730_v43 = vpop.f32.mrf.mxu0  ;;  %v9737_v49 = vpop.f32.mrf.mxu1 }
 0x2d7   : > { %10824 = vst [vmem:[#allocation18_spill] sm:$0xff] %v9730_v43 }
 0x2d8   : > { %v6928_v55 = vpop.f32.mrf.mxu0  ;;  %v6849_v20 = vpop.f32.mrf.mxu1 }
 0x2d9   : > { %7063 = vmatmul.mubr.msk.bf16.gmra.mxu1 %vm2687_vm5, %v4518_v33  ;;  %v9741_v0 = vadd.f32 %v6885_v29, %v6849_v20 }
 0x2da   : > { %7106 = vmatprep.mubr.msk.bf16.mxu1 %vm2687_vm5, %v9228_v48  ;;  %v9739_v59 = vpop.f32.mrf.mxu0  ;;  %v9743_v52 = vpop.f32.mrf.mxu1 }
 0x2db   : > { %10825 = vst [vmem:[#allocation47_spill] sm:$0xff] %v9739_v59  ;;  %10826 = vst [vmem:[#allocation19_spill] sm:$0xff] %v9741_v0 }
 0x2dc   : > { %v6929_v6 = vpop.f32.mrf.mxu0  ;;  %10827 = vst [vmem:[#allocation49_spill] sm:$0xff] %v9743_v52 }
 0x2de   : > { %v9745_v43 = vpop.f32.mrf.mxu0 }
 0x2df   : > { %10828 = vst [vmem:[#allocation41_spill] sm:$0xff] %v9745_v43 }
 0x2e0   : > { %v6932_v33 = vpop.f32.mrf.mxu0 }
 0x2e1   : > { %v6892_v28 = vpop.f32.mrf.mxu1  ;;  %7107 = vmatmul.mubr.msk.bf16.vlgmr.msra.gmra.mxu1 %vm2687_vm5, %v9275_v50 }
 0x2e2   : > { %v3829_v60 = vadd.f32 %v6892_v28, %v9597_v42  ;;  %7110 = vmatprep.mubr.msk.bf16.mxu1 %vm2687_vm5, %v9292_v22  ;;  %v9757_v59 = vpop.f32.mrf.mxu0 }
 0x2e3   : > { %v3700_v48 = vpop.f32.mrf.mxu1 }
 0x2e4   : > { %v9753_v45 = vadd.f32 %v3700_v48, %v9604_v30  ;;  %v9755_v29 = vadd.f32 %v6928_v55, %v3829_v60  ;;  %v6933_v52 = vpop.f32.mrf.mxu0 }
 0x2e5   : > { %v6893_v20 = vpop.f32.mrf.mxu1 }
 0x2e6   : > { %v3830_v43 = vadd.f32 %v6893_v20, %v9608_v18  ;;  %v9767_v42 = vpop.f32.mrf.mxu0 }
 0x2e7   : > { %v3703_v0 = vpop.f32.mrf.mxu1 }
 0x2e8   : > { %v9761_v50 = vadd.f32 %v3703_v0, %v9614_v54  ;;  %v9763_v28 = vadd.f32 %v6929_v6, %v3830_v43  ;;  %v6936_v18 = vpop.f32.mrf.mxu0 }
 0x2e9   : > { %v6896_v22 = vpop.f32.mrf.mxu1  ;;  %7111 = vmatmul.mubr.msk.bf16.gmra.mxu1 %vm2687_vm5, %v9299_v13  ;;  %v5251_v13 = vld [vmem:[%s10479_s5 + $0x18] sm:$0xff] }
 0x2ea   : > { %v3833_v30 = vadd.f32 %v6896_v22, %v9616_v53  ;;  %7114 = vmatprep.mubr.msk.bf16.mxu1 %vm2687_vm5, %v9301_v19  ;;  %v9777_v0 = vpop.f32.mrf.mxu0  ;;  %7138 = vmatprep.subr.mxu0 %v5251_v13 }
 0x2eb   : > { %v3716_v55 = vpop.f32.mrf.mxu1  ;;  %7139 = vmatpush3.msra.mxu0 %v5251_v13 }
 0x2ec   : > { %v9773_v60 = vadd.f32 %v3716_v55, %v9622_v62  ;;  %v9775_v54 = vadd.f32 %v6932_v33, %v3833_v30  ;;  %v6937_v48 = vpop.f32.mrf.mxu0 }
 0x2ed   : > { %v6897_v43 = vpop.f32.mrf.mxu1 }
 0x2ee   : > { %v3834_v6 = vadd.f32 %v6897_v43, %v9628_v58  ;;  %v9790_v33 = vpop.f32.mrf.mxu0 }
 0x2ef   : > { %v3719_v53 = vpop.f32.mrf.mxu1 }
 0x2f0   : > { %v9784_v19 = vadd.f32 %v3719_v53, %v9630_v7  ;;  %v9786_v20 = vadd.f32 %v6933_v52, %v3834_v6  ;;  %v6940_v30 = vpop.f32.mrf.mxu0 }
 0x2f1   : > { %v6900_v62 = vpop.f32.mrf.mxu1  ;;  %7115 = vmatmul.mubr.msk.bf16.gmra.mxu1 %vm2687_vm5, %v9318_v24 }
 0x2f2   : > { %v3837_v58 = vadd.f32 %v6900_v62, %v9632_v11  ;;  %7118 = vmatprep.mubr.msk.bf16.mxu1 %vm2687_vm5, %v9343_v39  ;;  %v9800_v43 = vpop.f32.mrf.mxu0 }
 0x2f3   : > { %v3732_v22 = vpop.f32.mrf.mxu1 }
 0x2f4   : > { %v9796_v55 = vadd.f32 %v3732_v22, %v9638_v17  ;;  %v9798_v7 = vadd.f32 %v6936_v18, %v3837_v58  ;;  %v6941_v13 = vpop.f32.mrf.mxu0 }
 0x2f5   : > { %v6901_v52 = vpop.f32.mrf.mxu1 }
 0x2f6   : > { %v3838_v6 = vadd.f32 %v6901_v52, %v9644_v56  ;;  %v9810_v17 = vpop.f32.mrf.mxu0 }
 0x2f7   : > { %v3735_v24 = vpop.f32.mrf.mxu1 }
 0x2f8   : > { %v9804_v53 = vadd.f32 %v3735_v24, %v9646_v32  ;;  %v9806_v11 = vadd.f32 %v6937_v48, %v3838_v6  ;;  %v6944_v56 = vpop.f32.mrf.mxu0 }
 0x2f9   : > { %v6904_v39 = vpop.f32.mrf.mxu1  ;;  %7119 = vmatmul.mubr.msk.bf16.gmra.mxu1 %vm2687_vm5, %v9345_v36  ;;  %v5250_v36 = vld [vmem:[%s10479_s5 + $0x10] sm:$0xff] }
 0x2fa   : > { %v3841_v18 = vadd.f32 %v6904_v39, %v9650_v5  ;;  %7122 = vmatprep.mubr.msk.bf16.mxu1 %vm2687_vm5, %v9351_v34  ;;  %v3978_v22 = vpop.f32.mrf.mxu0  ;;  %7140 = vmatprep.subr.mxu0 %v5250_v36 }
 0x2fb   : > { %v3748_v62 = vpop.f32.mrf.mxu1  ;;  %7141 = vmatpush3.msra.mxu0 %v5250_v36  ;;  %v3414_v36 = vadd.f32 %v9666_v38, %v9684_v41 }
 0x2fc   : > { %v9816_v58 = vadd.f32 %v3748_v62, %v9656_v47  ;;  %v9818_v32 = vadd.f32 %v6940_v30, %v3841_v18  ;;  %v6945_v5 = vpop.f32.mrf.mxu0 }
 0x2fd   : > { %v6905_v48 = vpop.f32.mrf.mxu1 }
 0x2fe   : > { %v3842_v52 = vadd.f32 %v6905_v48, %v9662_v12  ;;  %v3981_v30 = vpop.f32.mrf.mxu0  ;;  %v3411_v12 = vadd.f32 %v9660_v46, %v9674_v37 }
 0x2ff   : > { %v3751_v6 = vpop.f32.mrf.mxu1 }
 0x300   : > { %v9825_v34 = vadd.f32 %v3751_v6, %v9664_v8  ;;  %v9827_v24 = vadd.f32 %v6941_v13, %v3842_v52  ;;  %v6948_v62 = vpop.f32.mrf.mxu0 }
 0x301   : > { %v6908_v47 = vpop.f32.mrf.mxu1  ;;  %7123 = vmatmul.mubr.msk.bf16.gmra.mxu1 %vm2687_vm5, %v9371_v44 }
 0x302   : > { %v3845_v39 = vadd.f32 %v6908_v47, %v9670_v40  ;;  %7126 = vmatprep.mubr.msk.bf16.mxu1 %vm2687_vm5, %v9389_v4  ;;  %v3994_v52 = vpop.f32.mrf.mxu0 }
 0x303   : > { %v3764_v18 = vpop.f32.mrf.mxu1 }
 0x304   : > { %v3843_v8 = vadd.f32 %v3764_v18, %v3411_v12  ;;  %v9836_v48 = vadd.f32 %v6944_v56, %v3845_v39  ;;  %v6949_v37 = vpop.f32.mrf.mxu0  ;;  %v3427_v12 = vadd.f32 %v9680_v3, %v9697_v21 }
 0x305   : > { %v6909_v13 = vpop.f32.mrf.mxu1 }
 0x306   : > { %v3846_v44 = vadd.f32 %v6909_v13, %v9682_v1  ;;  %v9841_v6 = vadd.f32 %v3978_v22, %v3843_v8  ;;  %v3997_v56 = vpop.f32.mrf.mxu0 }
 0x307   : > { %v3767_v46 = vpop.f32.mrf.mxu1 }
 0x308   : > { %v3844_v40 = vadd.f32 %v3767_v46, %v3414_v36  ;;  %v9843_v47 = vadd.f32 %v6945_v5, %v3846_v44  ;;  %v6952_v41 = vpop.f32.mrf.mxu0 }
 0x309   : > { %v6912_v4 = vpop.f32.mrf.mxu1  ;;  %7127 = vmatmul.mubr.msk.bf16.gmra.mxu1 %vm2687_vm5, %v9398_v63  ;;  %v3430_v63 = vadd.f32 %v9686_v31, %v9709_v14 }
 0x30a   : > { %v3849_v39 = vadd.f32 %v6912_v4, %v9693_v25  ;;  %7130 = vmatprep.mubr.msk.bf16.mxu1 %vm2687_vm5, %v9406_v15  ;;  %v9852_v38 = vadd.f32 %v3981_v30, %v3844_v40  ;;  %v4010_v8 = vpop.f32.mrf.mxu0  ;;  %v5249_v15 = vld [vmem:[%s10479_s5 + $0x8] sm:$0xff] }
 0x30b   : > { %v3780_v1 = vpop.f32.mrf.mxu1  ;;  %7142 = vmatprep.subr.mxu0 %v5249_v15 }
 0x30c   : > { %v3847_v22 = vadd.f32 %v3780_v1, %v3427_v12  ;;  %v9854_v5 = vadd.f32 %v6948_v62, %v3849_v39  ;;  %v6953_v21 = vpop.f32.mrf.mxu0  ;;  %7143 = vmatpush3.msra.mxu0 %v5249_v15 }
 0x30d   : > { %v6913_v18 = vpop.f32.mrf.mxu1 }
 0x30e   : > { %v3850_v13 = vadd.f32 %v6913_v18, %v9707_v27  ;;  %v9859_v3 = vadd.f32 %v3994_v52, %v3847_v22  ;;  %v4013_v31 = vpop.f32.mrf.mxu0  ;;  %v3443_v27 = vadd.f32 %v9703_v61, %v9719_v16  ;;  %v10829_v22 = vld [vmem:[#allocation11_spill] sm:$0xff] }
 0x30f   : > { %v3783_v25 = vpop.f32.mrf.mxu1  ;;  %v10830_v18 = vpack.c.bf16 %v9593_v23, %v10829_v22  ;;  %v10833_v23 = vld [vmem:[#allocation18_spill] sm:$0xff] }
 0x310   : > { %v3848_v30 = vadd.f32 %v3783_v25, %v3430_v63  ;;  %v9864_v36 = vadd.f32 %v6949_v37, %v3850_v13  ;;  %v6956_v46 = vpop.f32.mrf.mxu0  ;;  %v10831_v63 = vld [vmem:[#allocation45_spill] sm:$0xff] }
 0x311   : > { %v6916_v62 = vpop.f32.mrf.mxu1  ;;  %7131 = vmatmul.mubr.msk.bf16.gmra.mxu1 %vm2687_vm5, %v9423_v51  ;;  %v3446_v51 = vadd.f32 %v9711_v26, %v9728_v9  ;;  %v3459_v13 = vadd.f32 %v10831_v63, %v9737_v49 }
 0x312   : > { %v3853_v14 = vadd.f32 %v6916_v62, %v9715_v2  ;;  %7134 = vmatprep.mubr.msk.bf16.mxu1 %vm2687_vm5, %v9564_v10  ;;  %v9873_v52 = vadd.f32 %v3997_v56, %v3848_v30  ;;  %v4026_v12 = vpop.f32.mrf.mxu0  ;;  %v10832_v62 = vld [vmem:[#allocation49_spill] sm:$0xff] }
 0x313   : > { %v3796_v44 = vpop.f32.mrf.mxu1 }
 0x314   : > { %v3851_v37 = vadd.f32 %v3796_v44, %v3443_v27  ;;  %v9875_v40 = vadd.f32 %v6952_v41, %v3853_v14  ;;  %v6957_v16 = vpop.f32.mrf.mxu0  ;;  %v3462_v27 = vadd.f32 %v10833_v23, %v10832_v62  ;;  %v10834_v14 = vld [vmem:[#allocation19_spill] sm:$0xff] }
 0x315   : > { %v6917_v4 = vpop.f32.mrf.mxu1 }
 0x316   : > { %v3854_v39 = vadd.f32 %v6917_v4, %v9726_v57  ;;  %v9880_v61 = vadd.f32 %v4010_v8, %v3851_v37  ;;  %v4029_v41 = vpop.f32.mrf.mxu0 }
 0x317   : > { %v3799_v2 = vpop.f32.mrf.mxu1 }
 0x318   : > { %v3852_v1 = vadd.f32 %v3799_v2, %v3446_v51  ;;  %v9882_v10 = vadd.f32 %v6953_v21, %v3854_v39  ;;  %v7000_v8 = vpop.f32.mrf.mxu0 }
 0x319   : > { %v6920_v56 = vpop.f32.mrf.mxu1  ;;  %7135 = vmatmul.mubr.msk.bf16.gmra.mxu1 %vm2687_vm5, %v10830_v18 }
 0x31a   : > { %v3857_v26 = vadd.f32 %v6920_v56, %v9733_v35  ;;  %v9891_v57 = vadd.f32 %v4013_v31, %v3852_v1  ;;  %v9895_v30 = vpop.f32.mrf.mxu0  ;;  %v5248_v35 = vld [vmem:[%s10479_s5] sm:$0xff]  ;;  %v10835_v1 = vld [vmem:[#allocation47_spill] sm:$0xff] }
 0x31b   : > { %v3812_v9 = vpop.f32.mrf.mxu1  ;;  %7144 = vmatprep.subr.mxu0 %v5248_v35 }
 0x31c   : > { %v3855_v15 = vadd.f32 %v3812_v9, %v3459_v13  ;;  %v9893_v25 = vadd.f32 %v6956_v46, %v3857_v26  ;;  %v7001_v31 = vpop.f32.mrf.mxu0  ;;  %7145 = vmatpush3.msra.mxu0 %v5248_v35 }
 0x31d   : > { %v6921_v21 = vpop.f32.mrf.mxu1 }
 0x31e   : > { %v3858_v44 = vadd.f32 %v6921_v21, %v10834_v14  ;;  %v9900_v37 = vadd.f32 %v4026_v12, %v3855_v15  ;;  %v9907_v39 = vpop.f32.mrf.mxu0  ;;  %v4041_v12 = vadd.f32 %v10835_v1, %v9753_v45  ;;  %v10836_v15 = vld [vmem:[#allocation41_spill] sm:$0xff]  ;;  %v4045_v14 = vadd.f32 %v9757_v59, %v9773_v60 }
 0x31f   : > { %v3815_v49 = vpop.f32.mrf.mxu1  ;;  %v4042_v21 = vadd.f32 %v10836_v15, %v9761_v50 }
 0x320   : > { %v3856_v4 = vadd.f32 %v3815_v49, %v3462_v27  ;;  %v9905_v46 = vadd.f32 %v6957_v16, %v3858_v44  ;;  %v7004_v18 = vpop.f32.mrf.mxu0 }
 0x321   : > { %v6964_v51 = vpop.f32.mrf.mxu1 }
 0x322   : > { %v4267_v2 = vadd.f32 %v6964_v51, %v9755_v29  ;;  %v9912_v56 = vadd.f32 %v4029_v41, %v3856_v4  ;;  %v9918_v16 = vpop.f32.mrf.mxu0  ;;  %v4046_v51 = vadd.f32 %v9767_v42, %v9784_v19 }
 0x323   : > { %v4138_v22 = vpop.f32.mrf.mxu1 }
 0x324   : > { %v9914_v63 = vadd.f32 %v4138_v22, %v4041_v12  ;;  %v9916_v13 = vadd.f32 %v7000_v8, %v4267_v2  ;;  %v7005_v62 = vpop.f32.mrf.mxu0 }
 0x325   : > { %v6965_v26 = vpop.f32.mrf.mxu1 }
 0x326   : > { %v4268_v9 = vadd.f32 %v6965_v26, %v9763_v28  ;;  %v9927_v27 = vpop.f32.mrf.mxu0 }
 0x327   : > { %v4141_v29 = vpop.f32.mrf.mxu1 }
 0x328   : > { %v9923_v23 = vadd.f32 %v4141_v29, %v4042_v21  ;;  %v9925_v45 = vadd.f32 %v7001_v31, %v4268_v9  ;;  %v7008_v35 = vpop.f32.mrf.mxu0  ;;  %v4050_v29 = vadd.f32 %v9790_v33, %v9804_v53 }
 0x329   : > { %v6968_v41 = vpop.f32.mrf.mxu1 }
 0x32a   : > { %v4271_v8 = vadd.f32 %v6968_v41, %v9775_v54  ;;  %v9936_v4 = vpop.f32.mrf.mxu0 }
 0x32b   : > { %v4154_v44 = vpop.f32.mrf.mxu1 }
 0x32c   : > { %v9932_v28 = vadd.f32 %v4154_v44, %v4045_v14  ;;  %v9934_v49 = vadd.f32 %v7004_v18, %v4271_v8  ;;  %v7009_v1 = vpop.f32.mrf.mxu0  ;;  %v4049_v18 = vadd.f32 %v9777_v0, %v9796_v55  ;;  %v4053_v44 = vadd.f32 %v9800_v43, %v9816_v58 }
 0x32d   : > { %v6969_v50 = vpop.f32.mrf.mxu1 }
 0x32e   : > { %v4272_v31 = vadd.f32 %v6969_v50, %v9786_v20  ;;  %v9945_v60 = vpop.f32.mrf.mxu0 }
 0x32f   : > { %v4157_v2 = vpop.f32.mrf.mxu1 }
 0x330   : > { %v9941_v54 = vadd.f32 %v4157_v2, %v4046_v51  ;;  %v9943_v12 = vadd.f32 %v7005_v62, %v4272_v31  ;;  %v7012_v9 = vpop.f32.mrf.mxu0  ;;  %v4054_v2 = vadd.f32 %v9810_v17, %v9825_v34 }
 0x331   : > { %v6972_v59 = vpop.f32.mrf.mxu1 }
 0x332   : > { %v4275_v22 = vadd.f32 %v6972_v59, %v9798_v7  ;;  %v9954_v19 = vpop.f32.mrf.mxu0 }
 0x333   : > { %v4170_v26 = vpop.f32.mrf.mxu1 }
 0x334   : > { %v9950_v20 = vadd.f32 %v4170_v26, %v4049_v18  ;;  %v9952_v15 = vadd.f32 %v7008_v35, %v4275_v22  ;;  %v7013_v41 = vpop.f32.mrf.mxu0 }
 0x335   : > { %v6973_v42 = vpop.f32.mrf.mxu1 }
 0x336   : > { %v4276_v21 = vadd.f32 %v6973_v42, %v9806_v11  ;;  %v9963_v55 = vpop.f32.mrf.mxu0 }
 0x337   : > { %v4173_v62 = vpop.f32.mrf.mxu1 }
 0x338   : > { %v9959_v7 = vadd.f32 %v4173_v62, %v4050_v29  ;;  %v9961_v8 = vadd.f32 %v7009_v1, %v4276_v21  ;;  %v7016_v50 = vpop.f32.mrf.mxu0 }
 0x339   : > { %v6976_v0 = vpop.f32.mrf.mxu1 }
 0x33a   : > { %v4279_v14 = vadd.f32 %v6976_v0, %v9818_v32  ;;  %v9972_v53 = vpop.f32.mrf.mxu0 }
 0x33b   : > { %v4186_v35 = vpop.f32.mrf.mxu1 }
 0x33c   : > { %v9968_v11 = vadd.f32 %v4186_v35, %v4053_v44  ;;  %v9970_v31 = vadd.f32 %v7012_v9, %v4279_v14  ;;  %v7017_v59 = vpop.f32.mrf.mxu0 }
 0x33d   : > { %v6977_v33 = vpop.f32.mrf.mxu1 }
 0x33e   : > { %v4280_v51 = vadd.f32 %v6977_v33, %v9827_v24  ;;  %v9981_v58 = vpop.f32.mrf.mxu0 }
 0x33f   : > { %v4189_v1 = vpop.f32.mrf.mxu1  ;;  %10837 = vst [vmem:[#allocation51_spill] sm:$0xff] %v9981_v58 }
 0x340   : > { %v9977_v32 = vadd.f32 %v4189_v1, %v4054_v2  ;;  %v9979_v22 = vadd.f32 %v7013_v41, %v4280_v51  ;;  %v7020_v9 = vpop.f32.mrf.mxu0 }
 0x341   : > { %v6980_v43 = vpop.f32.mrf.mxu1 }
 0x342   : > { %v4283_v18 = vadd.f32 %v6980_v43, %v9836_v48  ;;  %v9989_v17 = vpop.f32.mrf.mxu0 }
 0x343   : > { %v4202_v26 = vpop.f32.mrf.mxu1  ;;  %10838 = vst [vmem:[#allocation3_spill] sm:$0xff] %v9989_v17 }
 0x344   : > { %v9985_v42 = vadd.f32 %v4202_v26, %v9841_v6  ;;  %v9987_v24 = vadd.f32 %v7016_v50, %v4283_v18  ;;  %v7021_v62 = vpop.f32.mrf.mxu0 }
 0x345   : > { %v6981_v21 = vpop.f32.mrf.mxu1 }
 0x346   : > { %v4284_v34 = vadd.f32 %v6981_v21, %v9843_v47  ;;  %v9997_v14 = vpop.f32.mrf.mxu0 }
 0x347   : > { %v4205_v29 = vpop.f32.mrf.mxu1  ;;  %10839 = vst [vmem:[#allocation53_spill] sm:$0xff] %v9997_v14 }
 0x348   : > { %v9993_v41 = vadd.f32 %v4205_v29, %v9852_v38  ;;  %v9995_v0 = vadd.f32 %v7017_v59, %v4284_v34  ;;  %v7024_v35 = vpop.f32.mrf.mxu0 }
 0x349   : > { %v6984_v48 = vpop.f32.mrf.mxu1 }
 0x34a   : > { %v4287_v6 = vadd.f32 %v6984_v48, %v9854_v5  ;;  %v10005_v51 = vpop.f32.mrf.mxu0 }
 0x34b   : > { %v4218_v44 = vpop.f32.mrf.mxu1  ;;  %10841 = vst [vmem:[#allocation55_spill] sm:$0xff] %v10005_v51 }
 0x34c   : > { %v10001_v50 = vadd.f32 %v4218_v44, %v9859_v3  ;;  %v10003_v33 = vadd.f32 %v7020_v9, %v4287_v6  ;;  %v7025_v1 = vpop.f32.mrf.mxu0 }
 0x34d   : > { %v6985_v47 = vpop.f32.mrf.mxu1 }
 0x34e   : > { %10840 = vst [vmem:[#allocation9_spill] sm:$0xff] %v10001_v50  ;;  %v4288_v38 = vadd.f32 %v6985_v47, %v9864_v36  ;;  %v10013_v18 = vpop.f32.mrf.mxu0 }
 0x34f   : > { %v4221_v2 = vpop.f32.mrf.mxu1  ;;  %10843 = vst [vmem:[#allocation57_spill] sm:$0xff] %v10013_v18 }
 0x350   : > { %v10009_v59 = vadd.f32 %v4221_v2, %v9873_v52  ;;  %v10011_v43 = vadd.f32 %v7021_v62, %v4288_v38  ;;  %v7028_v9 = vpop.f32.mrf.mxu0 }
 0x351   : > { %v6988_v5 = vpop.f32.mrf.mxu1 }
 0x352   : > { %10842 = vst [vmem:[#allocation12_spill] sm:$0xff] %v10009_v59  ;;  %v4291_v3 = vadd.f32 %v6988_v5, %v9875_v40  ;;  %v10021_v29 = vpop.f32.mrf.mxu0 }
 0x353   : > { %v4234_v26 = vpop.f32.mrf.mxu1  ;;  %10845 = vst [vmem:[#allocation46_spill] sm:$0xff] %v10021_v29 }
 0x354   : > { %v10017_v21 = vadd.f32 %v4234_v26, %v9880_v61  ;;  %v10019_v34 = vadd.f32 %v7024_v35, %v4291_v3  ;;  %v7029_v6 = vpop.f32.mrf.mxu0 }
 0x355   : > { %v6989_v36 = vpop.f32.mrf.mxu1 }
 0x356   : > { %10844 = vst [vmem:[#allocation44_spill] sm:$0xff] %v10017_v21  ;;  %v4292_v52 = vadd.f32 %v6989_v36, %v9882_v10  ;;  %v10033_v35 = vpop.f32.mrf.mxu0 }
 0x357   : > { %v4237_v48 = vpop.f32.mrf.mxu1  ;;  %10848 = vst [vmem:[#allocation50_spill] sm:$0xff] %v10033_v35 }
 0x358   : > { %v10025_v62 = vadd.f32 %v4237_v48, %v9891_v57  ;;  %v10027_v44 = vadd.f32 %v7025_v1, %v4292_v52  ;;  %v10038_v57 = vpop.f32.mrf.mxu0 }
 0x359   : > { %v6992_v40 = vpop.f32.mrf.mxu1 }
 0x35a   : > { %10846 = vst [vmem:[#allocation48_spill] sm:$0xff] %v10025_v62  ;;  %v4295_v47 = vadd.f32 %v6992_v40, %v9893_v25  ;;  %v10048_v52 = vpop.f32.mrf.mxu0 }
 0x35b   : > { %v4250_v38 = vpop.f32.mrf.mxu1 }
 0x35c   : > { %v10031_v61 = vadd.f32 %v4250_v38, %v9900_v37  ;;  %v10035_v2 = vadd.f32 %v7028_v9, %v4295_v47  ;;  %v10053_v40 = vpop.f32.mrf.mxu0 }
 0x35d   : > { %v6993_v5 = vpop.f32.mrf.mxu1 }
 0x35e   : > { %10847 = vst [vmem:[#allocation59_spill] sm:$0xff] %v10031_v61  ;;  %v4296_v10 = vadd.f32 %v6993_v5, %v9905_v46  ;;  %v10060_v38 = vpop.f32.mrf.mxu0 }
 0x35f   : > { %v4253_v3 = vpop.f32.mrf.mxu1 }
 0x360   : > { %v10041_v1 = vadd.f32 %v4253_v3, %v9912_v56  ;;  %v10043_v26 = vadd.f32 %v7029_v6, %v4296_v10  ;;  %v10067_v3 = vpop.f32.mrf.mxu0 }
 0x361   : > { %v7036_v25 = vpop.f32.mrf.mxu1 }
 0x362   : > { %10849 = vst [vmem:[#allocation52_spill] sm:$0xff] %v10041_v1  ;;  %v10046_v36 = vadd.f32 %v7036_v25, %v9916_v13 }
 0x363   : > { %v4573_v37 = vpop.f32.mrf.mxu1 }
 0x365   : > { %v7037_v9 = vpop.f32.mrf.mxu1 }
 0x366   : > { %v10051_v48 = vadd.f32 %v7037_v9, %v9925_v45 }
 0x367   : > { %v4576_v46 = vpop.f32.mrf.mxu1 }
 0x369   : > { %v7040_v47 = vpop.f32.mrf.mxu1 }
 0x36a   : > { %v10056_v56 = vadd.f32 %v7040_v47, %v9934_v49  ;;  %v10074_v49 = vpop.f32.mrf.mxu0 }
 0x36b   : > { %v10058_v6 = vpop.f32.mrf.mxu1 }
 0x36d   : > { %v7041_v13 = vpop.f32.mrf.mxu1 }
 0x36e   : > { %v10063_v5 = vadd.f32 %v7041_v13, %v9943_v12  ;;  %v10081_v12 = vpop.f32.mrf.mxu0 }
 0x36f   : > { %v10065_v10 = vpop.f32.mrf.mxu1 }
 0x371   : > { %v7044_v45 = vpop.f32.mrf.mxu1 }
 0x372   : > { %v10070_v25 = vadd.f32 %v7044_v45, %v9952_v15  ;;  %v10088_v15 = vpop.f32.mrf.mxu0 }
 0x373   : > { %v10072_v9 = vpop.f32.mrf.mxu1 }
 0x375   : > { %v7045_v47 = vpop.f32.mrf.mxu1 }
 0x376   : > { %v10077_v35 = vadd.f32 %v7045_v47, %v9961_v8  ;;  %v10095_v8 = vpop.f32.mrf.mxu0 }
 0x377   : > { %v10079_v1 = vpop.f32.mrf.mxu1 }
 0x379   : > { %v7048_v13 = vpop.f32.mrf.mxu1 }
 0x37a   : > { %v10084_v29 = vadd.f32 %v7048_v13, %v9970_v31  ;;  %v10102_v31 = vpop.f32.mrf.mxu0 }
 0x37b   : > { %v10086_v61 = vpop.f32.mrf.mxu1 }
 0x37d   : > { %v7049_v45 = vpop.f32.mrf.mxu1 }
 0x37e   : > { %v10091_v18 = vadd.f32 %v7049_v45, %v9979_v22  ;;  %v10109_v22 = vpop.f32.mrf.mxu0 }
 0x37f   : > { %v10093_v62 = vpop.f32.mrf.mxu1 }
 0x381   : > { %v7052_v47 = vpop.f32.mrf.mxu1 }
 0x382   : > { %v10098_v51 = vadd.f32 %v7052_v47, %v9987_v24  ;;  %v10116_v24 = vpop.f32.mrf.mxu0 }
 0x383   : > { %v10100_v21 = vpop.f32.mrf.mxu1 }
 0x384   : > { %10850 = vst [vmem:[#allocation54_spill] sm:$0xff] %v10098_v51 }
 0x385   : > { %v7053_v13 = vpop.f32.mrf.mxu1 }
 0x386   : > { %v10105_v14 = vadd.f32 %v7053_v13, %v9995_v0  ;;  %v10123_v0 = vpop.f32.mrf.mxu0 }
 0x387   : > { %v10107_v59 = vpop.f32.mrf.mxu1 }
 0x388   : > { %10851 = vst [vmem:[#allocation56_spill] sm:$0xff] %v10105_v14  ;;  %10852 = vst [vmem:[#allocation58_spill] sm:$0xff] %v10107_v59 }
 0x389   : > { %v7056_v45 = vpop.f32.mrf.mxu1 }
 0x38a   : > { %v10112_v17 = vadd.f32 %v7056_v45, %v10003_v33  ;;  %v10130_v33 = vpop.f32.mrf.mxu0 }
 0x38b   : > { %v10114_v50 = vpop.f32.mrf.mxu1 }
 0x38c   : > { %10853 = vst [vmem:[#allocation17_spill] sm:$0xff] %v10112_v17  ;;  %10854 = vst [vmem:[#allocation61_spill] sm:$0xff] %v10114_v50 }
 0x38d   : > { %v7057_v47 = vpop.f32.mrf.mxu1 }
 0x38e   : > { %v10119_v51 = vadd.f32 %v7057_v47, %v10011_v43  ;;  %v10137_v43 = vpop.f32.mrf.mxu0 }
 0x38f   : > { %v10121_v58 = vpop.f32.mrf.mxu1 }
 0x390   : > { %10855 = vst [vmem:[#allocation7_spill] sm:$0xff] %v10119_v51  ;;  %10856 = vst [vmem:[#allocation10_spill] sm:$0xff] %v10121_v58 }
 0x391   : > { %v7060_v13 = vpop.f32.mrf.mxu1 }
 0x392   : > { %v10126_v14 = vadd.f32 %v7060_v13, %v10019_v34  ;;  %v4486_v34 = vadd.f32 %v9895_v30, %v9914_v63  ;;  %v10146_v13 = vpop.f32.mrf.mxu0 }
 0x393   : > { %v10128_v59 = vpop.f32.mrf.mxu1 }
 0x394   : > { %10857 = vst [vmem:[#allocation20_spill] sm:$0xff] %v10126_v14  ;;  %10858 = vst [vmem:[#allocation21_spill] sm:$0xff] %v10128_v59  ;;  %v4700_v59 = vadd.f32 %v4573_v37, %v4486_v34  ;;  %v4490_v37 = vadd.f32 %v9918_v16, %v9932_v28  ;;  %v4491_v28 = vadd.f32 %v9927_v27, %v9941_v54 }
 0x395   : > { %v7061_v45 = vpop.f32.mrf.mxu1  ;;  %v4494_v54 = vadd.f32 %v9936_v4, %v9950_v20 }
 0x396   : > { %v10133_v17 = vadd.f32 %v7061_v45, %v10027_v44  ;;  %v4924_v30 = vadd.f32 %v10048_v52, %v4700_v59 }
 0x397   : > { %v10135_v50 = vpop.f32.mrf.mxu1 }
 0x398   : > { %10859 = vst [vmem:[#allocation22_spill] sm:$0xff] %v10133_v17  ;;  %10860 = vst [vmem:[#allocation60_spill] sm:$0xff] %v10135_v50  ;;  %v4487_v17 = vadd.f32 %v9907_v39, %v9923_v23  ;;  %v10155_v50 = vpop.f32.mrf.mxu0  ;;  %v4927_v39 = vadd.f32 %v10053_v40, %v10051_v48  ;;  %v10169_v23 = vld [vmem:[%s10478_s4] ss:$0 sm:$0xff] }
 0x399   : > { %v7064_v47 = vpop.f32.mrf.mxu1 }
 0x39a   : > { %v10140_v51 = vadd.f32 %v7064_v47, %v10035_v2  ;;  %v4701_v47 = vadd.f32 %v4576_v46, %v4487_v17 }
 0x39b   : > { %v10142_v58 = vpop.f32.mrf.mxu1 }
 0x39c   : > { %10861 = vst [vmem:[#allocation62_spill] sm:$0xff] %v10140_v51  ;;  %v4926_v51 = vadd.f32 %v10038_v57, %v10046_v36  ;;  %v4704_v57 = vadd.f32 %v10058_v6, %v4490_v37  ;;  %v4925_v16 = vadd.f32 %v10060_v38, %v4701_v47  ;;  %v4930_v38 = vadd.f32 %v10067_v3, %v10056_v56 }
 0x39d   : > { %v7065_v14 = vpop.f32.mrf.mxu1  ;;  %v4931_v37 = vadd.f32 %v10081_v12, %v10063_v5  ;;  %v4495_v5 = vadd.f32 %v9945_v60, %v9959_v7 }
 0x39e   : > { %v10149_v44 = vadd.f32 %v7065_v14, %v10043_v26  ;;  %v10162_v14 = vpop.f32.mrf.mxu0  ;;  %v4928_v27 = vadd.f32 %v10074_v49, %v4704_v57 }
 0x39f   : > { %v10151_v45 = vpop.f32.mrf.mxu1 }
 0x3a0   : > { %v10176_v52 = vpop.f32.mrf.mxu0 }
 0x3a1   : > { %v7108_v2 = vpop.f32.mrf.mxu1 }
 0x3a2   : > { %v5147_v26 = vadd.f32 %v7108_v2, %v4926_v51  ;;  %v4705_v2 = vadd.f32 %v10065_v10, %v4491_v28  ;;  %v10190_v10 = vpop.f32.mrf.mxu0 }
 0x3a3   : > { %v5018_v63 = vpop.f32.mrf.mxu1 }
 0x3a4   : > { %v5145_v34 = vadd.f32 %v5018_v63, %v4924_v30  ;;  %v5186_v48 = vadd.f32 %v10169_v23, %v5147_v26  ;;  %v4929_v49 = vadd.f32 %v10088_v15, %v4705_v2  ;;  %v4934_v2 = vadd.f32 %v10095_v8, %v10070_v25 }
 0x3a5   : > { %v7109_v17 = vpop.f32.mrf.mxu1  ;;  %v4935_v25 = vadd.f32 %v10109_v22, %v10077_v35  ;;  %v4499_v35 = vadd.f32 %v9963_v55, %v9977_v32 }
 0x3a6   : > { %v5184_v59 = vadd.f32 %v10169_v23, %v5145_v34  ;;  %v5148_v36 = vadd.f32 %v7109_v17, %v4927_v39  ;;  %v5218_v26 = vmax.f32 %v5186_v48, 0.0 }
 0x3a7   : > { %v5021_v51 = vpop.f32.mrf.mxu1 }
 0x3a8   : > { %v5216_v46 = vmax.f32 %v5184_v59, 0.0  ;;  %v5146_v40 = vadd.f32 %v5021_v51, %v4925_v16  ;;  %v5187_v6 = vadd.f32 %v10169_v23, %v5148_v36  ;;  %v4708_v59 = vadd.f32 %v10072_v9, %v4494_v54  ;;  %v10201_v9 = vpop.f32.mrf.mxu0 }
 0x3a9   : > { %v7112_v30 = vpop.f32.mrf.mxu1  ;;  %v5616_v28 = vsel %vm2687_vm5, %v5218_v26, 0.0 }
 0x3aa   : > { %v5185_v63 = vadd.f32 %v10169_v23, %v5146_v40  ;;  %7146 = vmatprep.mubr.msk.f32.mxu0 %vm2687_vm5, %v5216_v46  ;;  %v5151_v39 = vadd.f32 %v7112_v30, %v4930_v38  ;;  %v5613_v56 = vsel %vm2687_vm5, %v5216_v46, 0.0  ;;  %v5219_v57 = vmax.f32 %v5187_v6, 0.0  ;;  %v10218_v8 = vpop.f32.mrf.mxu0 }
 0x3ab   : > { %v5034_v47 = vpop.f32.mrf.mxu1  ;;  %v4709_v46 = vadd.f32 %v10079_v1, %v4495_v5  ;;  %v4498_v38 = vadd.f32 %v9954_v19, %v9968_v11 }
 0x3ac   : > { %v5217_v34 = vmax.f32 %v5185_v63, 0.0  ;;  %v5149_v17 = vadd.f32 %v5034_v47, %v4928_v27  ;;  %v5190_v15 = vadd.f32 %v10169_v23, %v5151_v39  ;;  %v5618_v60 = vsel %vm2687_vm5, %v5219_v57, 0.0 }
 0x3ad   : > { %v7113_v3 = vpop.f32.mrf.mxu1  ;;  %v4932_v63 = vadd.f32 %v10102_v31, %v4708_v59  ;;  %v4712_v31 = vadd.f32 %v10086_v61, %v4498_v38  ;;  %v4933_v19 = vadd.f32 %v10116_v24, %v4709_v46  ;;  %v10230_v61 = vpop.f32.mrf.mxu0 }
 0x3ae   : > { %v5614_v4 = vsel %vm2687_vm5, %v5217_v34, 0.0  ;;  %v5188_v20 = vadd.f32 %v10169_v23, %v5149_v17  ;;  %v5152_v36 = vadd.f32 %v7113_v3, %v4931_v37  ;;  %7147 = vmatmul.mubr.msk.f32.vlgmr.msra.gmra.mxu0 %vm2687_vm5, %v5217_v34  ;;  %v5222_v47 = vmax.f32 %v5190_v15, 0.0 }
 0x3af   : > { %v5615_v12 = vadd.f32 %v5614_v4, %v5613_v56  ;;  %v5037_v16 = vpop.f32.mrf.mxu1  ;;  %7149 = vmatprep.mubr.msk.f32.mxu0 %vm2687_vm5, %v5218_v26  ;;  %v4936_v15 = vadd.f32 %v10130_v33, %v4712_v31 }
 0x3b0   : > { %v5220_v51 = vmax.f32 %v5188_v20, 0.0  ;;  %v5150_v48 = vadd.f32 %v5037_v16, %v4929_v49  ;;  %v5191_v7 = vadd.f32 %v10169_v23, %v5152_v36  ;;  %v5624_v24 = vsel %vm2687_vm5, %v5222_v47, 0.0 }
 0x3b1   : > { %v5617_v40 = vadd.f32 %v5616_v28, %v5615_v12  ;;  %v7116_v30 = vpop.f32.mrf.mxu1  ;;  %v4713_v36 = vadd.f32 %v10093_v62, %v4499_v35  ;;  %v4938_v12 = vadd.f32 %v10123_v0, %v10084_v29  ;;  %v4939_v29 = vadd.f32 %v10137_v43, %v10091_v18  ;;  %v10246_v0 = vpop.f32.mrf.mxu0  ;;  %v10862_v18 = vld [vmem:[#allocation51_spill] sm:$0xff] }
 0x3b2   : > { %v5189_v6 = vadd.f32 %v10169_v23, %v5150_v48  ;;  %7150 = vmatmul.mubr.msk.f32.gmra.mxu0 %vm2687_vm5, %v5219_v57  ;;  %v5155_v1 = vadd.f32 %v7116_v30, %v4934_v2  ;;  %v5620_v37 = vsel %vm2687_vm5, %v5220_v51, 0.0  ;;  %v5223_v11 = vmax.f32 %v5191_v7, 0.0  ;;  %v10866_v35 = vld [vmem:[#allocation3_spill] sm:$0xff] }
 0x3b3   : > { %v5619_v27 = vadd.f32 %v5618_v60, %v5617_v40  ;;  %v5050_v54 = vpop.f32.mrf.mxu1  ;;  %7152 = vmatprep.mubr.msk.f32.mxu0 %vm2687_vm5, %v5220_v51  ;;  %v4502_v51 = vadd.f32 %v9972_v53, %v9985_v42  ;;  %v4937_v53 = vadd.f32 %v10146_v13, %v4713_v36  ;;  %v4503_v43 = vadd.f32 %v10862_v18, %v9993_v41 }
 0x3b4   : > { %v5221_v26 = vmax.f32 %v5189_v6, 0.0  ;;  %v5153_v34 = vadd.f32 %v5050_v54, %v4932_v63  ;;  %v5194_v49 = vadd.f32 %v10169_v23, %v5155_v1  ;;  %v5626_v55 = vsel %vm2687_vm5, %v5223_v11, 0.0 }
 0x3b5   : > { %v5621_v39 = vadd.f32 %v5620_v37, %v5619_v27  ;;  %v7117_v17 = vpop.f32.mrf.mxu1  ;;  %v4716_v33 = vadd.f32 %v10100_v21, %v4502_v51  ;;  %v10257_v21 = vpop.f32.mrf.mxu0 }
 0x3b6   : > { %v5622_v59 = vsel %vm2687_vm5, %v5221_v26, 0.0  ;;  %v5192_v56 = vadd.f32 %v10169_v23, %v5153_v34  ;;  %v5156_v3 = vadd.f32 %v7117_v17, %v4935_v25  ;;  %7153 = vmatmul.mubr.msk.f32.gmra.mxu0 %vm2687_vm5, %v5221_v26  ;;  %v5226_v48 = vmax.f32 %v5194_v49, 0.0  ;;  %v10863_v26 = vld [vmem:[#allocation58_spill] sm:$0xff] }
 0x3b7   : > { %v5623_v22 = vadd.f32 %v5622_v59, %v5621_v39  ;;  %v5053_v57 = vpop.f32.mrf.mxu1  ;;  %7155 = vmatprep.mubr.msk.f32.mxu0 %vm2687_vm5, %v5222_v47  ;;  %v4717_v34 = vadd.f32 %v10863_v26, %v4503_v43  ;;  %v10864_v39 = vld [vmem:[#allocation54_spill] sm:$0xff] }
 0x3b8   : > { %v5224_v4 = vmax.f32 %v5192_v56, 0.0  ;;  %v5154_v20 = vadd.f32 %v5053_v57, %v4933_v19  ;;  %v5195_v32 = vadd.f32 %v10169_v23, %v5156_v3  ;;  %v5632_v25 = vsel %vm2687_vm5, %v5226_v48, 0.0  ;;  %v10865_v3 = vld [vmem:[#allocation9_spill] sm:$0xff] }
 0x3b9   : > { %v5625_v5 = vadd.f32 %v5624_v24, %v5623_v22  ;;  %v7120_v16 = vpop.f32.mrf.mxu1  ;;  %v4942_v17 = vadd.f32 %v10155_v50, %v10864_v39  ;;  %v4940_v56 = vadd.f32 %v10162_v14, %v4716_v33  ;;  %v4506_v22 = vadd.f32 %v10866_v35, %v10865_v3  ;;  %v10867_v50 = vld [vmem:[#allocation56_spill] sm:$0xff] }
 0x3ba   : > { %v5193_v28 = vadd.f32 %v10169_v23, %v5154_v20  ;;  %7156 = vmatmul.mubr.msk.f32.gmra.mxu0 %vm2687_vm5, %v5223_v11  ;;  %v5628_v40 = vsel %vm2687_vm5, %v5224_v4, 0.0  ;;  %v5159_v30 = vadd.f32 %v7120_v16, %v4938_v12  ;;  %v5227_v42 = vmax.f32 %v5195_v32, 0.0  ;;  %v10274_v20 = vpop.f32.mrf.mxu0 }
 0x3bb   : > { %v5627_v62 = vadd.f32 %v5626_v55, %v5625_v5  ;;  %v5066_v46 = vpop.f32.mrf.mxu1  ;;  %7158 = vmatprep.mubr.msk.f32.mxu0 %vm2687_vm5, %v5224_v4  ;;  %v4943_v4 = vadd.f32 %v10176_v52, %v10867_v50  ;;  %v10868_v55 = vld [vmem:[#allocation61_spill] sm:$0xff]  ;;  %v10869_v52 = vld [vmem:[#allocation12_spill] sm:$0xff] }
 0x3bc   : > { %v5225_v2 = vmax.f32 %v5193_v28, 0.0  ;;  %v5157_v60 = vadd.f32 %v5066_v46, %v4936_v15  ;;  %v5198_v13 = vadd.f32 %v10169_v23, %v5159_v30  ;;  %v5634_v41 = vsel %vm2687_vm5, %v5227_v42, 0.0  ;;  %v7097_v33 = vpop.f32.mrf.mxu0 }
 0x3bd   : > { %v5629_v7 = vadd.f32 %v5628_v40, %v5627_v62  ;;  %v7121_v6 = vpop.f32.mrf.mxu1  ;;  %v4720_v14 = vadd.f32 %v10868_v55, %v4506_v22  ;;  %v4941_v15 = vadd.f32 %v10190_v10, %v4717_v34 }
 0x3be   : > { %v5630_v63 = vsel %vm2687_vm5, %v5225_v2, 0.0  ;;  %v5196_v38 = vadd.f32 %v10169_v23, %v5157_v60  ;;  %v5160_v27 = vadd.f32 %v7121_v6, %v4939_v29  ;;  %7159 = vmatmul.mubr.msk.f32.gmra.mxu0 %vm2687_vm5, %v5225_v2  ;;  %v5230_v36 = vmax.f32 %v5198_v13, 0.0  ;;  %v10870_v29 = vld [vmem:[#allocation53_spill] sm:$0xff]  ;;  %v10873_v13 = vld [vmem:[#allocation44_spill] sm:$0xff] }
 0x3bf   : > { %v5631_v1 = vadd.f32 %v5630_v63, %v5629_v7  ;;  %v5069_v54 = vpop.f32.mrf.mxu1  ;;  %7161 = vmatprep.mubr.msk.f32.mxu0 %vm2687_vm5, %v5226_v48  ;;  %v4507_v40 = vadd.f32 %v10870_v29, %v10869_v52 }
 0x3c0   : > { %v5228_v47 = vmax.f32 %v5196_v38, 0.0  ;;  %v5158_v37 = vadd.f32 %v5069_v54, %v4937_v53  ;;  %v5199_v11 = vadd.f32 %v10169_v23, %v5160_v27  ;;  %v5640_v10 = vsel %vm2687_vm5, %v5230_v36, 0.0  ;;  %v10871_v53 = vld [vmem:[#allocation10_spill] sm:$0xff]  ;;  %v10872_v38 = vld [vmem:[#allocation17_spill] sm:$0xff] }
 0x3c1   : > { %v5633_v31 = vadd.f32 %v5632_v25, %v5631_v1  ;;  %v7124_v19 = vpop.f32.mrf.mxu1  ;;  %v4946_v27 = vadd.f32 %v10201_v9, %v10872_v38  ;;  %v4944_v25 = vadd.f32 %v10218_v8, %v4720_v14  ;;  %v10875_v9 = vld [vmem:[#allocation7_spill] sm:$0xff] }
 0x3c2   : > { %v5197_v59 = vadd.f32 %v10169_v23, %v5158_v37  ;;  %7162 = vmatmul.mubr.msk.f32.gmra.mxu0 %vm2687_vm5, %v5227_v42  ;;  %v5163_v57 = vadd.f32 %v7124_v19, %v4942_v17  ;;  %v5636_v5 = vsel %vm2687_vm5, %v5228_v47, 0.0  ;;  %v5231_v51 = vmax.f32 %v5199_v11, 0.0  ;;  %v4896_v17 = vpop.f32.mrf.mxu0 }
 0x3c3   : > { %v5635_v49 = vadd.f32 %v5634_v41, %v5633_v31  ;;  %v5082_v24 = vpop.f32.mrf.mxu1  ;;  %7164 = vmatprep.mubr.msk.f32.mxu0 %vm2687_vm5, %v5228_v47  ;;  %v4721_v42 = vadd.f32 %v10871_v53, %v4507_v40  ;;  %v10874_v47 = vld [vmem:[#allocation55_spill] sm:$0xff]  ;;  %v4947_v39 = vadd.f32 %v10230_v61, %v10875_v9  ;;  %v10877_v61 = vld [vmem:[#allocation48_spill] sm:$0xff] }
 0x3c4   : > { %v5229_v12 = vmax.f32 %v5197_v59, 0.0  ;;  %v5161_v16 = vadd.f32 %v5082_v24, %v4940_v56  ;;  %v5202_v30 = vadd.f32 %v10169_v23, %v5163_v57  ;;  %v5642_v43 = vsel %vm2687_vm5, %v5231_v51, 0.0  ;;  %v10876_v56 = vld [vmem:[#allocation21_spill] sm:$0xff] }
 0x3c5   : > { %v5637_v32 = vadd.f32 %v5636_v5, %v5635_v49  ;;  %v7125_v28 = vpop.f32.mrf.mxu1  ;;  %v4510_v37 = vadd.f32 %v10874_v47, %v10873_v13  ;;  %v4945_v22 = vadd.f32 %v10246_v0, %v4721_v42  ;;  %v7100_v49 = vpop.f32.mrf.mxu0 }
 0x3c6   : > { %v5638_v48 = vsel %vm2687_vm5, %v5229_v12, 0.0  ;;  %v5200_v62 = vadd.f32 %v10169_v23, %v5161_v16  ;;  %v5164_v46 = vadd.f32 %v7125_v28, %v4943_v4  ;;  %7165 = vmatmul.mubr.msk.f32.gmra.mxu0 %vm2687_vm5, %v5229_v12  ;;  %v5234_v26 = vmax.f32 %v5202_v30, 0.0  ;;  %v10879_v28 = vld [vmem:[#allocation60_spill] sm:$0xff] }
 0x3c7   : > { %v5639_v2 = vadd.f32 %v5638_v48, %v5637_v32  ;;  %v5085_v60 = vpop.f32.mrf.mxu1  ;;  %7167 = vmatprep.mubr.msk.f32.mxu0 %vm2687_vm5, %v5230_v36  ;;  %v4724_v3 = vadd.f32 %v10876_v56, %v4510_v37  ;;  %v10878_v36 = vld [vmem:[#allocation57_spill] sm:$0xff]  ;;  %v10880_v48 = vld [vmem:[#allocation20_spill] sm:$0xff]  ;;  %v4909_v52 = vpop.f32.mrf.mxu0 }
 0x3c8   : > { %v5232_v7 = vmax.f32 %v5200_v62, 0.0  ;;  %v5162_v6 = vadd.f32 %v5085_v60, %v4941_v15  ;;  %v5203_v1 = vadd.f32 %v10169_v23, %v5164_v46  ;;  %v4511_v5 = vadd.f32 %v10878_v36, %v10877_v61  ;;  %v10881_v60 = vld [vmem:[#allocation59_spill] sm:$0xff] }
 0x3c9   : > { %v5641_v63 = vadd.f32 %v5640_v10, %v5639_v2  ;;  %v7128_v18 = vpop.f32.mrf.mxu1  ;;  %v5648_v55 = vsel %vm2687_vm5, %v5234_v26, 0.0  ;;  %v4950_v62 = vadd.f32 %v10257_v21, %v10880_v48  ;;  %v4948_v30 = vadd.f32 %v10274_v20, %v4724_v3  ;;  %v10882_v10 = vld [vmem:[#allocation46_spill] sm:$0xff]  ;;  %v7101_v13 = vpop.f32.mrf.mxu0 }
 0x3ca   : > { %v5201_v54 = vadd.f32 %v10169_v23, %v5162_v6  ;;  %7168 = vmatmul.mubr.msk.f32.gmra.mxu0 %vm2687_vm5, %v5231_v51  ;;  %v5644_v19 = vsel %vm2687_vm5, %v5232_v7, 0.0  ;;  %v5167_v11 = vadd.f32 %v7128_v18, %v4946_v27  ;;  %v5235_v57 = vmax.f32 %v5203_v1, 0.0  ;;  %v10883_v21 = vld [vmem:[#allocation22_spill] sm:$0xff] }
 0x3cb   : > { %v5643_v34 = vadd.f32 %v5642_v43, %v5641_v63  ;;  %v5098_v31 = vpop.f32.mrf.mxu1  ;;  %7170 = vmatprep.mubr.msk.f32.mxu0 %vm2687_vm5, %v5232_v7  ;;  %v4725_v15 = vadd.f32 %v10879_v28, %v4511_v5  ;;  %v4514_v7 = vadd.f32 %v10882_v10, %v10881_v60  ;;  %v4951_v63 = vadd.f32 %v7097_v33, %v10883_v21  ;;  %v10884_v33 = vld [vmem:[#allocation52_spill] sm:$0xff] }
 0x3cc   : > { %v5233_v41 = vmax.f32 %v5201_v54, 0.0  ;;  %v5165_v59 = vadd.f32 %v5098_v31, %v4944_v25  ;;  %v5206_v0 = vadd.f32 %v10169_v23, %v5167_v11  ;;  %v5650_v29 = vsel %vm2687_vm5, %v5235_v57, 0.0  ;;  %v10885_v31 = vld [vmem:[#allocation50_spill] sm:$0xff] }
 0x3cd   : > { %v5645_v8 = vadd.f32 %v5644_v19, %v5643_v34  ;;  %v7129_v35 = vpop.f32.mrf.mxu1  ;;  %v4728_v1 = vadd.f32 %v10142_v58, %v4514_v7  ;;  %v4949_v20 = vadd.f32 %v4896_v17, %v4725_v15  ;;  %v4515_v9 = vadd.f32 %v10885_v31, %v10884_v33 }
 0x3ce   : > { %v5646_v24 = vsel %vm2687_vm5, %v5233_v41, 0.0  ;;  %v5204_v50 = vadd.f32 %v10169_v23, %v5165_v59  ;;  %v5168_v4 = vadd.f32 %v7129_v35, %v4947_v39  ;;  %7171 = vmatmul.mubr.msk.f32.gmra.mxu0 %vm2687_vm5, %v5233_v41  ;;  %v5238_v38 = vmax.f32 %v5206_v0, 0.0  ;;  %v10886_v59 = vld [vmem:[#allocation62_spill] sm:$0xff] }
 0x3cf   : > { %v5647_v12 = vadd.f32 %v5646_v24, %v5645_v8  ;;  %v5101_v16 = vpop.f32.mrf.mxu1  ;;  %7173 = vmatprep.mubr.msk.f32.mxu0 %vm2687_vm5, %v5234_v26  ;;  %v4954_v56 = vadd.f32 %v7100_v49, %v10886_v59  ;;  %v4729_v3 = vadd.f32 %v10151_v45, %v4515_v9  ;;  %v4955_v61 = vadd.f32 %v7101_v13, %v10149_v44 }
 0x3d0   : > { %v5236_v14 = vmax.f32 %v5204_v50, 0.0  ;;  %v5166_v32 = vadd.f32 %v5101_v16, %v4945_v22  ;;  %v5207_v40 = vadd.f32 %v10169_v23, %v5168_v4  ;;  %v5656_v58 = vsel %vm2687_vm5, %v5238_v38, 0.0 }
 0x3d1   : > { %v5649_v51 = vadd.f32 %v5648_v55, %v5647_v12  ;;  %v7132_v46 = vpop.f32.mrf.mxu1  ;;  %v4952_v22 = vadd.f32 %v4909_v52, %v4728_v1 }
 0x3d2   : > { %v5205_v2 = vadd.f32 %v10169_v23, %v5166_v32  ;;  %7174 = vmatmul.mubr.msk.f32.gmra.mxu0 %vm2687_vm5, %v5235_v57  ;;  %v5171_v53 = vadd.f32 %v7132_v46, %v4950_v62  ;;  %v5652_v27 = vsel %vm2687_vm5, %v5236_v14, 0.0  ;;  %v5239_v47 = vmax.f32 %v5207_v40, 0.0  ;;  %v4912_v57 = vpop.f32.mrf.mxu0 }
 0x3d3   : > { %v5651_v6 = vadd.f32 %v5650_v29, %v5649_v51  ;;  %v5114_v42 = vpop.f32.mrf.mxu1  ;;  %7176 = vmatprep.mubr.msk.f32.mxu0 %vm2687_vm5, %v5236_v14  ;;  %v4953_v0 = vadd.f32 %v4912_v57, %v4729_v3 }
 0x3d4   : > { %v5237_v18 = vmax.f32 %v5205_v2, 0.0  ;;  %v5169_v43 = vadd.f32 %v5114_v42, %v4948_v30  ;;  %v5210_v19 = vadd.f32 %v10169_v23, %v5171_v53  ;;  %v5658_v24 = vsel %vm2687_vm5, %v5239_v47, 0.0 }
 0x3d5   : > { %v5653_v54 = vadd.f32 %v5652_v27, %v5651_v6  ;;  %v7133_v25 = vpop.f32.mrf.mxu1 }
 0x3d6   : > { %v5654_v37 = vsel %vm2687_vm5, %v5237_v18, 0.0  ;;  %v5208_v26 = vadd.f32 %v10169_v23, %v5169_v43  ;;  %v5172_v34 = vadd.f32 %v7133_v25, %v4951_v63  ;;  %7177 = vmatmul.mubr.msk.f32.gmra.mxu0 %vm2687_vm5, %v5237_v18  ;;  %v5242_v36 = vmax.f32 %v5210_v19, 0.0 }
 0x3d7   : > { %v5655_v39 = vadd.f32 %v5654_v37, %v5653_v54  ;;  %v5117_v41 = vpop.f32.mrf.mxu1  ;;  %7179 = vmatprep.mubr.msk.f32.mxu0 %vm2687_vm5, %v5238_v38 }
 0x3d8   : > { %v5240_v17 = vmax.f32 %v5208_v26, 0.0  ;;  %v5170_v11 = vadd.f32 %v5117_v41, %v4949_v20  ;;  %v5211_v50 = vadd.f32 %v10169_v23, %v5172_v34  ;;  %v5664_v44 = vsel %vm2687_vm5, %v5242_v36, 0.0  ;;  %v10368_v34 = vld [vmem:[%s10480_s6] ss:$0 sm:$0xff] }
 0x3d9   : > { %v5657_v8 = vadd.f32 %v5656_v58, %v5655_v39  ;;  %v7136_v35 = vpop.f32.mrf.mxu1 }
 0x3da   : > { %v5209_v4 = vadd.f32 %v10169_v23, %v5170_v11  ;;  %7180 = vmatmul.mubr.msk.f32.gmra.mxu0 %vm2687_vm5, %v5239_v47  ;;  %v5660_v45 = vsel %vm2687_vm5, %v5240_v17, 0.0  ;;  %v5175_v16 = vadd.f32 %v7136_v35, %v4954_v56  ;;  %v5243_v28 = vmax.f32 %v5211_v50, 0.0 }
 0x3db   : > { %v5659_v5 = vadd.f32 %v5658_v24, %v5657_v8  ;;  %v5130_v12 = vpop.f32.mrf.mxu1  ;;  %7182 = vmatprep.mubr.msk.f32.mxu0 %vm2687_vm5, %v5240_v17 }
 0x3dc   : > { %v5241_v49 = vmax.f32 %v5209_v4, 0.0  ;;  %v5173_v55 = vadd.f32 %v5130_v12, %v4952_v22  ;;  %v5214_v52 = vadd.f32 %v10169_v23, %v5175_v16  ;;  %v5666_v60 = vsel %vm2687_vm5, %v5243_v28, 0.0 }
 0x3dd   : > { %v5661_v14 = vadd.f32 %v5660_v45, %v5659_v5  ;;  %v7137_v32 = vpop.f32.mrf.mxu1 }
 0x3de   : > { %v5662_v15 = vsel %vm2687_vm5, %v5241_v49, 0.0  ;;  %v5212_v51 = vadd.f32 %v10169_v23, %v5173_v55  ;;  %v5176_v48 = vadd.f32 %v7137_v32, %v4955_v61  ;;  %7183 = vmatmul.mubr.msk.f32.gmra.mxu0 %vm2687_vm5, %v5241_v49  ;;  %v5246_v6 = vmax.f32 %v5214_v52, 0.0 }
 0x3df   : > { %v5663_v62 = vadd.f32 %v5662_v15, %v5661_v14  ;;  %v5133_v46 = vpop.f32.mrf.mxu1  ;;  %7185 = vmatprep.mubr.msk.f32.mxu0 %vm2687_vm5, %v5242_v36 }
 0x3e0   : > { %v5244_v29 = vmax.f32 %v5212_v51, 0.0  ;;  %v5215_v40 = vadd.f32 %v10169_v23, %v5176_v48  ;;  %v5174_v2 = vadd.f32 %v5133_v46, %v4953_v0 }
 0x3e1   : > { %v5665_v30 = vadd.f32 %v5664_v44, %v5663_v62 }
 0x3e2   : > { %v5213_v10 = vadd.f32 %v10169_v23, %v5174_v2  ;;  %7186 = vmatmul.mubr.msk.f32.gmra.mxu0 %vm2687_vm5, %v5243_v28  ;;  %v5668_v53 = vsel %vm2687_vm5, %v5244_v29, 0.0  ;;  %v5247_v63 = vmax.f32 %v5215_v40, 0.0  ;;  %v5672_v23 = vsel %vm2687_vm5, %v5246_v6, 0.0 }
 0x3e3   : > { %v5667_v7 = vadd.f32 %v5666_v60, %v5665_v30  ;;  %7188 = vmatprep.mubr.msk.f32.mxu0 %vm2687_vm5, %v5244_v29 }
 0x3e4   : > { %v5245_v42 = vmax.f32 %v5213_v10, 0.0  ;;  %v5674_v43 = vsel %vm2687_vm5, %v5247_v63, 0.0 }
 0x3e5   : > { %v5669_v21 = vadd.f32 %v5668_v53, %v5667_v7 }
 0x3e6   : > { %v5670_v38 = vsel %vm2687_vm5, %v5245_v42, 0.0  ;;  %7189 = vmatmul.mubr.msk.f32.gmra.mxu0 %vm2687_vm5, %v5245_v42 }
 0x3e7   : > { %v5671_v27 = vadd.f32 %v5670_v38, %v5669_v21  ;;  %7191 = vmatprep.mubr.msk.f32.mxu0 %vm2687_vm5, %v5246_v6 }
 0x3e9   : > { %v5673_v18 = vadd.f32 %v5672_v23, %v5671_v27 }
 0x3ea   : > { %7192 = vmatmul.mubr.msk.f32.gmra.mxu0 %vm2687_vm5, %v5247_v63 }
 0x3eb   : > { %v5675_v1 = vadd.f32 %v5674_v43, %v5673_v18 }
 0x3ed   : > { %v5676_v54 = vrot.slane %v5675_v1, 4 }
 0x3ef   : > { %v5677_v25 = vadd.f32 %v5676_v54, %v5675_v1 }
 0x3f1   : > { %v5678_v20 = vrot.slane %v5677_v25, 2 }
 0x3f3   : > { %v5679_v13 = vadd.f32 %v5678_v20, %v5677_v25 }
 0x3f5   : > { %v5680_v47 = vrot.slane %v5679_v13, 1 }
 0x3f7   : > { %v5681_v37 = vadd.f32 %v5680_v47, %v5679_v13 }
 0x3f9   : > { %v5682_v26 = vmul.f32 0.00390625, %v5681_v37 }
 0x3fb   : > { %5684 = vst.msk [vmem:[%s314_s19] sm:$0x1] %vm5683_vm7, %v5682_v26 }
 0x46e   : > { %v7148_v33 = vpop.f32.mrf.mxu0 }
 0x46f   : > { %v5427_v31 = vadd.f32 %v7148_v33, %v10368_v34 }
 0x470   : > { %v5421_v9 = vpop.f32.mrf.mxu0 }
 0x471   : > { %5582 = vst.msk [vmem:[%s10373_s25 + $0x8] sm:$0xff] %vm5580_vm8, %v5427_v31  ;;  %v5422_v39 = vadd.f32 %v10368_v34, %v5421_v9 }
 0x472   : > { %v7151_v19 = vpop.f32.mrf.mxu0 }
 0x473   : > { %5581 = vst.msk [vmem:[%s10373_s25] sm:$0xff] %vm5580_vm8, %v5422_v39  ;;  %v5437_v41 = vadd.f32 %v7151_v19, %v10368_v34 }
 0x474   : > { %v5431_v58 = vpop.f32.mrf.mxu0 }
 0x475   : > { %5584 = vst.msk [vmem:[%s10373_s25 + $0x18] sm:$0xff] %vm5580_vm8, %v5437_v41  ;;  %v5432_v17 = vadd.f32 %v10368_v34, %v5431_v58 }
 0x476   : > { %v7154_v11 = vpop.f32.mrf.mxu0 }
 0x477   : > { %5583 = vst.msk [vmem:[%s10373_s25 + $0x10] sm:$0xff] %vm5580_vm8, %v5432_v17  ;;  %v5447_v59 = vadd.f32 %v7154_v11, %v10368_v34 }
 0x478   : > { %v5441_v56 = vpop.f32.mrf.mxu0 }
 0x479   : > { %5586 = vst.msk [vmem:[%s10373_s25 + $0x28] sm:$0xff] %vm5580_vm8, %v5447_v59  ;;  %v5442_v3 = vadd.f32 %v10368_v34, %v5441_v56 }
 0x47a   : > { %v7157_v8 = vpop.f32.mrf.mxu0 }
 0x47b   : > { %5585 = vst.msk [vmem:[%s10373_s25 + $0x20] sm:$0xff] %vm5580_vm8, %v5442_v3  ;;  %v5457_v35 = vadd.f32 %v7157_v8, %v10368_v34 }
 0x47c   : > { %v5451_v22 = vpop.f32.mrf.mxu0 }
 0x47d   : > { %5588 = vst.msk [vmem:[%s10373_s25 + $0x38] sm:$0xff] %vm5580_vm8, %v5457_v35  ;;  %v5452_v57 = vadd.f32 %v10368_v34, %v5451_v22 }
 0x47e   : > { %v7160_v24 = vpop.f32.mrf.mxu0 }
 0x47f   : > { %5587 = vst.msk [vmem:[%s10373_s25 + $0x30] sm:$0xff] %vm5580_vm8, %v5452_v57  ;;  %v5467_v50 = vadd.f32 %v7160_v24, %v10368_v34 }
 0x480   : > { %v5461_v4 = vpop.f32.mrf.mxu0 }
 0x481   : > { %5590 = vst.msk [vmem:[%s10373_s25 + $0x48] sm:$0xff] %vm5580_vm8, %v5467_v50  ;;  %v5462_v61 = vadd.f32 %v10368_v34, %v5461_v4 }
 0x482   : > { %v7163_v36 = vpop.f32.mrf.mxu0 }
 0x483   : > { %5589 = vst.msk [vmem:[%s10373_s25 + $0x40] sm:$0xff] %vm5580_vm8, %v5462_v61  ;;  %v5477_v5 = vadd.f32 %v7163_v36, %v10368_v34 }
 0x484   : > { %v5471_v12 = vpop.f32.mrf.mxu0 }
 0x485   : > { %5592 = vst.msk [vmem:[%s10373_s25 + $0x58] sm:$0xff] %vm5580_vm8, %v5477_v5  ;;  %v5472_v45 = vadd.f32 %v10368_v34, %v5471_v12 }
 0x486   : > { %v7166_v49 = vpop.f32.mrf.mxu0 }
 0x487   : > { %5591 = vst.msk [vmem:[%s10373_s25 + $0x50] sm:$0xff] %vm5580_vm8, %v5472_v45  ;;  %v5487_v16 = vadd.f32 %v7166_v49, %v10368_v34 }
 0x488   : > { %v5481_v55 = vpop.f32.mrf.mxu0 }
 0x489   : > { %5594 = vst.msk [vmem:[%s10373_s25 + $0x68] sm:$0xff] %vm5580_vm8, %v5487_v16  ;;  %v5482_v0 = vadd.f32 %v10368_v34, %v5481_v55 }
 0x48a   : > { %v7169_v14 = vpop.f32.mrf.mxu0 }
 0x48b   : > { %5593 = vst.msk [vmem:[%s10373_s25 + $0x60] sm:$0xff] %vm5580_vm8, %v5482_v0  ;;  %v5497_v32 = vadd.f32 %v7169_v14, %v10368_v34 }
 0x48c   : > { %v5491_v28 = vpop.f32.mrf.mxu0 }
 0x48d   : > { %5596 = vst.msk [vmem:[%s10373_s25 + $0x78] sm:$0xff] %vm5580_vm8, %v5497_v32  ;;  %v5492_v15 = vadd.f32 %v10368_v34, %v5491_v28 }
 0x48e   : > { %v7172_v51 = vpop.f32.mrf.mxu0 }
 0x48f   : > { %5595 = vst.msk [vmem:[%s10373_s25 + $0x70] sm:$0xff] %vm5580_vm8, %v5492_v15  ;;  %v5507_v48 = vadd.f32 %v7172_v51, %v10368_v34 }
 0x490   : > { %v5501_v44 = vpop.f32.mrf.mxu0 }
 0x491   : > { %5598 = vst.msk [vmem:[%s10373_s25 + $0x88] sm:$0xff] %vm5580_vm8, %v5507_v48  ;;  %v5502_v62 = vadd.f32 %v10368_v34, %v5501_v44 }
 0x492   : > { %v7175_v46 = vpop.f32.mrf.mxu0 }
 0x493   : > { %5597 = vst.msk [vmem:[%s10373_s25 + $0x80] sm:$0xff] %vm5580_vm8, %v5502_v62  ;;  %v5517_v52 = vadd.f32 %v7175_v46, %v10368_v34 }
 0x494   : > { %v5511_v29 = vpop.f32.mrf.mxu0 }
 0x495   : > { %5600 = vst.msk [vmem:[%s10373_s25 + $0x98] sm:$0xff] %vm5580_vm8, %v5517_v52  ;;  %v5512_v40 = vadd.f32 %v10368_v34, %v5511_v29 }
 0x496   : > { %v7178_v2 = vpop.f32.mrf.mxu0 }
 0x497   : > { %5599 = vst.msk [vmem:[%s10373_s25 + $0x90] sm:$0xff] %vm5580_vm8, %v5512_v40  ;;  %v5527_v30 = vadd.f32 %v7178_v2, %v10368_v34 }
 0x498   : > { %v5521_v60 = vpop.f32.mrf.mxu0 }
 0x499   : > { %5602 = vst.msk [vmem:[%s10373_s25 + $0xa8] sm:$0xff] %vm5580_vm8, %v5527_v30  ;;  %v5522_v10 = vadd.f32 %v10368_v34, %v5521_v60 }
 0x49a   : > { %v7181_v7 = vpop.f32.mrf.mxu0 }
 0x49b   : > { %5601 = vst.msk [vmem:[%s10373_s25 + $0xa0] sm:$0xff] %vm5580_vm8, %v5522_v10  ;;  %v5537_v6 = vadd.f32 %v7181_v7, %v10368_v34 }
 0x49c   : > { %v5531_v53 = vpop.f32.mrf.mxu0 }
 0x49d   : > { %5604 = vst.msk [vmem:[%s10373_s25 + $0xb8] sm:$0xff] %vm5580_vm8, %v5537_v6  ;;  %v5532_v42 = vadd.f32 %v10368_v34, %v5531_v53 }
 0x49e   : > { %v7184_v21 = vpop.f32.mrf.mxu0 }
 0x49f   : > { %5603 = vst.msk [vmem:[%s10373_s25 + $0xb0] sm:$0xff] %vm5580_vm8, %v5532_v42  ;;  %v5547_v63 = vadd.f32 %v7184_v21, %v10368_v34 }
 0x4a0   : > { %v5541_v38 = vpop.f32.mrf.mxu0 }
 0x4a1   : > { %5606 = vst.msk [vmem:[%s10373_s25 + $0xc8] sm:$0xff] %vm5580_vm8, %v5547_v63  ;;  %v5542_v27 = vadd.f32 %v10368_v34, %v5541_v38 }
 0x4a2   : > { %v7187_v23 = vpop.f32.mrf.mxu0 }
 0x4a3   : > { %5605 = vst.msk [vmem:[%s10373_s25 + $0xc0] sm:$0xff] %vm5580_vm8, %v5542_v27  ;;  %v5557_v18 = vadd.f32 %v7187_v23, %v10368_v34 }
 0x4a4   : > { %v5551_v43 = vpop.f32.mrf.mxu0 }
 0x4a5   : > { %5608 = vst.msk [vmem:[%s10373_s25 + $0xd8] sm:$0xff] %vm5580_vm8, %v5557_v18  ;;  %v5552_v1 = vadd.f32 %v10368_v34, %v5551_v43 }
 0x4a6   : > { %v7190_v54 = vpop.f32.mrf.mxu0 }
 0x4a7   : > { %5607 = vst.msk [vmem:[%s10373_s25 + $0xd0] sm:$0xff] %vm5580_vm8, %v5552_v1  ;;  %v5567_v25 = vadd.f32 %v7190_v54, %v10368_v34 }
 0x4a8   : > { %v5561_v20 = vpop.f32.mrf.mxu0 }
 0x4a9   : > { %5610 = vst.msk [vmem:[%s10373_s25 + $0xe8] sm:$0xff] %vm5580_vm8, %v5567_v25  ;;  %v5562_v13 = vadd.f32 %v10368_v34, %v5561_v20 }
 0x4aa   : > { %v7193_v47 = vpop.f32.mrf.mxu0 }
 0x4ab   : > { %5609 = vst.msk [vmem:[%s10373_s25 + $0xe0] sm:$0xff] %vm5580_vm8, %v5562_v13  ;;  %v5577_v37 = vadd.f32 %v7193_v47, %v10368_v34 }
 0x4ac   : > { %v5571_v26 = vpop.f32.mrf.mxu0 }
 0x4ad   : > { %5612 = vst.msk [vmem:[%s10373_s25 + $0xf8] sm:$0xff] %vm5580_vm8, %v5577_v37  ;;  %v5572_v33 = vadd.f32 %v10368_v34, %v5571_v26 }
 0x4af   : > { %5611 = vst.msk [vmem:[%s10373_s25 + $0xf0] sm:$0xff] %vm5580_vm8, %v5572_v33 }
 0x4b0 PF: > { %s19_s27 = sadd.s32 1, %s7231_s27  }
 0x4b1   : > { %p16_p4 = scmp.ge.s32.totalorder %s19_s27, 4  }
 0x4b3   :  { %18 = sbr.rel (!%p16_p4) target bundleno = 1 (0x1), region = 107 }

</bundles_post_ra>
